<compile_context>
chip_gen: v6e
topology: v6e:2x2x1
jax: 0.10.0
libtpu: 0.0.40
codegen_flags: <defaults>
</compile_context>

<pallas_src>
import numpy as np
import jax
import jax.numpy as jnp
from jax import lax
from jax.experimental import pallas as pl
from jax.experimental.pallas import tpu as pltpu

HIDDEN = 128          # hidden_size in the PyTorch module
NEG = -1e30           # large finite mask sentinel (avoids inf-inf -> NaN)


def _round_up(x, m):
    return (x + m - 1) // m * m


def _make_decoder_kernel(seq_len, b_blk, s_pad):
    H = HIDDEN
    B = b_blk

    def kernel(enc_h_ref, emb_wT_ref, emb_b_ref, w_f_ref,
               b_rz_ref, b_in_ref, b_hn_ref, out_wT_ref, out_b_ref,
               tours_ref, logp_ref):
        # ---- loop-invariant constants / broadcasts (hoisted; JAX won't CSE) ----
        iota_row = lax.broadcasted_iota(jnp.int32, (1, s_pad), 1)
        eye_b = (lax.broadcasted_iota(jnp.int32, (B, B), 0)
                 == lax.broadcasted_iota(jnp.int32, (B, B), 1)).astype(jnp.float32)
        emb_w = jnp.broadcast_to(emb_wT_ref[...], (B, H))
        emb_bias = jnp.broadcast_to(emb_b_ref[...], (B, H))
        b_rz = jnp.broadcast_to(b_rz_ref[...], (B, 2 * H))
        b_in = jnp.broadcast_to(b_in_ref[...], (B, H))
        b_hn = jnp.broadcast_to(b_hn_ref[...], (B, H))
        out_b = jnp.broadcast_to(out_b_ref[...], (B, s_pad))

        # ---- forward_step: embedding -> relu -> GRU(1 step) -> out linear ----
        def forward_step(dec_in, h):
            emb = jnp.maximum(dec_in * emb_w + emb_bias, 0.0)                  # (B, H)
            # single fused gate matmul: [emb|h] @ W_f -> [ (gx+gh)_rz | gx_n | gh_n ]
            xh = jnp.concatenate([emb, h], axis=-1)                            # (B, 2H)
            g = jnp.dot(xh, w_f_ref[...], preferred_element_type=jnp.float32)  # (B, 4H)
            rz = jax.nn.sigmoid(g[:, :2 * H] + b_rz)
            r = rz[:, :H]
            z = rz[:, H:]
            n = jnp.tanh(g[:, 2 * H:3 * H] + b_in + r * (g[:, 3 * H:] + b_hn))
            h_new = (1.0 - z) * n + z * h
            logits = (jnp.dot(h_new, out_wT_ref[...],
                              preferred_element_type=jnp.float32) + out_b)     # (B, S_pad)
            return logits, h_new

        def greedy_next_input(logits):
            # decoder_input for the next step = argmax of the UNMASKED logits
            mx = jnp.max(logits, axis=-1, keepdims=True)
            idx = jnp.min(jnp.where(logits == mx, iota_row, s_pad),
                          axis=-1, keepdims=True)
            return idx.astype(jnp.float32)                                     # (B, 1)

        def select_and_store(i, logits, mask_bias):
            # apply_mask_to_logits (additive -1e30 bias) + argmax + log_softmax gather
            masked = logits + mask_bias
            max_m = jnp.max(masked, axis=-1, keepdims=True)
            chosen = jnp.min(jnp.where(masked == max_m, iota_row, s_pad),
                             axis=-1, keepdims=True)                           # (B,1) i32
            chosen_f = chosen.astype(jnp.float32)
            # chosen is exactly the argmax so masked[chosen] - max_m == 0.
            logp = -jnp.log(jnp.sum(jnp.exp(masked - max_m), axis=-1, keepdims=True))
            # (B,1) -> (1,B) via eye-mask + sublane reduce; one narrow row store each.
            tours_ref[pl.ds(i, 1), :] = jnp.sum(chosen_f * eye_b, axis=0, keepdims=True)
            logp_ref[pl.ds(i, 1), :] = jnp.sum(logp * eye_b, axis=0, keepdims=True)
            return jnp.where(iota_row == chosen, NEG, mask_bias)

        # ---- step 0 (hoisted): masked logits are all -inf except col 0 = 1,
        #      so chosen_0 = 0 and logp_0 = 0 analytically. ----
        h = enc_h_ref[...]                                   # decoder_hidden = encoder_hidden
        logits0, h = forward_step(jnp.ones((B, 1), jnp.float32), h)
        zero_row = jnp.zeros((1, B), jnp.float32)
        tours_ref[pl.ds(0, 1), :] = zero_row
        logp_ref[pl.ds(0, 1), :] = zero_row
        dec_in = greedy_next_input(logits0)
        mask_bias = jnp.broadcast_to(
            jnp.where(iota_row == 0, NEG, 0.0).astype(jnp.float32), (B, s_pad))

        # ---- steady-state steps 1 .. seq_len-2 ----
        def body(i, carry):
            h, dec_in, mask_bias = carry
            logits, h_new = forward_step(dec_in, h)
            dec_in_next = greedy_next_input(logits)
            mask_bias = select_and_store(i, logits, mask_bias)
            return h_new, dec_in_next, mask_bias

        if seq_len > 2:
            trip = seq_len - 2
            h, dec_in, mask_bias = lax.fori_loop(
                1, seq_len - 1, body, (h, dec_in, mask_bias),
                unroll=(True if trip <= 32 else 2))

        # ---- peeled final step: its greedy next-input is never used ----
        if seq_len >= 2:
            logits_last, _ = forward_step(dec_in, h)
            select_and_store(seq_len - 1, logits_last, mask_bias)

    return kernel


def decoder_forward(encoder_outputs, encoder_hidden, params, batch_block=None):
    """Pallas implementation of Decoder.forward(encoder_outputs, encoder_hidden).

    encoder_outputs: (B, S, H)  -- only shapes are used (as in the PyTorch code)
    encoder_hidden : (1, B, H)  -- GRU initial hidden state
    batch_block    : optional batch tile (multiple of 128) to split batch across
                     TensorCores (v7x); default = whole batch in one grid point.
    returns (tours (B,1,S) float32, tour_logp (B,S,1) float32)
    # TODO(synk): teacher-forcing branch (target_tensor is not None) not implemented.
    """
    B, S = encoder_outputs.shape[0], encoder_outputs.shape[1]
    H = HIDDEN
    S_pad = _round_up(max(S, 128), 128)      # lane-align seq_len
    B_pad = _round_up(max(B, 8), 8)          # sublane-align batch
    if batch_block is None or batch_block >= B_pad:
        B_blk = B_pad                        # single batch block (1-TC chips)
    else:
        B_blk = _round_up(batch_block, 128)  # multi-block output tiles must be lane-aligned
        B_pad = _round_up(B_pad, B_blk)
    n_bblk = B_pad // B_blk

    enc_h = encoder_hidden[0].astype(jnp.float32)                          # (B, H)
    enc_h = jnp.zeros((B_pad, H), jnp.float32).at[:B].set(enc_h)

    emb_wT = params["emb_w"].T.astype(jnp.float32)                         # (1, H)
    emb_b = params["emb_b"].reshape(1, H).astype(jnp.float32)
    w_ihT = params["w_ih"].T.astype(jnp.float32)                           # (H, 3H) gates r|z|n
    w_hhT = params["w_hh"].T.astype(jnp.float32)
    # Fused gate weight: [emb|h] @ W_f -> [ (gx+gh)_rz | gx_n | gh_n ]
    W_f = jnp.zeros((2 * H, 4 * H), jnp.float32)
    W_f = W_f.at[:H, :2 * H].set(w_ihT[:, :2 * H])
    W_f = W_f.at[H:, :2 * H].set(w_hhT[:, :2 * H])
    W_f = W_f.at[:H, 2 * H:3 * H].set(w_ihT[:, 2 * H:])
    W_f = W_f.at[H:, 3 * H:].set(w_hhT[:, 2 * H:])
    # r/z gates always see b_ih + b_hh; only the n gate needs them separate.
    b_rz = (params["b_ih"][:2 * H] + params["b_hh"][:2 * H]).reshape(1, 2 * H)
    b_in = params["b_ih"][2 * H:].reshape(1, H)
    b_hn = params["b_hh"][2 * H:].reshape(1, H)
    # Pad output projection: zero weight columns, large-negative bias so padded
    # lanes never win an argmax and add ~0 to the softmax denominator.
    out_wT = jnp.zeros((H, S_pad), jnp.float32).at[:, :S].set(params["out_w"].T)
    out_b = jnp.full((1, S_pad), NEG, jnp.float32).at[0, :S].set(params["out_b"])

    def bcast(shape):
        return pl.BlockSpec(shape, lambda b: (0,) * len(shape))

    kernel = _make_decoder_kernel(S, B_blk, S_pad)
    tours, logp = pl.pallas_call(
        kernel,
        out_shape=(jax.ShapeDtypeStruct((S_pad, B_pad), jnp.float32),
                   jax.ShapeDtypeStruct((S_pad, B_pad), jnp.float32)),
        grid_spec=pltpu.PrefetchScalarGridSpec(
            num_scalar_prefetch=0,
            grid=(n_bblk,),                          # batch blocks; "parallel" for v7x 2-TC
            in_specs=[pl.BlockSpec((B_blk, H), lambda b: (b, 0)),
                      bcast((1, H)), bcast((1, H)),
                      bcast((2 * H, 4 * H)),
                      bcast((1, 2 * H)), bcast((1, H)), bcast((1, H)),
                      bcast((H, S_pad)), bcast((1, S_pad))],
            out_specs=[pl.BlockSpec((S_pad, B_blk), lambda b: (0, b)),
                       pl.BlockSpec((S_pad, B_blk), lambda b: (0, b))],
        ),
        compiler_params=pltpu.CompilerParams(dimension_semantics=("parallel",)),
    )(enc_h, emb_wT, emb_b, W_f, b_rz, b_in, b_hn, out_wT, out_b)

    # torch.cat(tours, 2) -> (B, 1, S); torch.cat(tour_logp, 1) -> (B, S, 1)
    tours = tours[:S, :B].T.reshape(B, 1, S)
    logp = logp[:S, :B].T.reshape(B, S, 1)
    return tours, logp


def decoder_forward_ref(encoder_outputs, encoder_hidden, params):
    """Pure-JAX reference replicating the PyTorch forward (target_tensor=None)."""
    B, S = encoder_outputs.shape[0], encoder_outputs.shape[1]
    H = HIDDEN
    h = encoder_hidden[0]
    dec_in = jnp.ones((B, 1), jnp.float32)
    mask = jnp.zeros((B, S), jnp.float32)
    prev = None
    tours, logps = [], []
    for _ in range(S):
        emb = jax.nn.relu(dec_in @ params["emb_w"].T + params["emb_b"])
        gx = emb @ params["w_ih"].T + params["b_ih"]
        gh = h @ params["w_hh"].T + params["b_hh"]
        r = jax.nn.sigmoid(gx[:, :H] + gh[:, :H])
        z = jax.nn.sigmoid(gx[:, H:2 * H] + gh[:, H:2 * H])
        n = jnp.tanh(gx[:, 2 * H:] + r * gh[:, 2 * H:])
        h = (1.0 - z) * n + z * h
        logits = h @ params["out_w"].T + params["out_b"]
        dec_in = jnp.argmax(logits, axis=-1, keepdims=True).astype(jnp.float32)
        if prev is None:
            masked = jnp.full_like(logits, -jnp.inf).at[:, 0].set(1.0)
        else:
            mask = mask.at[jnp.arange(B), prev].set(1.0)
            masked = jnp.where(mask > 0.0, -jnp.inf, logits)
        chosen = jnp.argmax(masked, axis=-1)
        prev = chosen
        logp = jax.nn.log_softmax(masked, axis=-1)[jnp.arange(B), chosen]
        tours.append(chosen.astype(jnp.float32))
        logps.append(logp)
    return (jnp.stack(tours, axis=-1).reshape(B, 1, S),
            jnp.stack(logps, axis=-1).reshape(B, S, 1))


def init_params(key, seq_len):
    """Deterministic synthetic parameters matching the PyTorch module shapes."""
    H = HIDDEN
    ks = jax.random.split(key, 8)
    u = lambda k, shape, bound: jax.random.uniform(k, shape, jnp.float32, -bound, bound)
    kh = 1.0 / np.sqrt(H)
    return {
        "emb_w": u(ks[0], (H, 1), 1.0),            # nn.Linear(1, H)
        "emb_b": u(ks[1], (H,), 1.0),
        "w_ih": u(ks[2], (3 * H, H), kh),          # nn.GRU weight_ih_l0 (r|z|n)
        "b_ih": u(ks[3], (3 * H,), kh),
        "w_hh": u(ks[4], (3 * H, H), kh),          # nn.GRU weight_hh_l0 (r|z|n)
        "b_hh": u(ks[5], (3 * H,), kh),
        "out_w": u(ks[6], (seq_len, H), kh),       # nn.Linear(H, seq_len)
        "out_b": u(ks[7], (seq_len,), kh),
    }


if __name__ == "__main__":
    key = jax.random.PRNGKey(0)
    B, S = 2, 8
    k_par, k_enc, k_hid = jax.random.split(key, 3)

    params = init_params(k_par, S)
    encoder_outputs = jax.random.normal(k_enc, (B, S, HIDDEN), jnp.float32)
    encoder_hidden = jax.random.normal(k_hid, (1, B, HIDDEN), jnp.float32)

    tours, tour_logp = decoder_forward(encoder_outputs, encoder_hidden, params)
    jax.block_until_ready((tours, tour_logp))

    tours_ref, logp_ref = decoder_forward_ref(encoder_outputs, encoder_hidden, params)
    assert tours.shape == (B, 1, S) and tour_logp.shape == (B, S, 1)
    np.testing.assert_array_equal(np.asarray(tours), np.asarray(tours_ref))
    np.testing.assert_allclose(np.asarray(tour_logp), np.asarray(logp_ref),
                               rtol=1e-2, atol=1e-2)
    print("KERNEL_OK")
</pallas_src>

<mosaic_0001>
module attributes {stable_mosaic.version = 11 : i64} {
  func.func @kernel(%arg0: i32, %arg1: memref<8x128xf32, #tpu.memory_space<vmem>>, %arg2: memref<1x128xf32, #tpu.memory_space<vmem>>, %arg3: memref<1x128xf32, #tpu.memory_space<vmem>>, %arg4: memref<256x512xf32, #tpu.memory_space<vmem>>, %arg5: memref<1x256xf32, #tpu.memory_space<vmem>>, %arg6: memref<1x128xf32, #tpu.memory_space<vmem>>, %arg7: memref<1x128xf32, #tpu.memory_space<vmem>>, %arg8: memref<128x128xf32, #tpu.memory_space<vmem>>, %arg9: memref<1x128xf32, #tpu.memory_space<vmem>>, %arg10: memref<128x8xf32, #tpu.memory_space<vmem>>, %arg11: memref<128x8xf32, #tpu.memory_space<vmem>>) attributes {dimension_semantics = [#tpu.dimension_semantics<parallel>], iteration_bounds = array<i64: 1>, scalar_prefetch = 0 : i64, scratch_operands = 0 : i64, tpu.core_type = #tpu.core_type<tc>, window_params = [{transform_indices = @transform_0, window_bounds = array<i64: 8, 128>}, {pipeline_mode = #tpu.pipeline_mode<synchronous>, transform_indices = @transform_1, window_bounds = array<i64: 1, 128>}, {pipeline_mode = #tpu.pipeline_mode<synchronous>, transform_indices = @transform_2, window_bounds = array<i64: 1, 128>}, {pipeline_mode = #tpu.pipeline_mode<synchronous>, transform_indices = @transform_3, window_bounds = array<i64: 256, 512>}, {pipeline_mode = #tpu.pipeline_mode<synchronous>, transform_indices = @transform_4, window_bounds = array<i64: 1, 256>}, {pipeline_mode = #tpu.pipeline_mode<synchronous>, transform_indices = @transform_5, window_bounds = array<i64: 1, 128>}, {pipeline_mode = #tpu.pipeline_mode<synchronous>, transform_indices = @transform_6, window_bounds = array<i64: 1, 128>}, {pipeline_mode = #tpu.pipeline_mode<synchronous>, transform_indices = @transform_7, window_bounds = array<i64: 128, 128>}, {pipeline_mode = #tpu.pipeline_mode<synchronous>, transform_indices = @transform_8, window_bounds = array<i64: 1, 128>}, {transform_indices = @transform_9, window_bounds = array<i64: 128, 8>}, {transform_indices = @transform_10, window_bounds = array<i64: 128, 8>}]} {
    %0 = tpu.iota {dimensions = array<i32: 1>} : vector<1x128xi32>
    %1 = tpu.iota {dimensions = array<i32: 0>} : vector<8x8xi32>
    %2 = tpu.iota {dimensions = array<i32: 1>} : vector<8x8xi32>
    %3 = arith.cmpi eq, %1, %2 : vector<8x8xi32>
    %4 = arith.extui %3 : vector<8x8xi1> to vector<8x8xi32>
    %5 = arith.sitofp %4 : vector<8x8xi32> to vector<8x8xf32>
    %c0 = arith.constant 0 : index
    %c0_0 = arith.constant 0 : index
    %6 = vector.load %arg2[%c0, %c0_0] : memref<1x128xf32, #tpu.memory_space<vmem>>, vector<1x128xf32>
    %7 = vector.shape_cast %6 : vector<1x128xf32> to vector<1x128xf32>
    %8 = vector.broadcast %7 : vector<1x128xf32> to vector<8x128xf32>
    %c0_1 = arith.constant 0 : index
    %c0_2 = arith.constant 0 : index
    %9 = vector.load %arg3[%c0_1, %c0_2] : memref<1x128xf32, #tpu.memory_space<vmem>>, vector<1x128xf32>
    %10 = vector.shape_cast %9 : vector<1x128xf32> to vector<1x128xf32>
    %11 = vector.broadcast %10 : vector<1x128xf32> to vector<8x128xf32>
    %c0_3 = arith.constant 0 : index
    %c0_4 = arith.constant 0 : index
    %12 = vector.load %arg5[%c0_3, %c0_4] : memref<1x256xf32, #tpu.memory_space<vmem>>, vector<1x256xf32>
    %13 = vector.shape_cast %12 : vector<1x256xf32> to vector<1x256xf32>
    %14 = vector.broadcast %13 : vector<1x256xf32> to vector<8x256xf32>
    %c0_5 = arith.constant 0 : index
    %c0_6 = arith.constant 0 : index
    %15 = vector.load %arg6[%c0_5, %c0_6] : memref<1x128xf32, #tpu.memory_space<vmem>>, vector<1x128xf32>
    %16 = vector.shape_cast %15 : vector<1x128xf32> to vector<1x128xf32>
    %17 = vector.broadcast %16 : vector<1x128xf32> to vector<8x128xf32>
    %c0_7 = arith.constant 0 : index
    %c0_8 = arith.constant 0 : index
    %18 = vector.load %arg7[%c0_7, %c0_8] : memref<1x128xf32, #tpu.memory_space<vmem>>, vector<1x128xf32>
    %19 = vector.shape_cast %18 : vector<1x128xf32> to vector<1x128xf32>
    %20 = vector.broadcast %19 : vector<1x128xf32> to vector<8x128xf32>
    %c0_9 = arith.constant 0 : index
    %c0_10 = arith.constant 0 : index
    %21 = vector.load %arg9[%c0_9, %c0_10] : memref<1x128xf32, #tpu.memory_space<vmem>>, vector<1x128xf32>
    %22 = vector.shape_cast %21 : vector<1x128xf32> to vector<1x128xf32>
    %23 = vector.broadcast %22 : vector<1x128xf32> to vector<8x128xf32>
    %c0_11 = arith.constant 0 : index
    %c0_12 = arith.constant 0 : index
    %24 = vector.load %arg1[%c0_11, %c0_12] : memref<8x128xf32, #tpu.memory_space<vmem>>, vector<8x128xf32>
    %cst = arith.constant 1.000000e+00 : f32
    %25 = vector.broadcast %cst : f32 to vector<8x1xf32>
    %26 = vector.broadcast %25 : vector<8x1xf32> to vector<8x128xf32>
    %27 = arith.mulf %26, %8 : vector<8x128xf32>
    %28 = arith.addf %27, %11 : vector<8x128xf32>
    %cst_13 = arith.constant 0.000000e+00 : f32
    %29 = vector.broadcast %cst_13 : f32 to vector<8x128xf32>
    %30 = arith.maximumf %28, %29 : vector<8x128xf32>
    %31 = tpu.concatenate %30, %24 in 1 : vector<8x128xf32>, vector<8x128xf32> -> vector<8x256xf32>
    %c0_14 = arith.constant 0 : index
    %c0_15 = arith.constant 0 : index
    %32 = vector.load %arg4[%c0_14, %c0_15] : memref<256x512xf32, #tpu.memory_space<vmem>>, vector<256x512xf32>
    %cst_16 = arith.constant dense<0.000000e+00> : vector<8x512xf32>
    %33 = tpu.matmul %31, %32, %cst_16 {dimension_numbers = #tpu.dot_dimension_numbers<[1], [0], [0], [1], [0, 0, 1, 1], [], []>} : vector<8x256xf32>, vector<256x512xf32>, vector<8x512xf32> -> vector<8x512xf32>
    %34 = vector.extract_strided_slice %33 {offsets = [0, 0], sizes = [8, 256], strides = [1, 1]} : vector<8x512xf32> to vector<8x256xf32>
    %35 = arith.addf %34, %14 : vector<8x256xf32>
    %36 = arith.negf %35 : vector<8x256xf32>
    %37 = math.exp %36 : vector<8x256xf32>
    %cst_17 = arith.constant 1.000000e+00 : f32
    %38 = vector.broadcast %cst_17 : f32 to vector<8x256xf32>
    %39 = arith.addf %38, %37 : vector<8x256xf32>
    %40 = arith.divf %38, %39 : vector<8x256xf32>
    %41 = vector.extract_strided_slice %40 {offsets = [0, 0], sizes = [8, 128], strides = [1, 1]} : vector<8x256xf32> to vector<8x128xf32>
    %42 = vector.extract_strided_slice %40 {offsets = [0, 128], sizes = [8, 128], strides = [1, 1]} : vector<8x256xf32> to vector<8x128xf32>
    %43 = vector.extract_strided_slice %33 {offsets = [0, 256], sizes = [8, 128], strides = [1, 1]} : vector<8x512xf32> to vector<8x128xf32>
    %44 = arith.addf %43, %17 : vector<8x128xf32>
    %45 = vector.extract_strided_slice %33 {offsets = [0, 384], sizes = [8, 128], strides = [1, 1]} : vector<8x512xf32> to vector<8x128xf32>
    %46 = arith.addf %45, %20 : vector<8x128xf32>
    %47 = arith.mulf %41, %46 : vector<8x128xf32>
    %48 = arith.addf %44, %47 : vector<8x128xf32>
    %49 = math.tanh %48 : vector<8x128xf32>
    %cst_18 = arith.constant 1.000000e+00 : f32
    %50 = vector.broadcast %cst_18 : f32 to vector<8x128xf32>
    %51 = arith.subf %50, %42 : vector<8x128xf32>
    %52 = arith.mulf %51, %49 : vector<8x128xf32>
    %53 = arith.mulf %42, %24 : vector<8x128xf32>
    %54 = arith.addf %52, %53 : vector<8x128xf32>
    %c0_19 = arith.constant 0 : index
    %c0_20 = arith.constant 0 : index
    %55 = vector.load %arg8[%c0_19, %c0_20] : memref<128x128xf32, #tpu.memory_space<vmem>>, vector<128x128xf32>
    %cst_21 = arith.constant dense<0.000000e+00> : vector<8x128xf32>
    %56 = tpu.matmul %54, %55, %cst_21 {dimension_numbers = #tpu.dot_dimension_numbers<[1], [0], [0], [1], [0, 0, 1, 1], [], []>} : vector<8x128xf32>, vector<128x128xf32>, vector<8x128xf32> -> vector<8x128xf32>
    %57 = arith.addf %56, %23 : vector<8x128xf32>
    %cst_22 = arith.constant 0.000000e+00 : f32
    %58 = vector.broadcast %cst_22 : f32 to vector<1x8xf32>
    %c0_23 = arith.constant 0 : index
    %c0_24 = arith.constant 0 : index
    %59 = vector.load %arg10[%c0_23, %c0_24] : memref<128x8xf32, #tpu.memory_space<vmem>>, vector<1x8xf32>
    tpu.vector_store %arg10[%c0_23, %c0_24], %58 {strides = array<i32>} : memref<128x8xf32, #tpu.memory_space<vmem>>, vector<1x8xf32>,
    %c0_25 = arith.constant 0 : index
    %c0_26 = arith.constant 0 : index
    %60 = vector.load %arg11[%c0_25, %c0_26] : memref<128x8xf32, #tpu.memory_space<vmem>>, vector<1x8xf32>
    tpu.vector_store %arg11[%c0_25, %c0_26], %58 {strides = array<i32>} : memref<128x8xf32, #tpu.memory_space<vmem>>, vector<1x8xf32>,
    %cst_27 = arith.constant dense<0xFF800000> : vector<8xf32>
    %61 = vector.multi_reduction <maximumf>, %57, %cst_27 [1] : vector<8x128xf32> to vector<8xf32>
    %62 = vector.shape_cast %61 : vector<8xf32> to vector<8x1xf32>
    %63 = vector.broadcast %62 : vector<8x1xf32> to vector<8x128xf32>
    %64 = arith.cmpf oeq, %57, %63 : vector<8x128xf32>
    %c128_i32 = arith.constant 128 : i32
    %65 = vector.shape_cast %0 : vector<1x128xi32> to vector<1x128xi32>
    %66 = vector.broadcast %65 : vector<1x128xi32> to vector<8x128xi32>
    %67 = vector.broadcast %c128_i32 : i32 to vector<8x128xi32>
    %68 = arith.select %64, %66, %67 : vector<8x128xi1>, vector<8x128xi32>
    %cst_28 = arith.constant dense<2147483647> : vector<8xi32>
    %69 = vector.multi_reduction <minsi>, %68, %cst_28 [1] : vector<8x128xi32> to vector<8xi32>
    %70 = vector.shape_cast %69 : vector<8xi32> to vector<8x1xi32>
    %71 = arith.sitofp %70 : vector<8x1xi32> to vector<8x1xf32>
    %c0_i32 = arith.constant 0 : i32
    %72 = vector.broadcast %c0_i32 : i32 to vector<1x128xi32>
    %73 = arith.cmpi eq, %0, %72 : vector<1x128xi32>
    %cst_29 = arith.constant -1.000000e+30 : f32
    %cst_30 = arith.constant 0.000000e+00 : f32
    %74 = vector.broadcast %cst_29 : f32 to vector<1x128xf32>
    %75 = vector.broadcast %cst_30 : f32 to vector<1x128xf32>
    %76 = arith.select %73, %74, %75 : vector<1x128xi1>, vector<1x128xf32>
    %77 = vector.shape_cast %76 : vector<1x128xf32> to vector<1x128xf32>
    %78 = vector.broadcast %77 : vector<1x128xf32> to vector<8x128xf32>
    %c1_i32 = arith.constant 1 : i32
    %79 = vector.broadcast %71 : vector<8x1xf32> to vector<8x128xf32>
    %80 = arith.mulf %79, %8 : vector<8x128xf32>
    %81 = arith.addf %80, %11 : vector<8x128xf32>
    %cst_31 = arith.constant 0.000000e+00 : f32
    %82 = vector.broadcast %cst_31 : f32 to vector<8x128xf32>
    %83 = arith.maximumf %81, %82 : vector<8x128xf32>
    %84 = tpu.concatenate %83, %54 in 1 : vector<8x128xf32>, vector<8x128xf32> -> vector<8x256xf32>
    %c0_32 = arith.constant 0 : index
    %c0_33 = arith.constant 0 : index
    %85 = vector.load %arg4[%c0_32, %c0_33] : memref<256x512xf32, #tpu.memory_space<vmem>>, vector<256x512xf32>
    %cst_34 = arith.constant dense<0.000000e+00> : vector<8x512xf32>
    %86 = tpu.matmul %84, %85, %cst_34 {dimension_numbers = #tpu.dot_dimension_numbers<[1], [0], [0], [1], [0, 0, 1, 1], [], []>} : vector<8x256xf32>, vector<256x512xf32>, vector<8x512xf32> -> vector<8x512xf32>
    %87 = vector.extract_strided_slice %86 {offsets = [0, 0], sizes = [8, 256], strides = [1, 1]} : vector<8x512xf32> to vector<8x256xf32>
    %88 = arith.addf %87, %14 : vector<8x256xf32>
    %89 = arith.negf %88 : vector<8x256xf32>
    %90 = math.exp %89 : vector<8x256xf32>
    %cst_35 = arith.constant 1.000000e+00 : f32
    %91 = vector.broadcast %cst_35 : f32 to vector<8x256xf32>
    %92 = arith.addf %91, %90 : vector<8x256xf32>
    %93 = arith.divf %91, %92 : vector<8x256xf32>
    %94 = vector.extract_strided_slice %93 {offsets = [0, 0], sizes = [8, 128], strides = [1, 1]} : vector<8x256xf32> to vector<8x128xf32>
    %95 = vector.extract_strided_slice %93 {offsets = [0, 128], sizes = [8, 128], strides = [1, 1]} : vector<8x256xf32> to vector<8x128xf32>
    %96 = vector.extract_strided_slice %86 {offsets = [0, 256], sizes = [8, 128], strides = [1, 1]} : vector<8x512xf32> to vector<8x128xf32>
    %97 = arith.addf %96, %17 : vector<8x128xf32>
    %98 = vector.extract_strided_slice %86 {offsets = [0, 384], sizes = [8, 128], strides = [1, 1]} : vector<8x512xf32> to vector<8x128xf32>
    %99 = arith.addf %98, %20 : vector<8x128xf32>
    %100 = arith.mulf %94, %99 : vector<8x128xf32>
    %101 = arith.addf %97, %100 : vector<8x128xf32>
    %102 = math.tanh %101 : vector<8x128xf32>
    %cst_36 = arith.constant 1.000000e+00 : f32
    %103 = vector.broadcast %cst_36 : f32 to vector<8x128xf32>
    %104 = arith.subf %103, %95 : vector<8x128xf32>
    %105 = arith.mulf %104, %102 : vector<8x128xf32>
    %106 = arith.mulf %95, %54 : vector<8x128xf32>
    %107 = arith.addf %105, %106 : vector<8x128xf32>
    %c0_37 = arith.constant 0 : index
    %c0_38 = arith.constant 0 : index
    %108 = vector.load %arg8[%c0_37, %c0_38] : memref<128x128xf32, #tpu.memory_space<vmem>>, vector<128x128xf32>
    %cst_39 = arith.constant dense<0.000000e+00> : vector<8x128xf32>
    %109 = tpu.matmul %107, %108, %cst_39 {dimension_numbers = #tpu.dot_dimension_numbers<[1], [0], [0], [1], [0, 0, 1, 1], [], []>} : vector<8x128xf32>, vector<128x128xf32>, vector<8x128xf32> -> vector<8x128xf32>
    %110 = arith.addf %109, %23 : vector<8x128xf32>
    %cst_40 = arith.constant dense<0xFF800000> : vector<8xf32>
    %111 = vector.multi_reduction <maximumf>, %110, %cst_40 [1] : vector<8x128xf32> to vector<8xf32>
    %112 = vector.shape_cast %111 : vector<8xf32> to vector<8x1xf32>
    %113 = vector.broadcast %112 : vector<8x1xf32> to vector<8x128xf32>
    %114 = arith.cmpf oeq, %110, %113 : vector<8x128xf32>
    %c128_i32_41 = arith.constant 128 : i32
    %115 = vector.shape_cast %0 : vector<1x128xi32> to vector<1x128xi32>
    %116 = vector.broadcast %115 : vector<1x128xi32> to vector<8x128xi32>
    %117 = vector.broadcast %c128_i32_41 : i32 to vector<8x128xi32>
    %118 = arith.select %114, %116, %117 : vector<8x128xi1>, vector<8x128xi32>
    %cst_42 = arith.constant dense<2147483647> : vector<8xi32>
    %119 = vector.multi_reduction <minsi>, %118, %cst_42 [1] : vector<8x128xi32> to vector<8xi32>
    %120 = vector.shape_cast %119 : vector<8xi32> to vector<8x1xi32>
    %121 = arith.sitofp %120 : vector<8x1xi32> to vector<8x1xf32>
    %122 = arith.addf %110, %78 : vector<8x128xf32>
    %cst_43 = arith.constant dense<0xFF800000> : vector<8xf32>
    %123 = vector.multi_reduction <maximumf>, %122, %cst_43 [1] : vector<8x128xf32> to vector<8xf32>
    %124 = vector.shape_cast %123 : vector<8xf32> to vector<8x1xf32>
    %125 = vector.broadcast %124 : vector<8x1xf32> to vector<8x128xf32>
    %126 = arith.cmpf oeq, %122, %125 : vector<8x128xf32>
    %c128_i32_44 = arith.constant 128 : i32
    %127 = vector.shape_cast %0 : vector<1x128xi32> to vector<1x128xi32>
    %128 = vector.broadcast %127 : vector<1x128xi32> to vector<8x128xi32>
    %129 = vector.broadcast %c128_i32_44 : i32 to vector<8x128xi32>
    %130 = arith.select %126, %128, %129 : vector<8x128xi1>, vector<8x128xi32>
    %cst_45 = arith.constant dense<2147483647> : vector<8xi32>
    %131 = vector.multi_reduction <minsi>, %130, %cst_45 [1] : vector<8x128xi32> to vector<8xi32>
    %132 = vector.shape_cast %131 : vector<8xi32> to vector<8x1xi32>
    %133 = arith.sitofp %132 : vector<8x1xi32> to vector<8x1xf32>
    %134 = vector.broadcast %124 : vector<8x1xf32> to vector<8x128xf32>
    %135 = arith.subf %122, %134 : vector<8x128xf32>
    %136 = math.exp %135 : vector<8x128xf32>
    %cst_46 = arith.constant dense<0.000000e+00> : vector<8xf32>
    %137 = vector.multi_reduction <add>, %136, %cst_46 [1] : vector<8x128xf32> to vector<8xf32>
    %138 = vector.shape_cast %137 : vector<8xf32> to vector<8x1xf32>
    %139 = math.log %138 : vector<8x1xf32>
    %cst_47 = arith.constant 0.000000e+00 : f32
    %140 = vector.broadcast %cst_47 : f32 to vector<8x1xf32>
    %141 = arith.subf %140, %139 : vector<8x1xf32>
    %142 = vector.broadcast %133 : vector<8x1xf32> to vector<8x8xf32>
    %143 = arith.mulf %142, %5 : vector<8x8xf32>
    %cst_48 = arith.constant dense<0.000000e+00> : vector<8xf32>
    %144 = vector.multi_reduction <add>, %143, %cst_48 [0] : vector<8x8xf32> to vector<8xf32>
    %145 = vector.shape_cast %144 : vector<8xf32> to vector<1x8xf32>
    %146 = arith.index_cast %c1_i32 : i32 to index
    %c0_49 = arith.constant 0 : index
    %147 = vector.load %arg10[%146, %c0_49] : memref<128x8xf32, #tpu.memory_space<vmem>>, vector<1x8xf32>
    tpu.vector_store %arg10[%146, %c0_49], %145 {strides = array<i32>} : memref<128x8xf32, #tpu.memory_space<vmem>>, vector<1x8xf32>,
    %148 = vector.broadcast %141 : vector<8x1xf32> to vector<8x8xf32>
    %149 = arith.mulf %148, %5 : vector<8x8xf32>
    %cst_50 = arith.constant dense<0.000000e+00> : vector<8xf32>
    %150 = vector.multi_reduction <add>, %149, %cst_50 [0] : vector<8x8xf32> to vector<8xf32>
    %151 = vector.shape_cast %150 : vector<8xf32> to vector<1x8xf32>
    %152 = arith.index_cast %c1_i32 : i32 to index
    %c0_51 = arith.constant 0 : index
    %153 = vector.load %arg11[%152, %c0_51] : memref<128x8xf32, #tpu.memory_space<vmem>>, vector<1x8xf32>
    tpu.vector_store %arg11[%152, %c0_51], %151 {strides = array<i32>} : memref<128x8xf32, #tpu.memory_space<vmem>>, vector<1x8xf32>,
    %154 = vector.broadcast %0 : vector<1x128xi32> to vector<8x128xi32>
    %155 = vector.broadcast %132 : vector<8x1xi32> to vector<8x128xi32>
    %156 = arith.cmpi eq, %154, %155 : vector<8x128xi32>
    %cst_52 = arith.constant -1.000000e+30 : f32
    %157 = vector.broadcast %cst_52 : f32 to vector<8x128xf32>
    %158 = arith.select %156, %157, %78 : vector<8x128xi1>, vector<8x128xf32>
    %c2_i32 = arith.constant 2 : i32
    %159 = vector.broadcast %121 : vector<8x1xf32> to vector<8x128xf32>
    %160 = arith.mulf %159, %8 : vector<8x128xf32>
    %161 = arith.addf %160, %11 : vector<8x128xf32>
    %cst_53 = arith.constant 0.000000e+00 : f32
    %162 = vector.broadcast %cst_53 : f32 to vector<8x128xf32>
    %163 = arith.maximumf %161, %162 : vector<8x128xf32>
    %164 = tpu.concatenate %163, %107 in 1 : vector<8x128xf32>, vector<8x128xf32> -> vector<8x256xf32>
    %c0_54 = arith.constant 0 : index
    %c0_55 = arith.constant 0 : index
    %165 = vector.load %arg4[%c0_54, %c0_55] : memref<256x512xf32, #tpu.memory_space<vmem>>, vector<256x512xf32>
    %cst_56 = arith.constant dense<0.000000e+00> : vector<8x512xf32>
    %166 = tpu.matmul %164, %165, %cst_56 {dimension_numbers = #tpu.dot_dimension_numbers<[1], [0], [0], [1], [0, 0, 1, 1], [], []>} : vector<8x256xf32>, vector<256x512xf32>, vector<8x512xf32> -> vector<8x512xf32>
    %167 = vector.extract_strided_slice %166 {offsets = [0, 0], sizes = [8, 256], strides = [1, 1]} : vector<8x512xf32> to vector<8x256xf32>
    %168 = arith.addf %167, %14 : vector<8x256xf32>
    %169 = arith.negf %168 : vector<8x256xf32>
    %170 = math.exp %169 : vector<8x256xf32>
    %cst_57 = arith.constant 1.000000e+00 : f32
    %171 = vector.broadcast %cst_57 : f32 to vector<8x256xf32>
    %172 = arith.addf %171, %170 : vector<8x256xf32>
    %173 = arith.divf %171, %172 : vector<8x256xf32>
    %174 = vector.extract_strided_slice %173 {offsets = [0, 0], sizes = [8, 128], strides = [1, 1]} : vector<8x256xf32> to vector<8x128xf32>
    %175 = vector.extract_strided_slice %173 {offsets = [0, 128], sizes = [8, 128], strides = [1, 1]} : vector<8x256xf32> to vector<8x128xf32>
    %176 = vector.extract_strided_slice %166 {offsets = [0, 256], sizes = [8, 128], strides = [1, 1]} : vector<8x512xf32> to vector<8x128xf32>
    %177 = arith.addf %176, %17 : vector<8x128xf32>
    %178 = vector.extract_strided_slice %166 {offsets = [0, 384], sizes = [8, 128], strides = [1, 1]} : vector<8x512xf32> to vector<8x128xf32>
    %179 = arith.addf %178, %20 : vector<8x128xf32>
    %180 = arith.mulf %174, %179 : vector<8x128xf32>
    %181 = arith.addf %177, %180 : vector<8x128xf32>
    %182 = math.tanh %181 : vector<8x128xf32>
    %cst_58 = arith.constant 1.000000e+00 : f32
    %183 = vector.broadcast %cst_58 : f32 to vector<8x128xf32>
    %184 = arith.subf %183, %175 : vector<8x128xf32>
    %185 = arith.mulf %184, %182 : vector<8x128xf32>
    %186 = arith.mulf %175, %107 : vector<8x128xf32>
    %187 = arith.addf %185, %186 : vector<8x128xf32>
    %c0_59 = arith.constant 0 : index
    %c0_60 = arith.constant 0 : index
    %188 = vector.load %arg8[%c0_59, %c0_60] : memref<128x128xf32, #tpu.memory_space<vmem>>, vector<128x128xf32>
    %cst_61 = arith.constant dense<0.000000e+00> : vector<8x128xf32>
    %189 = tpu.matmul %187, %188, %cst_61 {dimension_numbers = #tpu.dot_dimension_numbers<[1], [0], [0], [1], [0, 0, 1, 1], [], []>} : vector<8x128xf32>, vector<128x128xf32>, vector<8x128xf32> -> vector<8x128xf32>
    %190 = arith.addf %189, %23 : vector<8x128xf32>
    %cst_62 = arith.constant dense<0xFF800000> : vector<8xf32>
    %191 = vector.multi_reduction <maximumf>, %190, %cst_62 [1] : vector<8x128xf32> to vector<8xf32>
    %192 = vector.shape_cast %191 : vector<8xf32> to vector<8x1xf32>
    %193 = vector.broadcast %192 : vector<8x1xf32> to vector<8x128xf32>
    %194 = arith.cmpf oeq, %190, %193 : vector<8x128xf32>
    %c128_i32_63 = arith.constant 128 : i32
    %195 = vector.shape_cast %0 : vector<1x128xi32> to vector<1x128xi32>
    %196 = vector.broadcast %195 : vector<1x128xi32> to vector<8x128xi32>
    %197 = vector.broadcast %c128_i32_63 : i32 to vector<8x128xi32>
    %198 = arith.select %194, %196, %197 : vector<8x128xi1>, vector<8x128xi32>
    %cst_64 = arith.constant dense<2147483647> : vector<8xi32>
    %199 = vector.multi_reduction <minsi>, %198, %cst_64 [1] : vector<8x128xi32> to vector<8xi32>
    %200 = vector.shape_cast %199 : vector<8xi32> to vector<8x1xi32>
    %201 = arith.sitofp %200 : vector<8x1xi32> to vector<8x1xf32>
    %202 = arith.addf %190, %158 : vector<8x128xf32>
    %cst_65 = arith.constant dense<0xFF800000> : vector<8xf32>
    %203 = vector.multi_reduction <maximumf>, %202, %cst_65 [1] : vector<8x128xf32> to vector<8xf32>
    %204 = vector.shape_cast %203 : vector<8xf32> to vector<8x1xf32>
    %205 = vector.broadcast %204 : vector<8x1xf32> to vector<8x128xf32>
    %206 = arith.cmpf oeq, %202, %205 : vector<8x128xf32>
    %c128_i32_66 = arith.constant 128 : i32
    %207 = vector.shape_cast %0 : vector<1x128xi32> to vector<1x128xi32>
    %208 = vector.broadcast %207 : vector<1x128xi32> to vector<8x128xi32>
    %209 = vector.broadcast %c128_i32_66 : i32 to vector<8x128xi32>
    %210 = arith.select %206, %208, %209 : vector<8x128xi1>, vector<8x128xi32>
    %cst_67 = arith.constant dense<2147483647> : vector<8xi32>
    %211 = vector.multi_reduction <minsi>, %210, %cst_67 [1] : vector<8x128xi32> to vector<8xi32>
    %212 = vector.shape_cast %211 : vector<8xi32> to vector<8x1xi32>
    %213 = arith.sitofp %212 : vector<8x1xi32> to vector<8x1xf32>
    %214 = vector.broadcast %204 : vector<8x1xf32> to vector<8x128xf32>
    %215 = arith.subf %202, %214 : vector<8x128xf32>
    %216 = math.exp %215 : vector<8x128xf32>
    %cst_68 = arith.constant dense<0.000000e+00> : vector<8xf32>
    %217 = vector.multi_reduction <add>, %216, %cst_68 [1] : vector<8x128xf32> to vector<8xf32>
    %218 = vector.shape_cast %217 : vector<8xf32> to vector<8x1xf32>
    %219 = math.log %218 : vector<8x1xf32>
    %cst_69 = arith.constant 0.000000e+00 : f32
    %220 = vector.broadcast %cst_69 : f32 to vector<8x1xf32>
    %221 = arith.subf %220, %219 : vector<8x1xf32>
    %222 = vector.broadcast %213 : vector<8x1xf32> to vector<8x8xf32>
    %223 = arith.mulf %222, %5 : vector<8x8xf32>
    %cst_70 = arith.constant dense<0.000000e+00> : vector<8xf32>
    %224 = vector.multi_reduction <add>, %223, %cst_70 [0] : vector<8x8xf32> to vector<8xf32>
    %225 = vector.shape_cast %224 : vector<8xf32> to vector<1x8xf32>
    %226 = arith.index_cast %c2_i32 : i32 to index
    %c0_71 = arith.constant 0 : index
    %227 = vector.load %arg10[%226, %c0_71] : memref<128x8xf32, #tpu.memory_space<vmem>>, vector<1x8xf32>
    tpu.vector_store %arg10[%226, %c0_71], %225 {strides = array<i32>} : memref<128x8xf32, #tpu.memory_space<vmem>>, vector<1x8xf32>,
    %228 = vector.broadcast %221 : vector<8x1xf32> to vector<8x8xf32>
    %229 = arith.mulf %228, %5 : vector<8x8xf32>
    %cst_72 = arith.constant dense<0.000000e+00> : vector<8xf32>
    %230 = vector.multi_reduction <add>, %229, %cst_72 [0] : vector<8x8xf32> to vector<8xf32>
    %231 = vector.shape_cast %230 : vector<8xf32> to vector<1x8xf32>
    %232 = arith.index_cast %c2_i32 : i32 to index
    %c0_73 = arith.constant 0 : index
    %233 = vector.load %arg11[%232, %c0_73] : memref<128x8xf32, #tpu.memory_space<vmem>>, vector<1x8xf32>
    tpu.vector_store %arg11[%232, %c0_73], %231 {strides = array<i32>} : memref<128x8xf32, #tpu.memory_space<vmem>>, vector<1x8xf32>,
    %234 = vector.broadcast %0 : vector<1x128xi32> to vector<8x128xi32>
    %235 = vector.broadcast %212 : vector<8x1xi32> to vector<8x128xi32>
    %236 = arith.cmpi eq, %234, %235 : vector<8x128xi32>
    %cst_74 = arith.constant -1.000000e+30 : f32
    %237 = vector.broadcast %cst_74 : f32 to vector<8x128xf32>
    %238 = arith.select %236, %237, %158 : vector<8x128xi1>, vector<8x128xf32>
    %c3_i32 = arith.constant 3 : i32
    %239 = vector.broadcast %201 : vector<8x1xf32> to vector<8x128xf32>
    %240 = arith.mulf %239, %8 : vector<8x128xf32>
    %241 = arith.addf %240, %11 : vector<8x128xf32>
    %cst_75 = arith.constant 0.000000e+00 : f32
    %242 = vector.broadcast %cst_75 : f32 to vector<8x128xf32>
    %243 = arith.maximumf %241, %242 : vector<8x128xf32>
    %244 = tpu.concatenate %243, %187 in 1 : vector<8x128xf32>, vector<8x128xf32> -> vector<8x256xf32>
    %c0_76 = arith.constant 0 : index
    %c0_77 = arith.constant 0 : index
    %245 = vector.load %arg4[%c0_76, %c0_77] : memref<256x512xf32, #tpu.memory_space<vmem>>, vector<256x512xf32>
    %cst_78 = arith.constant dense<0.000000e+00> : vector<8x512xf32>
    %246 = tpu.matmul %244, %245, %cst_78 {dimension_numbers = #tpu.dot_dimension_numbers<[1], [0], [0], [1], [0, 0, 1, 1], [], []>} : vector<8x256xf32>, vector<256x512xf32>, vector<8x512xf32> -> vector<8x512xf32>
    %247 = vector.extract_strided_slice %246 {offsets = [0, 0], sizes = [8, 256], strides = [1, 1]} : vector<8x512xf32> to vector<8x256xf32>
    %248 = arith.addf %247, %14 : vector<8x256xf32>
    %249 = arith.negf %248 : vector<8x256xf32>
    %250 = math.exp %249 : vector<8x256xf32>
    %cst_79 = arith.constant 1.000000e+00 : f32
    %251 = vector.broadcast %cst_79 : f32 to vector<8x256xf32>
    %252 = arith.addf %251, %250 : vector<8x256xf32>
    %253 = arith.divf %251, %252 : vector<8x256xf32>
    %254 = vector.extract_strided_slice %253 {offsets = [0, 0], sizes = [8, 128], strides = [1, 1]} : vector<8x256xf32> to vector<8x128xf32>
    %255 = vector.extract_strided_slice %253 {offsets = [0, 128], sizes = [8, 128], strides = [1, 1]} : vector<8x256xf32> to vector<8x128xf32>
    %256 = vector.extract_strided_slice %246 {offsets = [0, 256], sizes = [8, 128], strides = [1, 1]} : vector<8x512xf32> to vector<8x128xf32>
    %257 = arith.addf %256, %17 : vector<8x128xf32>
    %258 = vector.extract_strided_slice %246 {offsets = [0, 384], sizes = [8, 128], strides = [1, 1]} : vector<8x512xf32> to vector<8x128xf32>
    %259 = arith.addf %258, %20 : vector<8x128xf32>
    %260 = arith.mulf %254, %259 : vector<8x128xf32>
    %261 = arith.addf %257, %260 : vector<8x128xf32>
    %262 = math.tanh %261 : vector<8x128xf32>
    %cst_80 = arith.constant 1.000000e+00 : f32
    %263 = vector.broadcast %cst_80 : f32 to vector<8x128xf32>
    %264 = arith.subf %263, %255 : vector<8x128xf32>
    %265 = arith.mulf %264, %262 : vector<8x128xf32>
    %266 = arith.mulf %255, %187 : vector<8x128xf32>
    %267 = arith.addf %265, %266 : vector<8x128xf32>
    %c0_81 = arith.constant 0 : index
    %c0_82 = arith.constant 0 : index
    %268 = vector.load %arg8[%c0_81, %c0_82] : memref<128x128xf32, #tpu.memory_space<vmem>>, vector<128x128xf32>
    %cst_83 = arith.constant dense<0.000000e+00> : vector<8x128xf32>
    %269 = tpu.matmul %267, %268, %cst_83 {dimension_numbers = #tpu.dot_dimension_numbers<[1], [0], [0], [1], [0, 0, 1, 1], [], []>} : vector<8x128xf32>, vector<128x128xf32>, vector<8x128xf32> -> vector<8x128xf32>
    %270 = arith.addf %269, %23 : vector<8x128xf32>
    %cst_84 = arith.constant dense<0xFF800000> : vector<8xf32>
    %271 = vector.multi_reduction <maximumf>, %270, %cst_84 [1] : vector<8x128xf32> to vector<8xf32>
    %272 = vector.shape_cast %271 : vector<8xf32> to vector<8x1xf32>
    %273 = vector.broadcast %272 : vector<8x1xf32> to vector<8x128xf32>
    %274 = arith.cmpf oeq, %270, %273 : vector<8x128xf32>
    %c128_i32_85 = arith.constant 128 : i32
    %275 = vector.shape_cast %0 : vector<1x128xi32> to vector<1x128xi32>
    %276 = vector.broadcast %275 : vector<1x128xi32> to vector<8x128xi32>
    %277 = vector.broadcast %c128_i32_85 : i32 to vector<8x128xi32>
    %278 = arith.select %274, %276, %277 : vector<8x128xi1>, vector<8x128xi32>
    %cst_86 = arith.constant dense<2147483647> : vector<8xi32>
    %279 = vector.multi_reduction <minsi>, %278, %cst_86 [1] : vector<8x128xi32> to vector<8xi32>
    %280 = vector.shape_cast %279 : vector<8xi32> to vector<8x1xi32>
    %281 = arith.sitofp %280 : vector<8x1xi32> to vector<8x1xf32>
    %282 = arith.addf %270, %238 : vector<8x128xf32>
    %cst_87 = arith.constant dense<0xFF800000> : vector<8xf32>
    %283 = vector.multi_reduction <maximumf>, %282, %cst_87 [1] : vector<8x128xf32> to vector<8xf32>
    %284 = vector.shape_cast %283 : vector<8xf32> to vector<8x1xf32>
    %285 = vector.broadcast %284 : vector<8x1xf32> to vector<8x128xf32>
    %286 = arith.cmpf oeq, %282, %285 : vector<8x128xf32>
    %c128_i32_88 = arith.constant 128 : i32
    %287 = vector.shape_cast %0 : vector<1x128xi32> to vector<1x128xi32>
    %288 = vector.broadcast %287 : vector<1x128xi32> to vector<8x128xi32>
    %289 = vector.broadcast %c128_i32_88 : i32 to vector<8x128xi32>
    %290 = arith.select %286, %288, %289 : vector<8x128xi1>, vector<8x128xi32>
    %cst_89 = arith.constant dense<2147483647> : vector<8xi32>
    %291 = vector.multi_reduction <minsi>, %290, %cst_89 [1] : vector<8x128xi32> to vector<8xi32>
    %292 = vector.shape_cast %291 : vector<8xi32> to vector<8x1xi32>
    %293 = arith.sitofp %292 : vector<8x1xi32> to vector<8x1xf32>
    %294 = vector.broadcast %284 : vector<8x1xf32> to vector<8x128xf32>
    %295 = arith.subf %282, %294 : vector<8x128xf32>
    %296 = math.exp %295 : vector<8x128xf32>
    %cst_90 = arith.constant dense<0.000000e+00> : vector<8xf32>
    %297 = vector.multi_reduction <add>, %296, %cst_90 [1] : vector<8x128xf32> to vector<8xf32>
    %298 = vector.shape_cast %297 : vector<8xf32> to vector<8x1xf32>
    %299 = math.log %298 : vector<8x1xf32>
    %cst_91 = arith.constant 0.000000e+00 : f32
    %300 = vector.broadcast %cst_91 : f32 to vector<8x1xf32>
    %301 = arith.subf %300, %299 : vector<8x1xf32>
    %302 = vector.broadcast %293 : vector<8x1xf32> to vector<8x8xf32>
    %303 = arith.mulf %302, %5 : vector<8x8xf32>
    %cst_92 = arith.constant dense<0.000000e+00> : vector<8xf32>
    %304 = vector.multi_reduction <add>, %303, %cst_92 [0] : vector<8x8xf32> to vector<8xf32>
    %305 = vector.shape_cast %304 : vector<8xf32> to vector<1x8xf32>
    %306 = arith.index_cast %c3_i32 : i32 to index
    %c0_93 = arith.constant 0 : index
    %307 = vector.load %arg10[%306, %c0_93] : memref<128x8xf32, #tpu.memory_space<vmem>>, vector<1x8xf32>
    tpu.vector_store %arg10[%306, %c0_93], %305 {strides = array<i32>} : memref<128x8xf32, #tpu.memory_space<vmem>>, vector<1x8xf32>,
    %308 = vector.broadcast %301 : vector<8x1xf32> to vector<8x8xf32>
    %309 = arith.mulf %308, %5 : vector<8x8xf32>
    %cst_94 = arith.constant dense<0.000000e+00> : vector<8xf32>
    %310 = vector.multi_reduction <add>, %309, %cst_94 [0] : vector<8x8xf32> to vector<8xf32>
    %311 = vector.shape_cast %310 : vector<8xf32> to vector<1x8xf32>
    %312 = arith.index_cast %c3_i32 : i32 to index
    %c0_95 = arith.constant 0 : index
    %313 = vector.load %arg11[%312, %c0_95] : memref<128x8xf32, #tpu.memory_space<vmem>>, vector<1x8xf32>
    tpu.vector_store %arg11[%312, %c0_95], %311 {strides = array<i32>} : memref<128x8xf32, #tpu.memory_space<vmem>>, vector<1x8xf32>,
    %314 = vector.broadcast %0 : vector<1x128xi32> to vector<8x128xi32>
    %315 = vector.broadcast %292 : vector<8x1xi32> to vector<8x128xi32>
    %316 = arith.cmpi eq, %314, %315 : vector<8x128xi32>
    %cst_96 = arith.constant -1.000000e+30 : f32
    %317 = vector.broadcast %cst_96 : f32 to vector<8x128xf32>
    %318 = arith.select %316, %317, %238 : vector<8x128xi1>, vector<8x128xf32>
    %c4_i32 = arith.constant 4 : i32
    %319 = vector.broadcast %281 : vector<8x1xf32> to vector<8x128xf32>
    %320 = arith.mulf %319, %8 : vector<8x128xf32>
    %321 = arith.addf %320, %11 : vector<8x128xf32>
    %cst_97 = arith.constant 0.000000e+00 : f32
    %322 = vector.broadcast %cst_97 : f32 to vector<8x128xf32>
    %323 = arith.maximumf %321, %322 : vector<8x128xf32>
    %324 = tpu.concatenate %323, %267 in 1 : vector<8x128xf32>, vector<8x128xf32> -> vector<8x256xf32>
    %c0_98 = arith.constant 0 : index
    %c0_99 = arith.constant 0 : index
    %325 = vector.load %arg4[%c0_98, %c0_99] : memref<256x512xf32, #tpu.memory_space<vmem>>, vector<256x512xf32>
    %cst_100 = arith.constant dense<0.000000e+00> : vector<8x512xf32>
    %326 = tpu.matmul %324, %325, %cst_100 {dimension_numbers = #tpu.dot_dimension_numbers<[1], [0], [0], [1], [0, 0, 1, 1], [], []>} : vector<8x256xf32>, vector<256x512xf32>, vector<8x512xf32> -> vector<8x512xf32>
    %327 = vector.extract_strided_slice %326 {offsets = [0, 0], sizes = [8, 256], strides = [1, 1]} : vector<8x512xf32> to vector<8x256xf32>
    %328 = arith.addf %327, %14 : vector<8x256xf32>
    %329 = arith.negf %328 : vector<8x256xf32>
    %330 = math.exp %329 : vector<8x256xf32>
    %cst_101 = arith.constant 1.000000e+00 : f32
    %331 = vector.broadcast %cst_101 : f32 to vector<8x256xf32>
    %332 = arith.addf %331, %330 : vector<8x256xf32>
    %333 = arith.divf %331, %332 : vector<8x256xf32>
    %334 = vector.extract_strided_slice %333 {offsets = [0, 0], sizes = [8, 128], strides = [1, 1]} : vector<8x256xf32> to vector<8x128xf32>
    %335 = vector.extract_strided_slice %333 {offsets = [0, 128], sizes = [8, 128], strides = [1, 1]} : vector<8x256xf32> to vector<8x128xf32>
    %336 = vector.extract_strided_slice %326 {offsets = [0, 256], sizes = [8, 128], strides = [1, 1]} : vector<8x512xf32> to vector<8x128xf32>
    %337 = arith.addf %336, %17 : vector<8x128xf32>
    %338 = vector.extract_strided_slice %326 {offsets = [0, 384], sizes = [8, 128], strides = [1, 1]} : vector<8x512xf32> to vector<8x128xf32>
    %339 = arith.addf %338, %20 : vector<8x128xf32>
    %340 = arith.mulf %334, %339 : vector<8x128xf32>
    %341 = arith.addf %337, %340 : vector<8x128xf32>
    %342 = math.tanh %341 : vector<8x128xf32>
    %cst_102 = arith.constant 1.000000e+00 : f32
    %343 = vector.broadcast %cst_102 : f32 to vector<8x128xf32>
    %344 = arith.subf %343, %335 : vector<8x128xf32>
    %345 = arith.mulf %344, %342 : vector<8x128xf32>
    %346 = arith.mulf %335, %267 : vector<8x128xf32>
    %347 = arith.addf %345, %346 : vector<8x128xf32>
    %c0_103 = arith.constant 0 : index
    %c0_104 = arith.constant 0 : index
    %348 = vector.load %arg8[%c0_103, %c0_104] : memref<128x128xf32, #tpu.memory_space<vmem>>, vector<128x128xf32>
    %cst_105 = arith.constant dense<0.000000e+00> : vector<8x128xf32>
    %349 = tpu.matmul %347, %348, %cst_105 {dimension_numbers = #tpu.dot_dimension_numbers<[1], [0], [0], [1], [0, 0, 1, 1], [], []>} : vector<8x128xf32>, vector<128x128xf32>, vector<8x128xf32> -> vector<8x128xf32>
    %350 = arith.addf %349, %23 : vector<8x128xf32>
    %cst_106 = arith.constant dense<0xFF800000> : vector<8xf32>
    %351 = vector.multi_reduction <maximumf>, %350, %cst_106 [1] : vector<8x128xf32> to vector<8xf32>
    %352 = vector.shape_cast %351 : vector<8xf32> to vector<8x1xf32>
    %353 = vector.broadcast %352 : vector<8x1xf32> to vector<8x128xf32>
    %354 = arith.cmpf oeq, %350, %353 : vector<8x128xf32>
    %c128_i32_107 = arith.constant 128 : i32
    %355 = vector.shape_cast %0 : vector<1x128xi32> to vector<1x128xi32>
    %356 = vector.broadcast %355 : vector<1x128xi32> to vector<8x128xi32>
    %357 = vector.broadcast %c128_i32_107 : i32 to vector<8x128xi32>
    %358 = arith.select %354, %356, %357 : vector<8x128xi1>, vector<8x128xi32>
    %cst_108 = arith.constant dense<2147483647> : vector<8xi32>
    %359 = vector.multi_reduction <minsi>, %358, %cst_108 [1] : vector<8x128xi32> to vector<8xi32>
    %360 = vector.shape_cast %359 : vector<8xi32> to vector<8x1xi32>
    %361 = arith.sitofp %360 : vector<8x1xi32> to vector<8x1xf32>
    %362 = arith.addf %350, %318 : vector<8x128xf32>
    %cst_109 = arith.constant dense<0xFF800000> : vector<8xf32>
    %363 = vector.multi_reduction <maximumf>, %362, %cst_109 [1] : vector<8x128xf32> to vector<8xf32>
    %364 = vector.shape_cast %363 : vector<8xf32> to vector<8x1xf32>
    %365 = vector.broadcast %364 : vector<8x1xf32> to vector<8x128xf32>
    %366 = arith.cmpf oeq, %362, %365 : vector<8x128xf32>
    %c128_i32_110 = arith.constant 128 : i32
    %367 = vector.shape_cast %0 : vector<1x128xi32> to vector<1x128xi32>
    %368 = vector.broadcast %367 : vector<1x128xi32> to vector<8x128xi32>
    %369 = vector.broadcast %c128_i32_110 : i32 to vector<8x128xi32>
    %370 = arith.select %366, %368, %369 : vector<8x128xi1>, vector<8x128xi32>
    %cst_111 = arith.constant dense<2147483647> : vector<8xi32>
    %371 = vector.multi_reduction <minsi>, %370, %cst_111 [1] : vector<8x128xi32> to vector<8xi32>
    %372 = vector.shape_cast %371 : vector<8xi32> to vector<8x1xi32>
    %373 = arith.sitofp %372 : vector<8x1xi32> to vector<8x1xf32>
    %374 = vector.broadcast %364 : vector<8x1xf32> to vector<8x128xf32>
    %375 = arith.subf %362, %374 : vector<8x128xf32>
    %376 = math.exp %375 : vector<8x128xf32>
    %cst_112 = arith.constant dense<0.000000e+00> : vector<8xf32>
    %377 = vector.multi_reduction <add>, %376, %cst_112 [1] : vector<8x128xf32> to vector<8xf32>
    %378 = vector.shape_cast %377 : vector<8xf32> to vector<8x1xf32>
    %379 = math.log %378 : vector<8x1xf32>
    %cst_113 = arith.constant 0.000000e+00 : f32
    %380 = vector.broadcast %cst_113 : f32 to vector<8x1xf32>
    %381 = arith.subf %380, %379 : vector<8x1xf32>
    %382 = vector.broadcast %373 : vector<8x1xf32> to vector<8x8xf32>
    %383 = arith.mulf %382, %5 : vector<8x8xf32>
    %cst_114 = arith.constant dense<0.000000e+00> : vector<8xf32>
    %384 = vector.multi_reduction <add>, %383, %cst_114 [0] : vector<8x8xf32> to vector<8xf32>
    %385 = vector.shape_cast %384 : vector<8xf32> to vector<1x8xf32>
    %386 = arith.index_cast %c4_i32 : i32 to index
    %c0_115 = arith.constant 0 : index
    %387 = vector.load %arg10[%386, %c0_115] : memref<128x8xf32, #tpu.memory_space<vmem>>, vector<1x8xf32>
    tpu.vector_store %arg10[%386, %c0_115], %385 {strides = array<i32>} : memref<128x8xf32, #tpu.memory_space<vmem>>, vector<1x8xf32>,
    %388 = vector.broadcast %381 : vector<8x1xf32> to vector<8x8xf32>
    %389 = arith.mulf %388, %5 : vector<8x8xf32>
    %cst_116 = arith.constant dense<0.000000e+00> : vector<8xf32>
    %390 = vector.multi_reduction <add>, %389, %cst_116 [0] : vector<8x8xf32> to vector<8xf32>
    %391 = vector.shape_cast %390 : vector<8xf32> to vector<1x8xf32>
    %392 = arith.index_cast %c4_i32 : i32 to index
    %c0_117 = arith.constant 0 : index
    %393 = vector.load %arg11[%392, %c0_117] : memref<128x8xf32, #tpu.memory_space<vmem>>, vector<1x8xf32>
    tpu.vector_store %arg11[%392, %c0_117], %391 {strides = array<i32>} : memref<128x8xf32, #tpu.memory_space<vmem>>, vector<1x8xf32>,
    %394 = vector.broadcast %0 : vector<1x128xi32> to vector<8x128xi32>
    %395 = vector.broadcast %372 : vector<8x1xi32> to vector<8x128xi32>
    %396 = arith.cmpi eq, %394, %395 : vector<8x128xi32>
    %cst_118 = arith.constant -1.000000e+30 : f32
    %397 = vector.broadcast %cst_118 : f32 to vector<8x128xf32>
    %398 = arith.select %396, %397, %318 : vector<8x128xi1>, vector<8x128xf32>
    %c5_i32 = arith.constant 5 : i32
    %399 = vector.broadcast %361 : vector<8x1xf32> to vector<8x128xf32>
    %400 = arith.mulf %399, %8 : vector<8x128xf32>
    %401 = arith.addf %400, %11 : vector<8x128xf32>
    %cst_119 = arith.constant 0.000000e+00 : f32
    %402 = vector.broadcast %cst_119 : f32 to vector<8x128xf32>
    %403 = arith.maximumf %401, %402 : vector<8x128xf32>
    %404 = tpu.concatenate %403, %347 in 1 : vector<8x128xf32>, vector<8x128xf32> -> vector<8x256xf32>
    %c0_120 = arith.constant 0 : index
    %c0_121 = arith.constant 0 : index
    %405 = vector.load %arg4[%c0_120, %c0_121] : memref<256x512xf32, #tpu.memory_space<vmem>>, vector<256x512xf32>
    %cst_122 = arith.constant dense<0.000000e+00> : vector<8x512xf32>
    %406 = tpu.matmul %404, %405, %cst_122 {dimension_numbers = #tpu.dot_dimension_numbers<[1], [0], [0], [1], [0, 0, 1, 1], [], []>} : vector<8x256xf32>, vector<256x512xf32>, vector<8x512xf32> -> vector<8x512xf32>
    %407 = vector.extract_strided_slice %406 {offsets = [0, 0], sizes = [8, 256], strides = [1, 1]} : vector<8x512xf32> to vector<8x256xf32>
    %408 = arith.addf %407, %14 : vector<8x256xf32>
    %409 = arith.negf %408 : vector<8x256xf32>
    %410 = math.exp %409 : vector<8x256xf32>
    %cst_123 = arith.constant 1.000000e+00 : f32
    %411 = vector.broadcast %cst_123 : f32 to vector<8x256xf32>
    %412 = arith.addf %411, %410 : vector<8x256xf32>
    %413 = arith.divf %411, %412 : vector<8x256xf32>
    %414 = vector.extract_strided_slice %413 {offsets = [0, 0], sizes = [8, 128], strides = [1, 1]} : vector<8x256xf32> to vector<8x128xf32>
    %415 = vector.extract_strided_slice %413 {offsets = [0, 128], sizes = [8, 128], strides = [1, 1]} : vector<8x256xf32> to vector<8x128xf32>
    %416 = vector.extract_strided_slice %406 {offsets = [0, 256], sizes = [8, 128], strides = [1, 1]} : vector<8x512xf32> to vector<8x128xf32>
    %417 = arith.addf %416, %17 : vector<8x128xf32>
    %418 = vector.extract_strided_slice %406 {offsets = [0, 384], sizes = [8, 128], strides = [1, 1]} : vector<8x512xf32> to vector<8x128xf32>
    %419 = arith.addf %418, %20 : vector<8x128xf32>
    %420 = arith.mulf %414, %419 : vector<8x128xf32>
    %421 = arith.addf %417, %420 : vector<8x128xf32>
    %422 = math.tanh %421 : vector<8x128xf32>
    %cst_124 = arith.constant 1.000000e+00 : f32
    %423 = vector.broadcast %cst_124 : f32 to vector<8x128xf32>
    %424 = arith.subf %423, %415 : vector<8x128xf32>
    %425 = arith.mulf %424, %422 : vector<8x128xf32>
    %426 = arith.mulf %415, %347 : vector<8x128xf32>
    %427 = arith.addf %425, %426 : vector<8x128xf32>
    %c0_125 = arith.constant 0 : index
    %c0_126 = arith.constant 0 : index
    %428 = vector.load %arg8[%c0_125, %c0_126] : memref<128x128xf32, #tpu.memory_space<vmem>>, vector<128x128xf32>
    %cst_127 = arith.constant dense<0.000000e+00> : vector<8x128xf32>
    %429 = tpu.matmul %427, %428, %cst_127 {dimension_numbers = #tpu.dot_dimension_numbers<[1], [0], [0], [1], [0, 0, 1, 1], [], []>} : vector<8x128xf32>, vector<128x128xf32>, vector<8x128xf32> -> vector<8x128xf32>
    %430 = arith.addf %429, %23 : vector<8x128xf32>
    %cst_128 = arith.constant dense<0xFF800000> : vector<8xf32>
    %431 = vector.multi_reduction <maximumf>, %430, %cst_128 [1] : vector<8x128xf32> to vector<8xf32>
    %432 = vector.shape_cast %431 : vector<8xf32> to vector<8x1xf32>
    %433 = vector.broadcast %432 : vector<8x1xf32> to vector<8x128xf32>
    %434 = arith.cmpf oeq, %430, %433 : vector<8x128xf32>
    %c128_i32_129 = arith.constant 128 : i32
    %435 = vector.shape_cast %0 : vector<1x128xi32> to vector<1x128xi32>
    %436 = vector.broadcast %435 : vector<1x128xi32> to vector<8x128xi32>
    %437 = vector.broadcast %c128_i32_129 : i32 to vector<8x128xi32>
    %438 = arith.select %434, %436, %437 : vector<8x128xi1>, vector<8x128xi32>
    %cst_130 = arith.constant dense<2147483647> : vector<8xi32>
    %439 = vector.multi_reduction <minsi>, %438, %cst_130 [1] : vector<8x128xi32> to vector<8xi32>
    %440 = vector.shape_cast %439 : vector<8xi32> to vector<8x1xi32>
    %441 = arith.sitofp %440 : vector<8x1xi32> to vector<8x1xf32>
    %442 = arith.addf %430, %398 : vector<8x128xf32>
    %cst_131 = arith.constant dense<0xFF800000> : vector<8xf32>
    %443 = vector.multi_reduction <maximumf>, %442, %cst_131 [1] : vector<8x128xf32> to vector<8xf32>
    %444 = vector.shape_cast %443 : vector<8xf32> to vector<8x1xf32>
    %445 = vector.broadcast %444 : vector<8x1xf32> to vector<8x128xf32>
    %446 = arith.cmpf oeq, %442, %445 : vector<8x128xf32>
    %c128_i32_132 = arith.constant 128 : i32
    %447 = vector.shape_cast %0 : vector<1x128xi32> to vector<1x128xi32>
    %448 = vector.broadcast %447 : vector<1x128xi32> to vector<8x128xi32>
    %449 = vector.broadcast %c128_i32_132 : i32 to vector<8x128xi32>
    %450 = arith.select %446, %448, %449 : vector<8x128xi1>, vector<8x128xi32>
    %cst_133 = arith.constant dense<2147483647> : vector<8xi32>
    %451 = vector.multi_reduction <minsi>, %450, %cst_133 [1] : vector<8x128xi32> to vector<8xi32>
    %452 = vector.shape_cast %451 : vector<8xi32> to vector<8x1xi32>
    %453 = arith.sitofp %452 : vector<8x1xi32> to vector<8x1xf32>
    %454 = vector.broadcast %444 : vector<8x1xf32> to vector<8x128xf32>
    %455 = arith.subf %442, %454 : vector<8x128xf32>
    %456 = math.exp %455 : vector<8x128xf32>
    %cst_134 = arith.constant dense<0.000000e+00> : vector<8xf32>
    %457 = vector.multi_reduction <add>, %456, %cst_134 [1] : vector<8x128xf32> to vector<8xf32>
    %458 = vector.shape_cast %457 : vector<8xf32> to vector<8x1xf32>
    %459 = math.log %458 : vector<8x1xf32>
    %cst_135 = arith.constant 0.000000e+00 : f32
    %460 = vector.broadcast %cst_135 : f32 to vector<8x1xf32>
    %461 = arith.subf %460, %459 : vector<8x1xf32>
    %462 = vector.broadcast %453 : vector<8x1xf32> to vector<8x8xf32>
    %463 = arith.mulf %462, %5 : vector<8x8xf32>
    %cst_136 = arith.constant dense<0.000000e+00> : vector<8xf32>
    %464 = vector.multi_reduction <add>, %463, %cst_136 [0] : vector<8x8xf32> to vector<8xf32>
    %465 = vector.shape_cast %464 : vector<8xf32> to vector<1x8xf32>
    %466 = arith.index_cast %c5_i32 : i32 to index
    %c0_137 = arith.constant 0 : index
    %467 = vector.load %arg10[%466, %c0_137] : memref<128x8xf32, #tpu.memory_space<vmem>>, vector<1x8xf32>
    tpu.vector_store %arg10[%466, %c0_137], %465 {strides = array<i32>} : memref<128x8xf32, #tpu.memory_space<vmem>>, vector<1x8xf32>,
    %468 = vector.broadcast %461 : vector<8x1xf32> to vector<8x8xf32>
    %469 = arith.mulf %468, %5 : vector<8x8xf32>
    %cst_138 = arith.constant dense<0.000000e+00> : vector<8xf32>
    %470 = vector.multi_reduction <add>, %469, %cst_138 [0] : vector<8x8xf32> to vector<8xf32>
    %471 = vector.shape_cast %470 : vector<8xf32> to vector<1x8xf32>
    %472 = arith.index_cast %c5_i32 : i32 to index
    %c0_139 = arith.constant 0 : index
    %473 = vector.load %arg11[%472, %c0_139] : memref<128x8xf32, #tpu.memory_space<vmem>>, vector<1x8xf32>
    tpu.vector_store %arg11[%472, %c0_139], %471 {strides = array<i32>} : memref<128x8xf32, #tpu.memory_space<vmem>>, vector<1x8xf32>,
    %474 = vector.broadcast %0 : vector<1x128xi32> to vector<8x128xi32>
    %475 = vector.broadcast %452 : vector<8x1xi32> to vector<8x128xi32>
    %476 = arith.cmpi eq, %474, %475 : vector<8x128xi32>
    %cst_140 = arith.constant -1.000000e+30 : f32
    %477 = vector.broadcast %cst_140 : f32 to vector<8x128xf32>
    %478 = arith.select %476, %477, %398 : vector<8x128xi1>, vector<8x128xf32>
    %c6_i32 = arith.constant 6 : i32
    %479 = vector.broadcast %441 : vector<8x1xf32> to vector<8x128xf32>
    %480 = arith.mulf %479, %8 : vector<8x128xf32>
    %481 = arith.addf %480, %11 : vector<8x128xf32>
    %cst_141 = arith.constant 0.000000e+00 : f32
    %482 = vector.broadcast %cst_141 : f32 to vector<8x128xf32>
    %483 = arith.maximumf %481, %482 : vector<8x128xf32>
    %484 = tpu.concatenate %483, %427 in 1 : vector<8x128xf32>, vector<8x128xf32> -> vector<8x256xf32>
    %c0_142 = arith.constant 0 : index
    %c0_143 = arith.constant 0 : index
    %485 = vector.load %arg4[%c0_142, %c0_143] : memref<256x512xf32, #tpu.memory_space<vmem>>, vector<256x512xf32>
    %cst_144 = arith.constant dense<0.000000e+00> : vector<8x512xf32>
    %486 = tpu.matmul %484, %485, %cst_144 {dimension_numbers = #tpu.dot_dimension_numbers<[1], [0], [0], [1], [0, 0, 1, 1], [], []>} : vector<8x256xf32>, vector<256x512xf32>, vector<8x512xf32> -> vector<8x512xf32>
    %487 = vector.extract_strided_slice %486 {offsets = [0, 0], sizes = [8, 256], strides = [1, 1]} : vector<8x512xf32> to vector<8x256xf32>
    %488 = arith.addf %487, %14 : vector<8x256xf32>
    %489 = arith.negf %488 : vector<8x256xf32>
    %490 = math.exp %489 : vector<8x256xf32>
    %cst_145 = arith.constant 1.000000e+00 : f32
    %491 = vector.broadcast %cst_145 : f32 to vector<8x256xf32>
    %492 = arith.addf %491, %490 : vector<8x256xf32>
    %493 = arith.divf %491, %492 : vector<8x256xf32>
    %494 = vector.extract_strided_slice %493 {offsets = [0, 0], sizes = [8, 128], strides = [1, 1]} : vector<8x256xf32> to vector<8x128xf32>
    %495 = vector.extract_strided_slice %493 {offsets = [0, 128], sizes = [8, 128], strides = [1, 1]} : vector<8x256xf32> to vector<8x128xf32>
    %496 = vector.extract_strided_slice %486 {offsets = [0, 256], sizes = [8, 128], strides = [1, 1]} : vector<8x512xf32> to vector<8x128xf32>
    %497 = arith.addf %496, %17 : vector<8x128xf32>
    %498 = vector.extract_strided_slice %486 {offsets = [0, 384], sizes = [8, 128], strides = [1, 1]} : vector<8x512xf32> to vector<8x128xf32>
    %499 = arith.addf %498, %20 : vector<8x128xf32>
    %500 = arith.mulf %494, %499 : vector<8x128xf32>
    %501 = arith.addf %497, %500 : vector<8x128xf32>
    %502 = math.tanh %501 : vector<8x128xf32>
    %cst_146 = arith.constant 1.000000e+00 : f32
    %503 = vector.broadcast %cst_146 : f32 to vector<8x128xf32>
    %504 = arith.subf %503, %495 : vector<8x128xf32>
    %505 = arith.mulf %504, %502 : vector<8x128xf32>
    %506 = arith.mulf %495, %427 : vector<8x128xf32>
    %507 = arith.addf %505, %506 : vector<8x128xf32>
    %c0_147 = arith.constant 0 : index
    %c0_148 = arith.constant 0 : index
    %508 = vector.load %arg8[%c0_147, %c0_148] : memref<128x128xf32, #tpu.memory_space<vmem>>, vector<128x128xf32>
    %cst_149 = arith.constant dense<0.000000e+00> : vector<8x128xf32>
    %509 = tpu.matmul %507, %508, %cst_149 {dimension_numbers = #tpu.dot_dimension_numbers<[1], [0], [0], [1], [0, 0, 1, 1], [], []>} : vector<8x128xf32>, vector<128x128xf32>, vector<8x128xf32> -> vector<8x128xf32>
    %510 = arith.addf %509, %23 : vector<8x128xf32>
    %cst_150 = arith.constant dense<0xFF800000> : vector<8xf32>
    %511 = vector.multi_reduction <maximumf>, %510, %cst_150 [1] : vector<8x128xf32> to vector<8xf32>
    %512 = vector.shape_cast %511 : vector<8xf32> to vector<8x1xf32>
    %513 = vector.broadcast %512 : vector<8x1xf32> to vector<8x128xf32>
    %514 = arith.cmpf oeq, %510, %513 : vector<8x128xf32>
    %c128_i32_151 = arith.constant 128 : i32
    %515 = vector.shape_cast %0 : vector<1x128xi32> to vector<1x128xi32>
    %516 = vector.broadcast %515 : vector<1x128xi32> to vector<8x128xi32>
    %517 = vector.broadcast %c128_i32_151 : i32 to vector<8x128xi32>
    %518 = arith.select %514, %516, %517 : vector<8x128xi1>, vector<8x128xi32>
    %cst_152 = arith.constant dense<2147483647> : vector<8xi32>
    %519 = vector.multi_reduction <minsi>, %518, %cst_152 [1] : vector<8x128xi32> to vector<8xi32>
    %520 = vector.shape_cast %519 : vector<8xi32> to vector<8x1xi32>
    %521 = arith.sitofp %520 : vector<8x1xi32> to vector<8x1xf32>
    %522 = arith.addf %510, %478 : vector<8x128xf32>
    %cst_153 = arith.constant dense<0xFF800000> : vector<8xf32>
    %523 = vector.multi_reduction <maximumf>, %522, %cst_153 [1] : vector<8x128xf32> to vector<8xf32>
    %524 = vector.shape_cast %523 : vector<8xf32> to vector<8x1xf32>
    %525 = vector.broadcast %524 : vector<8x1xf32> to vector<8x128xf32>
    %526 = arith.cmpf oeq, %522, %525 : vector<8x128xf32>
    %c128_i32_154 = arith.constant 128 : i32
    %527 = vector.shape_cast %0 : vector<1x128xi32> to vector<1x128xi32>
    %528 = vector.broadcast %527 : vector<1x128xi32> to vector<8x128xi32>
    %529 = vector.broadcast %c128_i32_154 : i32 to vector<8x128xi32>
    %530 = arith.select %526, %528, %529 : vector<8x128xi1>, vector<8x128xi32>
    %cst_155 = arith.constant dense<2147483647> : vector<8xi32>
    %531 = vector.multi_reduction <minsi>, %530, %cst_155 [1] : vector<8x128xi32> to vector<8xi32>
    %532 = vector.shape_cast %531 : vector<8xi32> to vector<8x1xi32>
    %533 = arith.sitofp %532 : vector<8x1xi32> to vector<8x1xf32>
    %534 = vector.broadcast %524 : vector<8x1xf32> to vector<8x128xf32>
    %535 = arith.subf %522, %534 : vector<8x128xf32>
    %536 = math.exp %535 : vector<8x128xf32>
    %cst_156 = arith.constant dense<0.000000e+00> : vector<8xf32>
    %537 = vector.multi_reduction <add>, %536, %cst_156 [1] : vector<8x128xf32> to vector<8xf32>
    %538 = vector.shape_cast %537 : vector<8xf32> to vector<8x1xf32>
    %539 = math.log %538 : vector<8x1xf32>
    %cst_157 = arith.constant 0.000000e+00 : f32
    %540 = vector.broadcast %cst_157 : f32 to vector<8x1xf32>
    %541 = arith.subf %540, %539 : vector<8x1xf32>
    %542 = vector.broadcast %533 : vector<8x1xf32> to vector<8x8xf32>
    %543 = arith.mulf %542, %5 : vector<8x8xf32>
    %cst_158 = arith.constant dense<0.000000e+00> : vector<8xf32>
    %544 = vector.multi_reduction <add>, %543, %cst_158 [0] : vector<8x8xf32> to vector<8xf32>
    %545 = vector.shape_cast %544 : vector<8xf32> to vector<1x8xf32>
    %546 = arith.index_cast %c6_i32 : i32 to index
    %c0_159 = arith.constant 0 : index
    %547 = vector.load %arg10[%546, %c0_159] : memref<128x8xf32, #tpu.memory_space<vmem>>, vector<1x8xf32>
    tpu.vector_store %arg10[%546, %c0_159], %545 {strides = array<i32>} : memref<128x8xf32, #tpu.memory_space<vmem>>, vector<1x8xf32>,
    %548 = vector.broadcast %541 : vector<8x1xf32> to vector<8x8xf32>
    %549 = arith.mulf %548, %5 : vector<8x8xf32>
    %cst_160 = arith.constant dense<0.000000e+00> : vector<8xf32>
    %550 = vector.multi_reduction <add>, %549, %cst_160 [0] : vector<8x8xf32> to vector<8xf32>
    %551 = vector.shape_cast %550 : vector<8xf32> to vector<1x8xf32>
    %552 = arith.index_cast %c6_i32 : i32 to index
    %c0_161 = arith.constant 0 : index
    %553 = vector.load %arg11[%552, %c0_161] : memref<128x8xf32, #tpu.memory_space<vmem>>, vector<1x8xf32>
    tpu.vector_store %arg11[%552, %c0_161], %551 {strides = array<i32>} : memref<128x8xf32, #tpu.memory_space<vmem>>, vector<1x8xf32>,
    %554 = vector.broadcast %0 : vector<1x128xi32> to vector<8x128xi32>
    %555 = vector.broadcast %532 : vector<8x1xi32> to vector<8x128xi32>
    %556 = arith.cmpi eq, %554, %555 : vector<8x128xi32>
    %cst_162 = arith.constant -1.000000e+30 : f32
    %557 = vector.broadcast %cst_162 : f32 to vector<8x128xf32>
    %558 = arith.select %556, %557, %478 : vector<8x128xi1>, vector<8x128xf32>
    %c6_i32_163 = arith.constant 6 : i32
    %559 = vector.broadcast %521 : vector<8x1xf32> to vector<8x128xf32>
    %560 = arith.mulf %559, %8 : vector<8x128xf32>
    %561 = arith.addf %560, %11 : vector<8x128xf32>
    %cst_164 = arith.constant 0.000000e+00 : f32
    %562 = vector.broadcast %cst_164 : f32 to vector<8x128xf32>
    %563 = arith.maximumf %561, %562 : vector<8x128xf32>
    %564 = tpu.concatenate %563, %507 in 1 : vector<8x128xf32>, vector<8x128xf32> -> vector<8x256xf32>
    %c0_165 = arith.constant 0 : index
    %c0_166 = arith.constant 0 : index
    %565 = vector.load %arg4[%c0_165, %c0_166] : memref<256x512xf32, #tpu.memory_space<vmem>>, vector<256x512xf32>
    %cst_167 = arith.constant dense<0.000000e+00> : vector<8x512xf32>
    %566 = tpu.matmul %564, %565, %cst_167 {dimension_numbers = #tpu.dot_dimension_numbers<[1], [0], [0], [1], [0, 0, 1, 1], [], []>} : vector<8x256xf32>, vector<256x512xf32>, vector<8x512xf32> -> vector<8x512xf32>
    %567 = vector.extract_strided_slice %566 {offsets = [0, 0], sizes = [8, 256], strides = [1, 1]} : vector<8x512xf32> to vector<8x256xf32>
    %568 = arith.addf %567, %14 : vector<8x256xf32>
    %569 = arith.negf %568 : vector<8x256xf32>
    %570 = math.exp %569 : vector<8x256xf32>
    %cst_168 = arith.constant 1.000000e+00 : f32
    %571 = vector.broadcast %cst_168 : f32 to vector<8x256xf32>
    %572 = arith.addf %571, %570 : vector<8x256xf32>
    %573 = arith.divf %571, %572 : vector<8x256xf32>
    %574 = vector.extract_strided_slice %573 {offsets = [0, 0], sizes = [8, 128], strides = [1, 1]} : vector<8x256xf32> to vector<8x128xf32>
    %575 = vector.extract_strided_slice %573 {offsets = [0, 128], sizes = [8, 128], strides = [1, 1]} : vector<8x256xf32> to vector<8x128xf32>
    %576 = vector.extract_strided_slice %566 {offsets = [0, 256], sizes = [8, 128], strides = [1, 1]} : vector<8x512xf32> to vector<8x128xf32>
    %577 = arith.addf %576, %17 : vector<8x128xf32>
    %578 = vector.extract_strided_slice %566 {offsets = [0, 384], sizes = [8, 128], strides = [1, 1]} : vector<8x512xf32> to vector<8x128xf32>
    %579 = arith.addf %578, %20 : vector<8x128xf32>
    %580 = arith.mulf %574, %579 : vector<8x128xf32>
    %581 = arith.addf %577, %580 : vector<8x128xf32>
    %582 = math.tanh %581 : vector<8x128xf32>
    %cst_169 = arith.constant 1.000000e+00 : f32
    %583 = vector.broadcast %cst_169 : f32 to vector<8x128xf32>
    %584 = arith.subf %583, %575 : vector<8x128xf32>
    %585 = arith.mulf %584, %582 : vector<8x128xf32>
    %586 = arith.mulf %575, %507 : vector<8x128xf32>
    %587 = arith.addf %585, %586 : vector<8x128xf32>
    %c0_170 = arith.constant 0 : index
    %c0_171 = arith.constant 0 : index
    %588 = vector.load %arg8[%c0_170, %c0_171] : memref<128x128xf32, #tpu.memory_space<vmem>>, vector<128x128xf32>
    %cst_172 = arith.constant dense<0.000000e+00> : vector<8x128xf32>
    %589 = tpu.matmul %587, %588, %cst_172 {dimension_numbers = #tpu.dot_dimension_numbers<[1], [0], [0], [1], [0, 0, 1, 1], [], []>} : vector<8x128xf32>, vector<128x128xf32>, vector<8x128xf32> -> vector<8x128xf32>
    %590 = arith.addf %589, %23 : vector<8x128xf32>
    %591 = arith.addf %590, %558 : vector<8x128xf32>
    %cst_173 = arith.constant dense<0xFF800000> : vector<8xf32>
    %592 = vector.multi_reduction <maximumf>, %591, %cst_173 [1] : vector<8x128xf32> to vector<8xf32>
    %593 = vector.shape_cast %592 : vector<8xf32> to vector<8x1xf32>
    %594 = vector.broadcast %593 : vector<8x1xf32> to vector<8x128xf32>
    %595 = arith.cmpf oeq, %591, %594 : vector<8x128xf32>
    %c128_i32_174 = arith.constant 128 : i32
    %596 = vector.shape_cast %0 : vector<1x128xi32> to vector<1x128xi32>
    %597 = vector.broadcast %596 : vector<1x128xi32> to vector<8x128xi32>
    %598 = vector.broadcast %c128_i32_174 : i32 to vector<8x128xi32>
    %599 = arith.select %595, %597, %598 : vector<8x128xi1>, vector<8x128xi32>
    %cst_175 = arith.constant dense<2147483647> : vector<8xi32>
    %600 = vector.multi_reduction <minsi>, %599, %cst_175 [1] : vector<8x128xi32> to vector<8xi32>
    %601 = vector.shape_cast %600 : vector<8xi32> to vector<8x1xi32>
    %602 = arith.sitofp %601 : vector<8x1xi32> to vector<8x1xf32>
    %603 = vector.broadcast %593 : vector<8x1xf32> to vector<8x128xf32>
    %604 = arith.subf %591, %603 : vector<8x128xf32>
    %605 = math.exp %604 : vector<8x128xf32>
    %cst_176 = arith.constant dense<0.000000e+00> : vector<8xf32>
    %606 = vector.multi_reduction <add>, %605, %cst_176 [1] : vector<8x128xf32> to vector<8xf32>
    %607 = vector.shape_cast %606 : vector<8xf32> to vector<8x1xf32>
    %608 = math.log %607 : vector<8x1xf32>
    %cst_177 = arith.constant 0.000000e+00 : f32
    %609 = vector.broadcast %cst_177 : f32 to vector<8x1xf32>
    %610 = arith.subf %609, %608 : vector<8x1xf32>
    %611 = vector.broadcast %602 : vector<8x1xf32> to vector<8x8xf32>
    %612 = arith.mulf %611, %5 : vector<8x8xf32>
    %cst_178 = arith.constant dense<0.000000e+00> : vector<8xf32>
    %613 = vector.multi_reduction <add>, %612, %cst_178 [0] : vector<8x8xf32> to vector<8xf32>
    %614 = vector.shape_cast %613 : vector<8xf32> to vector<1x8xf32>
    %c7 = arith.constant 7 : index
    %c0_179 = arith.constant 0 : index
    %615 = vector.load %arg10[%c7, %c0_179] : memref<128x8xf32, #tpu.memory_space<vmem>>, vector<1x8xf32>
    tpu.vector_store %arg10[%c7, %c0_179], %614 {strides = array<i32>} : memref<128x8xf32, #tpu.memory_space<vmem>>, vector<1x8xf32>,
    %616 = vector.broadcast %610 : vector<8x1xf32> to vector<8x8xf32>
    %617 = arith.mulf %616, %5 : vector<8x8xf32>
    %cst_180 = arith.constant dense<0.000000e+00> : vector<8xf32>
    %618 = vector.multi_reduction <add>, %617, %cst_180 [0] : vector<8x8xf32> to vector<8xf32>
    %619 = vector.shape_cast %618 : vector<8xf32> to vector<1x8xf32>
    %c7_181 = arith.constant 7 : index
    %c0_182 = arith.constant 0 : index
    %620 = vector.load %arg11[%c7_181, %c0_182] : memref<128x8xf32, #tpu.memory_space<vmem>>, vector<1x8xf32>
    tpu.vector_store %arg11[%c7_181, %c0_182], %619 {strides = array<i32>} : memref<128x8xf32, #tpu.memory_space<vmem>>, vector<1x8xf32>,
    return
  }
  func.func @transform_0(%arg0: i32) -> (i32, i32) {
    %c0_i32 = arith.constant 0 : i32
    %c0_i32_0 = arith.constant 0 : i32
    return %arg0, %c0_i32 : i32, i32
  }
  func.func @transform_1(%arg0: i32) -> (i32, i32) {
    %c0_i32 = arith.constant 0 : i32
    %c0_i32_0 = arith.constant 0 : i32
    %c0_i32_1 = arith.constant 0 : i32
    return %c0_i32, %c0_i32_0 : i32, i32
  }
  func.func @transform_2(%arg0: i32) -> (i32, i32) {
    %c0_i32 = arith.constant 0 : i32
    %c0_i32_0 = arith.constant 0 : i32
    %c0_i32_1 = arith.constant 0 : i32
    return %c0_i32, %c0_i32_0 : i32, i32
  }
  func.func @transform_3(%arg0: i32) -> (i32, i32) {
    %c0_i32 = arith.constant 0 : i32
    %c0_i32_0 = arith.constant 0 : i32
    %c0_i32_1 = arith.constant 0 : i32
    return %c0_i32, %c0_i32_0 : i32, i32
  }
  func.func @transform_4(%arg0: i32) -> (i32, i32) {
    %c0_i32 = arith.constant 0 : i32
    %c0_i32_0 = arith.constant 0 : i32
    %c0_i32_1 = arith.constant 0 : i32
    return %c0_i32, %c0_i32_0 : i32, i32
  }
  func.func @transform_5(%arg0: i32) -> (i32, i32) {
    %c0_i32 = arith.constant 0 : i32
    %c0_i32_0 = arith.constant 0 : i32
    %c0_i32_1 = arith.constant 0 : i32
    return %c0_i32, %c0_i32_0 : i32, i32
  }
  func.func @transform_6(%arg0: i32) -> (i32, i32) {
    %c0_i32 = arith.constant 0 : i32
    %c0_i32_0 = arith.constant 0 : i32
    %c0_i32_1 = arith.constant 0 : i32
    return %c0_i32, %c0_i32_0 : i32, i32
  }
  func.func @transform_7(%arg0: i32) -> (i32, i32) {
    %c0_i32 = arith.constant 0 : i32
    %c0_i32_0 = arith.constant 0 : i32
    %c0_i32_1 = arith.constant 0 : i32
    return %c0_i32, %c0_i32_0 : i32, i32
  }
  func.func @transform_8(%arg0: i32) -> (i32, i32) {
    %c0_i32 = arith.constant 0 : i32
    %c0_i32_0 = arith.constant 0 : i32
    %c0_i32_1 = arith.constant 0 : i32
    return %c0_i32, %c0_i32_0 : i32, i32
  }
  func.func @transform_9(%arg0: i32) -> (i32, i32) {
    %c0_i32 = arith.constant 0 : i32
    %c0_i32_0 = arith.constant 0 : i32
    return %c0_i32, %arg0 : i32, i32
  }
  func.func @transform_10(%arg0: i32) -> (i32, i32) {
    %c0_i32 = arith.constant 0 : i32
    %c0_i32_0 = arith.constant 0 : i32
    return %c0_i32, %arg0 : i32, i32
  }
}

</mosaic_0001>

<bundles_post_ra>
// kernel: tpu_custom_call.1
= control target key start
LH: loop header
LB: loop body
LE: loop exit
PB: predicated region body
PF: predicated region fallthrough
CT: control target
= control target key end

     0   :  { %16 = vsyncpa [#allocation3], 0  ;;  %s7320_s0 = inlined_call_operand.hbm [shape: f32[8,128], index: 0, kind: input, shape index: {}]   ;;  %s7321_s1 = inlined_call_operand.vmem [shape: f32[1,128], index: 1, kind: input, shape index: {}]   ;;  %s7322_s2 = inlined_call_operand.hbm [shape: f32[1,128], index: 2, kind: input, shape index: {}]   ;;  %s7323_s3 = inlined_call_operand.hbm [shape: f32[256,512], index: 3, kind: input, shape index: {}]   ;;  %s7324_s4 = inlined_call_operand.vmem [shape: f32[1,256], index: 4, kind: input, shape index: {}]   ;;  %s7325_s5 = inlined_call_operand.vmem [shape: f32[1,128], index: 5, kind: input, shape index: {}]   ;;  %s7326_s6 = inlined_call_operand.vmem [shape: f32[1,128], index: 6, kind: input, shape index: {}]   ;;  %s7327_s7 = inlined_call_operand.hbm [shape: f32[128,128], index: 7, kind: input, shape index: {}]   ;;  %s7328_s8 = inlined_call_operand.vmem [shape: f32[1,128], index: 8, kind: input, shape index: {}]   ;;  %s7329_s9 = inlined_call_operand.vmem [shape: f32[128,8], index: 9, kind: output, shape index: {0}]   ;;  %s7330_s10 = inlined_call_operand.vmem [shape: f32[128,8], index: 10, kind: output, shape index: {1}]  }
   0x1   :  { %17 = vsyncpa [#allocation5], 0 }
   0x2   :  { %18 = vsyncpa [#allocation8], 0  ;;  %s4336_s13 = smov [#allocation4]   ;;  %s4337_s15 = smov [#allocation2]  }
   0x3   :  { %s37_s14 = sshll.u32 %s4336_s13, 4  ;;  %s25_s16 = sshll.u32 %s4337_s15, 4  ;;  %s38_s14 = int_to_ptr.vmem [resolvable:$true] %s37_s14  ;;  %s26_s16 = int_to_ptr.vmem [resolvable:$true] %s25_s16 }
   0x4   :  { %s4258_s17 = scalar_lea.vmem %s38_s14, 16  ;;  %s4262_s18 = scalar_lea.vmem %s38_s14, 32 }
   0x5   :  { %p4259_p0 = scmp.ne.s32.totalorder %s38_s14, %s4258_s17  ;;  %p4263_p1 = scmp.lt.s32.totalorder %s38_s14, %s38_s14 }
   0x6   :  { %p4264_p2 = scmp.lt.s32.totalorder %s4262_s18, %s4258_s17 }
   0x8   :  { %p4265_p3 = por %p4264_p2, %p4263_p1 }
   0xa   :  { %p4266_p4 = pnand %p4265_p3, %p4259_p0 }
   0xc   :  { %4269 = shalt.err (!%p4266_p4)
}
   0xd   :  { %40 = dma.hbm_to_vmem [thread:$0]  %s7322_s2, 16, %s38_s14, [#allocation5]  }
   0xe   :  { %s4278_s21 = scalar_lea.vmem %s26_s16, 128  ;;  %p4283_p6 = scmp.lt.s32.totalorder %s26_s16, %s26_s16 }
   0xf   :  { %p4279_p5 = scmp.ne.s32.totalorder %s26_s16, %s4278_s21  ;;  %p4284_p7 = scmp.lt.s32.totalorder %s4278_s21, %s4278_s21 }
  0x11   :  { %p4285_p8 = por %p4284_p7, %p4283_p6 }
  0x13   :  { %p4286_p9 = pnand %p4285_p8, %p4279_p5 }
  0x15   :  { %4289 = shalt.err (!%p4286_p9)
}
  0x16   :  { %28 = dma.hbm_to_vmem [thread:$0]  %s7320_s0, 128, %s26_s16, [#allocation3]  }
  0x17   :  { %s4338_s24 = smov [#allocation6]  }
  0x18   :  { %s46_s25 = sshll.u32 %s4338_s24, 4  ;;  %s47_s25 = int_to_ptr.vmem [resolvable:$true] %s46_s25 }
  0x19   :  { %s4298_s26 = scalar_lea.vmem %s47_s25, 16384  ;;  %p4303_p11 = scmp.lt.s32.totalorder %s47_s25, %s47_s25 }
  0x1a   :  { %p4299_p10 = scmp.ne.s32.totalorder %s47_s25, %s4298_s26  ;;  %p4304_p12 = scmp.lt.s32.totalorder %s4298_s26, %s4298_s26 }
  0x1c   :  { %p4305_p13 = por %p4304_p12, %p4303_p11 }
  0x1e   :  { %p4306_p0 = pnand %p4305_p13, %p4299_p10 }
  0x20   :  { %4309 = shalt.err (!%p4306_p0)
}
  0x21   :  { %s4339_s2 = smov 512   ;;  %s4340_s27 = smov 32  }
  0x22   :  { %52 = dma.hbm_to_vmem [thread:$0]  %s7323_s3, 16384, %s47_s25, [#allocation5], %s4339_s2, %s4339_s2, %s4340_s27  }
  0x23   :  { %s4341_s30 = smov [#allocation7]  }
  0x24   :  { %s64_s11 = sshll.u32 %s4341_s30, 4  ;;  %s65_s11 = int_to_ptr.vmem [resolvable:$true] %s64_s11 }
  0x25   :  { %s4318_s0 = scalar_lea.vmem %s65_s11, 2048  ;;  %p4323_p2 = scmp.lt.s32.totalorder %s65_s11, %s65_s11 }
  0x26   :  { %p4319_p1 = scmp.ne.s32.totalorder %s65_s11, %s4318_s0  ;;  %p4324_p3 = scmp.lt.s32.totalorder %s4318_s0, %s4318_s0 }
  0x28   :  { %p4325_p4 = por %p4324_p3, %p4323_p2 }
  0x2a   :  { %p4326_p5 = pnand %p4325_p4, %p4319_p1 }
  0x2c   :  { %4329 = shalt.err (!%p4326_p5)
}
  0x2d   :  { %s4342_s12 = smov 128   ;;  %s4343_s13 = smov 8  }
  0x2e   :  { %70 = dma.hbm_to_vmem [thread:$0]  %s7327_s7, 2048, %s65_s11, [#allocation8], %s4342_s12, %s4342_s12, %s4343_s13  }
  0x2f   :  { %4330 = dma.done.wait [#allocation3], 128  }
  0x30   :  { %4331 = vsyncadd [#allocation3], 4294967168 }
  0x31   :  { %4332 = dma.done.wait [#allocation5], 16400  }
  0x32   :  { %4333 = vsyncadd [#allocation5], 4294950896 }
  0x33   :  { %4334 = dma.done.wait [#allocation8], 2048  }
  0x34   :  { %4335 = vsyncadd [#allocation8], 4294965248  ;;  %v4413_v0 = vld [vmem:[#allocation6 + $0x1e8] sm:$0xff]  ;;  %v4415_v1 = vld [vmem:[#allocation6 + $0x1e0] sm:$0xff]  ;;  %vm4345_vm0 = vmmov 0   ;;  %vm521_vm13 = vcmask 57344  }
  0x35   :  { %v4417_v2 = vld [vmem:[#allocation6 + $0x1c8] sm:$0xff]  ;;  %270 = vmatprep.subr.mxu0 %v4413_v0  ;;  %v4420_v3 = vld [vmem:[#allocation6 + $0x1c0] sm:$0xff]  ;;  %v4446_v12 = vld [vmem:[#allocation6 + $0x1f8] sm:$0xff] }
  0x36   :  { %271 = vmatpush1.msra.mxu0 %v4415_v1  ;;  %v4423_v4 = vld [vmem:[#allocation6 + $0x1a8] sm:$0xff]  ;;  %v4426_v5 = vld [vmem:[#allocation6 + $0x1a0] sm:$0xff]  ;;  %7663 = vst [vmem:[#allocation12_spill] sm:$0xff] %v4446_v12  ;;  %341 = vmatprep.subr.mxu1 %v4446_v12  ;;  %v4452_v14 = vld [vmem:[#allocation6 + $0x1f0] sm:$0xff] }
  0x37   :  { %272 = vmatprep.subr.mxu0 %v4417_v2  ;;  %v4429_v6 = vld [vmem:[#allocation6 + $0x188] sm:$0xff]  ;;  %v4432_v7 = vld [vmem:[#allocation6 + $0x180] sm:$0xff]  ;;  %7664 = vst [vmem:[#allocation13_spill] sm:$0xff] %v4452_v14  ;;  %342 = vmatpush1.msra.mxu1 %v4452_v14  ;;  %v4458_v16 = vld [vmem:[#allocation6 + $0x1d8] sm:$0xff] }
  0x38   :  { %273 = vmatpush1.msra.mxu0 %v4420_v3  ;;  %v4435_v8 = vld [vmem:[#allocation6 + $0x168] sm:$0xff]  ;;  %v4438_v9 = vld [vmem:[#allocation6 + $0x160] sm:$0xff]  ;;  %7665 = vst [vmem:[#allocation14_spill] sm:$0xff] %v4458_v16  ;;  %v4460_v17 = vld [vmem:[#allocation6 + $0x1d0] sm:$0xff]  ;;  %343 = vmatprep.subr.mxu1 %v4458_v16 }
  0x39   :  { %274 = vmatprep.subr.mxu0 %v4423_v4  ;;  %v4441_v10 = vld [vmem:[#allocation6 + $0x148] sm:$0xff]  ;;  %v4444_v11 = vld [vmem:[#allocation6 + $0x140] sm:$0xff]  ;;  %7666 = vst [vmem:[#allocation15_spill] sm:$0xff] %v4460_v17  ;;  %v4466_v19 = vld [vmem:[#allocation6 + $0x1b8] sm:$0xff]  ;;  %344 = vmatpush1.msra.mxu1 %v4460_v17 }
  0x3a   :  { %275 = vmatpush1.msra.mxu0 %v4426_v5  ;;  %v4449_v13 = vld [vmem:[#allocation6 + $0x128] sm:$0xff]  ;;  %v4455_v15 = vld [vmem:[#allocation6 + $0x120] sm:$0xff]  ;;  %7667 = vst [vmem:[#allocation16_spill] sm:$0xff] %v4466_v19  ;;  %v4472_v21 = vld [vmem:[#allocation6 + $0x1b0] sm:$0xff]  ;;  %345 = vmatprep.subr.mxu1 %v4466_v19 }
  0x3b   :  { %276 = vmatprep.subr.mxu0 %v4429_v6  ;;  %v4463_v18 = vld [vmem:[#allocation6 + $0x108] sm:$0xff]  ;;  %v4469_v20 = vld [vmem:[#allocation6 + $0x100] sm:$0xff]  ;;  %7668 = vst [vmem:[#allocation17_spill] sm:$0xff] %v4472_v21  ;;  %v4474_v22 = vld [vmem:[#allocation6 + $0x198] sm:$0xff]  ;;  %346 = vmatpush1.msra.mxu1 %v4472_v21 }
  0x3c   :  { %277 = vmatpush1.msra.mxu0 %v4432_v7  ;;  %7669 = vst [vmem:[#allocation18_spill] sm:$0xff] %v4474_v22  ;;  %v4477_v23 = vld [vmem:[#allocation6 + $0xe8] sm:$0xff]  ;;  %v4480_v24 = vld [vmem:[#allocation6 + $0x190] sm:$0xff]  ;;  %v4483_v25 = vld [vmem:[#allocation6 + $0xe0] sm:$0xff]  ;;  %347 = vmatprep.subr.mxu1 %v4474_v22 }
  0x3d   :  { %278 = vmatprep.subr.mxu0 %v4435_v8  ;;  %7670 = vst [vmem:[#allocation19_spill] sm:$0xff] %v4480_v24  ;;  %v4486_v26 = vld [vmem:[#allocation6 + $0x178] sm:$0xff]  ;;  %v4489_v27 = vld [vmem:[#allocation6 + $0xc8] sm:$0xff]  ;;  %v4492_v28 = vld [vmem:[#allocation6 + $0x170] sm:$0xff]  ;;  %348 = vmatpush1.msra.mxu1 %v4480_v24 }
  0x3e   :  { %279 = vmatpush1.msra.mxu0 %v4438_v9  ;;  %7671 = vst [vmem:[#allocation20_spill] sm:$0xff] %v4486_v26  ;;  %7672 = vst [vmem:[#allocation21_spill] sm:$0xff] %v4492_v28  ;;  %v4495_v29 = vld [vmem:[#allocation6 + $0xc0] sm:$0xff]  ;;  %v4498_v30 = vld [vmem:[#allocation6 + $0x158] sm:$0xff]  ;;  %349 = vmatprep.subr.mxu1 %v4486_v26 }
  0x3f   :  { %280 = vmatprep.subr.mxu0 %v4441_v10  ;;  %7673 = vst [vmem:[#allocation22_spill] sm:$0xff] %v4498_v30  ;;  %v4501_v31 = vld [vmem:[#allocation6 + $0xa8] sm:$0xff]  ;;  %v4504_v32 = vld [vmem:[#allocation6 + $0x150] sm:$0xff]  ;;  %v4507_v33 = vld [vmem:[#allocation6 + $0xa0] sm:$0xff]  ;;  %350 = vmatpush1.msra.mxu1 %v4492_v28 }
  0x40   :  { %281 = vmatpush1.msra.mxu0 %v4444_v11  ;;  %7674 = vst [vmem:[#allocation23_spill] sm:$0xff] %v4504_v32  ;;  %v4510_v34 = vld [vmem:[#allocation6 + $0x138] sm:$0xff]  ;;  %v4513_v35 = vld [vmem:[#allocation6 + $0x88] sm:$0xff]  ;;  %351 = vmatprep.subr.mxu1 %v4498_v30  ;;  %v4516_v36 = vld [vmem:[#allocation6 + $0x130] sm:$0xff] }
  0x41   :  { %282 = vmatprep.subr.mxu0 %v4449_v13  ;;  %7675 = vst [vmem:[#allocation24_spill] sm:$0xff] %v4510_v34  ;;  %7676 = vst [vmem:[#allocation25_spill] sm:$0xff] %v4516_v36  ;;  %v4519_v37 = vld [vmem:[#allocation6 + $0x80] sm:$0xff]  ;;  %352 = vmatpush1.msra.mxu1 %v4504_v32  ;;  %v4522_v38 = vld [vmem:[#allocation6 + $0x118] sm:$0xff] }
  0x42   :  { %283 = vmatpush1.msra.mxu0 %v4455_v15  ;;  %7677 = vst [vmem:[#allocation26_spill] sm:$0xff] %v4522_v38  ;;  %v4525_v39 = vld [vmem:[#allocation6 + $0x68] sm:$0xff]  ;;  %353 = vmatprep.subr.mxu1 %v4510_v34  ;;  %v4528_v40 = vld [vmem:[#allocation6 + $0x110] sm:$0xff]  ;;  %v4531_v41 = vld [vmem:[#allocation6 + $0x60] sm:$0xff] }
  0x43   :  { %284 = vmatprep.subr.mxu0 %v4463_v18  ;;  %7678 = vst [vmem:[#allocation27_spill] sm:$0xff] %v4528_v40  ;;  %354 = vmatpush1.msra.mxu1 %v4516_v36  ;;  %v4534_v42 = vld [vmem:[#allocation6 + $0xf8] sm:$0xff]  ;;  %v4537_v43 = vld [vmem:[#allocation6 + $0x48] sm:$0xff]  ;;  %v4540_v44 = vld [vmem:[#allocation6 + $0xf0] sm:$0xff] }
  0x44   :  { %285 = vmatpush1.msra.mxu0 %v4469_v20  ;;  %7679 = vst [vmem:[#allocation28_spill] sm:$0xff] %v4534_v42  ;;  %355 = vmatprep.subr.mxu1 %v4522_v38  ;;  %7680 = vst [vmem:[#allocation29_spill] sm:$0xff] %v4540_v44  ;;  %v4543_v45 = vld [vmem:[#allocation6 + $0x40] sm:$0xff]  ;;  %v4546_v46 = vld [vmem:[#allocation6 + $0xd8] sm:$0xff] }
  0x45   :  { %286 = vmatprep.subr.mxu0 %v4477_v23  ;;  %356 = vmatpush1.msra.mxu1 %v4528_v40  ;;  %7681 = vst [vmem:[#allocation30_spill] sm:$0xff] %v4546_v46  ;;  %v4549_v47 = vld [vmem:[#allocation6 + $0x28] sm:$0xff]  ;;  %v4552_v48 = vld [vmem:[#allocation6 + $0xd0] sm:$0xff]  ;;  %v4555_v49 = vld [vmem:[#allocation6 + $0x20] sm:$0xff] }
  0x46   :  { %287 = vmatpush1.msra.mxu0 %v4483_v25  ;;  %357 = vmatprep.subr.mxu1 %v4534_v42  ;;  %7682 = vst [vmem:[#allocation31_spill] sm:$0xff] %v4552_v48  ;;  %v4558_v50 = vld [vmem:[#allocation6 + $0xb8] sm:$0xff]  ;;  %v4561_v51 = vld [vmem:[#allocation6 + $0x8] sm:$0xff]  ;;  %v4564_v52 = vld [vmem:[#allocation6 + $0xb0] sm:$0xff] }
  0x47   :  { %288 = vmatprep.subr.mxu0 %v4489_v27  ;;  %358 = vmatpush1.msra.mxu1 %v4540_v44  ;;  %7683 = vst [vmem:[#allocation32_spill] sm:$0xff] %v4558_v50  ;;  %7684 = vst [vmem:[#allocation33_spill] sm:$0xff] %v4564_v52  ;;  %v4567_v53 = vld [vmem:[#allocation6] sm:$0xff]  ;;  %v4570_v54 = vld [vmem:[#allocation6 + $0x98] sm:$0xff] }
  0x48   :  { %289 = vmatpush1.msra.mxu0 %v4495_v29  ;;  %359 = vmatprep.subr.mxu1 %v4546_v46  ;;  %7685 = vst [vmem:[#allocation34_spill] sm:$0xff] %v4570_v54  ;;  %v4573_v55 = vld [vmem:[#allocation6 + $0x3e8] sm:$0xff]  ;;  %v4576_v56 = vld [vmem:[#allocation6 + $0x90] sm:$0xff]  ;;  %v4579_v57 = vld [vmem:[#allocation6 + $0x3e0] sm:$0xff] }
  0x49   :  { %290 = vmatprep.subr.mxu0 %v4501_v31  ;;  %360 = vmatpush1.msra.mxu1 %v4552_v48  ;;  %7686 = vst [vmem:[#allocation35_spill] sm:$0xff] %v4576_v56  ;;  %v4582_v58 = vld [vmem:[#allocation6 + $0x78] sm:$0xff]  ;;  %v4585_v59 = vld [vmem:[#allocation6 + $0x3c8] sm:$0xff]  ;;  %v4588_v60 = vld [vmem:[#allocation6 + $0x70] sm:$0xff] }
  0x4a   :  { %291 = vmatpush1.msra.mxu0 %v4507_v33  ;;  %361 = vmatprep.subr.mxu1 %v4558_v50  ;;  %7687 = vst [vmem:[#allocation36_spill] sm:$0xff] %v4582_v58  ;;  %7688 = vst [vmem:[#allocation37_spill] sm:$0xff] %v4588_v60  ;;  %v4591_v61 = vld [vmem:[#allocation6 + $0x3c0] sm:$0xff]  ;;  %v4594_v62 = vld [vmem:[#allocation6 + $0x58] sm:$0xff] }
  0x4b   :  { %292 = vmatprep.subr.mxu0 %v4513_v35  ;;  %362 = vmatpush1.msra.mxu1 %v4564_v52  ;;  %7689 = vst [vmem:[#allocation38_spill] sm:$0xff] %v4594_v62  ;;  %v4597_v63 = vld [vmem:[#allocation6 + $0x3a8] sm:$0xff]  ;;  %v4600_v52 = vld [vmem:[#allocation6 + $0x50] sm:$0xff]  ;;  %v4606_v50 = vld [vmem:[#allocation6 + $0x38] sm:$0xff] }
  0x4c   :  { %293 = vmatpush1.msra.mxu0 %v4519_v37  ;;  %363 = vmatprep.subr.mxu1 %v4570_v54  ;;  %7690 = vst [vmem:[#allocation39_spill] sm:$0xff] %v4600_v52  ;;  %v4603_v54 = vld [vmem:[#allocation6 + $0x3a0] sm:$0xff]  ;;  %7691 = vst [vmem:[#allocation40_spill] sm:$0xff] %v4606_v50  ;;  %v4612_v48 = vld [vmem:[#allocation6 + $0x30] sm:$0xff] }
  0x4d   :  { %294 = vmatprep.subr.mxu0 %v4525_v39  ;;  %364 = vmatpush1.msra.mxu1 %v4576_v56  ;;  %v4609_v56 = vld [vmem:[#allocation6 + $0x388] sm:$0xff]  ;;  %7692 = vst [vmem:[#allocation41_spill] sm:$0xff] %v4612_v48  ;;  %v4618_v46 = vld [vmem:[#allocation6 + $0x18] sm:$0xff]  ;;  %v4624_v44 = vld [vmem:[#allocation6 + $0x10] sm:$0xff] }
  0x4e   :  { %295 = vmatpush1.msra.mxu0 %v4531_v41  ;;  %365 = vmatprep.subr.mxu1 %v4582_v58  ;;  %v4615_v58 = vld [vmem:[#allocation6 + $0x380] sm:$0xff]  ;;  %7693 = vst [vmem:[#allocation42_spill] sm:$0xff] %v4618_v46  ;;  %7694 = vst [vmem:[#allocation43_spill] sm:$0xff] %v4624_v44  ;;  %v4630_v42 = vld [vmem:[#allocation6 + $0x3f8] sm:$0xff] }
  0x4f   :  { %296 = vmatprep.subr.mxu0 %v4537_v43  ;;  %366 = vmatpush1.msra.mxu1 %v4588_v60  ;;  %v4621_v60 = vld [vmem:[#allocation6 + $0x368] sm:$0xff]  ;;  %7695 = vst [vmem:[#allocation44_spill] sm:$0xff] %v4630_v42  ;;  %v4636_v40 = vld [vmem:[#allocation6 + $0x3f0] sm:$0xff]  ;;  %v4642_v38 = vld [vmem:[#allocation6 + $0x3d8] sm:$0xff] }
  0x50   :  { %297 = vmatpush1.msra.mxu0 %v4543_v45  ;;  %367 = vmatprep.subr.mxu1 %v4594_v62  ;;  %v4627_v62 = vld [vmem:[#allocation6 + $0x360] sm:$0xff]  ;;  %7696 = vst [vmem:[#allocation45_spill] sm:$0xff] %v4636_v40  ;;  %7697 = vst [vmem:[#allocation46_spill] sm:$0xff] %v4642_v38  ;;  %v4648_v36 = vld [vmem:[#allocation2] sm:$0xff] }
  0x51   :  { %298 = vmatprep.subr.mxu0 %v4549_v47  ;;  %368 = vmatpush1.msra.mxu1 %v4600_v52  ;;  %v4633_v52 = vld [vmem:[#allocation6 + $0x348] sm:$0xff]  ;;  %v4654_v34 = vld [vmem:[#allocation6 + $0x3d0] sm:$0xff]  ;;  %v4660_v32 = vld [vmem:[#allocation6 + $0x3b8] sm:$0xff] }
  0x52   :  { %299 = vmatpush1.msra.mxu0 %v4555_v49  ;;  %369 = vmatprep.subr.mxu1 %v4606_v50  ;;  %v4639_v50 = vld [vmem:[#allocation6 + $0x340] sm:$0xff]  ;;  %7698 = vst [vmem:[#allocation47_spill] sm:$0xff] %v4654_v34  ;;  %7699 = vst [vmem:[#allocation48_spill] sm:$0xff] %v4660_v32  ;;  %v4666_v30 = vld [vmem:[#allocation6 + $0x3b0] sm:$0xff] }
  0x53   :  { %300 = vmatprep.subr.mxu0 %v4561_v51  ;;  %370 = vmatpush1.msra.mxu1 %v4612_v48  ;;  %v4645_v48 = vld [vmem:[#allocation6 + $0x328] sm:$0xff]  ;;  %7700 = vst [vmem:[#allocation49_spill] sm:$0xff] %v4666_v30  ;;  %v4672_v28 = vld [vmem:[#allocation6 + $0x398] sm:$0xff]  ;;  %v4678_v26 = vld [vmem:[#allocation6 + $0x390] sm:$0xff] }
  0x54   :  { %301 = vmatpush1.msra.mxu0 %v4567_v53  ;;  %371 = vmatprep.subr.mxu1 %v4618_v46  ;;  %v4651_v46 = vld [vmem:[#allocation6 + $0x320] sm:$0xff]  ;;  %7701 = vst [vmem:[#allocation50_spill] sm:$0xff] %v4672_v28  ;;  %7703 = vst [vmem:[#allocation52_spill] sm:$0xff] %v4678_v26  ;;  %v4681_v24 = vld [vmem:[#allocation6 + $0x2c8] sm:$0xff] }
  0x55   :  { %302 = vmatprep.subr.mxu0 %v4573_v55  ;;  %372 = vmatpush1.msra.mxu1 %v4624_v44  ;;  %v4657_v44 = vld [vmem:[#allocation6 + $0x308] sm:$0xff]  ;;  %7704 = vst [vmem:[#allocation53_spill] sm:$0xff] %v4681_v24  ;;  %v4684_v22 = vld [vmem:[#allocation6 + $0x378] sm:$0xff]  ;;  %v4690_v21 = vld [vmem:[#allocation6 + $0x370] sm:$0xff] }
  0x56   :  { %303 = vmatpush2.msra.mxu0 %v4579_v57  ;;  %373 = vmatprep.subr.mxu1 %v4630_v42  ;;  %v4663_v42 = vld [vmem:[#allocation6 + $0x300] sm:$0xff]  ;;  %7705 = vst [vmem:[#allocation54_spill] sm:$0xff] %v4684_v22  ;;  %7707 = vst [vmem:[#allocation56_spill] sm:$0xff] %v4690_v21  ;;  %v4696_v19 = vld [vmem:[#allocation6 + $0x358] sm:$0xff] }
  0x57   :  { %304 = vmatprep.subr.mxu0 %v4585_v59  ;;  %374 = vmatpush2.msra.mxu1 %v4636_v40  ;;  %v4669_v40 = vld [vmem:[#allocation6 + $0x2e8] sm:$0xff]  ;;  %7709 = vst [vmem:[#allocation58_spill] sm:$0xff] %v4696_v19  ;;  %v4702_v17 = vld [vmem:[#allocation6 + $0x350] sm:$0xff]  ;;  %v4708_v16 = vld [vmem:[#allocation6 + $0x338] sm:$0xff] }
  0x58   :  { %305 = vmatpush2.msra.mxu0 %v4591_v61  ;;  %375 = vmatprep.subr.mxu1 %v4642_v38  ;;  %v4675_v38 = vld [vmem:[#allocation6 + $0x2e0] sm:$0xff]  ;;  %7711 = vst [vmem:[#allocation60_spill] sm:$0xff] %v4702_v17  ;;  %7713 = vst [vmem:[#allocation62_spill] sm:$0xff] %v4708_v16  ;;  %v4713_v14 = vld [vmem:[#allocation6 + $0x268] sm:$0xff] }
  0x59   :  { %306 = vmatprep.subr.mxu0 %v4597_v63  ;;  %334 = vmatprep.mubr.f32.mxu0 %v4648_v36  ;;  %7702 = vst [vmem:[#allocation51_spill] sm:$0xff] %v4675_v38  ;;  %7715 = vst [vmem:[#allocation64_spill] sm:$0xff] %v4713_v14  ;;  %v4716_v12 = vld [vmem:[#allocation6 + $0x330] sm:$0xff] }
  0x5a   :  { %307 = vmatpush2.msra.mxu0 %v4603_v54  ;;  %376 = vmatpush2.msra.mxu1 %v4654_v34  ;;  %v4687_v34 = vld [vmem:[#allocation6 + $0x2c0] sm:$0xff]  ;;  %7716 = vst [vmem:[#allocation65_spill] sm:$0xff] %v4716_v12 }
  0x5b   :  { %308 = vmatprep.subr.mxu0 %v4609_v56  ;;  %377 = vmatprep.subr.mxu1 %v4660_v32  ;;  %7706 = vst [vmem:[#allocation55_spill] sm:$0xff] %v4687_v34  ;;  %v4693_v32 = vld [vmem:[#allocation6 + $0x2a8] sm:$0xff] }
  0x5c   :  { %309 = vmatpush2.msra.mxu0 %v4615_v58  ;;  %378 = vmatpush2.msra.mxu1 %v4666_v30  ;;  %7708 = vst [vmem:[#allocation57_spill] sm:$0xff] %v4693_v32  ;;  %v4699_v30 = vld [vmem:[#allocation6 + $0x2a0] sm:$0xff] }
  0x5d   :  { %310 = vmatprep.subr.mxu0 %v4621_v60  ;;  %379 = vmatprep.subr.mxu1 %v4672_v28  ;;  %7710 = vst [vmem:[#allocation59_spill] sm:$0xff] %v4699_v30  ;;  %v4705_v28 = vld [vmem:[#allocation6 + $0x288] sm:$0xff] }
  0x5e   :  { %311 = vmatpush2.msra.mxu0 %v4627_v62  ;;  %380 = vmatpush2.msra.mxu1 %v4678_v26  ;;  %7712 = vst [vmem:[#allocation61_spill] sm:$0xff] %v4705_v28  ;;  %v4711_v26 = vld [vmem:[#allocation6 + $0x280] sm:$0xff] }
  0x5f   :  { %312 = vmatprep.subr.mxu0 %v4633_v52  ;;  %381 = vmatprep.subr.mxu1 %v4684_v22  ;;  %7714 = vst [vmem:[#allocation63_spill] sm:$0xff] %v4711_v26  ;;  %v4722_v22 = vld [vmem:[%s7321_s1] ss:$0 sm:$0xff] }
  0x60   :  { %313 = vmatpush2.msra.mxu0 %v4639_v50  ;;  %382 = vmatpush2.msra.mxu1 %v4690_v21  ;;  %7717 = vst [vmem:[#allocation66_spill] sm:$0xff] %v4722_v22  ;;  %v4724_v21 = vld [vmem:[#allocation4] ss:$0 sm:$0xff] }
  0x61   :  { %314 = vmatprep.subr.mxu0 %v4645_v48  ;;  %383 = vmatprep.subr.mxu1 %v4696_v19  ;;  %7718 = vst [vmem:[#allocation67_spill] sm:$0xff] %v4724_v21  ;;  %v4733_v19 = vld [vmem:[#allocation6 + $0x310] sm:$0xff] }
  0x62   :  { %315 = vmatpush2.msra.mxu0 %v4651_v46  ;;  %384 = vmatpush2.msra.mxu1 %v4702_v17  ;;  %7720 = vst [vmem:[#allocation69_spill] sm:$0xff] %v4733_v19  ;;  %v4742_v17 = vld [vmem:[#allocation6 + $0x240] sm:$0xff] }
  0x63   :  { %316 = vmatprep.subr.mxu0 %v4657_v44  ;;  %385 = vmatprep.subr.mxu1 %v4708_v16  ;;  %v4747_v16 = vld [vmem:[#allocation6 + $0x2f0] sm:$0xff] }
  0x64   :  { %317 = vmatpush2.msra.mxu0 %v4663_v42  ;;  %386 = vmatpush2.msra.mxu1 %v4716_v12  ;;  %7723 = vst [vmem:[#allocation72_spill] sm:$0xff] %v4747_v16  ;;  %v4753_v12 = vld [vmem:[#allocation6 + $0x2d8] sm:$0xff] }
  0x65   :  { %318 = vmatprep.subr.mxu0 %v4669_v40  ;;  %7724 = vst [vmem:[#allocation73_spill] sm:$0xff] %v4753_v12  ;;  %405 = vmatprep.mubr.f32.mxu1 %v4648_v36 }
  0x66   :  { %319 = vmatpush2.msra.mxu0 %v4675_v38  ;;  %v4759_v38 = vld [vmem:[#allocation6 + $0x2d0] sm:$0xff] }
  0x67   :  { %320 = vmatprep.subr.mxu0 %v4681_v24  ;;  %v4739_v24 = vld [vmem:[#allocation6 + $0x2f8] sm:$0xff]  ;;  %7725 = vst [vmem:[#allocation74_spill] sm:$0xff] %v4759_v38 }
  0x68   :  { %321 = vmatpush2.msra.mxu0 %v4687_v34  ;;  %v4730_v34 = vld [vmem:[#allocation6 + $0x260] sm:$0xff]  ;;  %7722 = vst [vmem:[#allocation71_spill] sm:$0xff] %v4739_v24 }
  0x69   :  { %322 = vmatprep.subr.mxu0 %v4693_v32  ;;  %v4727_v32 = vld [vmem:[#allocation6 + $0x318] sm:$0xff] }
  0x6a   :  { %323 = vmatpush2.msra.mxu0 %v4699_v30  ;;  %7719 = vst [vmem:[#allocation68_spill] sm:$0xff] %v4727_v32  ;;  %v4736_v30 = vld [vmem:[#allocation6 + $0x248] sm:$0xff]  ;;  %387 = vmatprep.subr.mxu1 %v4727_v32 }
  0x6b   :  { %324 = vmatprep.subr.mxu0 %v4705_v28  ;;  %7721 = vst [vmem:[#allocation70_spill] sm:$0xff] %v4736_v30  ;;  %v140_v28 = vadd.f32 %v4724_v21, %v4722_v22  ;;  %388 = vmatpush2.msra.mxu1 %v4733_v19  ;;  %v4762_v21 = vld [vmem:[#allocation6 + $0x208] sm:$0xff]  ;;  %v4765_v22 = vld [vmem:[#allocation6 + $0x2b8] sm:$0xff]  ;;  %v4768_v19 = vld [vmem:[#allocation6 + $0x200] sm:$0xff] }
  0x6c   :  { %325 = vmatpush2.msra.mxu0 %v4711_v26  ;;  %v4750_v26 = vld [vmem:[#allocation6 + $0x228] sm:$0xff]  ;;  %389 = vmatprep.subr.mxu1 %v4739_v24  ;;  %7726 = vst [vmem:[#allocation75_spill] sm:$0xff] %v4765_v22  ;;  %7727 = vst [vmem:[#allocation76_spill] sm:$0xff] %v4768_v19  ;;  %v4775_v24 = vld [vmem:[#allocation6 + $0x298] sm:$0xff] }
  0x6d   :  { %326 = vmatprep.subr.mxu0 %v4713_v14  ;;  %v4756_v14 = vld [vmem:[#allocation6 + $0x220] sm:$0xff]  ;;  %390 = vmatpush2.msra.mxu1 %v4747_v16  ;;  %v141_v32 = vmax.f32 %v140_v28, 0.0  ;;  %7729 = vst [vmem:[#allocation78_spill] sm:$0xff] %v4775_v24  ;;  %v4779_v16 = vld [vmem:[#allocation6 + $0x290] sm:$0xff]  ;;  %v4783_v28 = vld [vmem:[#allocation6 + $0x278] sm:$0xff] }
  0x6e   :  { %327 = vmatpush2.msra.mxu0 %v4730_v34  ;;  %391 = vmatprep.subr.mxu1 %v4753_v12  ;;  %7730 = vst [vmem:[#allocation79_spill] sm:$0xff] %v4779_v16  ;;  %7731 = vst [vmem:[#allocation80_spill] sm:$0xff] %v4783_v28  ;;  %v4786_v12 = vld [vmem:[#allocation6 + $0x270] sm:$0xff] }
  0x6f   :  { %328 = vmatprep.subr.mxu0 %v4736_v30  ;;  %v4771_v30 = vld [vmem:[#allocation6 + $0x2b0] sm:$0xff]  ;;  %392 = vmatpush2.msra.mxu1 %v4759_v38  ;;  %v4789_v38 = vld [vmem:[#allocation6 + $0x258] sm:$0xff] }
  0x70   :  { %329 = vmatpush2.msra.mxu0 %v4742_v17  ;;  %7728 = vst [vmem:[#allocation77_spill] sm:$0xff] %v4771_v30  ;;  %393 = vmatprep.subr.mxu1 %v4765_v22  ;;  %v4793_v22 = vld [vmem:[#allocation6 + $0x250] sm:$0xff] }
  0x71   :  { %330 = vmatprep.subr.mxu0 %v4750_v26  ;;  %394 = vmatpush2.msra.mxu1 %v4771_v30  ;;  %v4797_v30 = vld [vmem:[#allocation6 + $0x238] sm:$0xff] }
  0x72   :  { %331 = vmatpush2.msra.mxu0 %v4756_v14  ;;  %395 = vmatprep.subr.mxu1 %v4775_v24  ;;  %v4800_v24 = vld [vmem:[#allocation6 + $0x230] sm:$0xff] }
  0x73   :  { %332 = vmatprep.subr.mxu0 %v4762_v21  ;;  %396 = vmatpush2.msra.mxu1 %v4779_v16  ;;  %v4803_v16 = vld [vmem:[#allocation6 + $0x218] sm:$0xff] }
  0x74   :  { %333 = vmatpush2.msra.mxu0 %v4768_v19  ;;  %397 = vmatprep.subr.mxu1 %v4783_v28  ;;  %v7400_v19 = vmov 0.0   ;;  %v4806_v28 = vld [vmem:[#allocation6 + $0x210] sm:$0xff] }
  0x75   :  { %335 = vmatmul.mubr.f32.vlgmr.msra.gmra.mxu0 %v141_v32  ;;  %3837 = vmatprep.subr.mxu0 %v7400_v19 }
  0x76   :  { %398 = vmatpush2.msra.mxu1 %v4786_v12  ;;  %3869 = vmatprep.mubr.msk.f32.mxu0 %vm4345_vm0, %v7400_v19 }
  0x77   :  { %399 = vmatprep.subr.mxu1 %v4789_v38 }
  0x78   :  { %400 = vmatpush2.msra.mxu1 %v4793_v22 }
  0x79   :  { %401 = vmatprep.subr.mxu1 %v4797_v30 }
  0x7a   :  { %402 = vmatpush2.msra.mxu1 %v4800_v24 }
  0x7b   :  { %403 = vmatprep.subr.mxu1 %v4803_v16 }
  0x7c   :  { %404 = vmatpush2.msra.mxu1 %v4806_v28 }
  0x7d   :  { %406 = vmatmul.mubr.f32.vlgmr.msra.gmra.mxu1 %v141_v32  ;;  %676 = vmatprep.subr.mxu1 %v4413_v0  ;;  %v7732_v0 = vld [vmem:[#allocation51_spill] sm:$0xff]  ;;  %v4936_v32 = vld [vmem:[#allocation7] sm:$0xff] }
  0x7e   :  { %677 = vmatpush1.msra.mxu1 %v4415_v1  ;;  %v7733_v1 = vld [vmem:[#allocation53_spill] sm:$0xff] }
  0x7f   :  { %678 = vmatprep.subr.mxu1 %v4417_v2  ;;  %v7734_v2 = vld [vmem:[#allocation55_spill] sm:$0xff] }
  0x80   :  { %679 = vmatpush1.msra.mxu1 %v4420_v3  ;;  %v7735_v3 = vld [vmem:[#allocation57_spill] sm:$0xff] }
  0x81   :  { %680 = vmatprep.subr.mxu1 %v4423_v4  ;;  %v7736_v4 = vld [vmem:[#allocation59_spill] sm:$0xff] }
  0x82   :  { %681 = vmatpush1.msra.mxu1 %v4426_v5  ;;  %v7737_v5 = vld [vmem:[#allocation61_spill] sm:$0xff] }
  0x83   :  { %682 = vmatprep.subr.mxu1 %v4429_v6  ;;  %v7738_v6 = vld [vmem:[#allocation63_spill] sm:$0xff] }
  0x84   :  { %683 = vmatpush1.msra.mxu1 %v4432_v7  ;;  %v7739_v7 = vld [vmem:[#allocation64_spill] sm:$0xff] }
  0x85   :  { %684 = vmatprep.subr.mxu1 %v4435_v8  ;;  %v7740_v8 = vld [vmem:[#allocation70_spill] sm:$0xff] }
  0x86   :  { %685 = vmatpush1.msra.mxu1 %v4438_v9  ;;  %v7741_v9 = vld [vmem:[#allocation76_spill] sm:$0xff] }
  0x87   :  { %686 = vmatprep.subr.mxu1 %v4441_v10  ;;  %v4876_v10 = vld [vmem:[#allocation7 + $0x78] sm:$0xff] }
  0x88   :  { %687 = vmatpush1.msra.mxu1 %v4444_v11  ;;  %v4878_v11 = vld [vmem:[#allocation7 + $0x70] sm:$0xff]  ;;  %3838 = vmatpush3.msra.mxu0 %v4876_v10 }
  0x89   :  { %688 = vmatprep.subr.mxu1 %v4449_v13  ;;  %3839 = vmatprep.subr.mxu0 %v7400_v19  ;;  %v4884_v13 = vld [vmem:[#allocation7 + $0x68] sm:$0xff] }
  0x8a   :  { %689 = vmatpush1.msra.mxu1 %v4455_v15  ;;  %3840 = vmatpush3.msra.mxu0 %v4878_v11  ;;  %v4892_v15 = vld [vmem:[#allocation7 + $0x58] sm:$0xff] }
  0x8b   :  { %690 = vmatprep.subr.mxu1 %v4463_v18  ;;  %3841 = vmatprep.subr.mxu0 %v7400_v19  ;;  %v4900_v18 = vld [vmem:[#allocation7 + $0x48] sm:$0xff] }
  0x8c   :  { %691 = vmatpush1.msra.mxu1 %v4469_v20  ;;  %3842 = vmatpush3.msra.mxu0 %v4884_v13  ;;  %v4904_v20 = vld [vmem:[#allocation7 + $0x40] sm:$0xff] }
  0x8d   :  { %692 = vmatprep.subr.mxu1 %v4477_v23  ;;  %3843 = vmatprep.subr.mxu0 %v7400_v19  ;;  %v4912_v23 = vld [vmem:[#allocation7 + $0x30] sm:$0xff] }
  0x8e   :  { %693 = vmatpush1.msra.mxu1 %v4483_v25  ;;  %v4916_v25 = vld [vmem:[#allocation7 + $0x28] sm:$0xff] }
  0x8f   :  { %694 = vmatprep.subr.mxu1 %v4489_v27  ;;  %v4924_v27 = vld [vmem:[#allocation7 + $0x18] sm:$0xff] }
  0x90   :  { %695 = vmatpush1.msra.mxu1 %v4495_v29  ;;  %v4928_v29 = vld [vmem:[#allocation7 + $0x10] sm:$0xff] }
  0x91   :  { %696 = vmatprep.subr.mxu1 %v4501_v31  ;;  %v4932_v31 = vld [vmem:[#allocation7 + $0x8] sm:$0xff] }
  0x92   :  { %697 = vmatpush1.msra.mxu1 %v4507_v33  ;;  %v7742_v33 = vld [vmem:[#allocation12_spill] sm:$0xff] }
  0x93   :  { %698 = vmatprep.subr.mxu1 %v4513_v35 }
  0x94   :  { %699 = vmatpush1.msra.mxu1 %v4519_v37 }
  0x95   :  { %700 = vmatprep.subr.mxu1 %v4525_v39  ;;  %v106_v39 = vld [vmem:[%s7324_s4] sm:$0x3] }
  0x96   :  { %701 = vmatpush1.msra.mxu1 %v4531_v41 }
  0x97   :  { %702 = vmatprep.subr.mxu1 %v4537_v43 }
  0x98   :  { %703 = vmatpush1.msra.mxu1 %v4543_v45 }
  0x99   :  { %704 = vmatprep.subr.mxu1 %v4549_v47 }
  0x9a   :  { %705 = vmatpush1.msra.mxu1 %v4555_v49 }
  0x9b   :  { %706 = vmatprep.subr.mxu1 %v4561_v51 }
  0x9c   :  { %707 = vmatpush1.msra.mxu1 %v4567_v53  ;;  %v4959_v53 = vld [vmem:[%s7326_s6] ss:$0 sm:$0xff] }
  0x9d   :  { %708 = vmatprep.subr.mxu1 %v4573_v55 }
  0x9e   :  { %709 = vmatpush2.msra.mxu1 %v4579_v57 }
  0x9f   :  { %710 = vmatprep.subr.mxu1 %v4585_v59 }
  0xa0   :  { %711 = vmatpush2.msra.mxu1 %v4591_v61 }
  0xa1   :  { %712 = vmatprep.subr.mxu1 %v4597_v63 }
  0xa2   :  { %713 = vmatpush2.msra.mxu1 %v4603_v54 }
  0xa3   :  { %714 = vmatprep.subr.mxu1 %v4609_v56  ;;  %v4964_v56 = vld [vmem:[%s7325_s5] ss:$0 sm:$0xff] }
  0xa4   :  { %715 = vmatpush2.msra.mxu1 %v4615_v58 }
  0xa5   :  { %716 = vmatprep.subr.mxu1 %v4621_v60 }
  0xa6   :  { %717 = vmatpush2.msra.mxu1 %v4627_v62 }
  0xa7   :  { %718 = vmatprep.subr.mxu1 %v4633_v52 }
  0xa8   :  { %719 = vmatpush2.msra.mxu1 %v4639_v50 }
  0xa9   :  { %720 = vmatprep.subr.mxu1 %v4645_v48 }
  0xaa   :  { %721 = vmatpush2.msra.mxu1 %v4651_v46 }
  0xab   :  { %722 = vmatprep.subr.mxu1 %v4657_v44 }
  0xac   :  { %723 = vmatpush2.msra.mxu1 %v4663_v42 }
  0xad   :  { %724 = vmatprep.subr.mxu1 %v4669_v40 }
  0xae   :  { %725 = vmatpush2.msra.mxu1 %v7732_v0 }
  0xaf   :  { %726 = vmatprep.subr.mxu1 %v7733_v1 }
  0xb0   :  { %727 = vmatpush2.msra.mxu1 %v7734_v2 }
  0xb1   :  { %728 = vmatprep.subr.mxu1 %v7735_v3 }
  0xb2   :  { %729 = vmatpush2.msra.mxu1 %v7736_v4  ;;  %v7746_v4 = vld [vmem:[#allocation13_spill] sm:$0xff] }
  0xb3   :  { %730 = vmatprep.subr.mxu1 %v7737_v5  ;;  %v7747_v5 = vld [vmem:[#allocation14_spill] sm:$0xff] }
  0xb4   :  { %731 = vmatpush2.msra.mxu1 %v7738_v6  ;;  %v7748_v6 = vld [vmem:[#allocation15_spill] sm:$0xff] }
  0xb5   :  { %732 = vmatprep.subr.mxu1 %v7739_v7  ;;  %v7749_v7 = vld [vmem:[#allocation16_spill] sm:$0xff] }
  0xb6   :  { %733 = vmatpush2.msra.mxu1 %v4730_v34  ;;  %v85_v34 = vlaneseq }
  0xb7   :  { %734 = vmatprep.subr.mxu1 %v7740_v8  ;;  %v7750_v8 = vld [vmem:[#allocation17_spill] sm:$0xff] }
  0xb8   :  { %735 = vmatpush2.msra.mxu1 %v4742_v17  ;;  %v4896_v17 = vld [vmem:[#allocation7 + $0x50] sm:$0xff]  ;;  %v4943_v35 = vshrl.u32 %v85_v34, 7 }
  0xb9   :  { %736 = vmatprep.subr.mxu1 %v4750_v26  ;;  %v4920_v26 = vld [vmem:[#allocation7 + $0x20] sm:$0xff] }
  0xba   :  { %737 = vmatpush2.msra.mxu1 %v4756_v14  ;;  %v4888_v14 = vld [vmem:[#allocation7 + $0x60] sm:$0xff]  ;;  %7743 = vst [vmem:[#allocation51_spill] sm:$0xff] %v4943_v35  ;;  %v110_v37 = vsub.s32 0, %v4943_v35  ;;  %v114_v41 = vsub.s32 1, %v4943_v35  ;;  %v5268_v35 = vld [vmem:[#allocation6 + $0x28] sm:$0xff] }
  0xbb   :  { %738 = vmatprep.subr.mxu1 %v4762_v21  ;;  %3844 = vmatpush3.msra.mxu0 %v4888_v14  ;;  %v4906_v21 = vld [vmem:[#allocation7 + $0x38] sm:$0xff] }
  0xbc   :  { %739 = vmatpush2.msra.mxu1 %v7741_v9  ;;  %3845 = vmatprep.subr.mxu0 %v7400_v19  ;;  %v4949_v40 = vrot.slane %v106_v39, %v110_v37  ;;  %v4953_v45 = vrot.slane %v106_v39, %v114_v41  ;;  %v7751_v9 = vld [vmem:[#allocation18_spill] sm:$0xff]  ;;  %v7754_v37 = vld [vmem:[#allocation21_spill] sm:$0xff]  ;;  %v7756_v41 = vld [vmem:[#allocation23_spill] sm:$0xff] }
  0xbd   :  { %3872 = vmatprep.subr.mxu1 %v7400_v19  ;;  %3846 = vmatpush3.msra.mxu0 %v4892_v15  ;;  %v7755_v39 = vld [vmem:[#allocation22_spill] sm:$0xff] }
  0xbe   :  { %3847 = vmatprep.subr.mxu0 %v7400_v19  ;;  %7744 = vst [vmem:[#allocation53_spill] sm:$0xff] %v4949_v40  ;;  %7745 = vst [vmem:[#allocation55_spill] sm:$0xff] %v4953_v45 }
  0xbf   :  { %3848 = vmatpush3.msra.mxu0 %v4896_v17 }
  0xc0   :  { %3849 = vmatprep.subr.mxu0 %v7400_v19 }
  0xc1   :  { %3850 = vmatpush3.msra.mxu0 %v4900_v18 }
  0xc2   :  { %3851 = vmatprep.subr.mxu0 %v7400_v19 }
  0xc3   :  { %3852 = vmatpush3.msra.mxu0 %v4904_v20 }
  0xc4   :  { %3853 = vmatprep.subr.mxu0 %v7400_v19 }
  0xc5   :  { %3854 = vmatpush3.msra.mxu0 %v4906_v21 }
  0xc6   :  { %3855 = vmatprep.subr.mxu0 %v7400_v19 }
  0xc7   :  { %3856 = vmatpush3.msra.mxu0 %v4912_v23 }
  0xc8   :  { %3857 = vmatprep.subr.mxu0 %v7400_v19 }
  0xc9   :  { %3858 = vmatpush3.msra.mxu0 %v4916_v25 }
  0xca   :  { %3859 = vmatprep.subr.mxu0 %v7400_v19 }
  0xcb   :  { %3860 = vmatpush3.msra.mxu0 %v4920_v26 }
  0xcc   :  { %3861 = vmatprep.subr.mxu0 %v7400_v19 }
  0xcd   :  { %3862 = vmatpush3.msra.mxu0 %v4924_v27 }
  0xce   :  { %3863 = vmatprep.subr.mxu0 %v7400_v19 }
  0xcf   :  { %3864 = vmatpush3.msra.mxu0 %v4928_v29 }
  0xd0   :  { %3865 = vmatprep.subr.mxu0 %v7400_v19 }
  0xd1   :  { %3866 = vmatpush3.msra.mxu0 %v4932_v31 }
  0xd2   :  { %3867 = vmatprep.subr.mxu0 %v7400_v19 }
  0xd3   :  { %3868 = vmatpush3.msra.mxu0 %v4936_v32 }
  0xd4   :  { %747 = vmatprep.subr.mxu0 %v7742_v33  ;;  %v7753_v33 = vld [vmem:[#allocation20_spill] sm:$0xff] }
 0x135   :  { %v336_v42 = vpop.f32.mrf.mxu0 }
 0x136   :  { %v412_v43 = vadd.f32 %v336_v42, %v4949_v40  ;;  %v7757_v42 = vld [vmem:[#allocation24_spill] sm:$0xff] }
 0x137   :  { %v338_v46 = vpop.f32.mrf.mxu0 }
 0x138   :  { %v3685_v44 = vmul.f32 -1.442695, %v412_v43  ;;  %v413_v47 = vadd.f32 %v338_v46, %v4953_v45  ;;  %v7758_v43 = vld [vmem:[#allocation25_spill] sm:$0xff]  ;;  %v7760_v46 = vld [vmem:[#allocation27_spill] sm:$0xff] }
 0x13a   :  { %4127 = vpow2.f32 %v3685_v44  ;;  %v3686_v48 = vmul.f32 -1.442695, %v413_v47  ;;  %v7759_v44 = vld [vmem:[#allocation26_spill] sm:$0xff]  ;;  %v7761_v47 = vld [vmem:[#allocation28_spill] sm:$0xff] }
 0x13c   :  { %4129 = vpow2.f32 %v3686_v48  ;;  %v7762_v48 = vld [vmem:[#allocation29_spill] sm:$0xff] }
 0x13d   :  { %v407_v51 = vpop.f32.mrf.mxu1 }
 0x13e   :  { %v426_v59 = vadd.f32 %v4964_v56, %v407_v51  ;;  %v7765_v51 = vld [vmem:[#allocation32_spill] sm:$0xff] }
 0x13f   :  { %v409_v54 = vpop.f32.mrf.mxu1 }
 0x140   :  { %v427_v57 = vadd.f32 %v4959_v53, %v409_v54  ;;  %v7767_v54 = vld [vmem:[#allocation34_spill] sm:$0xff] }
 0x147   :  { %v4128_v49 = vpop.eup %4127 }
 0x148   :  { %v420_v50 = vadd.f32 1.0, %v4128_v49  ;;  %v7763_v49 = vld [vmem:[#allocation30_spill] sm:$0xff] }
 0x149   :  { %v4130_v52 = vpop.eup %4129 }
 0x14a   :  { %4131 = vrcp.f32 %v420_v50  ;;  %v421_v55 = vadd.f32 1.0, %v4130_v52  ;;  %v7764_v50 = vld [vmem:[#allocation31_spill] sm:$0xff]  ;;  %v7766_v52 = vld [vmem:[#allocation33_spill] sm:$0xff] }
 0x14c   :  { %4133 = vrcp.f32 %v421_v55  ;;  %v7768_v55 = vld [vmem:[#allocation35_spill] sm:$0xff] }
 0x157   :  { %v4132_v58 = vpop.eup %4131 }
 0x158   :  { %v428_v60 = vmul.f32 %v4132_v58, %v427_v57  ;;  %v7769_v57 = vld [vmem:[#allocation36_spill] sm:$0xff]  ;;  %v7770_v58 = vld [vmem:[#allocation37_spill] sm:$0xff] }
 0x159   :  { %v4134_v62 = vpop.eup %4133 }
 0x15a   :  { %v429_v61 = vadd.f32 %v428_v60, %v426_v59  ;;  %v431_v63 = vsub.f32 1.0, %v4134_v62  ;;  %v433_v2 = vmul.f32 %v4134_v62, %v4648_v36  ;;  %v7752_v36 = vld [vmem:[#allocation19_spill] sm:$0xff]  ;;  %v7771_v59 = vld [vmem:[#allocation38_spill] sm:$0xff]  ;;  %v7774_v62 = vld [vmem:[#allocation41_spill] sm:$0xff] }
 0x15b   :  { %v7772_v60 = vld [vmem:[#allocation39_spill] sm:$0xff] }
 0x15c   :  { %4135 = vtanh.f32 %v429_v61  ;;  %v7773_v61 = vld [vmem:[#allocation40_spill] sm:$0xff] }
 0x169   :  { %v4136_v0 = vpop.eup %4135 }
 0x16a   :  { %v432_v1 = vmul.f32 %v4136_v0, %v431_v63  ;;  %v7775_v63 = vld [vmem:[#allocation42_spill] sm:$0xff]  ;;  %v7776_v0 = vld [vmem:[#allocation43_spill] sm:$0xff] }
 0x16c   :  { %v4969_v3 = vadd.f32 %v433_v2, %v432_v1  ;;  %v7777_v1 = vld [vmem:[#allocation44_spill] sm:$0xff]  ;;  %v7778_v2 = vld [vmem:[#allocation45_spill] sm:$0xff] }
 0x16e   :  { %3870 = vmatmul.mubr.f32.vlgmr.msra.gmra.mxu0 %v4969_v3  ;;  %740 = vmatprep.mubr.f32.mxu1 %v4969_v3 }
 0x16f   :  { %811 = vmatprep.mubr.f32.mxu0 %v4969_v3  ;;  %748 = vmatpush1.msra.mxu0 %v7746_v4  ;;  %v7779_v4 = vld [vmem:[#allocation46_spill] sm:$0xff] }
 0x170   :  { %749 = vmatprep.subr.mxu0 %v7747_v5  ;;  %v7780_v5 = vld [vmem:[#allocation47_spill] sm:$0xff] }
 0x171   :  { %750 = vmatpush1.msra.mxu0 %v7748_v6  ;;  %v7781_v6 = vld [vmem:[#allocation48_spill] sm:$0xff] }
 0x172   :  { %751 = vmatprep.subr.mxu0 %v7749_v7  ;;  %v7782_v7 = vld [vmem:[#allocation49_spill] sm:$0xff] }
 0x173   :  { %752 = vmatpush1.msra.mxu0 %v7750_v8  ;;  %v7783_v8 = vld [vmem:[#allocation50_spill] sm:$0xff] }
 0x174   :  { %753 = vmatprep.subr.mxu0 %v7751_v9  ;;  %v7784_v9 = vld [vmem:[#allocation52_spill] sm:$0xff] }
 0x175   :  { %754 = vmatpush1.msra.mxu0 %v7752_v36  ;;  %v7785_v36 = vld [vmem:[#allocation54_spill] sm:$0xff] }
 0x176   :  { %755 = vmatprep.subr.mxu0 %v7753_v33  ;;  %v7786_v33 = vld [vmem:[#allocation56_spill] sm:$0xff] }
 0x177   :  { %756 = vmatpush1.msra.mxu0 %v7754_v37  ;;  %v7787_v37 = vld [vmem:[#allocation58_spill] sm:$0xff] }
 0x178   :  { %757 = vmatprep.subr.mxu0 %v7755_v39  ;;  %v7788_v39 = vld [vmem:[#allocation60_spill] sm:$0xff] }
 0x179   :  { %758 = vmatpush1.msra.mxu0 %v7756_v41  ;;  %v7789_v41 = vld [vmem:[#allocation62_spill] sm:$0xff] }
 0x17a   :  { %759 = vmatprep.subr.mxu0 %v7757_v42  ;;  %v7790_v42 = vld [vmem:[#allocation65_spill] sm:$0xff] }
 0x17b   :  { %760 = vmatpush1.msra.mxu0 %v7758_v43  ;;  %v7791_v43 = vld [vmem:[#allocation68_spill] sm:$0xff] }
 0x17c   :  { %761 = vmatprep.subr.mxu0 %v7759_v44  ;;  %v7792_v44 = vld [vmem:[#allocation69_spill] sm:$0xff] }
 0x17d   :  { %762 = vmatpush1.msra.mxu0 %v7760_v46  ;;  %v7793_v46 = vld [vmem:[#allocation71_spill] sm:$0xff] }
 0x17e   :  { %763 = vmatprep.subr.mxu0 %v7761_v47  ;;  %v7794_v47 = vld [vmem:[#allocation72_spill] sm:$0xff] }
 0x17f   :  { %764 = vmatpush1.msra.mxu0 %v7762_v48  ;;  %v7795_v48 = vld [vmem:[#allocation73_spill] sm:$0xff] }
 0x180   :  { %765 = vmatprep.subr.mxu0 %v7763_v49  ;;  %v7796_v49 = vld [vmem:[#allocation74_spill] sm:$0xff] }
 0x181   :  { %766 = vmatpush1.msra.mxu0 %v7764_v50  ;;  %v7797_v50 = vld [vmem:[#allocation75_spill] sm:$0xff] }
 0x182   :  { %767 = vmatprep.subr.mxu0 %v7765_v51  ;;  %v7798_v51 = vld [vmem:[#allocation77_spill] sm:$0xff] }
 0x183   :  { %768 = vmatpush1.msra.mxu0 %v7766_v52  ;;  %v7799_v52 = vld [vmem:[#allocation78_spill] sm:$0xff] }
 0x184   :  { %769 = vmatprep.subr.mxu0 %v7767_v54  ;;  %v7800_v54 = vld [vmem:[#allocation79_spill] sm:$0xff] }
 0x185   :  { %770 = vmatpush1.msra.mxu0 %v7768_v55  ;;  %v7801_v55 = vld [vmem:[#allocation80_spill] sm:$0xff] }
 0x186   :  { %771 = vmatprep.subr.mxu0 %v7769_v57  ;;  %v5040_v57 = vld [vmem:[%s7328_s8] ss:$0 sm:$0xff] }
 0x187   :  { %772 = vmatpush1.msra.mxu0 %v7770_v58 }
 0x188   :  { %773 = vmatprep.subr.mxu0 %v7771_v59 }
 0x189   :  { %774 = vmatpush1.msra.mxu0 %v7772_v60 }
 0x18a   :  { %775 = vmatprep.subr.mxu0 %v7773_v61 }
 0x18b   :  { %776 = vmatpush1.msra.mxu0 %v7774_v62 }
 0x18c   :  { %777 = vmatprep.subr.mxu0 %v7775_v63 }
 0x18d   :  { %778 = vmatpush1.msra.mxu0 %v7776_v0 }
 0x18e   :  { %779 = vmatprep.subr.mxu0 %v7777_v1 }
 0x18f   :  { %780 = vmatpush2.msra.mxu0 %v7778_v2 }
 0x190   :  { %781 = vmatprep.subr.mxu0 %v7779_v4 }
 0x191   :  { %782 = vmatpush2.msra.mxu0 %v7780_v5  ;;  %v7803_v5 = vld [vmem:[#allocation66_spill] sm:$0xff] }
 0x192   :  { %783 = vmatprep.subr.mxu0 %v7781_v6 }
 0x193   :  { %784 = vmatpush2.msra.mxu0 %v7782_v7  ;;  %v7804_v7 = vld [vmem:[#allocation67_spill] sm:$0xff] }
 0x194   :  { %785 = vmatprep.subr.mxu0 %v7783_v8 }
 0x195   :  { %786 = vmatpush2.msra.mxu0 %v7784_v9 }
 0x196   :  { %787 = vmatprep.subr.mxu0 %v7785_v36 }
 0x197   :  { %788 = vmatpush2.msra.mxu0 %v7786_v33 }
 0x198   :  { %789 = vmatprep.subr.mxu0 %v7787_v37 }
 0x199   :  { %790 = vmatpush2.msra.mxu0 %v7788_v39 }
 0x19a   :  { %791 = vmatprep.subr.mxu0 %v7789_v41 }
 0x19b   :  { %792 = vmatpush2.msra.mxu0 %v7790_v42 }
 0x19c   :  { %793 = vmatprep.subr.mxu0 %v7791_v43 }
 0x19d   :  { %794 = vmatpush2.msra.mxu0 %v7792_v44 }
 0x19e   :  { %795 = vmatprep.subr.mxu0 %v7793_v46 }
 0x19f   :  { %796 = vmatpush2.msra.mxu0 %v7794_v47 }
 0x1a0   :  { %797 = vmatprep.subr.mxu0 %v7795_v48 }
 0x1a1   :  { %798 = vmatpush2.msra.mxu0 %v7796_v49  ;;  %v5104_v49 = vld [vmem:[#allocation6 + $0x1e8] sm:$0xff] }
 0x1a2   :  { %799 = vmatprep.subr.mxu0 %v7797_v50  ;;  %v5106_v50 = vld [vmem:[#allocation6 + $0x1f8] sm:$0xff] }
 0x1a3   :  { %800 = vmatpush2.msra.mxu0 %v7798_v51  ;;  %7807 = vst [vmem:[#allocation63_spill] sm:$0xff] %v5106_v50  ;;  %v5108_v51 = vld [vmem:[#allocation6 + $0x1e0] sm:$0xff] }
 0x1a4   :  { %801 = vmatprep.subr.mxu0 %v7799_v52  ;;  %v5112_v52 = vld [vmem:[#allocation6 + $0x1f0] sm:$0xff] }
 0x1a5   :  { %802 = vmatpush2.msra.mxu0 %v7800_v54  ;;  %7808 = vst [vmem:[#allocation64_spill] sm:$0xff] %v5112_v52  ;;  %v5114_v54 = vld [vmem:[#allocation6 + $0x1c8] sm:$0xff] }
 0x1a6   :  { %803 = vmatprep.subr.mxu0 %v7801_v55  ;;  %v5116_v55 = vld [vmem:[#allocation6 + $0x1d8] sm:$0xff] }
 0x1a7   :  { %804 = vmatpush2.msra.mxu0 %v4786_v12  ;;  %7809 = vst [vmem:[#allocation70_spill] sm:$0xff] %v5116_v55 }
 0x1a8   :  { %805 = vmatprep.subr.mxu0 %v4789_v38 }
 0x1a9   :  { %806 = vmatpush2.msra.mxu0 %v4793_v22  ;;  %v5044_v22 = vand.u32 127, %v85_v34 }
 0x1aa   :  { %807 = vmatprep.subr.mxu0 %v4797_v30 }
 0x1ab   :  { %808 = vmatpush2.msra.mxu0 %v4800_v24  ;;  %7802 = vst [vmem:[#allocation57_spill] sm:$0xff] %v5044_v22 }
 0x1ac   :  { %809 = vmatprep.subr.mxu0 %v4803_v16 }
 0x1ad   :  { %810 = vmatpush2.msra.mxu0 %v4806_v28 }
 0x1ae   :  { %1126 = vmatprep.subr.mxu0 %v5104_v49 }
 0x22e   :  { %v517_v58 = vpop.f32.mrf.mxu0 }
 0x22f   :  { %v518_v12 = vadd.f32 %v5040_v57, %v517_v58  ;;  %v5122_v58 = vld [vmem:[#allocation6 + $0x1d0] sm:$0xff] }
 0x230   :  { %v3871_v59 = vpop.f32.mrf.mxu0  ;;  %7810 = vst [vmem:[#allocation76_spill] sm:$0xff] %v5122_v58 }
 0x231   :  { %524 = vmax.xlane.f32.xlu0 %v518_v12  ;;  %v5128_v59 = vld [vmem:[#allocation6 + $0x1b8] sm:$0xff] }
 0x232   :  { %7811 = vst [vmem:[#allocation12_spill] sm:$0xff] %v5128_v59 }
 0x2ba   :  { %v525_v30 = vpop.xlane.xlu0 %524 }
 0x2bb   :  { %vm526_vm1 = vcmp.eq.f32.partialorder %v518_v12, %v525_v30  ;;  %v5124_v12 = vld [vmem:[#allocation6 + $0x1a8] sm:$0xff]  ;;  %v5130_v30 = vld [vmem:[#allocation6 + $0x1a0] sm:$0xff] }
 0x2bc   :  { %v527_v24 = vsel %vm526_vm1, %v5044_v22, 128 }
 0x2bd   :  { %v529_v16 = vshra.s32 %v527_v24, 16  ;;  %v528_v28 = vand.u32 65535, %v527_v24  ;;  %v5132_v24 = vld [vmem:[#allocation6 + $0x1b0] sm:$0xff] }
 0x2be   :  { %7812 = vst [vmem:[#allocation13_spill] sm:$0xff] %v5132_v24 }
 0x2bf   :  { %v531_v38 = vcvt.s32.f32 %v529_v16  ;;  %v530_v61 = vcvt.s32.f32 %v528_v28  ;;  %v5136_v16 = vld [vmem:[#allocation6 + $0x188] sm:$0xff]  ;;  %v5142_v28 = vld [vmem:[#allocation6 + $0x180] sm:$0xff] }
 0x2c1   :  { %532 = vmin.xlane.f32.xlu0 %v531_v38 }
 0x34a   :  { %v533_v60 = vpop.xlane.xlu0 %532 }
 0x34b   :  { %vm534_vm2 = vcmp.eq.f32.partialorder %v531_v38, %v533_v60  ;;  %v539_v63 = vcvt.f32.s32 %v533_v60  ;;  %v5138_v38 = vld [vmem:[#allocation6 + $0x198] sm:$0xff]  ;;  %v5144_v60 = vld [vmem:[#allocation6 + $0x190] sm:$0xff] }
 0x34c   :  { %v535_v62 = vsel %vm534_vm2, %v530_v61, inf  ;;  %7813 = vst [vmem:[#allocation14_spill] sm:$0xff] %v5138_v38  ;;  %7814 = vst [vmem:[#allocation15_spill] sm:$0xff] %v5144_v60  ;;  %v5148_v61 = vld [vmem:[#allocation6 + $0x168] sm:$0xff]  ;;  %vm975_vm2 = vcmask 64512  }
 0x34d   :  { %536 = vmin.xlane.f32.xlu1 %v535_v62  ;;  %v540_v1 = vshll.u32 %v539_v63, 16  ;;  %v5150_v62 = vld [vmem:[#allocation6 + $0x178] sm:$0xff]  ;;  %v5154_v63 = vld [vmem:[#allocation6 + $0x160] sm:$0xff] }
 0x34e   :  { %7815 = vst [vmem:[#allocation16_spill] sm:$0xff] %v5150_v62 }
 0x3d6   :  { %v537_v0 = vpop.xlane.xlu1 %536 }
 0x3d7   :  { %v538_v2 = vcvt.f32.s32 %v537_v0  ;;  %v5156_v0 = vld [vmem:[#allocation6 + $0x170] sm:$0xff] }
 0x3d8   :  { %7816 = vst [vmem:[#allocation17_spill] sm:$0xff] %v5156_v0 }
 0x3d9   :  { %v541_v4 = vadd.s32 %v540_v1, %v538_v2  ;;  %v5160_v1 = vld [vmem:[#allocation6 + $0x148] sm:$0xff]  ;;  %v5162_v2 = vld [vmem:[#allocation6 + $0x158] sm:$0xff] }
 0x3da   :  { %7817 = vst [vmem:[#allocation18_spill] sm:$0xff] %v5162_v2 }
 0x3db   :  { %v542_v34 = vcvt.s32.f32 %v541_v4  ;;  %v5166_v4 = vld [vmem:[#allocation6 + $0x140] sm:$0xff] }
 0x3dd   :  { %v545_v6 = vmul.f32 %v7803_v5, %v542_v34  ;;  %v5168_v34 = vld [vmem:[#allocation6 + $0x150] sm:$0xff]  ;;  %v5172_v5 = vld [vmem:[#allocation6 + $0x128] sm:$0xff] }
 0x3de   :  { %7818 = vst [vmem:[#allocation19_spill] sm:$0xff] %v5168_v34 }
 0x3df   :  { %v546_v8 = vadd.f32 %v7804_v7, %v545_v6  ;;  %v5174_v6 = vld [vmem:[#allocation6 + $0x138] sm:$0xff]  ;;  %v5178_v7 = vld [vmem:[#allocation6 + $0x120] sm:$0xff] }
 0x3e0   :  { %7819 = vst [vmem:[#allocation20_spill] sm:$0xff] %v5174_v6 }
 0x3e1   :  { %v547_v9 = vmax.f32 %v546_v8, 0.0  ;;  %v5180_v8 = vld [vmem:[#allocation6 + $0x130] sm:$0xff] }
 0x3e2   :  { %7820 = vst [vmem:[#allocation21_spill] sm:$0xff] %v5180_v8 }
 0x3e3   :  { %741 = vmatmul.mubr.f32.vlgmr.msra.gmra.mxu1 %v547_v9  ;;  %812 = vmatmul.mubr.f32.vlgmr.msra.gmra.mxu0 %v547_v9  ;;  %v5184_v9 = vld [vmem:[#allocation6 + $0x108] sm:$0xff] }
 0x3e4   :  { %3873 = vmatpush3.msra.mxu1 %v4876_v10  ;;  %3904 = vmatprep.mubr.msk.f32.mxu1 %vm4345_vm0, %v7400_v19 }
 0x3e5   :  { %3874 = vmatprep.subr.mxu1 %v7400_v19  ;;  %1127 = vmatpush1.msra.mxu0 %v5108_v51 }
 0x3e6   :  { %3875 = vmatpush3.msra.mxu1 %v4878_v11  ;;  %1128 = vmatprep.subr.mxu0 %v5114_v54 }
 0x3e7   :  { %3876 = vmatprep.subr.mxu1 %v7400_v19 }
 0x3e8   :  { %3877 = vmatpush3.msra.mxu1 %v4884_v13 }
 0x3e9   :  { %3878 = vmatprep.subr.mxu1 %v7400_v19 }
 0x3ea   :  { %3879 = vmatpush3.msra.mxu1 %v4888_v14 }
 0x3eb   :  { %3880 = vmatprep.subr.mxu1 %v7400_v19 }
 0x3ec   :  { %3881 = vmatpush3.msra.mxu1 %v4892_v15 }
 0x3ed   :  { %3882 = vmatprep.subr.mxu1 %v7400_v19 }
 0x3ee   :  { %3883 = vmatpush3.msra.mxu1 %v4896_v17 }
 0x3ef   :  { %3884 = vmatprep.subr.mxu1 %v7400_v19 }
 0x3f0   :  { %3885 = vmatpush3.msra.mxu1 %v4900_v18 }
 0x3f1   :  { %3886 = vmatprep.subr.mxu1 %v7400_v19 }
 0x3f2   :  { %3887 = vmatpush3.msra.mxu1 %v4904_v20 }
 0x3f3   :  { %3888 = vmatprep.subr.mxu1 %v7400_v19 }
 0x3f4   :  { %3889 = vmatpush3.msra.mxu1 %v4906_v21 }
 0x3f5   :  { %3890 = vmatprep.subr.mxu1 %v7400_v19 }
 0x3f6   :  { %3891 = vmatpush3.msra.mxu1 %v4912_v23 }
 0x3f7   :  { %3892 = vmatprep.subr.mxu1 %v7400_v19 }
 0x3f8   :  { %3893 = vmatpush3.msra.mxu1 %v4916_v25 }
 0x3f9   :  { %3894 = vmatprep.subr.mxu1 %v7400_v19 }
 0x3fa   :  { %3895 = vmatpush3.msra.mxu1 %v4920_v26 }
 0x3fb   :  { %3896 = vmatprep.subr.mxu1 %v7400_v19 }
 0x3fc   :  { %3897 = vmatpush3.msra.mxu1 %v4924_v27 }
 0x3fd   :  { %3898 = vmatprep.subr.mxu1 %v7400_v19 }
 0x3fe   :  { %3899 = vmatpush3.msra.mxu1 %v4928_v29 }
 0x3ff   :  { %3900 = vmatprep.subr.mxu1 %v7400_v19 }
 0x400   :  { %3901 = vmatpush3.msra.mxu1 %v4932_v31 }
 0x401   :  { %3902 = vmatprep.subr.mxu1 %v7400_v19  ;;  %v5264_v19 = vld [vmem:[#allocation6 + $0x50] sm:$0xff] }
 0x402   :  { %3903 = vmatpush3.msra.mxu1 %v4936_v32  ;;  %7834 = vst [vmem:[#allocation35_spill] sm:$0xff] %v5264_v19 }
 0x403   :  { %1197 = vmatprep.subr.mxu1 %v5106_v50  ;;  %v5456_v50 = vld [vmem:[#allocation6 + $0x258] sm:$0xff] }
 0x404   :  { %7873 = vst [vmem:[#allocation84_spill] sm:$0xff] %v5456_v50 }
 0x4a3   :  { %v742_v10 = vpop.f32.mrf.mxu1  ;;  %v813_v21 = vpop.f32.mrf.mxu0 }
 0x4a4   :  { %v818_v11 = vadd.f32 %v742_v10, %v4949_v40  ;;  %v832_v31 = vadd.f32 %v4964_v56, %v813_v21  ;;  %v5186_v10 = vld [vmem:[#allocation6 + $0x118] sm:$0xff] }
 0x4a5   :  { %v744_v14 = vpop.f32.mrf.mxu1  ;;  %v815_v25 = vpop.f32.mrf.mxu0  ;;  %7821 = vst [vmem:[#allocation22_spill] sm:$0xff] %v5186_v10  ;;  %v5210_v21 = vld [vmem:[#allocation6 + $0xd8] sm:$0xff] }
 0x4a6   :  { %v3687_v13 = vmul.f32 -1.442695, %v818_v11  ;;  %v819_v15 = vadd.f32 %v744_v14, %v4953_v45  ;;  %v833_v27 = vadd.f32 %v4959_v53, %v815_v25  ;;  %v5190_v11 = vld [vmem:[#allocation6 + $0x100] sm:$0xff]  ;;  %v5196_v14 = vld [vmem:[#allocation6 + $0xe8] sm:$0xff]  ;;  %7825 = vst [vmem:[#allocation26_spill] sm:$0xff] %v5210_v21  ;;  %v5216_v25 = vld [vmem:[#allocation6 + $0xd0] sm:$0xff] }
 0x4a7   :  { %7826 = vst [vmem:[#allocation27_spill] sm:$0xff] %v5216_v25  ;;  %v5418_v45 = vld [vmem:[#allocation6 + $0x2a8] sm:$0xff]  ;;  %v5420_v40 = vld [vmem:[#allocation6 + $0x2b8] sm:$0xff] }
 0x4a8   :  { %4137 = vpow2.f32 %v3687_v13  ;;  %v3688_v17 = vmul.f32 -1.442695, %v819_v15  ;;  %v5192_v13 = vld [vmem:[#allocation6 + $0x110] sm:$0xff]  ;;  %v5198_v15 = vld [vmem:[#allocation6 + $0xf8] sm:$0xff]  ;;  %7860 = vst [vmem:[#allocation72_spill] sm:$0xff] %v5418_v45  ;;  %7861 = vst [vmem:[#allocation73_spill] sm:$0xff] %v5420_v40 }
 0x4a9   :  { %7822 = vst [vmem:[#allocation23_spill] sm:$0xff] %v5192_v13  ;;  %7823 = vst [vmem:[#allocation24_spill] sm:$0xff] %v5198_v15 }
 0x4aa   :  { %4139 = vpow2.f32 %v3688_v17  ;;  %v5202_v17 = vld [vmem:[#allocation6 + $0xe0] sm:$0xff] }
 0x4b5   :  { %v4138_v18 = vpop.eup %4137 }
 0x4b6   :  { %v826_v20 = vadd.f32 1.0, %v4138_v18  ;;  %v5204_v18 = vld [vmem:[#allocation6 + $0xf0] sm:$0xff] }
 0x4b7   :  { %v4140_v23 = vpop.eup %4139  ;;  %7824 = vst [vmem:[#allocation25_spill] sm:$0xff] %v5204_v18 }
 0x4b8   :  { %4141 = vrcp.f32 %v826_v20  ;;  %v827_v26 = vadd.f32 1.0, %v4140_v23  ;;  %v5208_v20 = vld [vmem:[#allocation6 + $0xc8] sm:$0xff]  ;;  %v5214_v23 = vld [vmem:[#allocation6 + $0xc0] sm:$0xff] }
 0x4ba   :  { %4143 = vrcp.f32 %v827_v26  ;;  %v5220_v26 = vld [vmem:[#allocation6 + $0xa8] sm:$0xff] }
 0x4c5   :  { %v4142_v29 = vpop.eup %4141 }
 0x4c6   :  { %v834_v32 = vmul.f32 %v4142_v29, %v833_v27  ;;  %v5222_v27 = vld [vmem:[#allocation6 + $0xb8] sm:$0xff]  ;;  %v5226_v29 = vld [vmem:[#allocation6 + $0xa0] sm:$0xff] }
 0x4c7   :  { %v4144_v33 = vpop.eup %4143  ;;  %7827 = vst [vmem:[#allocation28_spill] sm:$0xff] %v5222_v27 }
 0x4c8   :  { %v835_v36 = vadd.f32 %v834_v32, %v832_v31  ;;  %v837_v37 = vsub.f32 1.0, %v4144_v33  ;;  %v839_v42 = vmul.f32 %v4144_v33, %v4969_v3  ;;  %v5228_v31 = vld [vmem:[#allocation6 + $0xb0] sm:$0xff]  ;;  %v5232_v32 = vld [vmem:[#allocation6 + $0x88] sm:$0xff]  ;;  %v5238_v33 = vld [vmem:[#allocation6 + $0x80] sm:$0xff] }
 0x4c9   :  { %7828 = vst [vmem:[#allocation29_spill] sm:$0xff] %v5228_v31 }
 0x4ca   :  { %4145 = vtanh.f32 %v835_v36  ;;  %v5234_v36 = vld [vmem:[#allocation6 + $0x98] sm:$0xff] }
 0x4cb   :  { %7829 = vst [vmem:[#allocation30_spill] sm:$0xff] %v5234_v36 }
 0x4d7   :  { %v4146_v39 = vpop.eup %4145 }
 0x4d8   :  { %v838_v41 = vmul.f32 %v4146_v39, %v837_v37  ;;  %v5240_v37 = vld [vmem:[#allocation6 + $0x90] sm:$0xff]  ;;  %v5244_v39 = vld [vmem:[#allocation6 + $0x68] sm:$0xff] }
 0x4d9   :  { %7830 = vst [vmem:[#allocation31_spill] sm:$0xff] %v5240_v37 }
 0x4da   :  { %v5087_v43 = vadd.f32 %v839_v42, %v838_v41  ;;  %v5246_v41 = vld [vmem:[#allocation6 + $0x78] sm:$0xff]  ;;  %v5250_v42 = vld [vmem:[#allocation6 + $0x60] sm:$0xff] }
 0x4db   :  { %7831 = vst [vmem:[#allocation32_spill] sm:$0xff] %v5246_v41 }
 0x4dc   :  { %7805 = vst [vmem:[#allocation59_spill] sm:$0xff] %v5087_v43  ;;  %3905 = vmatmul.mubr.f32.vlgmr.msra.gmra.mxu1 %v5087_v43  ;;  %1190 = vmatprep.mubr.f32.mxu0 %v5087_v43 }
 0x4dd   :  { %1261 = vmatprep.mubr.f32.mxu1 %v5087_v43  ;;  %1198 = vmatpush1.msra.mxu1 %v5112_v52  ;;  %v5408_v52 = vld [vmem:[#allocation6 + $0x2d0] sm:$0xff] }
 0x4de   :  { %1199 = vmatprep.subr.mxu1 %v5116_v55  ;;  %v5402_v55 = vld [vmem:[#allocation6 + $0x2d8] sm:$0xff]  ;;  %7859 = vst [vmem:[#allocation71_spill] sm:$0xff] %v5408_v52 }
 0x4df   :  { %1200 = vmatpush1.msra.mxu1 %v5122_v58  ;;  %v5396_v58 = vld [vmem:[#allocation6 + $0x2f0] sm:$0xff]  ;;  %7857 = vst [vmem:[#allocation68_spill] sm:$0xff] %v5402_v55 }
 0x4e0   :  { %1201 = vmatprep.subr.mxu1 %v5128_v59  ;;  %v5390_v59 = vld [vmem:[#allocation6 + $0x2f8] sm:$0xff]  ;;  %7856 = vst [vmem:[#allocation65_spill] sm:$0xff] %v5396_v58 }
 0x4e1   :  { %1202 = vmatpush1.msra.mxu1 %v5132_v24  ;;  %v5384_v24 = vld [vmem:[#allocation6 + $0x310] sm:$0xff]  ;;  %7855 = vst [vmem:[#allocation62_spill] sm:$0xff] %v5390_v59 }
 0x4e2   :  { %1203 = vmatprep.subr.mxu1 %v5138_v38  ;;  %v5378_v38 = vld [vmem:[#allocation6 + $0x318] sm:$0xff]  ;;  %7854 = vst [vmem:[#allocation60_spill] sm:$0xff] %v5384_v24 }
 0x4e3   :  { %1204 = vmatpush1.msra.mxu1 %v5144_v60  ;;  %v5372_v60 = vld [vmem:[#allocation6 + $0x330] sm:$0xff]  ;;  %7853 = vst [vmem:[#allocation58_spill] sm:$0xff] %v5378_v38 }
 0x4e4   :  { %1205 = vmatprep.subr.mxu1 %v5150_v62  ;;  %v5366_v62 = vld [vmem:[#allocation6 + $0x338] sm:$0xff]  ;;  %7852 = vst [vmem:[#allocation56_spill] sm:$0xff] %v5372_v60 }
 0x4e5   :  { %1206 = vmatpush1.msra.mxu1 %v5156_v0  ;;  %v5360_v0 = vld [vmem:[#allocation6 + $0x350] sm:$0xff]  ;;  %7851 = vst [vmem:[#allocation54_spill] sm:$0xff] %v5366_v62 }
 0x4e6   :  { %1207 = vmatprep.subr.mxu1 %v5162_v2  ;;  %v5354_v2 = vld [vmem:[#allocation6 + $0x358] sm:$0xff]  ;;  %7850 = vst [vmem:[#allocation52_spill] sm:$0xff] %v5360_v0 }
 0x4e7   :  { %1208 = vmatpush1.msra.mxu1 %v5168_v34  ;;  %v5348_v34 = vld [vmem:[#allocation6 + $0x370] sm:$0xff]  ;;  %7849 = vst [vmem:[#allocation50_spill] sm:$0xff] %v5354_v2 }
 0x4e8   :  { %1209 = vmatprep.subr.mxu1 %v5174_v6  ;;  %v5342_v6 = vld [vmem:[#allocation6 + $0x378] sm:$0xff]  ;;  %7848 = vst [vmem:[#allocation49_spill] sm:$0xff] %v5348_v34 }
 0x4e9   :  { %1210 = vmatpush1.msra.mxu1 %v5180_v8  ;;  %v5336_v8 = vld [vmem:[#allocation6 + $0x390] sm:$0xff]  ;;  %7847 = vst [vmem:[#allocation48_spill] sm:$0xff] %v5342_v6 }
 0x4ea   :  { %1211 = vmatprep.subr.mxu1 %v5186_v10  ;;  %v5330_v10 = vld [vmem:[#allocation6 + $0x398] sm:$0xff]  ;;  %7846 = vst [vmem:[#allocation47_spill] sm:$0xff] %v5336_v8 }
 0x4eb   :  { %1212 = vmatpush1.msra.mxu1 %v5192_v13  ;;  %v5324_v13 = vld [vmem:[#allocation6 + $0x3b0] sm:$0xff]  ;;  %7845 = vst [vmem:[#allocation46_spill] sm:$0xff] %v5330_v10 }
 0x4ec   :  { %1213 = vmatprep.subr.mxu1 %v5198_v15  ;;  %v5318_v15 = vld [vmem:[#allocation6 + $0x3b8] sm:$0xff]  ;;  %7844 = vst [vmem:[#allocation45_spill] sm:$0xff] %v5324_v13 }
 0x4ed   :  { %1214 = vmatpush1.msra.mxu1 %v5204_v18  ;;  %v5312_v18 = vld [vmem:[#allocation6 + $0x3d0] sm:$0xff]  ;;  %7843 = vst [vmem:[#allocation44_spill] sm:$0xff] %v5318_v15 }
 0x4ee   :  { %1215 = vmatprep.subr.mxu1 %v5210_v21  ;;  %v5306_v21 = vld [vmem:[#allocation6 + $0x3d8] sm:$0xff]  ;;  %7842 = vst [vmem:[#allocation43_spill] sm:$0xff] %v5312_v18 }
 0x4ef   :  { %1216 = vmatpush1.msra.mxu1 %v5216_v25  ;;  %v5300_v25 = vld [vmem:[#allocation6 + $0x3f0] sm:$0xff]  ;;  %7841 = vst [vmem:[#allocation42_spill] sm:$0xff] %v5306_v21 }
 0x4f0   :  { %1217 = vmatprep.subr.mxu1 %v5222_v27  ;;  %v5294_v27 = vld [vmem:[#allocation6 + $0x3f8] sm:$0xff]  ;;  %7840 = vst [vmem:[#allocation41_spill] sm:$0xff] %v5300_v25 }
 0x4f1   :  { %1218 = vmatpush1.msra.mxu1 %v5228_v31  ;;  %v5288_v31 = vld [vmem:[#allocation6 + $0x10] sm:$0xff]  ;;  %7839 = vst [vmem:[#allocation40_spill] sm:$0xff] %v5294_v27 }
 0x4f2   :  { %1219 = vmatprep.subr.mxu1 %v5234_v36  ;;  %v5282_v36 = vld [vmem:[#allocation6 + $0x18] sm:$0xff]  ;;  %7838 = vst [vmem:[#allocation39_spill] sm:$0xff] %v5288_v31 }
 0x4f3   :  { %1220 = vmatpush1.msra.mxu1 %v5240_v37  ;;  %v5276_v37 = vld [vmem:[#allocation6 + $0x30] sm:$0xff]  ;;  %7837 = vst [vmem:[#allocation38_spill] sm:$0xff] %v5282_v36 }
 0x4f4   :  { %1221 = vmatprep.subr.mxu1 %v5246_v41  ;;  %7836 = vst [vmem:[#allocation37_spill] sm:$0xff] %v5276_v37  ;;  %v5280_v41 = vld [vmem:[#allocation6 + $0x8] sm:$0xff] }
 0x59c   :  { %v923_v53 = vpop.f32.mrf.mxu1 }
 0x59d   :  { %v5093_v56 = vadd.f32 %v5040_v57, %v923_v53  ;;  %v5120_v57 = vld [vmem:[#allocation6 + $0x1c0] sm:$0xff]  ;;  %v5252_v53 = vld [vmem:[#allocation6 + $0x70] sm:$0xff] }
 0x59e   :  { %v3906_v44 = vpop.f32.mrf.mxu1  ;;  %1129 = vmatpush1.msra.mxu0 %v5120_v57  ;;  %7832 = vst [vmem:[#allocation33_spill] sm:$0xff] %v5252_v53  ;;  %1222 = vmatpush1.msra.mxu1 %v5252_v53  ;;  %v5286_v53 = vld [vmem:[#allocation6] sm:$0xff] }
 0x59f   :  { %7806 = vst [vmem:[#allocation61_spill] sm:$0xff] %v5093_v56  ;;  %927 = vmax.xlane.f32.xlu1 %v5093_v56  ;;  %1130 = vmatprep.subr.mxu0 %v5124_v12  ;;  %v5256_v44 = vld [vmem:[#allocation6 + $0x48] sm:$0xff] }
 0x5a0   :  { %1131 = vmatpush1.msra.mxu0 %v5130_v30 }
 0x5a1   :  { %1132 = vmatprep.subr.mxu0 %v5136_v16 }
 0x5a2   :  { %1133 = vmatpush1.msra.mxu0 %v5142_v28 }
 0x5a3   :  { %1134 = vmatprep.subr.mxu0 %v5148_v61 }
 0x5a4   :  { %1135 = vmatpush1.msra.mxu0 %v5154_v63 }
 0x5a5   :  { %1136 = vmatprep.subr.mxu0 %v5160_v1 }
 0x5a6   :  { %1137 = vmatpush1.msra.mxu0 %v5166_v4 }
 0x5a7   :  { %1138 = vmatprep.subr.mxu0 %v5172_v5 }
 0x5a8   :  { %1139 = vmatpush1.msra.mxu0 %v5178_v7 }
 0x5a9   :  { %1140 = vmatprep.subr.mxu0 %v5184_v9 }
 0x5aa   :  { %1141 = vmatpush1.msra.mxu0 %v5190_v11 }
 0x5ab   :  { %1142 = vmatprep.subr.mxu0 %v5196_v14 }
 0x5ac   :  { %1143 = vmatpush1.msra.mxu0 %v5202_v17 }
 0x5ad   :  { %1144 = vmatprep.subr.mxu0 %v5208_v20 }
 0x5ae   :  { %1145 = vmatpush1.msra.mxu0 %v5214_v23 }
 0x5af   :  { %1146 = vmatprep.subr.mxu0 %v5220_v26 }
 0x5b0   :  { %1147 = vmatpush1.msra.mxu0 %v5226_v29 }
 0x5b1   :  { %1148 = vmatprep.subr.mxu0 %v5232_v32 }
 0x5b2   :  { %1149 = vmatpush1.msra.mxu0 %v5238_v33 }
 0x5b3   :  { %1150 = vmatprep.subr.mxu0 %v5244_v39 }
 0x5b4   :  { %1151 = vmatpush1.msra.mxu0 %v5250_v42 }
 0x5b5   :  { %1152 = vmatprep.subr.mxu0 %v5256_v44 }
 0x628   :  { %v928_v46 = vpop.xlane.xlu1 %927 }
 0x629   :  { %vm929_vm3 = vcmp.eq.f32.partialorder %v5093_v56, %v928_v46  ;;  %v5258_v46 = vld [vmem:[#allocation6 + $0x58] sm:$0xff] }
 0x62a   :  { %v5098_v3 = vsel %vm929_vm3, %v5044_v22, 128  ;;  %7833 = vst [vmem:[#allocation34_spill] sm:$0xff] %v5258_v46  ;;  %v5270_v56 = vld [vmem:[#allocation6 + $0x38] sm:$0xff]  ;;  %1223 = vmatprep.subr.mxu1 %v5258_v46  ;;  %v5274_v22 = vld [vmem:[#allocation6 + $0x20] sm:$0xff]  ;;  %v5292_v46 = vld [vmem:[#allocation6 + $0x3e8] sm:$0xff] }
 0x62b   :  { %v932_v47 = vshra.s32 %v5098_v3, 16  ;;  %7835 = vst [vmem:[#allocation36_spill] sm:$0xff] %v5270_v56  ;;  %1224 = vmatpush1.msra.mxu1 %v5264_v19  ;;  %v5298_v19 = vld [vmem:[#allocation6 + $0x3e0] sm:$0xff] }
 0x62c   :  { %1225 = vmatprep.subr.mxu1 %v5270_v56  ;;  %v5304_v56 = vld [vmem:[#allocation6 + $0x3c8] sm:$0xff] }
 0x62d   :  { %v5101_v48 = vcvt.s32.f32 %v932_v47  ;;  %v5262_v47 = vld [vmem:[#allocation6 + $0x40] sm:$0xff]  ;;  %1226 = vmatpush1.msra.mxu1 %v5276_v37 }
 0x62e   :  { %1153 = vmatpush1.msra.mxu0 %v5262_v47  ;;  %1227 = vmatprep.subr.mxu1 %v5282_v36  ;;  %v5310_v37 = vld [vmem:[#allocation6 + $0x3c0] sm:$0xff]  ;;  %v5316_v36 = vld [vmem:[#allocation6 + $0x3a8] sm:$0xff] }
 0x62f   :  { %935 = vmin.xlane.f32.xlu0 %v5101_v48  ;;  %1154 = vmatprep.subr.mxu0 %v5268_v35 }
 0x630   :  { %1155 = vmatpush1.msra.mxu0 %v5274_v22  ;;  %1228 = vmatpush1.msra.mxu1 %v5288_v31  ;;  %v5322_v31 = vld [vmem:[#allocation6 + $0x3a0] sm:$0xff] }
 0x631   :  { %1156 = vmatprep.subr.mxu0 %v5280_v41  ;;  %1229 = vmatprep.subr.mxu1 %v5294_v27  ;;  %v5328_v27 = vld [vmem:[#allocation6 + $0x388] sm:$0xff] }
 0x632   :  { %1157 = vmatpush1.msra.mxu0 %v5286_v53  ;;  %1230 = vmatpush2.msra.mxu1 %v5300_v25  ;;  %v5334_v25 = vld [vmem:[#allocation6 + $0x380] sm:$0xff] }
 0x633   :  { %1158 = vmatprep.subr.mxu0 %v5292_v46  ;;  %1231 = vmatprep.subr.mxu1 %v5306_v21  ;;  %v5340_v21 = vld [vmem:[#allocation6 + $0x368] sm:$0xff] }
 0x634   :  { %1159 = vmatpush2.msra.mxu0 %v5298_v19  ;;  %1232 = vmatpush2.msra.mxu1 %v5312_v18  ;;  %v5346_v18 = vld [vmem:[#allocation6 + $0x360] sm:$0xff] }
 0x635   :  { %1160 = vmatprep.subr.mxu0 %v5304_v56  ;;  %1233 = vmatprep.subr.mxu1 %v5318_v15  ;;  %v5352_v15 = vld [vmem:[#allocation6 + $0x348] sm:$0xff] }
 0x636   :  { %1161 = vmatpush2.msra.mxu0 %v5310_v37  ;;  %1234 = vmatpush2.msra.mxu1 %v5324_v13  ;;  %v5358_v13 = vld [vmem:[#allocation6 + $0x340] sm:$0xff] }
 0x637   :  { %1162 = vmatprep.subr.mxu0 %v5316_v36  ;;  %1235 = vmatprep.subr.mxu1 %v5330_v10  ;;  %v5364_v10 = vld [vmem:[#allocation6 + $0x328] sm:$0xff] }
 0x638   :  { %1163 = vmatpush2.msra.mxu0 %v5322_v31  ;;  %1236 = vmatpush2.msra.mxu1 %v5336_v8  ;;  %v5370_v8 = vld [vmem:[#allocation6 + $0x320] sm:$0xff] }
 0x639   :  { %1164 = vmatprep.subr.mxu0 %v5328_v27  ;;  %1237 = vmatprep.subr.mxu1 %v5342_v6  ;;  %v5376_v6 = vld [vmem:[#allocation6 + $0x308] sm:$0xff] }
 0x63a   :  { %1165 = vmatpush2.msra.mxu0 %v5334_v25  ;;  %1238 = vmatpush2.msra.mxu1 %v5348_v34  ;;  %v5382_v34 = vld [vmem:[#allocation6 + $0x300] sm:$0xff] }
 0x63b   :  { %1166 = vmatprep.subr.mxu0 %v5340_v21  ;;  %1239 = vmatprep.subr.mxu1 %v5354_v2  ;;  %v5388_v2 = vld [vmem:[#allocation6 + $0x2e8] sm:$0xff] }
 0x63c   :  { %1167 = vmatpush2.msra.mxu0 %v5346_v18  ;;  %1240 = vmatpush2.msra.mxu1 %v5360_v0  ;;  %v5394_v0 = vld [vmem:[#allocation6 + $0x2e0] sm:$0xff] }
 0x63d   :  { %1168 = vmatprep.subr.mxu0 %v5352_v15  ;;  %1241 = vmatprep.subr.mxu1 %v5366_v62  ;;  %v5400_v62 = vld [vmem:[#allocation6 + $0x2c8] sm:$0xff] }
 0x63e   :  { %1169 = vmatpush2.msra.mxu0 %v5358_v13  ;;  %1242 = vmatpush2.msra.mxu1 %v5372_v60  ;;  %v5406_v60 = vld [vmem:[#allocation6 + $0x2c0] sm:$0xff] }
 0x63f   :  { %1170 = vmatprep.subr.mxu0 %v5364_v10  ;;  %1243 = vmatprep.subr.mxu1 %v5378_v38  ;;  %7858 = vst [vmem:[#allocation69_spill] sm:$0xff] %v5406_v60 }
 0x640   :  { %1171 = vmatpush2.msra.mxu0 %v5370_v8  ;;  %1244 = vmatpush2.msra.mxu1 %v5384_v24  ;;  %v931_v24 = vand.u32 65535, %v5098_v3  ;;  %v5430_v3 = vld [vmem:[#allocation6 + $0x288] sm:$0xff] }
 0x641   :  { %1172 = vmatprep.subr.mxu0 %v5376_v6  ;;  %1245 = vmatprep.subr.mxu1 %v5390_v59  ;;  %7864 = vst [vmem:[#allocation77_spill] sm:$0xff] %v5430_v3 }
 0x642   :  { %1173 = vmatpush2.msra.mxu0 %v5382_v34  ;;  %1246 = vmatpush2.msra.mxu1 %v5396_v58  ;;  %v933_v59 = vcvt.s32.f32 %v931_v24  ;;  %v5426_v58 = vld [vmem:[#allocation6 + $0x2b0] sm:$0xff]  ;;  %v5442_v24 = vld [vmem:[#allocation6 + $0x268] sm:$0xff] }
 0x643   :  { %1174 = vmatprep.subr.mxu0 %v5388_v2  ;;  %1247 = vmatprep.subr.mxu1 %v5402_v55  ;;  %v5424_v55 = vld [vmem:[#allocation6 + $0x2a0] sm:$0xff]  ;;  %7863 = vst [vmem:[#allocation75_spill] sm:$0xff] %v5426_v58  ;;  %7868 = vst [vmem:[#allocation66_spill] sm:$0xff] %v5442_v24 }
 0x644   :  { %1175 = vmatpush2.msra.mxu0 %v5394_v0  ;;  %1248 = vmatpush2.msra.mxu1 %v5408_v52  ;;  %7862 = vst [vmem:[#allocation74_spill] sm:$0xff] %v5424_v55  ;;  %v5450_v52 = vld [vmem:[#allocation6 + $0x270] sm:$0xff] }
 0x645   :  { %1176 = vmatprep.subr.mxu0 %v5400_v62  ;;  %1249 = vmatprep.subr.mxu1 %v5420_v40  ;;  %v5444_v40 = vld [vmem:[#allocation6 + $0x278] sm:$0xff]  ;;  %7871 = vst [vmem:[#allocation82_spill] sm:$0xff] %v5450_v52 }
 0x646   :  { %1177 = vmatpush2.msra.mxu0 %v5406_v60  ;;  %1250 = vmatpush2.msra.mxu1 %v5426_v58  ;;  %7869 = vst [vmem:[#allocation67_spill] sm:$0xff] %v5444_v40  ;;  %v5448_v58 = vld [vmem:[#allocation6 + $0x260] sm:$0xff] }
 0x647   :  { %1178 = vmatprep.subr.mxu0 %v5418_v45  ;;  %7870 = vst [vmem:[#allocation81_spill] sm:$0xff] %v5448_v58 }
 0x648   :  { %1179 = vmatpush2.msra.mxu0 %v5424_v55 }
 0x649   :  { %1180 = vmatprep.subr.mxu0 %v5430_v3 }
 0x6b8   :  { %v936_v38 = vpop.xlane.xlu0 %935 }
 0x6b9   :  { %vm937_vm4 = vcmp.eq.f32.partialorder %v5101_v48, %v936_v38  ;;  %v5432_v48 = vld [vmem:[#allocation6 + $0x298] sm:$0xff] }
 0x6ba   :  { %v938_v43 = vsel %vm937_vm4, %v933_v59, inf  ;;  %7865 = vst [vmem:[#allocation78_spill] sm:$0xff] %v5432_v48  ;;  %1251 = vmatprep.subr.mxu1 %v5432_v48  ;;  %v5438_v59 = vld [vmem:[#allocation6 + $0x290] sm:$0xff]  ;;  %v5454_v48 = vld [vmem:[#allocation6 + $0x248] sm:$0xff] }
 0x6bb   :  { %939 = vmin.xlane.f32.xlu1 %v938_v43  ;;  %v5436_v43 = vld [vmem:[#allocation6 + $0x280] sm:$0xff]  ;;  %7867 = vst [vmem:[#allocation80_spill] sm:$0xff] %v5438_v59  ;;  %1252 = vmatpush2.msra.mxu1 %v5438_v59  ;;  %7872 = vst [vmem:[#allocation83_spill] sm:$0xff] %v5454_v48 }
 0x6bc   :  { %7866 = vst [vmem:[#allocation79_spill] sm:$0xff] %v5436_v43  ;;  %1181 = vmatpush2.msra.mxu0 %v5436_v43  ;;  %1253 = vmatprep.subr.mxu1 %v5444_v40  ;;  %v5460_v59 = vld [vmem:[#allocation6 + $0x240] sm:$0xff]  ;;  %v5466_v40 = vld [vmem:[#allocation6 + $0x228] sm:$0xff]  ;;  %v5484_v43 = vld [vmem:[#allocation6 + $0x210] sm:$0xff] }
 0x6bd   :  { %1182 = vmatprep.subr.mxu0 %v5442_v24  ;;  %1254 = vmatpush2.msra.mxu1 %v5450_v52  ;;  %7874 = vst [vmem:[#allocation85_spill] sm:$0xff] %v5460_v59  ;;  %v5462_v24 = vld [vmem:[#allocation6 + $0x250] sm:$0xff]  ;;  %7876 = vst [vmem:[#allocation87_spill] sm:$0xff] %v5466_v40  ;;  %v5472_v52 = vld [vmem:[#allocation6 + $0x220] sm:$0xff] }
 0x6be   :  { %1183 = vmatpush2.msra.mxu0 %v5448_v58  ;;  %1255 = vmatprep.subr.mxu1 %v5456_v50  ;;  %7875 = vst [vmem:[#allocation86_spill] sm:$0xff] %v5462_v24  ;;  %v5468_v58 = vld [vmem:[#allocation6 + $0x238] sm:$0xff]  ;;  %7878 = vst [vmem:[#allocation89_spill] sm:$0xff] %v5472_v52  ;;  %v5476_v50 = vld [vmem:[#allocation6 + $0x208] sm:$0xff] }
 0x6bf   :  { %1184 = vmatprep.subr.mxu0 %v5454_v48  ;;  %1256 = vmatpush2.msra.mxu1 %v5462_v24  ;;  %7877 = vst [vmem:[#allocation88_spill] sm:$0xff] %v5468_v58  ;;  %v5474_v48 = vld [vmem:[#allocation6 + $0x230] sm:$0xff]  ;;  %7880 = vst [vmem:[#allocation91_spill] sm:$0xff] %v5476_v50  ;;  %v5482_v24 = vld [vmem:[#allocation6 + $0x200] sm:$0xff] }
 0x6c0   :  { %1185 = vmatpush2.msra.mxu0 %v5460_v59  ;;  %1257 = vmatprep.subr.mxu1 %v5468_v58  ;;  %7879 = vst [vmem:[#allocation90_spill] sm:$0xff] %v5474_v48  ;;  %v5480_v59 = vld [vmem:[#allocation6 + $0x218] sm:$0xff]  ;;  %7882 = vst [vmem:[#allocation93_spill] sm:$0xff] %v5482_v24  ;;  %v7884_v58 = vmov 0.0  }
 0x6c1   :  { %1186 = vmatprep.subr.mxu0 %v5466_v40  ;;  %1258 = vmatpush2.msra.mxu1 %v5474_v48  ;;  %7881 = vst [vmem:[#allocation92_spill] sm:$0xff] %v5480_v59  ;;  %7883 = vst [vmem:[#allocation94_spill] sm:$0xff] %v5484_v43 }
 0x6c2   :  { %1187 = vmatpush2.msra.mxu0 %v5472_v52  ;;  %1259 = vmatprep.subr.mxu1 %v5480_v59  ;;  %v942_v52 = vcvt.f32.s32 %v936_v38  ;;  %v5575_v38 = vld [vmem:[#allocation7 + $0x68] sm:$0xff]  ;;  %522 = vst.msk [vmem:[%s7329_s9] sm:$0x1] %vm521_vm13, %v7884_v58  ;;  %523 = vst.msk [vmem:[%s7330_s10] sm:$0x1] %vm521_vm13, %v7884_v58 }
 0x6c3   :  { %1188 = vmatprep.subr.mxu0 %v5476_v50  ;;  %1260 = vmatpush2.msra.mxu1 %v5484_v43  ;;  %v5495_v50 = vld [vmem:[%s7321_s1] ss:$0 sm:$0xff] }
 0x6c4   :  { %1189 = vmatpush2.msra.mxu0 %v5482_v24  ;;  %1575 = vmatprep.subr.mxu1 %v5104_v49  ;;  %v943_v40 = vshll.u32 %v942_v52, 16  ;;  %v5498_v24 = vld [vmem:[#allocation4] ss:$0 sm:$0xff]  ;;  %v7891_v49 = vld [vmem:[#allocation81_spill] sm:$0xff] }
 0x6c5   :  { %3907 = vmatprep.subr.mxu0 %v7884_v58  ;;  %v7893_v52 = vld [vmem:[#allocation85_spill] sm:$0xff] }
 0x744   :  { %v940_v48 = vpop.xlane.xlu1 %939 }
 0x745   :  { %v941_v3 = vcvt.f32.s32 %v940_v48  ;;  %v7902_v48 = vld [vmem:[#allocation64_spill] sm:$0xff] }
 0x747   :  { %v944_v55 = vadd.s32 %v943_v40, %v941_v3  ;;  %v7887_v40 = vld [vmem:[#allocation74_spill] sm:$0xff] }
 0x749   :  { %v945_v45 = vcvt.s32.f32 %v944_v55  ;;  %v7895_v55 = vld [vmem:[#allocation89_spill] sm:$0xff] }
 0x74b   :  { %v995_v59 = vmul.f32 %v5495_v50, %v945_v45  ;;  %v7888_v45 = vld [vmem:[#allocation77_spill] sm:$0xff] }
 0x74d   :  { %v996_v43 = vadd.f32 %v5498_v24, %v995_v59  ;;  %v7904_v59 = vld [vmem:[#allocation76_spill] sm:$0xff] }
 0x74f   :  { %v997_v60 = vmax.f32 %v996_v43, 0.0  ;;  %v7903_v43 = vld [vmem:[#allocation70_spill] sm:$0xff] }
 0x751   :  { %1191 = vmatmul.mubr.f32.vlgmr.msra.gmra.mxu0 %v997_v60  ;;  %1262 = vmatmul.mubr.f32.vlgmr.msra.gmra.mxu1 %v997_v60  ;;  %v5583_v60 = vld [vmem:[#allocation7 + $0x58] sm:$0xff] }
 0x752   :  { %3939 = vmatprep.mubr.msk.f32.mxu0 %vm4345_vm0, %v7884_v58  ;;  %1576 = vmatpush1.msra.mxu1 %v5108_v51  ;;  %v7892_v51 = vld [vmem:[#allocation83_spill] sm:$0xff] }
 0x753   :  { %1577 = vmatprep.subr.mxu1 %v5114_v54  ;;  %v7894_v54 = vld [vmem:[#allocation87_spill] sm:$0xff] }
 0x754   :  { %1578 = vmatpush1.msra.mxu1 %v5120_v57  ;;  %v7896_v57 = vld [vmem:[#allocation91_spill] sm:$0xff] }
 0x755   :  { %1579 = vmatprep.subr.mxu1 %v5124_v12  ;;  %v7897_v12 = vld [vmem:[#allocation93_spill] sm:$0xff] }
 0x756   :  { %1580 = vmatpush1.msra.mxu1 %v5130_v30  ;;  %v5567_v30 = vld [vmem:[#allocation7 + $0x78] sm:$0xff] }
 0x757   :  { %1581 = vmatprep.subr.mxu1 %v5136_v16  ;;  %3908 = vmatpush3.msra.mxu0 %v5567_v30  ;;  %v5571_v16 = vld [vmem:[#allocation7 + $0x70] sm:$0xff] }
 0x758   :  { %1582 = vmatpush1.msra.mxu1 %v5142_v28  ;;  %3909 = vmatprep.subr.mxu0 %v7884_v58  ;;  %v5579_v28 = vld [vmem:[#allocation7 + $0x60] sm:$0xff] }
 0x759   :  { %1583 = vmatprep.subr.mxu1 %v5148_v61  ;;  %3910 = vmatpush3.msra.mxu0 %v5571_v16  ;;  %v5587_v61 = vld [vmem:[#allocation7 + $0x50] sm:$0xff] }
 0x75a   :  { %1584 = vmatpush1.msra.mxu1 %v5154_v63  ;;  %3911 = vmatprep.subr.mxu0 %v7884_v58  ;;  %v5595_v63 = vld [vmem:[#allocation7 + $0x40] sm:$0xff] }
 0x75b   :  { %1585 = vmatprep.subr.mxu1 %v5160_v1  ;;  %3912 = vmatpush3.msra.mxu0 %v5575_v38  ;;  %v5601_v1 = vld [vmem:[#allocation7 + $0x30] sm:$0xff] }
 0x75c   :  { %1586 = vmatpush1.msra.mxu1 %v5166_v4  ;;  %3913 = vmatprep.subr.mxu0 %v7884_v58  ;;  %v5609_v4 = vld [vmem:[#allocation7 + $0x20] sm:$0xff] }
 0x75d   :  { %1587 = vmatprep.subr.mxu1 %v5172_v5  ;;  %3914 = vmatpush3.msra.mxu0 %v5579_v28  ;;  %v5617_v5 = vld [vmem:[#allocation7 + $0x10] sm:$0xff] }
 0x75e   :  { %1588 = vmatpush1.msra.mxu1 %v5178_v7  ;;  %3915 = vmatprep.subr.mxu0 %v7884_v58  ;;  %v5625_v7 = vld [vmem:[#allocation7] sm:$0xff] }
 0x75f   :  { %1589 = vmatprep.subr.mxu1 %v5184_v9  ;;  %3916 = vmatpush3.msra.mxu0 %v5583_v60 }
 0x760   :  { %1590 = vmatpush1.msra.mxu1 %v5190_v11  ;;  %3917 = vmatprep.subr.mxu0 %v7884_v58 }
 0x761   :  { %1591 = vmatprep.subr.mxu1 %v5196_v14  ;;  %3918 = vmatpush3.msra.mxu0 %v5587_v61 }
 0x762   :  { %1592 = vmatpush1.msra.mxu1 %v5202_v17  ;;  %3919 = vmatprep.subr.mxu0 %v7884_v58 }
 0x763   :  { %1593 = vmatprep.subr.mxu1 %v5208_v20 }
 0x764   :  { %1594 = vmatpush1.msra.mxu1 %v5214_v23 }
 0x765   :  { %1595 = vmatprep.subr.mxu1 %v5220_v26 }
 0x766   :  { %1596 = vmatpush1.msra.mxu1 %v5226_v29  ;;  %v5636_v29 = vld [vmem:[%s7326_s6] ss:$0 sm:$0xff] }
 0x767   :  { %1597 = vmatprep.subr.mxu1 %v5232_v32 }
 0x768   :  { %1598 = vmatpush1.msra.mxu1 %v5238_v33 }
 0x769   :  { %1599 = vmatprep.subr.mxu1 %v5244_v39 }
 0x76a   :  { %1600 = vmatpush1.msra.mxu1 %v5250_v42 }
 0x76b   :  { %1601 = vmatprep.subr.mxu1 %v5256_v44 }
 0x76c   :  { %1602 = vmatpush1.msra.mxu1 %v5262_v47 }
 0x76d   :  { %1603 = vmatprep.subr.mxu1 %v5268_v35  ;;  %v7886_v35 = vld [vmem:[#allocation72_spill] sm:$0xff] }
 0x76e   :  { %1604 = vmatpush1.msra.mxu1 %v5274_v22  ;;  %v7889_v22 = vld [vmem:[#allocation79_spill] sm:$0xff] }
 0x76f   :  { %1605 = vmatprep.subr.mxu1 %v5280_v41 }
 0x770   :  { %1606 = vmatpush1.msra.mxu1 %v5286_v53 }
 0x771   :  { %1607 = vmatprep.subr.mxu1 %v5292_v46  ;;  %v7901_v46 = vld [vmem:[#allocation59_spill] sm:$0xff] }
 0x772   :  { %1608 = vmatpush2.msra.mxu1 %v5298_v19  ;;  %v7885_v19 = vld [vmem:[#allocation69_spill] sm:$0xff] }
 0x773   :  { %1609 = vmatprep.subr.mxu1 %v5304_v56  ;;  %v7890_v56 = vld [vmem:[#allocation66_spill] sm:$0xff] }
 0x774   :  { %1610 = vmatpush2.msra.mxu1 %v5310_v37 }
 0x775   :  { %1611 = vmatprep.subr.mxu1 %v5316_v36  ;;  %v5642_v36 = vld [vmem:[%s7325_s5] ss:$0 sm:$0xff] }
 0x776   :  { %1612 = vmatpush2.msra.mxu1 %v5322_v31 }
 0x777   :  { %1613 = vmatprep.subr.mxu1 %v5328_v27 }
 0x778   :  { %1614 = vmatpush2.msra.mxu1 %v5334_v25 }
 0x779   :  { %1615 = vmatprep.subr.mxu1 %v5340_v21 }
 0x77a   :  { %1616 = vmatpush2.msra.mxu1 %v5346_v18 }
 0x77b   :  { %1617 = vmatprep.subr.mxu1 %v5352_v15  ;;  %v7900_v15 = vld [vmem:[#allocation55_spill] sm:$0xff] }
 0x77c   :  { %1618 = vmatpush2.msra.mxu1 %v5358_v13 }
 0x77d   :  { %1619 = vmatprep.subr.mxu1 %v5364_v10  ;;  %v7899_v10 = vld [vmem:[#allocation53_spill] sm:$0xff] }
 0x77e   :  { %1620 = vmatpush2.msra.mxu1 %v5370_v8  ;;  %v7898_v8 = vld [vmem:[#allocation63_spill] sm:$0xff] }
 0x77f   :  { %1621 = vmatprep.subr.mxu1 %v5376_v6  ;;  %v5621_v6 = vld [vmem:[#allocation7 + $0x8] sm:$0xff] }
 0x780   :  { %1622 = vmatpush2.msra.mxu1 %v5382_v34  ;;  %v5613_v34 = vld [vmem:[#allocation7 + $0x18] sm:$0xff] }
 0x781   :  { %1623 = vmatprep.subr.mxu1 %v5388_v2  ;;  %v5605_v2 = vld [vmem:[#allocation7 + $0x28] sm:$0xff] }
 0x782   :  { %1624 = vmatpush2.msra.mxu1 %v5394_v0  ;;  %v5597_v0 = vld [vmem:[#allocation7 + $0x38] sm:$0xff] }
 0x783   :  { %1625 = vmatprep.subr.mxu1 %v5400_v62  ;;  %v5591_v62 = vld [vmem:[#allocation7 + $0x48] sm:$0xff] }
 0x784   :  { %1626 = vmatpush2.msra.mxu1 %v7885_v19  ;;  %3920 = vmatpush3.msra.mxu0 %v5591_v62  ;;  %v7905_v19 = vld [vmem:[#allocation12_spill] sm:$0xff] }
 0x785   :  { %1627 = vmatprep.subr.mxu1 %v7886_v35  ;;  %3921 = vmatprep.subr.mxu0 %v7884_v58  ;;  %v7906_v35 = vld [vmem:[#allocation13_spill] sm:$0xff] }
 0x786   :  { %1628 = vmatpush2.msra.mxu1 %v7887_v40  ;;  %3922 = vmatpush3.msra.mxu0 %v5595_v63  ;;  %v7907_v40 = vld [vmem:[#allocation14_spill] sm:$0xff] }
 0x787   :  { %1629 = vmatprep.subr.mxu1 %v7888_v45  ;;  %3923 = vmatprep.subr.mxu0 %v7884_v58  ;;  %v7908_v45 = vld [vmem:[#allocation15_spill] sm:$0xff] }
 0x788   :  { %1630 = vmatpush2.msra.mxu1 %v7889_v22  ;;  %3924 = vmatpush3.msra.mxu0 %v5597_v0  ;;  %v7909_v22 = vld [vmem:[#allocation16_spill] sm:$0xff] }
 0x789   :  { %1631 = vmatprep.subr.mxu1 %v7890_v56  ;;  %3925 = vmatprep.subr.mxu0 %v7884_v58  ;;  %v7910_v56 = vld [vmem:[#allocation17_spill] sm:$0xff] }
 0x78a   :  { %1632 = vmatpush2.msra.mxu1 %v7891_v49  ;;  %3926 = vmatpush3.msra.mxu0 %v5601_v1  ;;  %v7911_v49 = vld [vmem:[#allocation18_spill] sm:$0xff] }
 0x78b   :  { %1633 = vmatprep.subr.mxu1 %v7892_v51  ;;  %3927 = vmatprep.subr.mxu0 %v7884_v58  ;;  %v7912_v51 = vld [vmem:[#allocation19_spill] sm:$0xff] }
 0x78c   :  { %1634 = vmatpush2.msra.mxu1 %v7893_v52  ;;  %3928 = vmatpush3.msra.mxu0 %v5605_v2  ;;  %v7913_v52 = vld [vmem:[#allocation20_spill] sm:$0xff] }
 0x78d   :  { %1635 = vmatprep.subr.mxu1 %v7894_v54  ;;  %3929 = vmatprep.subr.mxu0 %v7884_v58  ;;  %v7914_v54 = vld [vmem:[#allocation21_spill] sm:$0xff] }
 0x78e   :  { %1636 = vmatpush2.msra.mxu1 %v7895_v55  ;;  %3930 = vmatpush3.msra.mxu0 %v5609_v4  ;;  %v7915_v55 = vld [vmem:[#allocation22_spill] sm:$0xff] }
 0x78f   :  { %1637 = vmatprep.subr.mxu1 %v7896_v57  ;;  %3931 = vmatprep.subr.mxu0 %v7884_v58  ;;  %v7916_v57 = vld [vmem:[#allocation23_spill] sm:$0xff] }
 0x790   :  { %1638 = vmatpush2.msra.mxu1 %v7897_v12  ;;  %3932 = vmatpush3.msra.mxu0 %v5613_v34  ;;  %v7917_v12 = vld [vmem:[#allocation24_spill] sm:$0xff] }
 0x791   :  { %3942 = vmatprep.subr.mxu1 %v7884_v58  ;;  %3933 = vmatprep.subr.mxu0 %v7884_v58 }
 0x792   :  { %3934 = vmatpush3.msra.mxu0 %v5617_v5 }
 0x793   :  { %3935 = vmatprep.subr.mxu0 %v7884_v58 }
 0x794   :  { %3936 = vmatpush3.msra.mxu0 %v5621_v6 }
 0x795   :  { %3937 = vmatprep.subr.mxu0 %v7884_v58 }
 0x796   :  { %3938 = vmatpush3.msra.mxu0 %v5625_v7 }
 0x797   :  { %1646 = vmatprep.subr.mxu0 %v7898_v8  ;;  %v7918_v8 = vld [vmem:[#allocation25_spill] sm:$0xff] }
 0x811   :  { %v1192_v9 = vpop.f32.mrf.mxu0  ;;  %v1263_v23 = vpop.f32.mrf.mxu1 }
 0x812   :  { %v1268_v11 = vadd.f32 %v1192_v9, %v7899_v10  ;;  %v1282_v33 = vadd.f32 %v5642_v36, %v1263_v23  ;;  %v7919_v9 = vld [vmem:[#allocation26_spill] sm:$0xff] }
 0x813   :  { %v1194_v14 = vpop.f32.mrf.mxu0  ;;  %v1265_v26 = vpop.f32.mrf.mxu1  ;;  %v7927_v23 = vld [vmem:[#allocation34_spill] sm:$0xff] }
 0x814   :  { %v3689_v13 = vmul.f32 -1.442695, %v1268_v11  ;;  %v1269_v17 = vadd.f32 %v1194_v14, %v7900_v15  ;;  %v1283_v31 = vadd.f32 %v5636_v29, %v1265_v26  ;;  %v7920_v11 = vld [vmem:[#allocation27_spill] sm:$0xff]  ;;  %v7922_v14 = vld [vmem:[#allocation29_spill] sm:$0xff]  ;;  %v7929_v26 = vld [vmem:[#allocation36_spill] sm:$0xff] }
 0x816   :  { %4147 = vpow2.f32 %v3689_v13  ;;  %v3690_v18 = vmul.f32 -1.442695, %v1269_v17  ;;  %v7921_v13 = vld [vmem:[#allocation28_spill] sm:$0xff]  ;;  %v7923_v17 = vld [vmem:[#allocation30_spill] sm:$0xff] }
 0x818   :  { %4149 = vpow2.f32 %v3690_v18  ;;  %v7924_v18 = vld [vmem:[#allocation31_spill] sm:$0xff] }
 0x823   :  { %v4148_v20 = vpop.eup %4147 }
 0x824   :  { %v1276_v21 = vadd.f32 1.0, %v4148_v20  ;;  %v7925_v20 = vld [vmem:[#allocation32_spill] sm:$0xff] }
 0x825   :  { %v4150_v25 = vpop.eup %4149 }
 0x826   :  { %4151 = vrcp.f32 %v1276_v21  ;;  %v1277_v27 = vadd.f32 1.0, %v4150_v25  ;;  %v7926_v21 = vld [vmem:[#allocation33_spill] sm:$0xff]  ;;  %v7928_v25 = vld [vmem:[#allocation35_spill] sm:$0xff] }
 0x828   :  { %4153 = vrcp.f32 %v1277_v27  ;;  %v7930_v27 = vld [vmem:[#allocation37_spill] sm:$0xff] }
 0x833   :  { %v4152_v32 = vpop.eup %4151 }
 0x834   :  { %v1284_v37 = vmul.f32 %v4152_v32, %v1283_v31  ;;  %v7931_v31 = vld [vmem:[#allocation38_spill] sm:$0xff]  ;;  %v7932_v32 = vld [vmem:[#allocation39_spill] sm:$0xff] }
 0x835   :  { %v4154_v41 = vpop.eup %4153 }
 0x836   :  { %v1285_v39 = vadd.f32 %v1284_v37, %v1282_v33  ;;  %v1287_v42 = vsub.f32 1.0, %v4154_v41  ;;  %v1289_v47 = vmul.f32 %v4154_v41, %v7901_v46  ;;  %v7933_v33 = vld [vmem:[#allocation40_spill] sm:$0xff]  ;;  %v7934_v37 = vld [vmem:[#allocation41_spill] sm:$0xff]  ;;  %v7936_v41 = vld [vmem:[#allocation43_spill] sm:$0xff] }
 0x837   :  { %v7940_v46 = vld [vmem:[#allocation47_spill] sm:$0xff] }
 0x838   :  { %4155 = vtanh.f32 %v1285_v39  ;;  %v7935_v39 = vld [vmem:[#allocation42_spill] sm:$0xff] }
 0x845   :  { %v4156_v53 = vpop.eup %4155 }
 0x846   :  { %v1288_v44 = vmul.f32 %v4156_v53, %v1287_v42  ;;  %v7937_v42 = vld [vmem:[#allocation44_spill] sm:$0xff]  ;;  %v7938_v53 = vld [vmem:[#allocation45_spill] sm:$0xff] }
 0x848   :  { %v5646_v3 = vadd.f32 %v1289_v47, %v1288_v44  ;;  %v7939_v44 = vld [vmem:[#allocation46_spill] sm:$0xff]  ;;  %v7941_v47 = vld [vmem:[#allocation48_spill] sm:$0xff] }
 0x84a   :  { %3940 = vmatmul.mubr.f32.vlgmr.msra.gmra.mxu0 %v5646_v3  ;;  %1639 = vmatprep.mubr.f32.mxu1 %v5646_v3 }
 0x84b   :  { %1710 = vmatprep.mubr.f32.mxu0 %v5646_v3  ;;  %1647 = vmatpush1.msra.mxu0 %v7902_v48  ;;  %v7942_v48 = vld [vmem:[#allocation49_spill] sm:$0xff] }
 0x84c   :  { %1648 = vmatprep.subr.mxu0 %v7903_v43  ;;  %v7943_v43 = vld [vmem:[#allocation50_spill] sm:$0xff] }
 0x84d   :  { %1649 = vmatpush1.msra.mxu0 %v7904_v59  ;;  %v7944_v59 = vld [vmem:[#allocation52_spill] sm:$0xff] }
 0x84e   :  { %1650 = vmatprep.subr.mxu0 %v7905_v19  ;;  %v7945_v19 = vld [vmem:[#allocation54_spill] sm:$0xff] }
 0x84f   :  { %1651 = vmatpush1.msra.mxu0 %v7906_v35  ;;  %v7946_v35 = vld [vmem:[#allocation56_spill] sm:$0xff] }
 0x850   :  { %1652 = vmatprep.subr.mxu0 %v7907_v40  ;;  %v7947_v40 = vld [vmem:[#allocation58_spill] sm:$0xff] }
 0x851   :  { %1653 = vmatpush1.msra.mxu0 %v7908_v45  ;;  %v7948_v45 = vld [vmem:[#allocation60_spill] sm:$0xff] }
 0x852   :  { %1654 = vmatprep.subr.mxu0 %v7909_v22  ;;  %v7949_v22 = vld [vmem:[#allocation62_spill] sm:$0xff] }
 0x853   :  { %1655 = vmatpush1.msra.mxu0 %v7910_v56  ;;  %v7950_v56 = vld [vmem:[#allocation65_spill] sm:$0xff] }
 0x854   :  { %1656 = vmatprep.subr.mxu0 %v7911_v49  ;;  %v7951_v49 = vld [vmem:[#allocation68_spill] sm:$0xff] }
 0x855   :  { %1657 = vmatpush1.msra.mxu0 %v7912_v51  ;;  %v7952_v51 = vld [vmem:[#allocation71_spill] sm:$0xff] }
 0x856   :  { %1658 = vmatprep.subr.mxu0 %v7913_v52  ;;  %v7953_v52 = vld [vmem:[#allocation73_spill] sm:$0xff] }
 0x857   :  { %1659 = vmatpush1.msra.mxu0 %v7914_v54  ;;  %v7954_v54 = vld [vmem:[#allocation75_spill] sm:$0xff] }
 0x858   :  { %1660 = vmatprep.subr.mxu0 %v7915_v55  ;;  %v7955_v55 = vld [vmem:[#allocation78_spill] sm:$0xff] }
 0x859   :  { %1661 = vmatpush1.msra.mxu0 %v7916_v57  ;;  %v7956_v57 = vld [vmem:[#allocation80_spill] sm:$0xff] }
 0x85a   :  { %1662 = vmatprep.subr.mxu0 %v7917_v12  ;;  %v7957_v12 = vld [vmem:[#allocation67_spill] sm:$0xff] }
 0x85b   :  { %1663 = vmatpush1.msra.mxu0 %v7918_v8  ;;  %v7958_v8 = vld [vmem:[#allocation82_spill] sm:$0xff] }
 0x85c   :  { %1664 = vmatprep.subr.mxu0 %v7919_v9  ;;  %v7959_v9 = vld [vmem:[#allocation84_spill] sm:$0xff] }
 0x85d   :  { %1665 = vmatpush1.msra.mxu0 %v7920_v11  ;;  %v7960_v11 = vld [vmem:[#allocation86_spill] sm:$0xff] }
 0x85e   :  { %1666 = vmatprep.subr.mxu0 %v7921_v13  ;;  %v7961_v13 = vld [vmem:[#allocation88_spill] sm:$0xff] }
 0x85f   :  { %1667 = vmatpush1.msra.mxu0 %v7922_v14  ;;  %v7962_v14 = vld [vmem:[#allocation90_spill] sm:$0xff] }
 0x860   :  { %1668 = vmatprep.subr.mxu0 %v7923_v17  ;;  %v7963_v17 = vld [vmem:[#allocation92_spill] sm:$0xff] }
 0x861   :  { %1669 = vmatpush1.msra.mxu0 %v7924_v18  ;;  %v7964_v18 = vld [vmem:[#allocation94_spill] sm:$0xff] }
 0x862   :  { %1670 = vmatprep.subr.mxu0 %v7925_v20 }
 0x863   :  { %1671 = vmatpush1.msra.mxu0 %v7926_v21  ;;  %v5717_v21 = vld [vmem:[%s7328_s8] ss:$0 sm:$0xff] }
 0x864   :  { %1672 = vmatprep.subr.mxu0 %v7927_v23 }
 0x865   :  { %1673 = vmatpush1.msra.mxu0 %v7928_v25 }
 0x866   :  { %1674 = vmatprep.subr.mxu0 %v7929_v26 }
 0x867   :  { %1675 = vmatpush1.msra.mxu0 %v7930_v27  ;;  %v7966_v27 = vld [vmem:[#allocation57_spill] sm:$0xff] }
 0x868   :  { %1676 = vmatprep.subr.mxu0 %v7931_v31 }
 0x869   :  { %1677 = vmatpush1.msra.mxu0 %v7932_v32 }
 0x86a   :  { %1678 = vmatprep.subr.mxu0 %v7933_v33 }
 0x86b   :  { %1679 = vmatpush2.msra.mxu0 %v7934_v37 }
 0x86c   :  { %1680 = vmatprep.subr.mxu0 %v7935_v39 }
 0x86d   :  { %1681 = vmatpush2.msra.mxu0 %v7936_v41 }
 0x86e   :  { %1682 = vmatprep.subr.mxu0 %v7937_v42 }
 0x86f   :  { %1683 = vmatpush2.msra.mxu0 %v7938_v53 }
 0x870   :  { %1684 = vmatprep.subr.mxu0 %v7939_v44 }
 0x871   :  { %1685 = vmatpush2.msra.mxu0 %v7940_v46 }
 0x872   :  { %1686 = vmatprep.subr.mxu0 %v7941_v47 }
 0x873   :  { %1687 = vmatpush2.msra.mxu0 %v7942_v48 }
 0x874   :  { %1688 = vmatprep.subr.mxu0 %v7943_v43 }
 0x875   :  { %1689 = vmatpush2.msra.mxu0 %v7944_v59 }
 0x876   :  { %1690 = vmatprep.subr.mxu0 %v7945_v19 }
 0x877   :  { %1691 = vmatpush2.msra.mxu0 %v7946_v35 }
 0x878   :  { %1692 = vmatprep.subr.mxu0 %v7947_v40 }
 0x879   :  { %1693 = vmatpush2.msra.mxu0 %v7948_v45 }
 0x87a   :  { %1694 = vmatprep.subr.mxu0 %v7949_v22 }
 0x87b   :  { %1695 = vmatpush2.msra.mxu0 %v7950_v56 }
 0x87c   :  { %1696 = vmatprep.subr.mxu0 %v7951_v49 }
 0x87d   :  { %1697 = vmatpush2.msra.mxu0 %v7952_v51 }
 0x87e   :  { %1698 = vmatprep.subr.mxu0 %v7953_v52 }
 0x87f   :  { %1699 = vmatpush2.msra.mxu0 %v7954_v54 }
 0x880   :  { %1700 = vmatprep.subr.mxu0 %v7955_v55 }
 0x881   :  { %1701 = vmatpush2.msra.mxu0 %v7956_v57  ;;  %v5782_v57 = vld [vmem:[#allocation6 + $0x1e8] sm:$0xff] }
 0x882   :  { %1702 = vmatprep.subr.mxu0 %v7957_v12  ;;  %v5784_v12 = vld [vmem:[#allocation6 + $0x1f8] sm:$0xff] }
 0x883   :  { %1703 = vmatpush2.msra.mxu0 %v7958_v8  ;;  %7969 = vst [vmem:[#allocation77_spill] sm:$0xff] %v5784_v12  ;;  %v5786_v8 = vld [vmem:[#allocation6 + $0x1e0] sm:$0xff] }
 0x884   :  { %1704 = vmatprep.subr.mxu0 %v7959_v9  ;;  %v5790_v9 = vld [vmem:[#allocation6 + $0x1f0] sm:$0xff] }
 0x885   :  { %1705 = vmatpush2.msra.mxu0 %v7960_v11  ;;  %7970 = vst [vmem:[#allocation79_spill] sm:$0xff] %v5790_v9  ;;  %v5792_v11 = vld [vmem:[#allocation6 + $0x1c8] sm:$0xff] }
 0x886   :  { %1706 = vmatprep.subr.mxu0 %v7961_v13  ;;  %v5794_v13 = vld [vmem:[#allocation6 + $0x1d8] sm:$0xff] }
 0x887   :  { %1707 = vmatpush2.msra.mxu0 %v7962_v14  ;;  %7971 = vst [vmem:[#allocation66_spill] sm:$0xff] %v5794_v13  ;;  %v5798_v14 = vld [vmem:[#allocation6 + $0x1c0] sm:$0xff] }
 0x888   :  { %1708 = vmatprep.subr.mxu0 %v7963_v17  ;;  %v5800_v17 = vld [vmem:[#allocation6 + $0x1d0] sm:$0xff] }
 0x889   :  { %1709 = vmatpush2.msra.mxu0 %v7964_v18  ;;  %7972 = vst [vmem:[#allocation81_spill] sm:$0xff] %v5800_v17  ;;  %v5802_v18 = vld [vmem:[#allocation6 + $0x1a8] sm:$0xff] }
 0x88a   :  { %2024 = vmatprep.subr.mxu0 %v5782_v57 }
 0x90a   :  { %v1373_v20 = vpop.f32.mrf.mxu0 }
 0x90b   :  { %v5720_v23 = vadd.f32 %v5717_v21, %v1373_v20  ;;  %v5806_v20 = vld [vmem:[#allocation6 + $0x1b8] sm:$0xff] }
 0x90c   :  { %v3941_v25 = vpop.f32.mrf.mxu0  ;;  %7973 = vst [vmem:[#allocation83_spill] sm:$0xff] %v5806_v20 }
 0x90d   :  { %7965 = vst [vmem:[#allocation69_spill] sm:$0xff] %v5720_v23  ;;  %1377 = vmax.xlane.f32.xlu0 %v5720_v23  ;;  %v5810_v25 = vld [vmem:[#allocation6 + $0x1b0] sm:$0xff] }
 0x90e   :  { %7974 = vst [vmem:[#allocation85_spill] sm:$0xff] %v5810_v25 }
 0x996   :  { %v1378_v26 = vpop.xlane.xlu0 %1377 }
 0x997   :  { %vm1379_vm5 = vcmp.eq.f32.partialorder %v5720_v23, %v1378_v26  ;;  %v5814_v26 = vld [vmem:[#allocation6 + $0x188] sm:$0xff] }
 0x998   :  { %v1380_v31 = vsel %vm1379_vm5, %v7966_v27, 128  ;;  %v5946_v23 = vld [vmem:[#allocation6 + $0x28] sm:$0xff] }
 0x999   :  { %v1382_v32 = vshra.s32 %v1380_v31, 16  ;;  %v1381_v37 = vand.u32 65535, %v1380_v31  ;;  %v5816_v31 = vld [vmem:[#allocation6 + $0x198] sm:$0xff] }
 0x99a   :  { %7975 = vst [vmem:[#allocation87_spill] sm:$0xff] %v5816_v31 }
 0x99b   :  { %v1384_v33 = vcvt.s32.f32 %v1382_v32  ;;  %v1383_v41 = vcvt.s32.f32 %v1381_v37  ;;  %v5820_v32 = vld [vmem:[#allocation6 + $0x180] sm:$0xff]  ;;  %v5826_v37 = vld [vmem:[#allocation6 + $0x168] sm:$0xff] }
 0x99d   :  { %1385 = vmin.xlane.f32.xlu1 %v1384_v33 }
 0xa26   :  { %v1386_v39 = vpop.xlane.xlu1 %1385 }
 0xa27   :  { %vm1387_vm6 = vcmp.eq.f32.partialorder %v1384_v33, %v1386_v39  ;;  %v1392_v53 = vcvt.f32.s32 %v1386_v39  ;;  %v5822_v33 = vld [vmem:[#allocation6 + $0x190] sm:$0xff]  ;;  %v5828_v39 = vld [vmem:[#allocation6 + $0x178] sm:$0xff] }
 0xa28   :  { %v1388_v42 = vsel %vm1387_vm6, %v1383_v41, inf  ;;  %7976 = vst [vmem:[#allocation89_spill] sm:$0xff] %v5822_v33  ;;  %7977 = vst [vmem:[#allocation91_spill] sm:$0xff] %v5828_v39  ;;  %v5832_v41 = vld [vmem:[#allocation6 + $0x160] sm:$0xff] }
 0xa29   :  { %1389 = vmin.xlane.f32.xlu0 %v1388_v42  ;;  %v1393_v46 = vshll.u32 %v1392_v53, 16  ;;  %v5834_v42 = vld [vmem:[#allocation6 + $0x170] sm:$0xff]  ;;  %v5838_v53 = vld [vmem:[#allocation6 + $0x148] sm:$0xff] }
 0xa2a   :  { %7978 = vst [vmem:[#allocation93_spill] sm:$0xff] %v5834_v42 }
 0xab2   :  { %v1390_v44 = vpop.xlane.xlu0 %1389 }
 0xab3   :  { %v1391_v47 = vcvt.f32.s32 %v1390_v44  ;;  %v5840_v44 = vld [vmem:[#allocation6 + $0x158] sm:$0xff] }
 0xab4   :  { %7979 = vst [vmem:[#allocation63_spill] sm:$0xff] %v5840_v44 }
 0xab5   :  { %v1394_v48 = vadd.s32 %v1393_v46, %v1391_v47  ;;  %v5844_v46 = vld [vmem:[#allocation6 + $0x140] sm:$0xff]  ;;  %v5846_v47 = vld [vmem:[#allocation6 + $0x150] sm:$0xff] }
 0xab6   :  { %7980 = vst [vmem:[#allocation59_spill] sm:$0xff] %v5846_v47 }
 0xab7   :  { %v1395_v43 = vcvt.s32.f32 %v1394_v48  ;;  %v5850_v48 = vld [vmem:[#allocation6 + $0x128] sm:$0xff] }
 0xab9   :  { %v1444_v59 = vmul.f32 %v5495_v50, %v1395_v43  ;;  %v5852_v43 = vld [vmem:[#allocation6 + $0x138] sm:$0xff] }
 0xaba   :  { %7981 = vst [vmem:[#allocation64_spill] sm:$0xff] %v5852_v43 }
 0xabb   :  { %v1445_v19 = vadd.f32 %v5498_v24, %v1444_v59  ;;  %v5856_v59 = vld [vmem:[#allocation6 + $0x120] sm:$0xff] }
 0xabd   :  { %v1446_v35 = vmax.f32 %v1445_v19, 0.0  ;;  %v5858_v19 = vld [vmem:[#allocation6 + $0x130] sm:$0xff] }
 0xabe   :  { %7982 = vst [vmem:[#allocation70_spill] sm:$0xff] %v5858_v19 }
 0xabf   :  { %1640 = vmatmul.mubr.f32.vlgmr.msra.gmra.mxu1 %v1446_v35  ;;  %1711 = vmatmul.mubr.f32.vlgmr.msra.gmra.mxu0 %v1446_v35  ;;  %v5862_v35 = vld [vmem:[#allocation6 + $0x108] sm:$0xff] }
 0xac0   :  { %3943 = vmatpush3.msra.mxu1 %v5567_v30  ;;  %3974 = vmatprep.mubr.msk.f32.mxu1 %vm4345_vm0, %v7884_v58 }
 0xac1   :  { %3944 = vmatprep.subr.mxu1 %v7884_v58  ;;  %2025 = vmatpush1.msra.mxu0 %v5786_v8 }
 0xac2   :  { %3945 = vmatpush3.msra.mxu1 %v5571_v16  ;;  %2026 = vmatprep.subr.mxu0 %v5792_v11 }
 0xac3   :  { %3946 = vmatprep.subr.mxu1 %v7884_v58  ;;  %2027 = vmatpush1.msra.mxu0 %v5798_v14 }
 0xac4   :  { %3947 = vmatpush3.msra.mxu1 %v5575_v38  ;;  %2028 = vmatprep.subr.mxu0 %v5802_v18 }
 0xac5   :  { %3948 = vmatprep.subr.mxu1 %v7884_v58 }
 0xac6   :  { %3949 = vmatpush3.msra.mxu1 %v5579_v28 }
 0xac7   :  { %3950 = vmatprep.subr.mxu1 %v7884_v58 }
 0xac8   :  { %3951 = vmatpush3.msra.mxu1 %v5583_v60 }
 0xac9   :  { %3952 = vmatprep.subr.mxu1 %v7884_v58 }
 0xaca   :  { %3953 = vmatpush3.msra.mxu1 %v5587_v61 }
 0xacb   :  { %3954 = vmatprep.subr.mxu1 %v7884_v58 }
 0xacc   :  { %3955 = vmatpush3.msra.mxu1 %v5591_v62 }
 0xacd   :  { %3956 = vmatprep.subr.mxu1 %v7884_v58 }
 0xace   :  { %3957 = vmatpush3.msra.mxu1 %v5595_v63 }
 0xacf   :  { %3958 = vmatprep.subr.mxu1 %v7884_v58 }
 0xad0   :  { %3959 = vmatpush3.msra.mxu1 %v5597_v0 }
 0xad1   :  { %3960 = vmatprep.subr.mxu1 %v7884_v58 }
 0xad2   :  { %3961 = vmatpush3.msra.mxu1 %v5601_v1 }
 0xad3   :  { %3962 = vmatprep.subr.mxu1 %v7884_v58 }
 0xad4   :  { %3963 = vmatpush3.msra.mxu1 %v5605_v2 }
 0xad5   :  { %3964 = vmatprep.subr.mxu1 %v7884_v58 }
 0xad6   :  { %3965 = vmatpush3.msra.mxu1 %v5609_v4 }
 0xad7   :  { %3966 = vmatprep.subr.mxu1 %v7884_v58 }
 0xad8   :  { %3967 = vmatpush3.msra.mxu1 %v5613_v34 }
 0xad9   :  { %3968 = vmatprep.subr.mxu1 %v7884_v58 }
 0xada   :  { %3969 = vmatpush3.msra.mxu1 %v5617_v5 }
 0xadb   :  { %3970 = vmatprep.subr.mxu1 %v7884_v58 }
 0xadc   :  { %3971 = vmatpush3.msra.mxu1 %v5621_v6 }
 0xadd   :  { %3972 = vmatprep.subr.mxu1 %v7884_v58 }
 0xade   :  { %3973 = vmatpush3.msra.mxu1 %v5625_v7 }
 0xadf   :  { %2095 = vmatprep.subr.mxu1 %v5784_v12  ;;  %v6098_v12 = vld [vmem:[#allocation6 + $0x2b8] sm:$0xff] }
 0xae0   :  { %8023 = vst [vmem:[#allocation52_spill] sm:$0xff] %v6098_v12 }
 0xb7f   :  { %v1641_v50 = vpop.f32.mrf.mxu1  ;;  %v1712_v62 = vpop.f32.mrf.mxu0 }
 0xb80   :  { %v1717_v24 = vadd.f32 %v1641_v50, %v7899_v10  ;;  %v1731_v34 = vadd.f32 %v5642_v36, %v1712_v62  ;;  %v5864_v50 = vld [vmem:[#allocation6 + $0x118] sm:$0xff]  ;;  %v6096_v10 = vld [vmem:[#allocation6 + $0x2a8] sm:$0xff] }
 0xb81   :  { %v1643_v16 = vpop.f32.mrf.mxu1  ;;  %v1714_v0 = vpop.f32.mrf.mxu0  ;;  %7983 = vst [vmem:[#allocation76_spill] sm:$0xff] %v5864_v50  ;;  %v5888_v62 = vld [vmem:[#allocation6 + $0xd8] sm:$0xff]  ;;  %8022 = vst [vmem:[#allocation50_spill] sm:$0xff] %v6096_v10 }
 0xb82   :  { %v3691_v30 = vmul.f32 -1.442695, %v1717_v24  ;;  %v1718_v38 = vadd.f32 %v1643_v16, %v7900_v15  ;;  %v1732_v2 = vadd.f32 %v5636_v29, %v1714_v0  ;;  %v5868_v24 = vld [vmem:[#allocation6 + $0x100] sm:$0xff]  ;;  %v5874_v16 = vld [vmem:[#allocation6 + $0xe8] sm:$0xff]  ;;  %7987 = vst [vmem:[#allocation15_spill] sm:$0xff] %v5888_v62  ;;  %v5894_v0 = vld [vmem:[#allocation6 + $0xd0] sm:$0xff] }
 0xb83   :  { %7988 = vst [vmem:[#allocation16_spill] sm:$0xff] %v5894_v0 }
 0xb84   :  { %4157 = vpow2.f32 %v3691_v30  ;;  %v3692_v28 = vmul.f32 -1.442695, %v1718_v38  ;;  %v5870_v30 = vld [vmem:[#allocation6 + $0x110] sm:$0xff]  ;;  %v5876_v38 = vld [vmem:[#allocation6 + $0xf8] sm:$0xff] }
 0xb85   :  { %7984 = vst [vmem:[#allocation12_spill] sm:$0xff] %v5870_v30  ;;  %7985 = vst [vmem:[#allocation13_spill] sm:$0xff] %v5876_v38 }
 0xb86   :  { %4159 = vpow2.f32 %v3692_v28  ;;  %v5880_v28 = vld [vmem:[#allocation6 + $0xe0] sm:$0xff] }
 0xb91   :  { %v4158_v60 = vpop.eup %4157 }
 0xb92   :  { %v1725_v61 = vadd.f32 1.0, %v4158_v60  ;;  %v5882_v60 = vld [vmem:[#allocation6 + $0xf0] sm:$0xff] }
 0xb93   :  { %v4160_v63 = vpop.eup %4159  ;;  %7986 = vst [vmem:[#allocation14_spill] sm:$0xff] %v5882_v60 }
 0xb94   :  { %4161 = vrcp.f32 %v1725_v61  ;;  %v1726_v1 = vadd.f32 1.0, %v4160_v63  ;;  %v5886_v61 = vld [vmem:[#allocation6 + $0xc8] sm:$0xff]  ;;  %v5892_v63 = vld [vmem:[#allocation6 + $0xc0] sm:$0xff] }
 0xb96   :  { %4163 = vrcp.f32 %v1726_v1  ;;  %v5898_v1 = vld [vmem:[#allocation6 + $0xa8] sm:$0xff] }
 0xba1   :  { %v4162_v4 = vpop.eup %4161 }
 0xba2   :  { %v1733_v5 = vmul.f32 %v4162_v4, %v1732_v2  ;;  %v5900_v2 = vld [vmem:[#allocation6 + $0xb8] sm:$0xff]  ;;  %v5904_v4 = vld [vmem:[#allocation6 + $0xa0] sm:$0xff] }
 0xba3   :  { %v4164_v7 = vpop.eup %4163  ;;  %7989 = vst [vmem:[#allocation17_spill] sm:$0xff] %v5900_v2 }
 0xba4   :  { %v1734_v6 = vadd.f32 %v1733_v5, %v1731_v34  ;;  %v1736_v40 = vsub.f32 1.0, %v4164_v7  ;;  %v1738_v56 = vmul.f32 %v4164_v7, %v5646_v3  ;;  %v5906_v34 = vld [vmem:[#allocation6 + $0xb0] sm:$0xff]  ;;  %v5910_v5 = vld [vmem:[#allocation6 + $0x88] sm:$0xff]  ;;  %v5916_v7 = vld [vmem:[#allocation6 + $0x80] sm:$0xff] }
 0xba5   :  { %7990 = vst [vmem:[#allocation18_spill] sm:$0xff] %v5906_v34 }
 0xba6   :  { %4165 = vtanh.f32 %v1734_v6  ;;  %v5912_v6 = vld [vmem:[#allocation6 + $0x98] sm:$0xff] }
 0xba7   :  { %7991 = vst [vmem:[#allocation19_spill] sm:$0xff] %v5912_v6 }
 0xbb3   :  { %v4166_v45 = vpop.eup %4165 }
 0xbb4   :  { %v1737_v22 = vmul.f32 %v4166_v45, %v1736_v40  ;;  %v5918_v40 = vld [vmem:[#allocation6 + $0x90] sm:$0xff]  ;;  %v5922_v45 = vld [vmem:[#allocation6 + $0x68] sm:$0xff] }
 0xbb5   :  { %7992 = vst [vmem:[#allocation20_spill] sm:$0xff] %v5918_v40 }
 0xbb6   :  { %v5765_v49 = vadd.f32 %v1738_v56, %v1737_v22  ;;  %v5924_v22 = vld [vmem:[#allocation6 + $0x78] sm:$0xff]  ;;  %v5928_v56 = vld [vmem:[#allocation6 + $0x60] sm:$0xff] }
 0xbb7   :  { %7993 = vst [vmem:[#allocation21_spill] sm:$0xff] %v5924_v22 }
 0xbb8   :  { %7967 = vst [vmem:[#allocation72_spill] sm:$0xff] %v5765_v49  ;;  %3975 = vmatmul.mubr.f32.vlgmr.msra.gmra.mxu1 %v5765_v49  ;;  %2088 = vmatprep.mubr.f32.mxu0 %v5765_v49 }
 0xbb9   :  { %2159 = vmatprep.mubr.f32.mxu1 %v5765_v49  ;;  %2096 = vmatpush1.msra.mxu1 %v5790_v9  ;;  %v6080_v9 = vld [vmem:[#allocation6 + $0x2d8] sm:$0xff]  ;;  %v6086_v49 = vld [vmem:[#allocation6 + $0x2d0] sm:$0xff] }
 0xbba   :  { %2097 = vmatprep.subr.mxu1 %v5794_v13  ;;  %v6074_v13 = vld [vmem:[#allocation6 + $0x2f0] sm:$0xff]  ;;  %8019 = vst [vmem:[#allocation47_spill] sm:$0xff] %v6080_v9  ;;  %8021 = vst [vmem:[#allocation49_spill] sm:$0xff] %v6086_v49 }
 0xbbb   :  { %2098 = vmatpush1.msra.mxu1 %v5800_v17  ;;  %v6068_v17 = vld [vmem:[#allocation6 + $0x2f8] sm:$0xff]  ;;  %8018 = vst [vmem:[#allocation46_spill] sm:$0xff] %v6074_v13 }
 0xbbc   :  { %2099 = vmatprep.subr.mxu1 %v5806_v20  ;;  %v6062_v20 = vld [vmem:[#allocation6 + $0x310] sm:$0xff]  ;;  %8017 = vst [vmem:[#allocation45_spill] sm:$0xff] %v6068_v17 }
 0xbbd   :  { %2100 = vmatpush1.msra.mxu1 %v5810_v25  ;;  %v6056_v25 = vld [vmem:[#allocation6 + $0x318] sm:$0xff]  ;;  %8016 = vst [vmem:[#allocation44_spill] sm:$0xff] %v6062_v20 }
 0xbbe   :  { %2101 = vmatprep.subr.mxu1 %v5816_v31  ;;  %v6050_v31 = vld [vmem:[#allocation6 + $0x330] sm:$0xff]  ;;  %8015 = vst [vmem:[#allocation43_spill] sm:$0xff] %v6056_v25 }
 0xbbf   :  { %2102 = vmatpush1.msra.mxu1 %v5822_v33  ;;  %v6044_v33 = vld [vmem:[#allocation6 + $0x338] sm:$0xff]  ;;  %8014 = vst [vmem:[#allocation42_spill] sm:$0xff] %v6050_v31 }
 0xbc0   :  { %2103 = vmatprep.subr.mxu1 %v5828_v39  ;;  %v6038_v39 = vld [vmem:[#allocation6 + $0x350] sm:$0xff]  ;;  %8013 = vst [vmem:[#allocation41_spill] sm:$0xff] %v6044_v33 }
 0xbc1   :  { %2104 = vmatpush1.msra.mxu1 %v5834_v42  ;;  %v6032_v42 = vld [vmem:[#allocation6 + $0x358] sm:$0xff]  ;;  %8012 = vst [vmem:[#allocation40_spill] sm:$0xff] %v6038_v39 }
 0xbc2   :  { %2105 = vmatprep.subr.mxu1 %v5840_v44  ;;  %v6026_v44 = vld [vmem:[#allocation6 + $0x370] sm:$0xff]  ;;  %8011 = vst [vmem:[#allocation39_spill] sm:$0xff] %v6032_v42 }
 0xbc3   :  { %2106 = vmatpush1.msra.mxu1 %v5846_v47  ;;  %v6020_v47 = vld [vmem:[#allocation6 + $0x378] sm:$0xff]  ;;  %8010 = vst [vmem:[#allocation38_spill] sm:$0xff] %v6026_v44 }
 0xbc4   :  { %2107 = vmatprep.subr.mxu1 %v5852_v43  ;;  %v6014_v43 = vld [vmem:[#allocation6 + $0x390] sm:$0xff]  ;;  %8009 = vst [vmem:[#allocation37_spill] sm:$0xff] %v6020_v47 }
 0xbc5   :  { %2108 = vmatpush1.msra.mxu1 %v5858_v19  ;;  %v6008_v19 = vld [vmem:[#allocation6 + $0x398] sm:$0xff]  ;;  %8008 = vst [vmem:[#allocation36_spill] sm:$0xff] %v6014_v43 }
 0xbc6   :  { %2109 = vmatprep.subr.mxu1 %v5864_v50  ;;  %v6002_v50 = vld [vmem:[#allocation6 + $0x3b0] sm:$0xff]  ;;  %8007 = vst [vmem:[#allocation35_spill] sm:$0xff] %v6008_v19 }
 0xbc7   :  { %2110 = vmatpush1.msra.mxu1 %v5870_v30  ;;  %v5996_v30 = vld [vmem:[#allocation6 + $0x3b8] sm:$0xff]  ;;  %8006 = vst [vmem:[#allocation34_spill] sm:$0xff] %v6002_v50 }
 0xbc8   :  { %2111 = vmatprep.subr.mxu1 %v5876_v38  ;;  %v5990_v38 = vld [vmem:[#allocation6 + $0x3d0] sm:$0xff]  ;;  %8005 = vst [vmem:[#allocation33_spill] sm:$0xff] %v5996_v30 }
 0xbc9   :  { %2112 = vmatpush1.msra.mxu1 %v5882_v60  ;;  %v5984_v60 = vld [vmem:[#allocation6 + $0x3d8] sm:$0xff]  ;;  %8004 = vst [vmem:[#allocation32_spill] sm:$0xff] %v5990_v38 }
 0xbca   :  { %2113 = vmatprep.subr.mxu1 %v5888_v62  ;;  %v5978_v62 = vld [vmem:[#allocation6 + $0x3f0] sm:$0xff]  ;;  %8003 = vst [vmem:[#allocation31_spill] sm:$0xff] %v5984_v60 }
 0xbcb   :  { %2114 = vmatpush1.msra.mxu1 %v5894_v0  ;;  %v5972_v0 = vld [vmem:[#allocation6 + $0x3f8] sm:$0xff]  ;;  %8002 = vst [vmem:[#allocation30_spill] sm:$0xff] %v5978_v62 }
 0xbcc   :  { %2115 = vmatprep.subr.mxu1 %v5900_v2  ;;  %v5966_v2 = vld [vmem:[#allocation6 + $0x10] sm:$0xff]  ;;  %8001 = vst [vmem:[#allocation29_spill] sm:$0xff] %v5972_v0 }
 0xbcd   :  { %2116 = vmatpush1.msra.mxu1 %v5906_v34  ;;  %v5960_v34 = vld [vmem:[#allocation6 + $0x18] sm:$0xff]  ;;  %8000 = vst [vmem:[#allocation28_spill] sm:$0xff] %v5966_v2 }
 0xbce   :  { %2117 = vmatprep.subr.mxu1 %v5912_v6  ;;  %v5954_v6 = vld [vmem:[#allocation6 + $0x30] sm:$0xff]  ;;  %7999 = vst [vmem:[#allocation27_spill] sm:$0xff] %v5960_v34 }
 0xbcf   :  { %2118 = vmatpush1.msra.mxu1 %v5918_v40  ;;  %v5952_v40 = vld [vmem:[#allocation6 + $0x20] sm:$0xff]  ;;  %7998 = vst [vmem:[#allocation26_spill] sm:$0xff] %v5954_v6 }
 0xbd0   :  { %2119 = vmatprep.subr.mxu1 %v5924_v22  ;;  %v5958_v22 = vld [vmem:[#allocation6 + $0x8] sm:$0xff] }
 0xc78   :  { %v1822_v29 = vpop.f32.mrf.mxu1 }
 0xc79   :  { %v5771_v36 = vadd.f32 %v5717_v21, %v1822_v29  ;;  %v5808_v21 = vld [vmem:[#allocation6 + $0x1a0] sm:$0xff]  ;;  %v5930_v29 = vld [vmem:[#allocation6 + $0x70] sm:$0xff] }
 0xc7a   :  { %v3976_v51 = vpop.f32.mrf.mxu1  ;;  %2029 = vmatpush1.msra.mxu0 %v5808_v21  ;;  %7994 = vst [vmem:[#allocation22_spill] sm:$0xff] %v5930_v29  ;;  %2120 = vmatpush1.msra.mxu1 %v5930_v29  ;;  %v5964_v29 = vld [vmem:[#allocation6] sm:$0xff] }
 0xc7b   :  { %7968 = vst [vmem:[#allocation74_spill] sm:$0xff] %v5771_v36  ;;  %1826 = vmax.xlane.f32.xlu1 %v5771_v36  ;;  %2030 = vmatprep.subr.mxu0 %v5814_v26  ;;  %v5934_v51 = vld [vmem:[#allocation6 + $0x48] sm:$0xff] }
 0xc7c   :  { %2031 = vmatpush1.msra.mxu0 %v5820_v32 }
 0xc7d   :  { %2032 = vmatprep.subr.mxu0 %v5826_v37 }
 0xc7e   :  { %2033 = vmatpush1.msra.mxu0 %v5832_v41 }
 0xc7f   :  { %2034 = vmatprep.subr.mxu0 %v5838_v53 }
 0xc80   :  { %2035 = vmatpush1.msra.mxu0 %v5844_v46 }
 0xc81   :  { %2036 = vmatprep.subr.mxu0 %v5850_v48 }
 0xc82   :  { %2037 = vmatpush1.msra.mxu0 %v5856_v59 }
 0xc83   :  { %2038 = vmatprep.subr.mxu0 %v5862_v35 }
 0xc84   :  { %2039 = vmatpush1.msra.mxu0 %v5868_v24 }
 0xc85   :  { %2040 = vmatprep.subr.mxu0 %v5874_v16 }
 0xc86   :  { %2041 = vmatpush1.msra.mxu0 %v5880_v28 }
 0xc87   :  { %2042 = vmatprep.subr.mxu0 %v5886_v61 }
 0xc88   :  { %2043 = vmatpush1.msra.mxu0 %v5892_v63 }
 0xc89   :  { %2044 = vmatprep.subr.mxu0 %v5898_v1 }
 0xc8a   :  { %2045 = vmatpush1.msra.mxu0 %v5904_v4 }
 0xc8b   :  { %2046 = vmatprep.subr.mxu0 %v5910_v5 }
 0xc8c   :  { %2047 = vmatpush1.msra.mxu0 %v5916_v7 }
 0xc8d   :  { %2048 = vmatprep.subr.mxu0 %v5922_v45 }
 0xc8e   :  { %2049 = vmatpush1.msra.mxu0 %v5928_v56 }
 0xc8f   :  { %2050 = vmatprep.subr.mxu0 %v5934_v51 }
 0xd04   :  { %v1827_v52 = vpop.xlane.xlu1 %1826 }
 0xd05   :  { %vm1828_vm7 = vcmp.eq.f32.partialorder %v5771_v36, %v1827_v52  ;;  %v5936_v52 = vld [vmem:[#allocation6 + $0x58] sm:$0xff]  ;;  %v5942_v36 = vld [vmem:[#allocation6 + $0x50] sm:$0xff] }
 0xd06   :  { %v5776_v3 = vsel %vm1828_vm7, %v7966_v27, 128  ;;  %7995 = vst [vmem:[#allocation23_spill] sm:$0xff] %v5936_v52  ;;  %7996 = vst [vmem:[#allocation24_spill] sm:$0xff] %v5942_v36  ;;  %v5948_v27 = vld [vmem:[#allocation6 + $0x38] sm:$0xff]  ;;  %2121 = vmatprep.subr.mxu1 %v5936_v52  ;;  %v5970_v52 = vld [vmem:[#allocation6 + $0x3e8] sm:$0xff] }
 0xd07   :  { %v1831_v54 = vshra.s32 %v5776_v3, 16  ;;  %7997 = vst [vmem:[#allocation25_spill] sm:$0xff] %v5948_v27  ;;  %2122 = vmatpush1.msra.mxu1 %v5942_v36  ;;  %v5976_v36 = vld [vmem:[#allocation6 + $0x3e0] sm:$0xff] }
 0xd08   :  { %2123 = vmatprep.subr.mxu1 %v5948_v27  ;;  %v5982_v27 = vld [vmem:[#allocation6 + $0x3c8] sm:$0xff] }
 0xd09   :  { %v5779_v55 = vcvt.s32.f32 %v1831_v54  ;;  %v5940_v54 = vld [vmem:[#allocation6 + $0x40] sm:$0xff]  ;;  %2124 = vmatpush1.msra.mxu1 %v5954_v6 }
 0xd0a   :  { %2051 = vmatpush1.msra.mxu0 %v5940_v54  ;;  %2125 = vmatprep.subr.mxu1 %v5960_v34  ;;  %v5988_v6 = vld [vmem:[#allocation6 + $0x3c0] sm:$0xff]  ;;  %v5994_v34 = vld [vmem:[#allocation6 + $0x3a8] sm:$0xff] }
 0xd0b   :  { %1834 = vmin.xlane.f32.xlu0 %v5779_v55  ;;  %2052 = vmatprep.subr.mxu0 %v5946_v23 }
 0xd0c   :  { %2053 = vmatpush1.msra.mxu0 %v5952_v40  ;;  %2126 = vmatpush1.msra.mxu1 %v5966_v2  ;;  %v6000_v2 = vld [vmem:[#allocation6 + $0x3a0] sm:$0xff] }
 0xd0d   :  { %2054 = vmatprep.subr.mxu0 %v5958_v22  ;;  %2127 = vmatprep.subr.mxu1 %v5972_v0  ;;  %v6006_v0 = vld [vmem:[#allocation6 + $0x388] sm:$0xff] }
 0xd0e   :  { %2055 = vmatpush1.msra.mxu0 %v5964_v29  ;;  %2128 = vmatpush2.msra.mxu1 %v5978_v62  ;;  %v6012_v62 = vld [vmem:[#allocation6 + $0x380] sm:$0xff] }
 0xd0f   :  { %2056 = vmatprep.subr.mxu0 %v5970_v52  ;;  %2129 = vmatprep.subr.mxu1 %v5984_v60  ;;  %v6018_v60 = vld [vmem:[#allocation6 + $0x368] sm:$0xff] }
 0xd10   :  { %2057 = vmatpush2.msra.mxu0 %v5976_v36  ;;  %2130 = vmatpush2.msra.mxu1 %v5990_v38  ;;  %v6024_v38 = vld [vmem:[#allocation6 + $0x360] sm:$0xff] }
 0xd11   :  { %2058 = vmatprep.subr.mxu0 %v5982_v27  ;;  %2131 = vmatprep.subr.mxu1 %v5996_v30  ;;  %v6030_v30 = vld [vmem:[#allocation6 + $0x348] sm:$0xff] }
 0xd12   :  { %2059 = vmatpush2.msra.mxu0 %v5988_v6  ;;  %2132 = vmatpush2.msra.mxu1 %v6002_v50  ;;  %v6036_v50 = vld [vmem:[#allocation6 + $0x340] sm:$0xff] }
 0xd13   :  { %2060 = vmatprep.subr.mxu0 %v5994_v34  ;;  %2133 = vmatprep.subr.mxu1 %v6008_v19  ;;  %v6042_v19 = vld [vmem:[#allocation6 + $0x328] sm:$0xff] }
 0xd14   :  { %2061 = vmatpush2.msra.mxu0 %v6000_v2  ;;  %2134 = vmatpush2.msra.mxu1 %v6014_v43  ;;  %v6048_v43 = vld [vmem:[#allocation6 + $0x320] sm:$0xff] }
 0xd15   :  { %2062 = vmatprep.subr.mxu0 %v6006_v0  ;;  %2135 = vmatprep.subr.mxu1 %v6020_v47  ;;  %v6054_v47 = vld [vmem:[#allocation6 + $0x308] sm:$0xff] }
 0xd16   :  { %2063 = vmatpush2.msra.mxu0 %v6012_v62  ;;  %2136 = vmatpush2.msra.mxu1 %v6026_v44  ;;  %v6060_v44 = vld [vmem:[#allocation6 + $0x300] sm:$0xff] }
 0xd17   :  { %2064 = vmatprep.subr.mxu0 %v6018_v60  ;;  %2137 = vmatprep.subr.mxu1 %v6032_v42  ;;  %v6066_v42 = vld [vmem:[#allocation6 + $0x2e8] sm:$0xff] }
 0xd18   :  { %2065 = vmatpush2.msra.mxu0 %v6024_v38  ;;  %2138 = vmatpush2.msra.mxu1 %v6038_v39  ;;  %v6072_v39 = vld [vmem:[#allocation6 + $0x2e0] sm:$0xff] }
 0xd19   :  { %2066 = vmatprep.subr.mxu0 %v6030_v30  ;;  %2139 = vmatprep.subr.mxu1 %v6044_v33  ;;  %v6078_v33 = vld [vmem:[#allocation6 + $0x2c8] sm:$0xff] }
 0xd1a   :  { %2067 = vmatpush2.msra.mxu0 %v6036_v50  ;;  %2140 = vmatpush2.msra.mxu1 %v6050_v31  ;;  %v6084_v31 = vld [vmem:[#allocation6 + $0x2c0] sm:$0xff] }
 0xd1b   :  { %2068 = vmatprep.subr.mxu0 %v6042_v19  ;;  %2141 = vmatprep.subr.mxu1 %v6056_v25  ;;  %8020 = vst [vmem:[#allocation48_spill] sm:$0xff] %v6084_v31 }
 0xd1c   :  { %2069 = vmatpush2.msra.mxu0 %v6048_v43  ;;  %2142 = vmatpush2.msra.mxu1 %v6062_v20  ;;  %v1830_v20 = vand.u32 65535, %v5776_v3  ;;  %v6108_v3 = vld [vmem:[#allocation6 + $0x288] sm:$0xff] }
 0xd1d   :  { %2070 = vmatprep.subr.mxu0 %v6054_v47  ;;  %2143 = vmatprep.subr.mxu1 %v6068_v17  ;;  %8026 = vst [vmem:[#allocation58_spill] sm:$0xff] %v6108_v3 }
 0xd1e   :  { %2071 = vmatpush2.msra.mxu0 %v6060_v44  ;;  %2144 = vmatpush2.msra.mxu1 %v6074_v13  ;;  %v1832_v17 = vcvt.s32.f32 %v1830_v20  ;;  %v6104_v13 = vld [vmem:[#allocation6 + $0x2b0] sm:$0xff]  ;;  %v6120_v20 = vld [vmem:[#allocation6 + $0x268] sm:$0xff] }
 0xd1f   :  { %2072 = vmatprep.subr.mxu0 %v6066_v42  ;;  %2145 = vmatprep.subr.mxu1 %v6080_v9  ;;  %v6102_v9 = vld [vmem:[#allocation6 + $0x2a0] sm:$0xff]  ;;  %8025 = vst [vmem:[#allocation56_spill] sm:$0xff] %v6104_v13  ;;  %8030 = vst [vmem:[#allocation68_spill] sm:$0xff] %v6120_v20 }
 0xd20   :  { %2073 = vmatpush2.msra.mxu0 %v6072_v39  ;;  %2146 = vmatpush2.msra.mxu1 %v6086_v49  ;;  %8024 = vst [vmem:[#allocation54_spill] sm:$0xff] %v6102_v9  ;;  %v6128_v49 = vld [vmem:[#allocation6 + $0x270] sm:$0xff] }
 0xd21   :  { %2074 = vmatprep.subr.mxu0 %v6078_v33  ;;  %2147 = vmatprep.subr.mxu1 %v6098_v12  ;;  %v6122_v12 = vld [vmem:[#allocation6 + $0x278] sm:$0xff]  ;;  %8033 = vst [vmem:[#allocation75_spill] sm:$0xff] %v6128_v49 }
 0xd22   :  { %2075 = vmatpush2.msra.mxu0 %v6084_v31  ;;  %2148 = vmatpush2.msra.mxu1 %v6104_v13  ;;  %8031 = vst [vmem:[#allocation71_spill] sm:$0xff] %v6122_v12  ;;  %v6126_v13 = vld [vmem:[#allocation6 + $0x260] sm:$0xff] }
 0xd23   :  { %2076 = vmatprep.subr.mxu0 %v6096_v10  ;;  %8032 = vst [vmem:[#allocation73_spill] sm:$0xff] %v6126_v13 }
 0xd24   :  { %2077 = vmatpush2.msra.mxu0 %v6102_v9 }
 0xd25   :  { %2078 = vmatprep.subr.mxu0 %v6108_v3  ;;  %v6162_v3 = vld [vmem:[#allocation6 + $0x210] sm:$0xff] }
 0xd26   :  { %8045 = vst [vmem:[#allocation96_spill] sm:$0xff] %v6162_v3 }
 0xd94   :  { %v1835_v25 = vpop.xlane.xlu0 %1834 }
 0xd95   :  { %vm1836_vm8 = vcmp.eq.f32.partialorder %v5779_v55, %v1835_v25  ;;  %v6110_v55 = vld [vmem:[#allocation6 + $0x298] sm:$0xff] }
 0xd96   :  { %v1837_v15 = vsel %vm1836_vm8, %v1832_v17, inf  ;;  %8027 = vst [vmem:[#allocation60_spill] sm:$0xff] %v6110_v55  ;;  %2149 = vmatprep.subr.mxu1 %v6110_v55  ;;  %v6116_v17 = vld [vmem:[#allocation6 + $0x290] sm:$0xff]  ;;  %v6132_v55 = vld [vmem:[#allocation6 + $0x248] sm:$0xff] }
 0xd97   :  { %1838 = vmin.xlane.f32.xlu1 %v1837_v15  ;;  %v6114_v15 = vld [vmem:[#allocation6 + $0x280] sm:$0xff]  ;;  %8029 = vst [vmem:[#allocation65_spill] sm:$0xff] %v6116_v17  ;;  %2150 = vmatpush2.msra.mxu1 %v6116_v17  ;;  %8034 = vst [vmem:[#allocation78_spill] sm:$0xff] %v6132_v55 }
 0xd98   :  { %8028 = vst [vmem:[#allocation62_spill] sm:$0xff] %v6114_v15  ;;  %2079 = vmatpush2.msra.mxu0 %v6114_v15  ;;  %2151 = vmatprep.subr.mxu1 %v6122_v12  ;;  %v6134_v15 = vld [vmem:[#allocation6 + $0x258] sm:$0xff]  ;;  %v6138_v17 = vld [vmem:[#allocation6 + $0x240] sm:$0xff]  ;;  %v6144_v12 = vld [vmem:[#allocation6 + $0x228] sm:$0xff] }
 0xd99   :  { %2080 = vmatprep.subr.mxu0 %v6120_v20  ;;  %2152 = vmatpush2.msra.mxu1 %v6128_v49  ;;  %8035 = vst [vmem:[#allocation80_spill] sm:$0xff] %v6134_v15  ;;  %8036 = vst [vmem:[#allocation67_spill] sm:$0xff] %v6138_v17  ;;  %v6140_v20 = vld [vmem:[#allocation6 + $0x250] sm:$0xff]  ;;  %v6150_v49 = vld [vmem:[#allocation6 + $0x220] sm:$0xff] }
 0xd9a   :  { %2081 = vmatpush2.msra.mxu0 %v6126_v13  ;;  %2153 = vmatprep.subr.mxu1 %v6134_v15  ;;  %8037 = vst [vmem:[#allocation82_spill] sm:$0xff] %v6140_v20  ;;  %8038 = vst [vmem:[#allocation84_spill] sm:$0xff] %v6144_v12  ;;  %v6146_v13 = vld [vmem:[#allocation6 + $0x238] sm:$0xff]  ;;  %v6154_v15 = vld [vmem:[#allocation6 + $0x208] sm:$0xff] }
 0xd9b   :  { %2082 = vmatprep.subr.mxu0 %v6132_v55  ;;  %2154 = vmatpush2.msra.mxu1 %v6140_v20  ;;  %8039 = vst [vmem:[#allocation86_spill] sm:$0xff] %v6146_v13  ;;  %8040 = vst [vmem:[#allocation88_spill] sm:$0xff] %v6150_v49  ;;  %v6152_v55 = vld [vmem:[#allocation6 + $0x230] sm:$0xff]  ;;  %v6160_v20 = vld [vmem:[#allocation6 + $0x200] sm:$0xff] }
 0xd9c   :  { %2083 = vmatpush2.msra.mxu0 %v6138_v17  ;;  %2155 = vmatprep.subr.mxu1 %v6146_v13  ;;  %8041 = vst [vmem:[#allocation90_spill] sm:$0xff] %v6152_v55  ;;  %8042 = vst [vmem:[#allocation92_spill] sm:$0xff] %v6154_v15  ;;  %v6158_v17 = vld [vmem:[#allocation6 + $0x218] sm:$0xff]  ;;  %v1841_v13 = vcvt.f32.s32 %v1835_v25  ;;  %v6249_v25 = vld [vmem:[#allocation7 + $0x70] sm:$0xff] }
 0xd9d   :  { %2084 = vmatprep.subr.mxu0 %v6144_v12  ;;  %2156 = vmatpush2.msra.mxu1 %v6152_v55  ;;  %8043 = vst [vmem:[#allocation94_spill] sm:$0xff] %v6158_v17  ;;  %8044 = vst [vmem:[#allocation95_spill] sm:$0xff] %v6160_v20 }
 0xd9e   :  { %2085 = vmatpush2.msra.mxu0 %v6150_v49  ;;  %2157 = vmatprep.subr.mxu1 %v6158_v17  ;;  %v1842_v49 = vshll.u32 %v1841_v13, 16 }
 0xd9f   :  { %2086 = vmatprep.subr.mxu0 %v6154_v15  ;;  %2158 = vmatpush2.msra.mxu1 %v6162_v3  ;;  %v6173_v15 = vld [vmem:[%s7321_s1] ss:$0 sm:$0xff] }
 0xda0   :  { %2087 = vmatpush2.msra.mxu0 %v6160_v20  ;;  %2473 = vmatprep.subr.mxu1 %v5782_v57  ;;  %v6176_v20 = vld [vmem:[#allocation4] ss:$0 sm:$0xff]  ;;  %v8051_v57 = vld [vmem:[#allocation68_spill] sm:$0xff] }
 0xda1   :  { %3977 = vmatprep.subr.mxu0 %v7884_v58 }
 0xda2   :  { %v8056_v13 = vld [vmem:[#allocation88_spill] sm:$0xff] }
 0xe20   :  { %v1839_v55 = vpop.xlane.xlu1 %1838 }
 0xe21   :  { %v1840_v12 = vcvt.f32.s32 %v1839_v55  ;;  %v8064_v55 = vld [vmem:[#allocation66_spill] sm:$0xff] }
 0xe23   :  { %v1843_v9 = vadd.s32 %v1842_v49, %v1840_v12  ;;  %v8049_v49 = vld [vmem:[#allocation58_spill] sm:$0xff]  ;;  %v8052_v12 = vld [vmem:[#allocation73_spill] sm:$0xff] }
 0xe25   :  { %v1844_v10 = vcvt.s32.f32 %v1843_v9  ;;  %v8054_v9 = vld [vmem:[#allocation67_spill] sm:$0xff] }
 0xe27   :  { %v1893_v17 = vmul.f32 %v6173_v15, %v1844_v10  ;;  %v8046_v10 = vld [vmem:[#allocation48_spill] sm:$0xff] }
 0xe29   :  { %v1894_v3 = vadd.f32 %v6176_v20, %v1893_v17  ;;  %v8065_v17 = vld [vmem:[#allocation81_spill] sm:$0xff] }
 0xe2b   :  { %v1895_v31 = vmax.f32 %v1894_v3, 0.0  ;;  %v8063_v3 = vld [vmem:[#allocation79_spill] sm:$0xff] }
 0xe2d   :  { %2089 = vmatmul.mubr.f32.vlgmr.msra.gmra.mxu0 %v1895_v31  ;;  %2160 = vmatmul.mubr.f32.vlgmr.msra.gmra.mxu1 %v1895_v31  ;;  %v6257_v31 = vld [vmem:[#allocation7 + $0x60] sm:$0xff] }
 0xe2e   :  { %4009 = vmatprep.mubr.msk.f32.mxu0 %vm4345_vm0, %v7884_v58  ;;  %2474 = vmatpush1.msra.mxu1 %v5786_v8  ;;  %v8053_v8 = vld [vmem:[#allocation78_spill] sm:$0xff] }
 0xe2f   :  { %2475 = vmatprep.subr.mxu1 %v5792_v11  ;;  %v8055_v11 = vld [vmem:[#allocation84_spill] sm:$0xff] }
 0xe30   :  { %2476 = vmatpush1.msra.mxu1 %v5798_v14  ;;  %v8057_v14 = vld [vmem:[#allocation92_spill] sm:$0xff] }
 0xe31   :  { %2477 = vmatprep.subr.mxu1 %v5802_v18  ;;  %v8058_v18 = vld [vmem:[#allocation95_spill] sm:$0xff] }
 0xe32   :  { %2478 = vmatpush1.msra.mxu1 %v5808_v21  ;;  %v6245_v21 = vld [vmem:[#allocation7 + $0x78] sm:$0xff] }
 0xe33   :  { %2479 = vmatprep.subr.mxu1 %v5814_v26  ;;  %3978 = vmatpush3.msra.mxu0 %v6245_v21  ;;  %v6253_v26 = vld [vmem:[#allocation7 + $0x68] sm:$0xff] }
 0xe34   :  { %2480 = vmatpush1.msra.mxu1 %v5820_v32  ;;  %3979 = vmatprep.subr.mxu0 %v7884_v58  ;;  %v6261_v32 = vld [vmem:[#allocation7 + $0x58] sm:$0xff] }
 0xe35   :  { %2481 = vmatprep.subr.mxu1 %v5826_v37  ;;  %3980 = vmatpush3.msra.mxu0 %v6249_v25  ;;  %v6269_v37 = vld [vmem:[#allocation7 + $0x48] sm:$0xff] }
 0xe36   :  { %2482 = vmatpush1.msra.mxu1 %v5832_v41  ;;  %3981 = vmatprep.subr.mxu0 %v7884_v58  ;;  %v6275_v41 = vld [vmem:[#allocation7 + $0x38] sm:$0xff] }
 0xe37   :  { %2483 = vmatprep.subr.mxu1 %v5838_v53  ;;  %3982 = vmatpush3.msra.mxu0 %v6253_v26  ;;  %v6283_v53 = vld [vmem:[#allocation7 + $0x28] sm:$0xff] }
 0xe38   :  { %2484 = vmatpush1.msra.mxu1 %v5844_v46  ;;  %3983 = vmatprep.subr.mxu0 %v7884_v58  ;;  %v6291_v46 = vld [vmem:[#allocation7 + $0x18] sm:$0xff] }
 0xe39   :  { %2485 = vmatprep.subr.mxu1 %v5850_v48  ;;  %3984 = vmatpush3.msra.mxu0 %v6257_v31  ;;  %v6299_v48 = vld [vmem:[#allocation7 + $0x8] sm:$0xff] }
 0xe3a   :  { %2486 = vmatpush1.msra.mxu1 %v5856_v59  ;;  %3985 = vmatprep.subr.mxu0 %v7884_v58  ;;  %v8059_v59 = vld [vmem:[#allocation77_spill] sm:$0xff] }
 0xe3b   :  { %2487 = vmatprep.subr.mxu1 %v5862_v35  ;;  %3986 = vmatpush3.msra.mxu0 %v6261_v32  ;;  %v8060_v35 = vld [vmem:[#allocation53_spill] sm:$0xff] }
 0xe3c   :  { %2488 = vmatpush1.msra.mxu1 %v5868_v24  ;;  %3987 = vmatprep.subr.mxu0 %v7884_v58 }
 0xe3d   :  { %2489 = vmatprep.subr.mxu1 %v5874_v16  ;;  %v8061_v16 = vld [vmem:[#allocation55_spill] sm:$0xff] }
 0xe3e   :  { %2490 = vmatpush1.msra.mxu1 %v5880_v28 }
 0xe3f   :  { %2491 = vmatprep.subr.mxu1 %v5886_v61 }
 0xe40   :  { %2492 = vmatpush1.msra.mxu1 %v5892_v63 }
 0xe41   :  { %2493 = vmatprep.subr.mxu1 %v5898_v1 }
 0xe42   :  { %2494 = vmatpush1.msra.mxu1 %v5904_v4 }
 0xe43   :  { %2495 = vmatprep.subr.mxu1 %v5910_v5  ;;  %v6320_v5 = vld [vmem:[%s7325_s5] ss:$0 sm:$0xff] }
 0xe44   :  { %2496 = vmatpush1.msra.mxu1 %v5916_v7 }
 0xe45   :  { %2497 = vmatprep.subr.mxu1 %v5922_v45 }
 0xe46   :  { %2498 = vmatpush1.msra.mxu1 %v5928_v56 }
 0xe47   :  { %2499 = vmatprep.subr.mxu1 %v5934_v51  ;;  %v8062_v51 = vld [vmem:[#allocation72_spill] sm:$0xff] }
 0xe48   :  { %2500 = vmatpush1.msra.mxu1 %v5940_v54 }
 0xe49   :  { %2501 = vmatprep.subr.mxu1 %v5946_v23  ;;  %v8047_v23 = vld [vmem:[#allocation50_spill] sm:$0xff] }
 0xe4a   :  { %2502 = vmatpush1.msra.mxu1 %v5952_v40 }
 0xe4b   :  { %2503 = vmatprep.subr.mxu1 %v5958_v22 }
 0xe4c   :  { %2504 = vmatpush1.msra.mxu1 %v5964_v29 }
 0xe4d   :  { %2505 = vmatprep.subr.mxu1 %v5970_v52 }
 0xe4e   :  { %2506 = vmatpush2.msra.mxu1 %v5976_v36  ;;  %v8050_v36 = vld [vmem:[#allocation62_spill] sm:$0xff] }
 0xe4f   :  { %2507 = vmatprep.subr.mxu1 %v5982_v27  ;;  %v8048_v27 = vld [vmem:[#allocation54_spill] sm:$0xff] }
 0xe50   :  { %2508 = vmatpush2.msra.mxu1 %v5988_v6 }
 0xe51   :  { %2509 = vmatprep.subr.mxu1 %v5994_v34 }
 0xe52   :  { %2510 = vmatpush2.msra.mxu1 %v6000_v2  ;;  %v6314_v2 = vld [vmem:[%s7326_s6] ss:$0 sm:$0xff] }
 0xe53   :  { %2511 = vmatprep.subr.mxu1 %v6006_v0 }
 0xe54   :  { %2512 = vmatpush2.msra.mxu1 %v6012_v62 }
 0xe55   :  { %2513 = vmatprep.subr.mxu1 %v6018_v60 }
 0xe56   :  { %2514 = vmatpush2.msra.mxu1 %v6024_v38 }
 0xe57   :  { %2515 = vmatprep.subr.mxu1 %v6030_v30 }
 0xe58   :  { %2516 = vmatpush2.msra.mxu1 %v6036_v50 }
 0xe59   :  { %2517 = vmatprep.subr.mxu1 %v6042_v19 }
 0xe5a   :  { %2518 = vmatpush2.msra.mxu1 %v6048_v43  ;;  %v6303_v43 = vld [vmem:[#allocation7] sm:$0xff] }
 0xe5b   :  { %2519 = vmatprep.subr.mxu1 %v6054_v47  ;;  %v6295_v47 = vld [vmem:[#allocation7 + $0x10] sm:$0xff] }
 0xe5c   :  { %2520 = vmatpush2.msra.mxu1 %v6060_v44  ;;  %v6287_v44 = vld [vmem:[#allocation7 + $0x20] sm:$0xff] }
 0xe5d   :  { %2521 = vmatprep.subr.mxu1 %v6066_v42  ;;  %v6279_v42 = vld [vmem:[#allocation7 + $0x30] sm:$0xff] }
 0xe5e   :  { %2522 = vmatpush2.msra.mxu1 %v6072_v39  ;;  %v6273_v39 = vld [vmem:[#allocation7 + $0x40] sm:$0xff] }
 0xe5f   :  { %2523 = vmatprep.subr.mxu1 %v6078_v33  ;;  %v6265_v33 = vld [vmem:[#allocation7 + $0x50] sm:$0xff] }
 0xe60   :  { %2524 = vmatpush2.msra.mxu1 %v8046_v10  ;;  %3988 = vmatpush3.msra.mxu0 %v6265_v33  ;;  %v8066_v10 = vld [vmem:[#allocation83_spill] sm:$0xff] }
 0xe61   :  { %2525 = vmatprep.subr.mxu1 %v8047_v23  ;;  %3989 = vmatprep.subr.mxu0 %v7884_v58  ;;  %v8067_v23 = vld [vmem:[#allocation85_spill] sm:$0xff] }
 0xe62   :  { %2526 = vmatpush2.msra.mxu1 %v8048_v27  ;;  %3990 = vmatpush3.msra.mxu0 %v6269_v37  ;;  %v8068_v27 = vld [vmem:[#allocation87_spill] sm:$0xff] }
 0xe63   :  { %2527 = vmatprep.subr.mxu1 %v8049_v49  ;;  %3991 = vmatprep.subr.mxu0 %v7884_v58  ;;  %v8069_v49 = vld [vmem:[#allocation89_spill] sm:$0xff] }
 0xe64   :  { %2528 = vmatpush2.msra.mxu1 %v8050_v36  ;;  %3992 = vmatpush3.msra.mxu0 %v6273_v39  ;;  %v8070_v36 = vld [vmem:[#allocation91_spill] sm:$0xff] }
 0xe65   :  { %2529 = vmatprep.subr.mxu1 %v8051_v57  ;;  %3993 = vmatprep.subr.mxu0 %v7884_v58  ;;  %v8071_v57 = vld [vmem:[#allocation93_spill] sm:$0xff] }
 0xe66   :  { %2530 = vmatpush2.msra.mxu1 %v8052_v12  ;;  %3994 = vmatpush3.msra.mxu0 %v6275_v41  ;;  %v8072_v12 = vld [vmem:[#allocation63_spill] sm:$0xff] }
 0xe67   :  { %2531 = vmatprep.subr.mxu1 %v8053_v8  ;;  %3995 = vmatprep.subr.mxu0 %v7884_v58  ;;  %v8073_v8 = vld [vmem:[#allocation59_spill] sm:$0xff] }
 0xe68   :  { %2532 = vmatpush2.msra.mxu1 %v8054_v9  ;;  %3996 = vmatpush3.msra.mxu0 %v6279_v42  ;;  %v8074_v9 = vld [vmem:[#allocation64_spill] sm:$0xff] }
 0xe69   :  { %2533 = vmatprep.subr.mxu1 %v8055_v11  ;;  %3997 = vmatprep.subr.mxu0 %v7884_v58  ;;  %v8075_v11 = vld [vmem:[#allocation70_spill] sm:$0xff] }
 0xe6a   :  { %2534 = vmatpush2.msra.mxu1 %v8056_v13  ;;  %3998 = vmatpush3.msra.mxu0 %v6283_v53  ;;  %v8076_v13 = vld [vmem:[#allocation76_spill] sm:$0xff] }
 0xe6b   :  { %2535 = vmatprep.subr.mxu1 %v8057_v14  ;;  %3999 = vmatprep.subr.mxu0 %v7884_v58  ;;  %v8077_v14 = vld [vmem:[#allocation12_spill] sm:$0xff] }
 0xe6c   :  { %2536 = vmatpush2.msra.mxu1 %v8058_v18  ;;  %4000 = vmatpush3.msra.mxu0 %v6287_v44  ;;  %v8078_v18 = vld [vmem:[#allocation13_spill] sm:$0xff] }
 0xe6d   :  { %4012 = vmatprep.subr.mxu1 %v7884_v58  ;;  %4001 = vmatprep.subr.mxu0 %v7884_v58 }
 0xe6e   :  { %4002 = vmatpush3.msra.mxu0 %v6291_v46 }
 0xe6f   :  { %4003 = vmatprep.subr.mxu0 %v7884_v58 }
 0xe70   :  { %4004 = vmatpush3.msra.mxu0 %v6295_v47 }
 0xe71   :  { %4005 = vmatprep.subr.mxu0 %v7884_v58 }
 0xe72   :  { %4006 = vmatpush3.msra.mxu0 %v6299_v48 }
 0xe73   :  { %4007 = vmatprep.subr.mxu0 %v7884_v58 }
 0xe74   :  { %4008 = vmatpush3.msra.mxu0 %v6303_v43 }
 0xe75   :  { %2544 = vmatprep.subr.mxu0 %v8059_v59  ;;  %v8079_v59 = vld [vmem:[#allocation14_spill] sm:$0xff] }
 0xeed   :  { %v2090_v19 = vpop.f32.mrf.mxu0  ;;  %v2161_v62 = vpop.f32.mrf.mxu1 }
 0xeee   :  { %v2166_v50 = vadd.f32 %v2090_v19, %v8060_v35  ;;  %v2180_v6 = vadd.f32 %v6320_v5, %v2161_v62  ;;  %v8080_v19 = vld [vmem:[#allocation15_spill] sm:$0xff] }
 0xeef   :  { %v2092_v30 = vpop.f32.mrf.mxu0  ;;  %v2163_v0 = vpop.f32.mrf.mxu1  ;;  %v8088_v62 = vld [vmem:[#allocation23_spill] sm:$0xff] }
 0xef0   :  { %v3693_v24 = vmul.f32 -1.442695, %v2166_v50  ;;  %v2167_v38 = vadd.f32 %v2092_v30, %v8061_v16  ;;  %v2181_v4 = vadd.f32 %v6314_v2, %v2163_v0  ;;  %v8081_v50 = vld [vmem:[#allocation16_spill] sm:$0xff]  ;;  %v8083_v30 = vld [vmem:[#allocation18_spill] sm:$0xff]  ;;  %v8090_v0 = vld [vmem:[#allocation25_spill] sm:$0xff] }
 0xef2   :  { %4167 = vpow2.f32 %v3693_v24  ;;  %v3694_v28 = vmul.f32 -1.442695, %v2167_v38  ;;  %v8082_v24 = vld [vmem:[#allocation17_spill] sm:$0xff]  ;;  %v8084_v38 = vld [vmem:[#allocation19_spill] sm:$0xff] }
 0xef4   :  { %4169 = vpow2.f32 %v3694_v28  ;;  %v8085_v28 = vld [vmem:[#allocation20_spill] sm:$0xff] }
 0xeff   :  { %v4168_v60 = vpop.eup %4167 }
 0xf00   :  { %v2174_v61 = vadd.f32 1.0, %v4168_v60  ;;  %v8086_v60 = vld [vmem:[#allocation21_spill] sm:$0xff] }
 0xf01   :  { %v4170_v63 = vpop.eup %4169 }
 0xf02   :  { %4171 = vrcp.f32 %v2174_v61  ;;  %v2175_v1 = vadd.f32 1.0, %v4170_v63  ;;  %v8087_v61 = vld [vmem:[#allocation22_spill] sm:$0xff]  ;;  %v8089_v63 = vld [vmem:[#allocation24_spill] sm:$0xff] }
 0xf04   :  { %4173 = vrcp.f32 %v2175_v1  ;;  %v8091_v1 = vld [vmem:[#allocation26_spill] sm:$0xff] }
 0xf0f   :  { %v4172_v34 = vpop.eup %4171 }
 0xf10   :  { %v2182_v7 = vmul.f32 %v4172_v34, %v2181_v4  ;;  %v8092_v4 = vld [vmem:[#allocation27_spill] sm:$0xff]  ;;  %v8093_v34 = vld [vmem:[#allocation28_spill] sm:$0xff] }
 0xf11   :  { %v4174_v45 = vpop.eup %4173 }
 0xf12   :  { %v2183_v40 = vadd.f32 %v2182_v7, %v2180_v6  ;;  %v2185_v22 = vsub.f32 1.0, %v4174_v45  ;;  %v2187_v52 = vmul.f32 %v4174_v45, %v8062_v51  ;;  %v8094_v6 = vld [vmem:[#allocation29_spill] sm:$0xff]  ;;  %v8095_v7 = vld [vmem:[#allocation30_spill] sm:$0xff]  ;;  %v8097_v45 = vld [vmem:[#allocation32_spill] sm:$0xff] }
 0xf13   :  { %v8101_v51 = vld [vmem:[#allocation36_spill] sm:$0xff] }
 0xf14   :  { %4175 = vtanh.f32 %v2183_v40  ;;  %v8096_v40 = vld [vmem:[#allocation31_spill] sm:$0xff] }
 0xf21   :  { %v4176_v56 = vpop.eup %4175 }
 0xf22   :  { %v2186_v29 = vmul.f32 %v4176_v56, %v2185_v22  ;;  %v8098_v22 = vld [vmem:[#allocation33_spill] sm:$0xff]  ;;  %v8099_v56 = vld [vmem:[#allocation34_spill] sm:$0xff] }
 0xf24   :  { %v6324_v54 = vadd.f32 %v2187_v52, %v2186_v29  ;;  %v8100_v29 = vld [vmem:[#allocation35_spill] sm:$0xff]  ;;  %v8102_v52 = vld [vmem:[#allocation37_spill] sm:$0xff] }
 0xf26   :  { %4010 = vmatmul.mubr.f32.vlgmr.msra.gmra.mxu0 %v6324_v54  ;;  %2537 = vmatprep.mubr.f32.mxu1 %v6324_v54 }
 0xf27   :  { %2608 = vmatprep.mubr.f32.mxu0 %v6324_v54  ;;  %2545 = vmatpush1.msra.mxu0 %v8063_v3  ;;  %v8103_v3 = vld [vmem:[#allocation38_spill] sm:$0xff] }
 0xf28   :  { %2546 = vmatprep.subr.mxu0 %v8064_v55  ;;  %v8104_v55 = vld [vmem:[#allocation39_spill] sm:$0xff] }
 0xf29   :  { %2547 = vmatpush1.msra.mxu0 %v8065_v17  ;;  %v8105_v17 = vld [vmem:[#allocation40_spill] sm:$0xff] }
 0xf2a   :  { %2548 = vmatprep.subr.mxu0 %v8066_v10  ;;  %v8106_v10 = vld [vmem:[#allocation41_spill] sm:$0xff] }
 0xf2b   :  { %2549 = vmatpush1.msra.mxu0 %v8067_v23  ;;  %v8107_v23 = vld [vmem:[#allocation42_spill] sm:$0xff] }
 0xf2c   :  { %2550 = vmatprep.subr.mxu0 %v8068_v27  ;;  %v8108_v27 = vld [vmem:[#allocation43_spill] sm:$0xff] }
 0xf2d   :  { %2551 = vmatpush1.msra.mxu0 %v8069_v49  ;;  %v8109_v49 = vld [vmem:[#allocation44_spill] sm:$0xff] }
 0xf2e   :  { %2552 = vmatprep.subr.mxu0 %v8070_v36  ;;  %v8110_v36 = vld [vmem:[#allocation45_spill] sm:$0xff] }
 0xf2f   :  { %2553 = vmatpush1.msra.mxu0 %v8071_v57  ;;  %v8111_v57 = vld [vmem:[#allocation46_spill] sm:$0xff] }
 0xf30   :  { %2554 = vmatprep.subr.mxu0 %v8072_v12  ;;  %v8112_v12 = vld [vmem:[#allocation47_spill] sm:$0xff] }
 0xf31   :  { %2555 = vmatpush1.msra.mxu0 %v8073_v8  ;;  %v8113_v8 = vld [vmem:[#allocation49_spill] sm:$0xff] }
 0xf32   :  { %2556 = vmatprep.subr.mxu0 %v8074_v9  ;;  %v8114_v9 = vld [vmem:[#allocation52_spill] sm:$0xff] }
 0xf33   :  { %2557 = vmatpush1.msra.mxu0 %v8075_v11  ;;  %v8115_v11 = vld [vmem:[#allocation56_spill] sm:$0xff] }
 0xf34   :  { %2558 = vmatprep.subr.mxu0 %v8076_v13  ;;  %v8116_v13 = vld [vmem:[#allocation60_spill] sm:$0xff] }
 0xf35   :  { %2559 = vmatpush1.msra.mxu0 %v8077_v14  ;;  %v8117_v14 = vld [vmem:[#allocation65_spill] sm:$0xff] }
 0xf36   :  { %2560 = vmatprep.subr.mxu0 %v8078_v18  ;;  %v8118_v18 = vld [vmem:[#allocation71_spill] sm:$0xff] }
 0xf37   :  { %2561 = vmatpush1.msra.mxu0 %v8079_v59  ;;  %v8119_v59 = vld [vmem:[#allocation75_spill] sm:$0xff] }
 0xf38   :  { %2562 = vmatprep.subr.mxu0 %v8080_v19  ;;  %v8120_v19 = vld [vmem:[#allocation80_spill] sm:$0xff] }
 0xf39   :  { %2563 = vmatpush1.msra.mxu0 %v8081_v50  ;;  %v8121_v50 = vld [vmem:[#allocation82_spill] sm:$0xff] }
 0xf3a   :  { %2564 = vmatprep.subr.mxu0 %v8082_v24  ;;  %v8122_v24 = vld [vmem:[#allocation86_spill] sm:$0xff] }
 0xf3b   :  { %2565 = vmatpush1.msra.mxu0 %v8083_v30  ;;  %v8123_v30 = vld [vmem:[#allocation90_spill] sm:$0xff] }
 0xf3c   :  { %2566 = vmatprep.subr.mxu0 %v8084_v38  ;;  %v8124_v38 = vld [vmem:[#allocation94_spill] sm:$0xff] }
 0xf3d   :  { %2567 = vmatpush1.msra.mxu0 %v8085_v28  ;;  %v8125_v28 = vld [vmem:[#allocation96_spill] sm:$0xff] }
 0xf3e   :  { %2568 = vmatprep.subr.mxu0 %v8086_v60 }
 0xf3f   :  { %2569 = vmatpush1.msra.mxu0 %v8087_v61  ;;  %v6395_v61 = vld [vmem:[%s7328_s8] ss:$0 sm:$0xff] }
 0xf40   :  { %2570 = vmatprep.subr.mxu0 %v8088_v62 }
 0xf41   :  { %2571 = vmatpush1.msra.mxu0 %v8089_v63 }
 0xf42   :  { %2572 = vmatprep.subr.mxu0 %v8090_v0 }
 0xf43   :  { %2573 = vmatpush1.msra.mxu0 %v8091_v1  ;;  %v8127_v1 = vld [vmem:[#allocation57_spill] sm:$0xff] }
 0xf44   :  { %2574 = vmatprep.subr.mxu0 %v8092_v4  ;;  %vm543_vm10 = vcmp.eq.s32.totalorder %v8127_v1, 0 }
 0xf45   :  { %2575 = vmatpush1.msra.mxu0 %v8093_v34 }
 0xf46   :  { %2576 = vmatprep.subr.mxu0 %v8094_v6 }
 0xf47   :  { %2577 = vmatpush2.msra.mxu0 %v8095_v7  ;;  %v6405_v7 = vsel %vm543_vm10, -1e+30, %v7884_v58 }
 0xf48   :  { %2578 = vmatprep.subr.mxu0 %v8096_v40  ;;  %v8128_v40 = vld [vmem:[#allocation61_spill] sm:$0xff] }
 0xf49   :  { %2579 = vmatpush2.msra.mxu0 %v8097_v45  ;;  %v6409_v45 = vadd.f32 %v8128_v40, %v6405_v7 }
 0xf4a   :  { %2580 = vmatprep.subr.mxu0 %v8098_v22 }
 0xf4b   :  { %2581 = vmatpush2.msra.mxu0 %v8099_v56  ;;  %8129 = vst [vmem:[#allocation50_spill] sm:$0xff] %v6409_v45 }
 0xf4c   :  { %2582 = vmatprep.subr.mxu0 %v8100_v29 }
 0xf4d   :  { %2583 = vmatpush2.msra.mxu0 %v8101_v51 }
 0xf4e   :  { %2584 = vmatprep.subr.mxu0 %v8102_v52 }
 0xf4f   :  { %2585 = vmatpush2.msra.mxu0 %v8103_v3 }
 0xf50   :  { %2586 = vmatprep.subr.mxu0 %v8104_v55 }
 0xf51   :  { %2587 = vmatpush2.msra.mxu0 %v8105_v17 }
 0xf52   :  { %2588 = vmatprep.subr.mxu0 %v8106_v10 }
 0xf53   :  { %2589 = vmatpush2.msra.mxu0 %v8107_v23 }
 0xf54   :  { %2590 = vmatprep.subr.mxu0 %v8108_v27 }
 0xf55   :  { %2591 = vmatpush2.msra.mxu0 %v8109_v49 }
 0xf56   :  { %2592 = vmatprep.subr.mxu0 %v8110_v36 }
 0xf57   :  { %2593 = vmatpush2.msra.mxu0 %v8111_v57 }
 0xf58   :  { %2594 = vmatprep.subr.mxu0 %v8112_v12 }
 0xf59   :  { %2595 = vmatpush2.msra.mxu0 %v8113_v8 }
 0xf5a   :  { %2596 = vmatprep.subr.mxu0 %v8114_v9 }
 0xf5b   :  { %2597 = vmatpush2.msra.mxu0 %v8115_v11 }
 0xf5c   :  { %2598 = vmatprep.subr.mxu0 %v8116_v13 }
 0xf5d   :  { %2599 = vmatpush2.msra.mxu0 %v8117_v14 }
 0xf5e   :  { %2600 = vmatprep.subr.mxu0 %v8118_v18 }
 0xf5f   :  { %2601 = vmatpush2.msra.mxu0 %v8119_v59 }
 0xf60   :  { %2602 = vmatprep.subr.mxu0 %v8120_v19 }
 0xf61   :  { %2603 = vmatpush2.msra.mxu0 %v8121_v50 }
 0xf62   :  { %2604 = vmatprep.subr.mxu0 %v8122_v24 }
 0xf63   :  { %2605 = vmatpush2.msra.mxu0 %v8123_v30 }
 0xf64   :  { %2606 = vmatprep.subr.mxu0 %v8124_v38 }
 0xf65   :  { %2607 = vmatpush2.msra.mxu0 %v8125_v28 }
 0xfe6   :  { %v2271_v60 = vpop.f32.mrf.mxu0 }
 0xfe7   :  { %v6398_v62 = vadd.f32 %v6395_v61, %v2271_v60 }
 0xfe8   :  { %v4011_v63 = vpop.f32.mrf.mxu0 }
 0xfe9   :  { %8126 = vst [vmem:[#allocation48_spill] sm:$0xff] %v6398_v62  ;;  %2275 = vmax.xlane.f32.xlu0 %v6398_v62 }
0x1072   :  { %v2276_v0 = vpop.xlane.xlu0 %2275 }
0x1073   :  { %vm2277_vm9 = vcmp.eq.f32.partialorder %v6398_v62, %v2276_v0  ;;  %v6658_v62 = vld [vmem:[#allocation6 + $0x58] sm:$0xff] }
0x1074   :  { %v2278_v4 = vsel %vm2277_vm9, %v8127_v1, 128  ;;  %8164 = vst [vmem:[#allocation17_spill] sm:$0xff] %v6658_v62 }
0x1075   :  { %v2280_v34 = vshra.s32 %v2278_v4, 16  ;;  %v2279_v22 = vand.u32 65535, %v2278_v4 }
0x1077   :  { %v2282_v6 = vcvt.s32.f32 %v2280_v34  ;;  %v2281_v29 = vcvt.s32.f32 %v2279_v22 }
0x1079   :  { %2283 = vmin.xlane.f32.xlu1 %v2282_v6 }
0x107d   :  { %947 = vmax.xlane.f32.xlu1 %v6409_v45 }
0x1102   :  { %v2284_v56 = vpop.xlane.xlu1 %2283 }
0x1103   :  { %vm2285_vm11 = vcmp.eq.f32.partialorder %v2282_v6, %v2284_v56  ;;  %v2290_v10 = vcvt.f32.s32 %v2284_v56 }
0x1104   :  { %v2286_v51 = vsel %vm2285_vm11, %v2281_v29, inf }
0x1105   :  { %2287 = vmin.xlane.f32.xlu0 %v2286_v51  ;;  %v2291_v27 = vshll.u32 %v2290_v10, 16 }
0x1106   :  { %v6412_v52 = vpop.xlane.xlu1 %947 }
0x1107   :  { %8130 = vst [vmem:[#allocation54_spill] sm:$0xff] %v6412_v52  ;;  %vm949_vm12 = vcmp.eq.f32.partialorder %v6409_v45, %v6412_v52  ;;  %v6650_v45 = vld [vmem:[#allocation6 + $0x60] sm:$0xff]  ;;  %v6652_v52 = vld [vmem:[#allocation6 + $0x70] sm:$0xff] }
0x1108   :  { %v950_v3 = vsel %vm949_vm12, %v8127_v1, 128  ;;  %8163 = vst [vmem:[#allocation16_spill] sm:$0xff] %v6652_v52 }
0x1109   :  { %v952_v55 = vshra.s32 %v950_v3, 16  ;;  %v951_v57 = vand.u32 65535, %v950_v3 }
0x110b   :  { %v954_v17 = vcvt.s32.f32 %v952_v55  ;;  %v953_v11 = vcvt.s32.f32 %v951_v57 }
0x110d   :  { %955 = vmin.xlane.f32.xlu1 %v954_v17 }
0x118e   :  { %v2288_v23 = vpop.xlane.xlu0 %2287 }
0x118f   :  { %v2289_v49 = vcvt.f32.s32 %v2288_v23 }
0x1191   :  { %v2292_v36 = vadd.s32 %v2291_v27, %v2289_v49 }
0x1193   :  { %v2293_v12 = vcvt.s32.f32 %v2292_v36 }
0x1195   :  { %v2342_v8 = vmul.f32 %v6173_v15, %v2293_v12  ;;  %v6504_v12 = vld [vmem:[#allocation6 + $0x1e8] sm:$0xff] }
0x1196   :  { %v956_v9 = vpop.xlane.xlu1 %955  ;;  %2922 = vmatprep.subr.mxu0 %v6504_v12 }
0x1197   :  { %v2343_v13 = vadd.f32 %v6176_v20, %v2342_v8  ;;  %vm957_vm14 = vcmp.eq.f32.partialorder %v954_v17, %v956_v9  ;;  %v962_v15 = vcvt.f32.s32 %v956_v9  ;;  %v6506_v8 = vld [vmem:[#allocation6 + $0x1f8] sm:$0xff]  ;;  %v6512_v9 = vld [vmem:[#allocation6 + $0x1f0] sm:$0xff] }
0x1198   :  { %v958_v14 = vsel %vm957_vm14, %v953_v11, inf  ;;  %8138 = vst [vmem:[#allocation67_spill] sm:$0xff] %v6506_v8  ;;  %8139 = vst [vmem:[#allocation84_spill] sm:$0xff] %v6512_v9  ;;  %v6514_v11 = vld [vmem:[#allocation6 + $0x1c8] sm:$0xff] }
0x1199   :  { %959 = vmin.xlane.f32.xlu1 %v958_v14  ;;  %v2344_v18 = vmax.f32 %v2343_v13, 0.0  ;;  %v6516_v13 = vld [vmem:[#allocation6 + $0x1d8] sm:$0xff]  ;;  %v6520_v14 = vld [vmem:[#allocation6 + $0x1c0] sm:$0xff] }
0x119a   :  { %8140 = vst [vmem:[#allocation88_spill] sm:$0xff] %v6516_v13 }
0x119b   :  { %2538 = vmatmul.mubr.f32.vlgmr.msra.gmra.mxu1 %v2344_v18  ;;  %2609 = vmatmul.mubr.f32.vlgmr.msra.gmra.mxu0 %v2344_v18  ;;  %v6522_v18 = vld [vmem:[#allocation6 + $0x1d0] sm:$0xff] }
0x119c   :  { %4013 = vmatpush3.msra.mxu1 %v6245_v21  ;;  %4044 = vmatprep.mubr.msk.f32.mxu1 %vm4345_vm0, %v7884_v58  ;;  %v8131_v21 = vld [vmem:[#allocation51_spill] sm:$0xff]  ;;  %8141 = vst [vmem:[#allocation92_spill] sm:$0xff] %v6522_v18 }
0x119d   :  { %4014 = vmatprep.subr.mxu1 %v7884_v58  ;;  %vm89_vm15 = vcmp.eq.s32.totalorder %v8131_v21, %v8127_v1  ;;  %v6530_v21 = vld [vmem:[#allocation6 + $0x1a0] sm:$0xff] }
0x119e   :  { %4015 = vmatpush3.msra.mxu1 %v6249_v25  ;;  %v963_v25 = vshll.u32 %v962_v15, 16  ;;  %v6524_v15 = vld [vmem:[#allocation6 + $0x1a8] sm:$0xff] }
0x119f   :  { %4016 = vmatprep.subr.mxu1 %v7884_v58 }
0x11a0   :  { %4017 = vmatpush3.msra.mxu1 %v6253_v26 }
0x11a1   :  { %4018 = vmatprep.subr.mxu1 %v7884_v58 }
0x11a2   :  { %4019 = vmatpush3.msra.mxu1 %v6257_v31 }
0x11a3   :  { %4020 = vmatprep.subr.mxu1 %v7884_v58 }
0x11a4   :  { %4021 = vmatpush3.msra.mxu1 %v6261_v32  ;;  %v6465_v32 = vsel %vm89_vm15, 1.0, %v7884_v58 }
0x11a5   :  { %4022 = vmatprep.subr.mxu1 %v7884_v58  ;;  %8132 = vst [vmem:[#allocation58_spill] sm:$0xff] %v6465_v32 }
0x11a6   :  { %4023 = vmatpush3.msra.mxu1 %v6265_v33 }
0x11a7   :  { %4024 = vmatprep.subr.mxu1 %v7884_v58 }
0x11a8   :  { %4025 = vmatpush3.msra.mxu1 %v6269_v37 }
0x11a9   :  { %4026 = vmatprep.subr.mxu1 %v7884_v58 }
0x11aa   :  { %4027 = vmatpush3.msra.mxu1 %v6273_v39 }
0x11ab   :  { %4028 = vmatprep.subr.mxu1 %v7884_v58 }
0x11ac   :  { %4029 = vmatpush3.msra.mxu1 %v6275_v41  ;;  %v8134_v41 = vld [vmem:[#allocation69_spill] sm:$0xff] }
0x11ad   :  { %4030 = vmatprep.subr.mxu1 %v7884_v58 }
0x11ae   :  { %4031 = vmatpush3.msra.mxu1 %v6279_v42 }
0x11af   :  { %4032 = vmatprep.subr.mxu1 %v7884_v58 }
0x11b0   :  { %4033 = vmatpush3.msra.mxu1 %v6283_v53 }
0x11b1   :  { %4034 = vmatprep.subr.mxu1 %v7884_v58 }
0x11b2   :  { %4035 = vmatpush3.msra.mxu1 %v6287_v44 }
0x11b3   :  { %4036 = vmatprep.subr.mxu1 %v7884_v58 }
0x11b4   :  { %4037 = vmatpush3.msra.mxu1 %v6291_v46 }
0x11b5   :  { %4038 = vmatprep.subr.mxu1 %v7884_v58 }
0x11b6   :  { %4039 = vmatpush3.msra.mxu1 %v6295_v47 }
0x11b7   :  { %4040 = vmatprep.subr.mxu1 %v7884_v58 }
0x11b8   :  { %4041 = vmatpush3.msra.mxu1 %v6299_v48 }
0x11b9   :  { %4042 = vmatprep.subr.mxu1 %v7884_v58 }
0x11ba   :  { %4043 = vmatpush3.msra.mxu1 %v6303_v43 }
0x11bb   :  { %2993 = vmatprep.subr.mxu1 %v6506_v8 }
0x1222   :  { %v960_v20 = vpop.xlane.xlu1 %959 }
0x1223   :  { %v961_v26 = vcvt.f32.s32 %v960_v20  ;;  %v6528_v20 = vld [vmem:[#allocation6 + $0x1b8] sm:$0xff] }
0x1224   :  { %8142 = vst [vmem:[#allocation95_spill] sm:$0xff] %v6528_v20 }
0x1225   :  { %v964_v31 = vadd.s32 %v963_v25, %v961_v26  ;;  %v6532_v25 = vld [vmem:[#allocation6 + $0x1b0] sm:$0xff]  ;;  %v6536_v26 = vld [vmem:[#allocation6 + $0x188] sm:$0xff] }
0x1226   :  { %8143 = vst [vmem:[#allocation77_spill] sm:$0xff] %v6532_v25 }
0x1227   :  { %v965_v33 = vcvt.s32.f32 %v964_v31  ;;  %vm993_vm1 = vcmp.eq.s32.totalorder %v8127_v1, %v964_v31  ;;  %v6538_v31 = vld [vmem:[#allocation6 + $0x198] sm:$0xff] }
0x1228   :  { %v6469_v37 = vsel %vm993_vm1, -1e+30, %v6405_v7  ;;  %8144 = vst [vmem:[#allocation72_spill] sm:$0xff] %v6538_v31 }
0x1229   :  { %8133 = vst [vmem:[#allocation62_spill] sm:$0xff] %v6469_v37  ;;  %v974_v39 = vmul.f32 %v6465_v32, %v965_v33  ;;  %v6474_v42 = vadd.f32 %v8134_v41, %v6469_v37  ;;  %v6542_v33 = vld [vmem:[#allocation6 + $0x180] sm:$0xff]  ;;  %v6548_v41 = vld [vmem:[#allocation6 + $0x168] sm:$0xff]  ;;  %v6802_v32 = vld [vmem:[#allocation6 + $0x2d8] sm:$0xff] }
0x122a   :  { %8191 = vst [vmem:[#allocation44_spill] sm:$0xff] %v6802_v32  ;;  %v6808_v37 = vld [vmem:[#allocation6 + $0x2d0] sm:$0xff] }
0x122b   :  { %8135 = vst [vmem:[#allocation68_spill] sm:$0xff] %v6474_v42  ;;  %v976_v53 = vsel %vm975_vm2, %v974_v39, 0.0  ;;  %1397 = vmax.xlane.f32.xlu1 %v6474_v42  ;;  %v6544_v39 = vld [vmem:[#allocation6 + $0x190] sm:$0xff]  ;;  %8193 = vst [vmem:[#allocation46_spill] sm:$0xff] %v6808_v37 }
0x122c   :  { %v977_v44 = vrot.slane %v976_v53, 4  ;;  %8145 = vst [vmem:[#allocation79_spill] sm:$0xff] %v6544_v39 }
0x122e   :  { %v978_v46 = vadd.f32 %v977_v44, %v976_v53  ;;  %v6550_v53 = vld [vmem:[#allocation6 + $0x178] sm:$0xff]  ;;  %v6554_v44 = vld [vmem:[#allocation6 + $0x160] sm:$0xff] }
0x122f   :  { %8146 = vst [vmem:[#allocation66_spill] sm:$0xff] %v6550_v53 }
0x1230   :  { %v979_v47 = vrot.slane %v978_v46, 2 }
0x1232   :  { %v980_v48 = vadd.f32 %v979_v47, %v978_v46  ;;  %v6556_v46 = vld [vmem:[#allocation6 + $0x170] sm:$0xff]  ;;  %v6560_v47 = vld [vmem:[#allocation6 + $0x148] sm:$0xff] }
0x1233   :  { %8147 = vst [vmem:[#allocation81_spill] sm:$0xff] %v6556_v46 }
0x1234   :  { %v981_v43 = vrot.slane %v980_v48, 1 }
0x1236   :  { %v982_v59 = vadd.f32 %v981_v43, %v980_v48  ;;  %v6562_v48 = vld [vmem:[#allocation6 + $0x158] sm:$0xff]  ;;  %v6566_v43 = vld [vmem:[#allocation6 + $0x140] sm:$0xff] }
0x1237   :  { %8148 = vst [vmem:[#allocation83_spill] sm:$0xff] %v6562_v48 }
0x1238   :  { %983 = vst.msk [vmem:[%s7329_s9 + $0x1] sm:$0x1] %vm521_vm13, %v982_v59  ;;  %v6568_v59 = vld [vmem:[#allocation6 + $0x150] sm:$0xff] }
0x1239   :  { %8149 = vst [vmem:[#allocation85_spill] sm:$0xff] %v6568_v59 }
0x125b   :  { %v2539_v19 = vpop.f32.mrf.mxu1  ;;  %v2610_v0 = vpop.f32.mrf.mxu0 }
0x125c   :  { %v2615_v50 = vadd.f32 %v2539_v19, %v8060_v35  ;;  %v2629_v22 = vadd.f32 %v6320_v5, %v2610_v0  ;;  %v6572_v19 = vld [vmem:[#allocation6 + $0x128] sm:$0xff]  ;;  %v6796_v35 = vld [vmem:[#allocation6 + $0x2f0] sm:$0xff] }
0x125d   :  { %v2541_v30 = vpop.f32.mrf.mxu1  ;;  %v2612_v34 = vpop.f32.mrf.mxu0  ;;  %v6596_v0 = vld [vmem:[#allocation6 + $0xe8] sm:$0xff]  ;;  %8189 = vst [vmem:[#allocation42_spill] sm:$0xff] %v6796_v35 }
0x125e   :  { %v3695_v24 = vmul.f32 -1.442695, %v2615_v50  ;;  %v2616_v38 = vadd.f32 %v2541_v30, %v8061_v16  ;;  %v2630_v7 = vadd.f32 %v6314_v2, %v2612_v34  ;;  %v6574_v50 = vld [vmem:[#allocation6 + $0x138] sm:$0xff]  ;;  %v6580_v30 = vld [vmem:[#allocation6 + $0x130] sm:$0xff]  ;;  %v6602_v34 = vld [vmem:[#allocation6 + $0xe0] sm:$0xff] }
0x125f   :  { %8150 = vst [vmem:[#allocation87_spill] sm:$0xff] %v6574_v50  ;;  %8151 = vst [vmem:[#allocation89_spill] sm:$0xff] %v6580_v30  ;;  %v6790_v16 = vld [vmem:[#allocation6 + $0x2f8] sm:$0xff] }
0x1260   :  { %4177 = vpow2.f32 %v3695_v24  ;;  %v3696_v28 = vmul.f32 -1.442695, %v2616_v38  ;;  %v6578_v24 = vld [vmem:[#allocation6 + $0x120] sm:$0xff]  ;;  %v6584_v38 = vld [vmem:[#allocation6 + $0x108] sm:$0xff]  ;;  %8187 = vst [vmem:[#allocation40_spill] sm:$0xff] %v6790_v16 }
0x1262   :  { %4179 = vpow2.f32 %v3696_v28  ;;  %v6586_v28 = vld [vmem:[#allocation6 + $0x118] sm:$0xff] }
0x1263   :  { %8152 = vst [vmem:[#allocation91_spill] sm:$0xff] %v6586_v28 }
0x126d   :  { %v4178_v60 = vpop.eup %4177 }
0x126e   :  { %v2623_v63 = vadd.f32 1.0, %v4178_v60  ;;  %v6590_v60 = vld [vmem:[#allocation6 + $0x100] sm:$0xff] }
0x126f   :  { %v4180_v4 = vpop.eup %4179 }
0x1270   :  { %4181 = vrcp.f32 %v2623_v63  ;;  %v2624_v6 = vadd.f32 1.0, %v4180_v4  ;;  %v6592_v63 = vld [vmem:[#allocation6 + $0x110] sm:$0xff]  ;;  %v6598_v4 = vld [vmem:[#allocation6 + $0xf8] sm:$0xff] }
0x1271   :  { %8153 = vst [vmem:[#allocation93_spill] sm:$0xff] %v6592_v63  ;;  %8154 = vst [vmem:[#allocation63_spill] sm:$0xff] %v6598_v4 }
0x1272   :  { %4183 = vrcp.f32 %v2624_v6  ;;  %v6604_v6 = vld [vmem:[#allocation6 + $0xf0] sm:$0xff] }
0x1273   :  { %8155 = vst [vmem:[#allocation59_spill] sm:$0xff] %v6604_v6 }
0x127d   :  { %v4182_v40 = vpop.eup %4181 }
0x127e   :  { %v2631_v56 = vmul.f32 %v4182_v40, %v2630_v7  ;;  %v6608_v7 = vld [vmem:[#allocation6 + $0xc8] sm:$0xff]  ;;  %v6610_v40 = vld [vmem:[#allocation6 + $0xd8] sm:$0xff] }
0x127f   :  { %v4184_v51 = vpop.eup %4183  ;;  %8156 = vst [vmem:[#allocation64_spill] sm:$0xff] %v6610_v40 }
0x1280   :  { %v2632_v29 = vadd.f32 %v2631_v56, %v2629_v22  ;;  %v2634_v3 = vsub.f32 1.0, %v4184_v51  ;;  %v2636_v10 = vmul.f32 %v4184_v51, %v6324_v54  ;;  %v6614_v22 = vld [vmem:[#allocation6 + $0xc0] sm:$0xff]  ;;  %v6616_v56 = vld [vmem:[#allocation6 + $0xd0] sm:$0xff]  ;;  %v6622_v51 = vld [vmem:[#allocation6 + $0xb8] sm:$0xff] }
0x1281   :  { %8157 = vst [vmem:[#allocation70_spill] sm:$0xff] %v6616_v56  ;;  %8158 = vst [vmem:[#allocation76_spill] sm:$0xff] %v6622_v51 }
0x1282   :  { %4185 = vtanh.f32 %v2632_v29  ;;  %v6620_v29 = vld [vmem:[#allocation6 + $0xa8] sm:$0xff] }
0x128f   :  { %v4186_v55 = vpop.eup %4185 }
0x1290   :  { %v2635_v17 = vmul.f32 %v4186_v55, %v2634_v3  ;;  %v6626_v3 = vld [vmem:[#allocation6 + $0xa0] sm:$0xff]  ;;  %v6628_v55 = vld [vmem:[#allocation6 + $0xb0] sm:$0xff] }
0x1291   :  { %8159 = vst [vmem:[#allocation12_spill] sm:$0xff] %v6628_v55 }
0x1292   :  { %v6487_v23 = vadd.f32 %v2636_v10, %v2635_v17  ;;  %v6632_v17 = vld [vmem:[#allocation6 + $0x88] sm:$0xff]  ;;  %v6634_v10 = vld [vmem:[#allocation6 + $0x98] sm:$0xff] }
0x1293   :  { %8160 = vst [vmem:[#allocation13_spill] sm:$0xff] %v6634_v10 }
0x1294   :  { %8136 = vst [vmem:[#allocation73_spill] sm:$0xff] %v6487_v23  ;;  %4045 = vmatmul.mubr.f32.vlgmr.msra.gmra.mxu1 %v6487_v23  ;;  %2986 = vmatprep.mubr.f32.mxu0 %v6487_v23 }
0x1295   :  { %3057 = vmatprep.mubr.f32.mxu1 %v6487_v23  ;;  %2994 = vmatpush1.msra.mxu1 %v6512_v9  ;;  %v6778_v9 = vld [vmem:[#allocation6 + $0x318] sm:$0xff]  ;;  %v6784_v23 = vld [vmem:[#allocation6 + $0x310] sm:$0xff] }
0x1296   :  { %2995 = vmatprep.subr.mxu1 %v6516_v13  ;;  %v6772_v13 = vld [vmem:[#allocation6 + $0x330] sm:$0xff]  ;;  %8184 = vst [vmem:[#allocation37_spill] sm:$0xff] %v6778_v9  ;;  %8185 = vst [vmem:[#allocation38_spill] sm:$0xff] %v6784_v23 }
0x1297   :  { %2996 = vmatpush1.msra.mxu1 %v6522_v18  ;;  %v6766_v18 = vld [vmem:[#allocation6 + $0x338] sm:$0xff]  ;;  %8183 = vst [vmem:[#allocation36_spill] sm:$0xff] %v6772_v13 }
0x1298   :  { %2997 = vmatprep.subr.mxu1 %v6528_v20  ;;  %v6760_v20 = vld [vmem:[#allocation6 + $0x350] sm:$0xff]  ;;  %8182 = vst [vmem:[#allocation35_spill] sm:$0xff] %v6766_v18 }
0x1299   :  { %2998 = vmatpush1.msra.mxu1 %v6532_v25  ;;  %v6754_v25 = vld [vmem:[#allocation6 + $0x358] sm:$0xff]  ;;  %8181 = vst [vmem:[#allocation34_spill] sm:$0xff] %v6760_v20 }
0x129a   :  { %2999 = vmatprep.subr.mxu1 %v6538_v31  ;;  %v6748_v31 = vld [vmem:[#allocation6 + $0x370] sm:$0xff]  ;;  %8180 = vst [vmem:[#allocation33_spill] sm:$0xff] %v6754_v25 }
0x129b   :  { %3000 = vmatpush1.msra.mxu1 %v6544_v39  ;;  %v6742_v39 = vld [vmem:[#allocation6 + $0x378] sm:$0xff]  ;;  %8179 = vst [vmem:[#allocation32_spill] sm:$0xff] %v6748_v31 }
0x129c   :  { %3001 = vmatprep.subr.mxu1 %v6550_v53  ;;  %v6736_v53 = vld [vmem:[#allocation6 + $0x390] sm:$0xff]  ;;  %8178 = vst [vmem:[#allocation31_spill] sm:$0xff] %v6742_v39 }
0x129d   :  { %3002 = vmatpush1.msra.mxu1 %v6556_v46  ;;  %v6730_v46 = vld [vmem:[#allocation6 + $0x398] sm:$0xff]  ;;  %8177 = vst [vmem:[#allocation30_spill] sm:$0xff] %v6736_v53 }
0x129e   :  { %3003 = vmatprep.subr.mxu1 %v6562_v48  ;;  %v6724_v48 = vld [vmem:[#allocation6 + $0x3b0] sm:$0xff]  ;;  %8176 = vst [vmem:[#allocation29_spill] sm:$0xff] %v6730_v46 }
0x129f   :  { %3004 = vmatpush1.msra.mxu1 %v6568_v59  ;;  %v6718_v59 = vld [vmem:[#allocation6 + $0x3b8] sm:$0xff]  ;;  %8175 = vst [vmem:[#allocation28_spill] sm:$0xff] %v6724_v48 }
0x12a0   :  { %3005 = vmatprep.subr.mxu1 %v6574_v50  ;;  %v6712_v50 = vld [vmem:[#allocation6 + $0x3d0] sm:$0xff]  ;;  %8174 = vst [vmem:[#allocation27_spill] sm:$0xff] %v6718_v59 }
0x12a1   :  { %3006 = vmatpush1.msra.mxu1 %v6580_v30  ;;  %v6706_v30 = vld [vmem:[#allocation6 + $0x3d8] sm:$0xff]  ;;  %8173 = vst [vmem:[#allocation26_spill] sm:$0xff] %v6712_v50 }
0x12a2   :  { %3007 = vmatprep.subr.mxu1 %v6586_v28  ;;  %v6700_v28 = vld [vmem:[#allocation6 + $0x3f0] sm:$0xff]  ;;  %8172 = vst [vmem:[#allocation25_spill] sm:$0xff] %v6706_v30 }
0x12a3   :  { %3008 = vmatpush1.msra.mxu1 %v6592_v63  ;;  %v6694_v63 = vld [vmem:[#allocation6 + $0x3f8] sm:$0xff]  ;;  %8171 = vst [vmem:[#allocation24_spill] sm:$0xff] %v6700_v28 }
0x12a4   :  { %3009 = vmatprep.subr.mxu1 %v6598_v4  ;;  %v6688_v4 = vld [vmem:[#allocation6 + $0x10] sm:$0xff]  ;;  %8170 = vst [vmem:[#allocation23_spill] sm:$0xff] %v6694_v63 }
0x12a5   :  { %3010 = vmatpush1.msra.mxu1 %v6604_v6  ;;  %v6682_v6 = vld [vmem:[#allocation6 + $0x18] sm:$0xff]  ;;  %8169 = vst [vmem:[#allocation22_spill] sm:$0xff] %v6688_v4 }
0x12a6   :  { %3011 = vmatprep.subr.mxu1 %v6610_v40  ;;  %v6676_v40 = vld [vmem:[#allocation6 + $0x30] sm:$0xff]  ;;  %8168 = vst [vmem:[#allocation21_spill] sm:$0xff] %v6682_v6 }
0x12a7   :  { %3012 = vmatpush1.msra.mxu1 %v6616_v56  ;;  %v6670_v56 = vld [vmem:[#allocation6 + $0x38] sm:$0xff]  ;;  %8167 = vst [vmem:[#allocation20_spill] sm:$0xff] %v6676_v40 }
0x12a8   :  { %3013 = vmatprep.subr.mxu1 %v6622_v51  ;;  %v6664_v51 = vld [vmem:[#allocation6 + $0x50] sm:$0xff]  ;;  %8166 = vst [vmem:[#allocation19_spill] sm:$0xff] %v6670_v56 }
0x12a9   :  { %3014 = vmatpush1.msra.mxu1 %v6628_v55  ;;  %v6662_v55 = vld [vmem:[#allocation6 + $0x40] sm:$0xff]  ;;  %8165 = vst [vmem:[#allocation18_spill] sm:$0xff] %v6664_v51 }
0x12aa   :  { %3015 = vmatprep.subr.mxu1 %v6634_v10  ;;  %v6668_v10 = vld [vmem:[#allocation6 + $0x28] sm:$0xff] }
0x1354   :  { %v2720_v2 = vpop.f32.mrf.mxu1 }
0x1355   :  { %v6493_v5 = vadd.f32 %v6395_v61, %v2720_v2  ;;  %v6508_v61 = vld [vmem:[#allocation6 + $0x1e0] sm:$0xff] }
0x1356   :  { %v4046_v27 = vpop.f32.mrf.mxu1  ;;  %2923 = vmatpush1.msra.mxu0 %v6508_v61  ;;  %v6638_v2 = vld [vmem:[#allocation6 + $0x80] sm:$0xff] }
0x1357   :  { %8137 = vst [vmem:[#allocation78_spill] sm:$0xff] %v6493_v5  ;;  %2724 = vmax.xlane.f32.xlu0 %v6493_v5  ;;  %2924 = vmatprep.subr.mxu0 %v6514_v11  ;;  %v6640_v27 = vld [vmem:[#allocation6 + $0x90] sm:$0xff] }
0x1358   :  { %2925 = vmatpush1.msra.mxu0 %v6520_v14  ;;  %8161 = vst [vmem:[#allocation14_spill] sm:$0xff] %v6640_v27  ;;  %3016 = vmatpush1.msra.mxu1 %v6640_v27  ;;  %v6674_v27 = vld [vmem:[#allocation6 + $0x20] sm:$0xff] }
0x1359   :  { %2926 = vmatprep.subr.mxu0 %v6524_v15 }
0x135a   :  { %2927 = vmatpush1.msra.mxu0 %v6530_v21 }
0x135b   :  { %2928 = vmatprep.subr.mxu0 %v6536_v26 }
0x135c   :  { %2929 = vmatpush1.msra.mxu0 %v6542_v33 }
0x135d   :  { %2930 = vmatprep.subr.mxu0 %v6548_v41 }
0x135e   :  { %2931 = vmatpush1.msra.mxu0 %v6554_v44 }
0x135f   :  { %2932 = vmatprep.subr.mxu0 %v6560_v47 }
0x1360   :  { %2933 = vmatpush1.msra.mxu0 %v6566_v43 }
0x1361   :  { %2934 = vmatprep.subr.mxu0 %v6572_v19 }
0x1362   :  { %2935 = vmatpush1.msra.mxu0 %v6578_v24 }
0x1363   :  { %2936 = vmatprep.subr.mxu0 %v6584_v38 }
0x1364   :  { %2937 = vmatpush1.msra.mxu0 %v6590_v60 }
0x1365   :  { %2938 = vmatprep.subr.mxu0 %v6596_v0 }
0x1366   :  { %2939 = vmatpush1.msra.mxu0 %v6602_v34 }
0x1367   :  { %2940 = vmatprep.subr.mxu0 %v6608_v7 }
0x1368   :  { %2941 = vmatpush1.msra.mxu0 %v6614_v22 }
0x1369   :  { %2942 = vmatprep.subr.mxu0 %v6620_v29 }
0x136a   :  { %2943 = vmatpush1.msra.mxu0 %v6626_v3 }
0x136b   :  { %2944 = vmatprep.subr.mxu0 %v6632_v17 }
0x136c   :  { %2945 = vmatpush1.msra.mxu0 %v6638_v2 }
0x13e0   :  { %v2725_v49 = vpop.xlane.xlu0 %2724 }
0x13e1   :  { %vm2726_vm3 = vcmp.eq.f32.partialorder %v6493_v5, %v2725_v49  ;;  %v6644_v49 = vld [vmem:[#allocation6 + $0x68] sm:$0xff] }
0x13e2   :  { %v6498_v54 = vsel %vm2726_vm3, %v8127_v1, 128  ;;  %v6656_v5 = vld [vmem:[#allocation6 + $0x48] sm:$0xff]  ;;  %2946 = vmatprep.subr.mxu0 %v6644_v49 }
0x13e3   :  { %v2729_v36 = vshra.s32 %v6498_v54, 16  ;;  %2947 = vmatpush1.msra.mxu0 %v6650_v45 }
0x13e4   :  { %2948 = vmatprep.subr.mxu0 %v6656_v5 }
0x13e5   :  { %v6501_v57 = vcvt.s32.f32 %v2729_v36  ;;  %v6646_v36 = vld [vmem:[#allocation6 + $0x78] sm:$0xff]  ;;  %2949 = vmatpush1.msra.mxu0 %v6662_v55 }
0x13e6   :  { %8162 = vst [vmem:[#allocation15_spill] sm:$0xff] %v6646_v36  ;;  %3017 = vmatprep.subr.mxu1 %v6646_v36  ;;  %v6680_v36 = vld [vmem:[#allocation6 + $0x8] sm:$0xff]  ;;  %2950 = vmatprep.subr.mxu0 %v6668_v10 }
0x13e7   :  { %2732 = vmin.xlane.f32.xlu0 %v6501_v57  ;;  %3018 = vmatpush1.msra.mxu1 %v6652_v52  ;;  %v6686_v52 = vld [vmem:[#allocation6] sm:$0xff] }
0x13e8   :  { %3019 = vmatprep.subr.mxu1 %v6658_v62  ;;  %2951 = vmatpush1.msra.mxu0 %v6674_v27  ;;  %v6692_v62 = vld [vmem:[#allocation6 + $0x3e8] sm:$0xff] }
0x13e9   :  { %3020 = vmatpush1.msra.mxu1 %v6664_v51  ;;  %2952 = vmatprep.subr.mxu0 %v6680_v36  ;;  %v6698_v51 = vld [vmem:[#allocation6 + $0x3e0] sm:$0xff] }
0x13ea   :  { %3021 = vmatprep.subr.mxu1 %v6670_v56  ;;  %2953 = vmatpush1.msra.mxu0 %v6686_v52  ;;  %v6704_v56 = vld [vmem:[#allocation6 + $0x3c8] sm:$0xff] }
0x13eb   :  { %3022 = vmatpush1.msra.mxu1 %v6676_v40  ;;  %2954 = vmatprep.subr.mxu0 %v6692_v62  ;;  %v6710_v40 = vld [vmem:[#allocation6 + $0x3c0] sm:$0xff] }
0x13ec   :  { %3023 = vmatprep.subr.mxu1 %v6682_v6  ;;  %2955 = vmatpush2.msra.mxu0 %v6698_v51  ;;  %v6716_v6 = vld [vmem:[#allocation6 + $0x3a8] sm:$0xff] }
0x13ed   :  { %3024 = vmatpush1.msra.mxu1 %v6688_v4  ;;  %2956 = vmatprep.subr.mxu0 %v6704_v56  ;;  %v6722_v4 = vld [vmem:[#allocation6 + $0x3a0] sm:$0xff] }
0x13ee   :  { %3025 = vmatprep.subr.mxu1 %v6694_v63  ;;  %2957 = vmatpush2.msra.mxu0 %v6710_v40  ;;  %v6728_v63 = vld [vmem:[#allocation6 + $0x388] sm:$0xff] }
0x13ef   :  { %3026 = vmatpush2.msra.mxu1 %v6700_v28  ;;  %2958 = vmatprep.subr.mxu0 %v6716_v6  ;;  %v6734_v28 = vld [vmem:[#allocation6 + $0x380] sm:$0xff] }
0x13f0   :  { %3027 = vmatprep.subr.mxu1 %v6706_v30  ;;  %2959 = vmatpush2.msra.mxu0 %v6722_v4  ;;  %v6740_v30 = vld [vmem:[#allocation6 + $0x368] sm:$0xff] }
0x13f1   :  { %3028 = vmatpush2.msra.mxu1 %v6712_v50  ;;  %2960 = vmatprep.subr.mxu0 %v6728_v63  ;;  %v6746_v50 = vld [vmem:[#allocation6 + $0x360] sm:$0xff] }
0x13f2   :  { %3029 = vmatprep.subr.mxu1 %v6718_v59  ;;  %2961 = vmatpush2.msra.mxu0 %v6734_v28  ;;  %v6752_v59 = vld [vmem:[#allocation6 + $0x348] sm:$0xff] }
0x13f3   :  { %3030 = vmatpush2.msra.mxu1 %v6724_v48  ;;  %2962 = vmatprep.subr.mxu0 %v6740_v30  ;;  %v6758_v48 = vld [vmem:[#allocation6 + $0x340] sm:$0xff] }
0x13f4   :  { %3031 = vmatprep.subr.mxu1 %v6730_v46  ;;  %2963 = vmatpush2.msra.mxu0 %v6746_v50  ;;  %v6764_v46 = vld [vmem:[#allocation6 + $0x328] sm:$0xff] }
0x13f5   :  { %3032 = vmatpush2.msra.mxu1 %v6736_v53  ;;  %2964 = vmatprep.subr.mxu0 %v6752_v59  ;;  %v6770_v53 = vld [vmem:[#allocation6 + $0x320] sm:$0xff] }
0x13f6   :  { %3033 = vmatprep.subr.mxu1 %v6742_v39  ;;  %2965 = vmatpush2.msra.mxu0 %v6758_v48  ;;  %v6776_v39 = vld [vmem:[#allocation6 + $0x308] sm:$0xff] }
0x13f7   :  { %3034 = vmatpush2.msra.mxu1 %v6748_v31  ;;  %2966 = vmatprep.subr.mxu0 %v6764_v46  ;;  %v6782_v31 = vld [vmem:[#allocation6 + $0x300] sm:$0xff] }
0x13f8   :  { %3035 = vmatprep.subr.mxu1 %v6754_v25  ;;  %2967 = vmatpush2.msra.mxu0 %v6770_v53  ;;  %v6788_v25 = vld [vmem:[#allocation6 + $0x2e8] sm:$0xff] }
0x13f9   :  { %3036 = vmatpush2.msra.mxu1 %v6760_v20  ;;  %8186 = vst [vmem:[#allocation39_spill] sm:$0xff] %v6788_v25  ;;  %2968 = vmatprep.subr.mxu0 %v6776_v39  ;;  %v6794_v20 = vld [vmem:[#allocation6 + $0x2e0] sm:$0xff] }
0x13fa   :  { %3037 = vmatprep.subr.mxu1 %v6766_v18  ;;  %8188 = vst [vmem:[#allocation41_spill] sm:$0xff] %v6794_v20  ;;  %2969 = vmatpush2.msra.mxu0 %v6782_v31  ;;  %v6800_v18 = vld [vmem:[#allocation6 + $0x2c8] sm:$0xff] }
0x13fb   :  { %3038 = vmatpush2.msra.mxu1 %v6772_v13  ;;  %8190 = vst [vmem:[#allocation43_spill] sm:$0xff] %v6800_v18  ;;  %2970 = vmatprep.subr.mxu0 %v6788_v25  ;;  %v6806_v13 = vld [vmem:[#allocation6 + $0x2c0] sm:$0xff] }
0x13fc   :  { %3039 = vmatprep.subr.mxu1 %v6778_v9  ;;  %8192 = vst [vmem:[#allocation45_spill] sm:$0xff] %v6806_v13  ;;  %2971 = vmatpush2.msra.mxu0 %v6794_v20 }
0x13fd   :  { %3040 = vmatpush2.msra.mxu1 %v6784_v23  ;;  %2972 = vmatprep.subr.mxu0 %v6800_v18  ;;  %v6816_v23 = vpop.xlane.xlu1 %1397 }
0x13fe   :  { %3041 = vmatprep.subr.mxu1 %v6790_v16  ;;  %2973 = vmatpush2.msra.mxu0 %v6806_v13  ;;  %8194 = vst [vmem:[#allocation47_spill] sm:$0xff] %v6816_v23  ;;  %vm1399_vm4 = vcmp.eq.f32.partialorder %v6474_v42, %v6816_v23  ;;  %v2728_v16 = vand.u32 65535, %v6498_v54  ;;  %v6831_v42 = vld [vmem:[#allocation6 + $0x2b8] sm:$0xff]  ;;  %v6835_v54 = vld [vmem:[#allocation6 + $0x2a0] sm:$0xff]  ;;  %v6853_v23 = vld [vmem:[#allocation6 + $0x268] sm:$0xff] }
0x13ff   :  { %3042 = vmatpush2.msra.mxu1 %v6796_v35  ;;  %v6822_v9 = vsel %vm1399_vm4, %v8127_v1, 128  ;;  %8196 = vst [vmem:[#allocation52_spill] sm:$0xff] %v6831_v42  ;;  %8197 = vst [vmem:[#allocation56_spill] sm:$0xff] %v6835_v54  ;;  %v6861_v1 = vld [vmem:[#allocation6 + $0x270] sm:$0xff] }
0x1400   :  { %3043 = vmatprep.subr.mxu1 %v6802_v32  ;;  %v2730_v35 = vcvt.s32.f32 %v2728_v16  ;;  %v1402_v32 = vshra.s32 %v6822_v9, 16  ;;  %v6837_v16 = vld [vmem:[#allocation6 + $0x2b0] sm:$0xff]  ;;  %8203 = vst [vmem:[#allocation82_spill] sm:$0xff] %v6853_v23  ;;  %8206 = vst [vmem:[#allocation94_spill] sm:$0xff] %v6861_v1 }
0x1401   :  { %3044 = vmatpush2.msra.mxu1 %v6808_v37  ;;  %v6829_v37 = vld [vmem:[#allocation6 + $0x2a8] sm:$0xff]  ;;  %8198 = vst [vmem:[#allocation60_spill] sm:$0xff] %v6837_v16 }
0x1402   :  { %v6826_v13 = vcvt.s32.f32 %v1402_v32  ;;  %8195 = vst [vmem:[#allocation49_spill] sm:$0xff] %v6829_v37  ;;  %2974 = vmatprep.subr.mxu0 %v6829_v37  ;;  %3045 = vmatprep.subr.mxu1 %v6831_v42  ;;  %v6843_v32 = vld [vmem:[#allocation6 + $0x298] sm:$0xff] }
0x1403   :  { %2975 = vmatpush2.msra.mxu0 %v6835_v54  ;;  %3046 = vmatpush2.msra.mxu1 %v6837_v16  ;;  %8200 = vst [vmem:[#allocation71_spill] sm:$0xff] %v6843_v32  ;;  %v6855_v42 = vld [vmem:[#allocation6 + $0x278] sm:$0xff]  ;;  %v6859_v16 = vld [vmem:[#allocation6 + $0x260] sm:$0xff] }
0x1404   :  { %3047 = vmatprep.subr.mxu1 %v6843_v32  ;;  %8204 = vst [vmem:[#allocation86_spill] sm:$0xff] %v6855_v42  ;;  %8205 = vst [vmem:[#allocation90_spill] sm:$0xff] %v6859_v16  ;;  %v6865_v32 = vld [vmem:[#allocation6 + $0x248] sm:$0xff] }
0x1405   :  { %8207 = vst [vmem:[#allocation96_spill] sm:$0xff] %v6865_v32 }
0x1470   :  { %v2733_v8 = vpop.xlane.xlu0 %2732 }
0x1471   :  { %vm2734_vm5 = vcmp.eq.f32.partialorder %v6501_v57, %v2733_v8  ;;  %v6847_v57 = vld [vmem:[#allocation6 + $0x280] sm:$0xff] }
0x1472   :  { %v2735_v18 = vsel %vm2734_vm5, %v2730_v35, inf  ;;  %v6841_v35 = vld [vmem:[#allocation6 + $0x288] sm:$0xff]  ;;  %8201 = vst [vmem:[#allocation75_spill] sm:$0xff] %v6847_v57 }
0x1473   :  { %2736 = vmin.xlane.f32.xlu0 %v2735_v18  ;;  %8199 = vst [vmem:[#allocation65_spill] sm:$0xff] %v6841_v35  ;;  %2976 = vmatprep.subr.mxu0 %v6841_v35  ;;  %v6849_v18 = vld [vmem:[#allocation6 + $0x290] sm:$0xff] }
0x1474   :  { %8202 = vst [vmem:[#allocation80_spill] sm:$0xff] %v6849_v18  ;;  %2977 = vmatpush2.msra.mxu0 %v6847_v57  ;;  %3048 = vmatpush2.msra.mxu1 %v6849_v18  ;;  %v6867_v57 = vld [vmem:[#allocation6 + $0x258] sm:$0xff]  ;;  %v6871_v18 = vld [vmem:[#allocation6 + $0x240] sm:$0xff]  ;;  %v6895_v35 = vld [vmem:[#allocation6 + $0x210] sm:$0xff] }
0x1475   :  { %2978 = vmatprep.subr.mxu0 %v6853_v23  ;;  %3049 = vmatprep.subr.mxu1 %v6855_v42  ;;  %8208 = vst [vmem:[#allocation61_spill] sm:$0xff] %v6867_v57  ;;  %8209 = vst [vmem:[#allocation51_spill] sm:$0xff] %v6871_v18  ;;  %v6873_v23 = vld [vmem:[#allocation6 + $0x250] sm:$0xff]  ;;  %v6877_v42 = vld [vmem:[#allocation6 + $0x228] sm:$0xff] }
0x1476   :  { %2979 = vmatpush2.msra.mxu0 %v6859_v16  ;;  %3050 = vmatpush2.msra.mxu1 %v6861_v1  ;;  %8210 = vst [vmem:[#allocation69_spill] sm:$0xff] %v6873_v23  ;;  %8211 = vst [vmem:[#allocation97_spill] sm:$0xff] %v6877_v42  ;;  %v6879_v16 = vld [vmem:[#allocation6 + $0x238] sm:$0xff]  ;;  %v6883_v1 = vld [vmem:[#allocation6 + $0x220] sm:$0xff] }
0x1477   :  { %1405 = vmin.xlane.f32.xlu0 %v6826_v13  ;;  %2980 = vmatprep.subr.mxu0 %v6865_v32  ;;  %8212 = vst [vmem:[#allocation98_spill] sm:$0xff] %v6879_v16  ;;  %8213 = vst [vmem:[#allocation99_spill] sm:$0xff] %v6883_v1  ;;  %v6885_v32 = vld [vmem:[#allocation6 + $0x230] sm:$0xff] }
0x1478   :  { %3051 = vmatprep.subr.mxu1 %v6867_v57  ;;  %2981 = vmatpush2.msra.mxu0 %v6871_v18  ;;  %8214 = vst [vmem:[#allocation100_spill] sm:$0xff] %v6885_v32  ;;  %v6887_v57 = vld [vmem:[#allocation6 + $0x208] sm:$0xff]  ;;  %v6891_v18 = vld [vmem:[#allocation6 + $0x218] sm:$0xff]  ;;  %8217 = vst [vmem:[#allocation103_spill] sm:$0xff] %v6895_v35 }
0x1479   :  { %3052 = vmatpush2.msra.mxu1 %v6873_v23  ;;  %2982 = vmatprep.subr.mxu0 %v6877_v42  ;;  %8215 = vst [vmem:[#allocation101_spill] sm:$0xff] %v6887_v57  ;;  %8216 = vst [vmem:[#allocation102_spill] sm:$0xff] %v6891_v18  ;;  %v6893_v23 = vld [vmem:[#allocation6 + $0x200] sm:$0xff] }
0x147a   :  { %3053 = vmatprep.subr.mxu1 %v6879_v16  ;;  %2983 = vmatpush2.msra.mxu0 %v6883_v1  ;;  %v2739_v16 = vcvt.f32.s32 %v2733_v8  ;;  %v1401_v1 = vand.u32 65535, %v6822_v9  ;;  %v6914_v8 = vld [vmem:[#allocation4] ss:$0 sm:$0xff] }
0x147b   :  { %3054 = vmatpush2.msra.mxu1 %v6885_v32  ;;  %2984 = vmatprep.subr.mxu0 %v6887_v57 }
0x147c   :  { %3055 = vmatprep.subr.mxu1 %v6891_v18  ;;  %2985 = vmatpush2.msra.mxu0 %v6893_v23  ;;  %v2740_v42 = vshll.u32 %v2739_v16, 16  ;;  %v1403_v57 = vcvt.s32.f32 %v1401_v1  ;;  %v8219_v1 = vld [vmem:[#allocation41_spill] sm:$0xff] }
0x147d   :  { %3056 = vmatpush2.msra.mxu1 %v6895_v35  ;;  %4047 = vmatprep.subr.mxu0 %v7884_v58  ;;  %v6911_v35 = vld [vmem:[%s7321_s1] ss:$0 sm:$0xff] }
0x147e   :  { %3371 = vmatprep.subr.mxu1 %v6504_v12 }
0x14fc   :  { %v2737_v32 = vpop.xlane.xlu0 %2736 }
0x14fd   :  { %v2738_v54 = vcvt.f32.s32 %v2737_v32 }
0x14ff   :  { %v2741_v37 = vadd.s32 %v2740_v42, %v2738_v54  ;;  %v8238_v54 = vld [vmem:[#allocation53_spill] sm:$0xff] }
0x1500   :  { %v6904_v20 = vpop.xlane.xlu0 %1405 }
0x1501   :  { %v2742_v25 = vcvt.s32.f32 %v2741_v37  ;;  %vm1407_vm6 = vcmp.eq.f32.partialorder %v6826_v13, %v6904_v20  ;;  %v8222_v37 = vld [vmem:[#allocation49_spill] sm:$0xff]  ;;  %v8226_v13 = vld [vmem:[#allocation82_spill] sm:$0xff] }
0x1502   :  { %v1408_v18 = vsel %vm1407_vm6, %v1403_v57, inf }
0x1503   :  { %v2791_v12 = vmul.f32 %v6911_v35, %v2742_v25  ;;  %1409 = vmin.xlane.f32.xlu1 %v1408_v18  ;;  %v8230_v25 = vld [vmem:[#allocation97_spill] sm:$0xff]  ;;  %v8239_v18 = vld [vmem:[#allocation55_spill] sm:$0xff] }
0x1505   :  { %v2792_v42 = vadd.f32 %v6914_v8, %v2791_v12 }
0x1507   :  { %v2793_v9 = vmax.f32 %v2792_v42, 0.0 }
0x1509   :  { %2987 = vmatmul.mubr.f32.vlgmr.msra.gmra.mxu0 %v2793_v9  ;;  %3058 = vmatmul.mubr.f32.vlgmr.msra.gmra.mxu1 %v2793_v9 }
0x150a   :  { %4079 = vmatprep.mubr.msk.f32.mxu0 %vm4345_vm0, %v7884_v58  ;;  %3372 = vmatpush1.msra.mxu1 %v6508_v61  ;;  %v8224_v61 = vld [vmem:[#allocation65_spill] sm:$0xff] }
0x150b   :  { %3373 = vmatprep.subr.mxu1 %v6514_v11  ;;  %v8225_v11 = vld [vmem:[#allocation75_spill] sm:$0xff] }
0x150c   :  { %3374 = vmatpush1.msra.mxu1 %v6520_v14  ;;  %v8227_v14 = vld [vmem:[#allocation90_spill] sm:$0xff] }
0x150d   :  { %3375 = vmatprep.subr.mxu1 %v6524_v15  ;;  %v8228_v15 = vld [vmem:[#allocation96_spill] sm:$0xff] }
0x150e   :  { %3376 = vmatpush1.msra.mxu1 %v6530_v21  ;;  %v8229_v21 = vld [vmem:[#allocation51_spill] sm:$0xff] }
0x150f   :  { %3377 = vmatprep.subr.mxu1 %v6536_v26  ;;  %v8231_v26 = vld [vmem:[#allocation99_spill] sm:$0xff] }
0x1510   :  { %3378 = vmatpush1.msra.mxu1 %v6542_v33  ;;  %v6983_v33 = vld [vmem:[#allocation7 + $0x78] sm:$0xff] }
0x1511   :  { %3379 = vmatprep.subr.mxu1 %v6548_v41  ;;  %4048 = vmatpush3.msra.mxu0 %v6983_v33  ;;  %v6991_v41 = vld [vmem:[#allocation7 + $0x68] sm:$0xff] }
0x1512   :  { %3380 = vmatpush1.msra.mxu1 %v6554_v44  ;;  %4049 = vmatprep.subr.mxu0 %v7884_v58  ;;  %v7003_v44 = vld [vmem:[#allocation7 + $0x50] sm:$0xff] }
0x1513   :  { %3381 = vmatprep.subr.mxu1 %v6560_v47  ;;  %v7011_v47 = vld [vmem:[#allocation7 + $0x40] sm:$0xff] }
0x1514   :  { %3382 = vmatpush1.msra.mxu1 %v6566_v43  ;;  %v7017_v43 = vld [vmem:[#allocation7 + $0x30] sm:$0xff] }
0x1515   :  { %3383 = vmatprep.subr.mxu1 %v6572_v19  ;;  %v7025_v19 = vld [vmem:[#allocation7 + $0x20] sm:$0xff] }
0x1516   :  { %3384 = vmatpush1.msra.mxu1 %v6578_v24  ;;  %v7033_v24 = vld [vmem:[#allocation7 + $0x10] sm:$0xff] }
0x1517   :  { %3385 = vmatprep.subr.mxu1 %v6584_v38  ;;  %v7041_v38 = vld [vmem:[#allocation7] sm:$0xff] }
0x1518   :  { %3386 = vmatpush1.msra.mxu1 %v6590_v60  ;;  %v1412_v60 = vcvt.f32.s32 %v6904_v20 }
0x1519   :  { %3387 = vmatprep.subr.mxu1 %v6596_v0 }
0x151a   :  { %3388 = vmatpush1.msra.mxu1 %v6602_v34  ;;  %v1413_v0 = vshll.u32 %v1412_v60, 16  ;;  %v8240_v60 = vld [vmem:[#allocation73_spill] sm:$0xff] }
0x151b   :  { %3389 = vmatprep.subr.mxu1 %v6608_v7  ;;  %v8234_v7 = vld [vmem:[#allocation57_spill] sm:$0xff] }
0x151c   :  { %3390 = vmatpush1.msra.mxu1 %v6614_v22 }
0x151d   :  { %3391 = vmatprep.subr.mxu1 %v6620_v29 }
0x151e   :  { %3392 = vmatpush1.msra.mxu1 %v6626_v3 }
0x151f   :  { %3393 = vmatprep.subr.mxu1 %v6632_v17 }
0x1520   :  { %3394 = vmatpush1.msra.mxu1 %v6638_v2 }
0x1521   :  { %3395 = vmatprep.subr.mxu1 %v6644_v49 }
0x1522   :  { %3396 = vmatpush1.msra.mxu1 %v6650_v45  ;;  %v8220_v45 = vld [vmem:[#allocation43_spill] sm:$0xff] }
0x1523   :  { %3397 = vmatprep.subr.mxu1 %v6656_v5  ;;  %v8223_v5 = vld [vmem:[#allocation56_spill] sm:$0xff] }
0x1524   :  { %3398 = vmatpush1.msra.mxu1 %v6662_v55 }
0x1525   :  { %3399 = vmatprep.subr.mxu1 %v6668_v10 }
0x1526   :  { %3400 = vmatpush1.msra.mxu1 %v6674_v27 }
0x1527   :  { %3401 = vmatprep.subr.mxu1 %v6680_v36 }
0x1528   :  { %3402 = vmatpush1.msra.mxu1 %v6686_v52  ;;  %v8221_v52 = vld [vmem:[#allocation45_spill] sm:$0xff] }
0x1529   :  { %3403 = vmatprep.subr.mxu1 %v6692_v62  ;;  %v8218_v62 = vld [vmem:[#allocation39_spill] sm:$0xff] }
0x152a   :  { %3404 = vmatpush2.msra.mxu1 %v6698_v51  ;;  %v8237_v51 = vld [vmem:[#allocation74_spill] sm:$0xff] }
0x152b   :  { %3405 = vmatprep.subr.mxu1 %v6704_v56  ;;  %v8236_v56 = vld [vmem:[#allocation58_spill] sm:$0xff] }
0x152c   :  { %3406 = vmatpush2.msra.mxu1 %v6710_v40  ;;  %v8235_v40 = vld [vmem:[#allocation62_spill] sm:$0xff] }
0x152d   :  { %3407 = vmatprep.subr.mxu1 %v6716_v6 }
0x152e   :  { %3408 = vmatpush2.msra.mxu1 %v6722_v4 }
0x152f   :  { %3409 = vmatprep.subr.mxu1 %v6728_v63 }
0x1530   :  { %3410 = vmatpush2.msra.mxu1 %v6734_v28  ;;  %v8233_v28 = vld [vmem:[#allocation67_spill] sm:$0xff] }
0x1531   :  { %3411 = vmatprep.subr.mxu1 %v6740_v30  ;;  %v7037_v30 = vld [vmem:[#allocation7 + $0x8] sm:$0xff] }
0x1532   :  { %3412 = vmatpush2.msra.mxu1 %v6746_v50  ;;  %v7029_v50 = vld [vmem:[#allocation7 + $0x18] sm:$0xff] }
0x1533   :  { %3413 = vmatprep.subr.mxu1 %v6752_v59  ;;  %v7021_v59 = vld [vmem:[#allocation7 + $0x28] sm:$0xff] }
0x1534   :  { %3414 = vmatpush2.msra.mxu1 %v6758_v48  ;;  %v7013_v48 = vld [vmem:[#allocation7 + $0x38] sm:$0xff] }
0x1535   :  { %3415 = vmatprep.subr.mxu1 %v6764_v46  ;;  %v7007_v46 = vld [vmem:[#allocation7 + $0x48] sm:$0xff] }
0x1536   :  { %3416 = vmatpush2.msra.mxu1 %v6770_v53  ;;  %v6999_v53 = vld [vmem:[#allocation7 + $0x58] sm:$0xff] }
0x1537   :  { %3417 = vmatprep.subr.mxu1 %v6776_v39  ;;  %v6987_v39 = vld [vmem:[#allocation7 + $0x70] sm:$0xff] }
0x1538   :  { %3418 = vmatpush2.msra.mxu1 %v6782_v31  ;;  %v8232_v31 = vld [vmem:[#allocation101_spill] sm:$0xff]  ;;  %4050 = vmatpush3.msra.mxu0 %v6987_v39 }
0x1539   :  { %3419 = vmatprep.subr.mxu1 %v8218_v62  ;;  %4051 = vmatprep.subr.mxu0 %v7884_v58 }
0x153a   :  { %3420 = vmatpush2.msra.mxu1 %v8219_v1  ;;  %4052 = vmatpush3.msra.mxu0 %v6991_v41 }
0x153b   :  { %3421 = vmatprep.subr.mxu1 %v8220_v45  ;;  %4053 = vmatprep.subr.mxu0 %v7884_v58 }
0x153c   :  { %3422 = vmatpush2.msra.mxu1 %v8221_v52 }
0x153d   :  { %3423 = vmatprep.subr.mxu1 %v8222_v37 }
0x153e   :  { %3424 = vmatpush2.msra.mxu1 %v8223_v5  ;;  %v7068_v5 = vld [vmem:[%s7326_s6] ss:$0 sm:$0xff] }
0x153f   :  { %3425 = vmatprep.subr.mxu1 %v8224_v61 }
0x1540   :  { %3426 = vmatpush2.msra.mxu1 %v8225_v11 }
0x1541   :  { %3427 = vmatprep.subr.mxu1 %v8226_v13  ;;  %v7074_v13 = vld [vmem:[%s7325_s5] ss:$0 sm:$0xff] }
0x1542   :  { %3428 = vmatpush2.msra.mxu1 %v8227_v14 }
0x1543   :  { %3429 = vmatprep.subr.mxu1 %v8228_v15 }
0x1544   :  { %3430 = vmatpush2.msra.mxu1 %v8229_v21 }
0x1545   :  { %3431 = vmatprep.subr.mxu1 %v8230_v25 }
0x1546   :  { %3432 = vmatpush2.msra.mxu1 %v8231_v26 }
0x1547   :  { %3433 = vmatprep.subr.mxu1 %v8232_v31 }
0x1548   :  { %3434 = vmatpush2.msra.mxu1 %v6893_v23  ;;  %v6995_v23 = vld [vmem:[#allocation7 + $0x60] sm:$0xff] }
0x1549   :  { %4082 = vmatprep.subr.mxu1 %v7884_v58  ;;  %4054 = vmatpush3.msra.mxu0 %v6995_v23 }
0x154a   :  { %4055 = vmatprep.subr.mxu0 %v7884_v58 }
0x154b   :  { %4056 = vmatpush3.msra.mxu0 %v6999_v53 }
0x154c   :  { %4057 = vmatprep.subr.mxu0 %v7884_v58 }
0x154d   :  { %4058 = vmatpush3.msra.mxu0 %v7003_v44 }
0x154e   :  { %4059 = vmatprep.subr.mxu0 %v7884_v58 }
0x154f   :  { %4060 = vmatpush3.msra.mxu0 %v7007_v46 }
0x1550   :  { %4061 = vmatprep.subr.mxu0 %v7884_v58 }
0x1551   :  { %4062 = vmatpush3.msra.mxu0 %v7011_v47 }
0x1552   :  { %4063 = vmatprep.subr.mxu0 %v7884_v58 }
0x1553   :  { %4064 = vmatpush3.msra.mxu0 %v7013_v48 }
0x1554   :  { %4065 = vmatprep.subr.mxu0 %v7884_v58 }
0x1555   :  { %4066 = vmatpush3.msra.mxu0 %v7017_v43 }
0x1556   :  { %4067 = vmatprep.subr.mxu0 %v7884_v58 }
0x1557   :  { %4068 = vmatpush3.msra.mxu0 %v7021_v59 }
0x1558   :  { %4069 = vmatprep.subr.mxu0 %v7884_v58 }
0x1559   :  { %4070 = vmatpush3.msra.mxu0 %v7025_v19 }
0x155a   :  { %4071 = vmatprep.subr.mxu0 %v7884_v58 }
0x155b   :  { %4072 = vmatpush3.msra.mxu0 %v7029_v50 }
0x155c   :  { %4073 = vmatprep.subr.mxu0 %v7884_v58 }
0x155d   :  { %4074 = vmatpush3.msra.mxu0 %v7033_v24 }
0x155e   :  { %4075 = vmatprep.subr.mxu0 %v7884_v58 }
0x155f   :  { %4076 = vmatpush3.msra.mxu0 %v7037_v30 }
0x1560   :  { %4077 = vmatprep.subr.mxu0 %v7884_v58 }
0x1561   :  { %4078 = vmatpush3.msra.mxu0 %v7041_v38 }
0x1562   :  { %3442 = vmatprep.subr.mxu0 %v8233_v28 }
0x158c   :  { %v1410_v63 = vpop.xlane.xlu1 %1409 }
0x158d   :  { %v1411_v4 = vcvt.f32.s32 %v1410_v63 }
0x158f   :  { %v1414_v34 = vadd.s32 %v1413_v0, %v1411_v4  ;;  %v8241_v4 = vld [vmem:[#allocation84_spill] sm:$0xff] }
0x1591   :  { %v1415_v6 = vcvt.s32.f32 %v1414_v34  ;;  %vm1442_vm7 = vcmp.eq.s32.totalorder %v8234_v7, %v1414_v34  ;;  %v8242_v34 = vld [vmem:[#allocation88_spill] sm:$0xff] }
0x1592   :  { %v7050_v22 = vsel %vm1442_vm7, -1e+30, %v8235_v40  ;;  %v8244_v40 = vld [vmem:[#allocation95_spill] sm:$0xff] }
0x1593   :  { %v1424_v29 = vmul.f32 %v8236_v56, %v1415_v6  ;;  %v7055_v3 = vadd.f32 %v8237_v51, %v7050_v22  ;;  %v8243_v6 = vld [vmem:[#allocation92_spill] sm:$0xff] }
0x1594   :  { %v8246_v51 = vld [vmem:[#allocation72_spill] sm:$0xff] }
0x1595   :  { %v1425_v55 = vsel %vm975_vm2, %v1424_v29, 0.0  ;;  %1846 = vmax.xlane.f32.xlu0 %v7055_v3  ;;  %v8245_v29 = vld [vmem:[#allocation77_spill] sm:$0xff] }
0x1596   :  { %v1426_v20 = vrot.slane %v1425_v55, 4 }
0x1598   :  { %v1427_v17 = vadd.f32 %v1426_v20, %v1425_v55  ;;  %v8247_v55 = vld [vmem:[#allocation79_spill] sm:$0xff]  ;;  %v8248_v20 = vld [vmem:[#allocation66_spill] sm:$0xff] }
0x159a   :  { %v1428_v10 = vrot.slane %v1427_v17, 2 }
0x159c   :  { %v1429_v2 = vadd.f32 %v1428_v10, %v1427_v17  ;;  %v8249_v17 = vld [vmem:[#allocation81_spill] sm:$0xff]  ;;  %v8250_v10 = vld [vmem:[#allocation83_spill] sm:$0xff] }
0x159e   :  { %v1430_v27 = vrot.slane %v1429_v2, 1 }
0x15a0   :  { %v1431_v49 = vadd.f32 %v1430_v27, %v1429_v2  ;;  %v8251_v2 = vld [vmem:[#allocation85_spill] sm:$0xff]  ;;  %v8252_v27 = vld [vmem:[#allocation87_spill] sm:$0xff] }
0x15a2   :  { %1432 = vst.msk [vmem:[%s7329_s9 + $0x2] sm:$0x1] %vm521_vm13, %v1431_v49  ;;  %v8253_v49 = vld [vmem:[#allocation89_spill] sm:$0xff] }
0x15c9   :  { %v2988_v36 = vpop.f32.mrf.mxu0  ;;  %v3059_v1 = vpop.f32.mrf.mxu1 }
0x15ca   :  { %v3064_v16 = vadd.f32 %v2988_v36, %v8238_v54  ;;  %v3078_v14 = vadd.f32 %v7074_v13, %v3059_v1  ;;  %v8254_v36 = vld [vmem:[#allocation91_spill] sm:$0xff]  ;;  %v8262_v1 = vld [vmem:[#allocation13_spill] sm:$0xff] }
0x15cb   :  { %v2990_v57 = vpop.f32.mrf.mxu0  ;;  %v3061_v52 = vpop.f32.mrf.mxu1 }
0x15cc   :  { %v3697_v32 = vmul.f32 -1.442695, %v3064_v16  ;;  %v3065_v12 = vadd.f32 %v2990_v57, %v8239_v18  ;;  %v3079_v61 = vadd.f32 %v7068_v5, %v3061_v52  ;;  %v8255_v16 = vld [vmem:[#allocation93_spill] sm:$0xff]  ;;  %v8257_v57 = vld [vmem:[#allocation59_spill] sm:$0xff] }
0x15cd   :  { %v8264_v52 = vld [vmem:[#allocation15_spill] sm:$0xff] }
0x15ce   :  { %4187 = vpow2.f32 %v3697_v32  ;;  %v3698_v42 = vmul.f32 -1.442695, %v3065_v12  ;;  %v8256_v32 = vld [vmem:[#allocation63_spill] sm:$0xff]  ;;  %v8258_v12 = vld [vmem:[#allocation64_spill] sm:$0xff] }
0x15d0   :  { %4189 = vpow2.f32 %v3698_v42  ;;  %v8259_v42 = vld [vmem:[#allocation70_spill] sm:$0xff] }
0x15db   :  { %v4188_v9 = vpop.eup %4187 }
0x15dc   :  { %v3072_v62 = vadd.f32 1.0, %v4188_v9  ;;  %v8260_v9 = vld [vmem:[#allocation76_spill] sm:$0xff] }
0x15dd   :  { %v4190_v45 = vpop.eup %4189 }
0x15de   :  { %4191 = vrcp.f32 %v3072_v62  ;;  %v3073_v37 = vadd.f32 1.0, %v4190_v45  ;;  %v8261_v62 = vld [vmem:[#allocation12_spill] sm:$0xff]  ;;  %v8263_v45 = vld [vmem:[#allocation14_spill] sm:$0xff] }
0x15e0   :  { %4193 = vrcp.f32 %v3073_v37  ;;  %v8265_v37 = vld [vmem:[#allocation16_spill] sm:$0xff] }
0x15eb   :  { %v4192_v11 = vpop.eup %4191 }
0x15ec   :  { %v3080_v15 = vmul.f32 %v4192_v11, %v3079_v61  ;;  %v8266_v61 = vld [vmem:[#allocation17_spill] sm:$0xff]  ;;  %v8267_v11 = vld [vmem:[#allocation18_spill] sm:$0xff] }
0x15ed   :  { %v4194_v25 = vpop.eup %4193 }
0x15ee   :  { %v3081_v21 = vadd.f32 %v3080_v15, %v3078_v14  ;;  %v3083_v26 = vsub.f32 1.0, %v4194_v25  ;;  %v3085_v63 = vmul.f32 %v4194_v25, %v8240_v60  ;;  %v8268_v15 = vld [vmem:[#allocation19_spill] sm:$0xff] }
0x15ef   :  { %v8272_v60 = vld [vmem:[#allocation23_spill] sm:$0xff] }
0x15f0   :  { %4195 = vtanh.f32 %v3081_v21  ;;  %v8269_v21 = vld [vmem:[#allocation20_spill] sm:$0xff] }
0x15fd   :  { %v4196_v31 = vpop.eup %4195 }
0x15fe   :  { %v3084_v28 = vmul.f32 %v4196_v31, %v3083_v26  ;;  %v8270_v26 = vld [vmem:[#allocation21_spill] sm:$0xff] }
0x1600   :  { %v7078_v0 = vadd.f32 %v3085_v63, %v3084_v28  ;;  %v8271_v28 = vld [vmem:[#allocation22_spill] sm:$0xff] }
0x1602   :  { %4080 = vmatmul.mubr.f32.vlgmr.msra.gmra.mxu0 %v7078_v0  ;;  %3435 = vmatprep.mubr.f32.mxu1 %v7078_v0 }
0x1603   :  { %3506 = vmatprep.mubr.f32.mxu0 %v7078_v0  ;;  %3443 = vmatpush1.msra.mxu0 %v8241_v4  ;;  %v8273_v4 = vld [vmem:[#allocation24_spill] sm:$0xff] }
0x1604   :  { %3444 = vmatprep.subr.mxu0 %v8242_v34  ;;  %v8274_v34 = vld [vmem:[#allocation25_spill] sm:$0xff] }
0x1605   :  { %3445 = vmatpush1.msra.mxu0 %v8243_v6  ;;  %v8275_v6 = vld [vmem:[#allocation26_spill] sm:$0xff] }
0x1606   :  { %3446 = vmatprep.subr.mxu0 %v8244_v40  ;;  %v8276_v40 = vld [vmem:[#allocation27_spill] sm:$0xff] }
0x1607   :  { %3447 = vmatpush1.msra.mxu0 %v8245_v29  ;;  %v8277_v29 = vld [vmem:[#allocation28_spill] sm:$0xff] }
0x1608   :  { %3448 = vmatprep.subr.mxu0 %v8246_v51  ;;  %v8278_v51 = vld [vmem:[#allocation29_spill] sm:$0xff] }
0x1609   :  { %3449 = vmatpush1.msra.mxu0 %v8247_v55  ;;  %v8279_v55 = vld [vmem:[#allocation30_spill] sm:$0xff] }
0x160a   :  { %3450 = vmatprep.subr.mxu0 %v8248_v20  ;;  %v8280_v20 = vld [vmem:[#allocation31_spill] sm:$0xff] }
0x160b   :  { %3451 = vmatpush1.msra.mxu0 %v8249_v17  ;;  %v8281_v17 = vld [vmem:[#allocation32_spill] sm:$0xff] }
0x160c   :  { %3452 = vmatprep.subr.mxu0 %v8250_v10  ;;  %v8282_v10 = vld [vmem:[#allocation33_spill] sm:$0xff] }
0x160d   :  { %3453 = vmatpush1.msra.mxu0 %v8251_v2  ;;  %v8283_v2 = vld [vmem:[#allocation34_spill] sm:$0xff] }
0x160e   :  { %3454 = vmatprep.subr.mxu0 %v8252_v27  ;;  %v8284_v27 = vld [vmem:[#allocation35_spill] sm:$0xff] }
0x160f   :  { %3455 = vmatpush1.msra.mxu0 %v8253_v49  ;;  %v8285_v49 = vld [vmem:[#allocation36_spill] sm:$0xff] }
0x1610   :  { %3456 = vmatprep.subr.mxu0 %v8254_v36  ;;  %v8286_v36 = vld [vmem:[#allocation37_spill] sm:$0xff] }
0x1611   :  { %3457 = vmatpush1.msra.mxu0 %v8255_v16  ;;  %v8287_v16 = vld [vmem:[#allocation38_spill] sm:$0xff] }
0x1612   :  { %3458 = vmatprep.subr.mxu0 %v8256_v32  ;;  %v8288_v32 = vld [vmem:[#allocation40_spill] sm:$0xff] }
0x1613   :  { %3459 = vmatpush1.msra.mxu0 %v8257_v57  ;;  %v8289_v57 = vld [vmem:[#allocation42_spill] sm:$0xff] }
0x1614   :  { %3460 = vmatprep.subr.mxu0 %v8258_v12  ;;  %v8290_v12 = vld [vmem:[#allocation44_spill] sm:$0xff] }
0x1615   :  { %3461 = vmatpush1.msra.mxu0 %v8259_v42  ;;  %v8291_v42 = vld [vmem:[#allocation46_spill] sm:$0xff] }
0x1616   :  { %3462 = vmatprep.subr.mxu0 %v8260_v9  ;;  %v8292_v9 = vld [vmem:[#allocation52_spill] sm:$0xff] }
0x1617   :  { %3463 = vmatpush1.msra.mxu0 %v8261_v62  ;;  %v8293_v62 = vld [vmem:[#allocation60_spill] sm:$0xff] }
0x1618   :  { %3464 = vmatprep.subr.mxu0 %v8262_v1  ;;  %v8294_v1 = vld [vmem:[#allocation71_spill] sm:$0xff] }
0x1619   :  { %3465 = vmatpush1.msra.mxu0 %v8263_v45  ;;  %v8295_v45 = vld [vmem:[#allocation80_spill] sm:$0xff] }
0x161a   :  { %3466 = vmatprep.subr.mxu0 %v8264_v52  ;;  %v8296_v52 = vld [vmem:[#allocation86_spill] sm:$0xff] }
0x161b   :  { %3467 = vmatpush1.msra.mxu0 %v8265_v37  ;;  %v8297_v37 = vld [vmem:[#allocation94_spill] sm:$0xff] }
0x161c   :  { %3468 = vmatprep.subr.mxu0 %v8266_v61  ;;  %v8298_v61 = vld [vmem:[#allocation61_spill] sm:$0xff] }
0x161d   :  { %3469 = vmatpush1.msra.mxu0 %v8267_v11  ;;  %v8299_v11 = vld [vmem:[#allocation69_spill] sm:$0xff] }
0x161e   :  { %v7110_v14 = vpop.xlane.xlu0 %1846  ;;  %3470 = vmatprep.subr.mxu0 %v8268_v15  ;;  %v8300_v15 = vld [vmem:[#allocation98_spill] sm:$0xff] }
0x161f   :  { %vm1848_vm8 = vcmp.eq.f32.partialorder %v7055_v3, %v7110_v14  ;;  %3471 = vmatpush1.msra.mxu0 %v8269_v21  ;;  %v8301_v21 = vld [vmem:[#allocation100_spill] sm:$0xff] }
0x1620   :  { %v1849_v25 = vsel %vm1848_vm8, %v8234_v7, 128  ;;  %3472 = vmatprep.subr.mxu0 %v8270_v26  ;;  %v8302_v26 = vld [vmem:[#allocation102_spill] sm:$0xff] }
0x1621   :  { %v1851_v31 = vshra.s32 %v1849_v25, 16  ;;  %3473 = vmatpush1.msra.mxu0 %v8271_v28  ;;  %v1850_v28 = vand.u32 65535, %v1849_v25 }
0x1622   :  { %3474 = vmatprep.subr.mxu0 %v8272_v60 }
0x1623   :  { %v1853_v63 = vcvt.s32.f32 %v1851_v31  ;;  %3475 = vmatpush2.msra.mxu0 %v8273_v4  ;;  %v8303_v31 = vld [vmem:[#allocation103_spill] sm:$0xff]  ;;  %v1852_v4 = vcvt.s32.f32 %v1850_v28 }
0x1624   :  { %3476 = vmatprep.subr.mxu0 %v8274_v34 }
0x1625   :  { %1854 = vmin.xlane.f32.xlu1 %v1853_v63  ;;  %3477 = vmatpush2.msra.mxu0 %v8275_v6 }
0x1626   :  { %3478 = vmatprep.subr.mxu0 %v8276_v40  ;;  %v7154_v40 = vld [vmem:[%s7328_s8] ss:$0 sm:$0xff] }
0x1627   :  { %3479 = vmatpush2.msra.mxu0 %v8277_v29 }
0x1628   :  { %3480 = vmatprep.subr.mxu0 %v8278_v51 }
0x1629   :  { %3481 = vmatpush2.msra.mxu0 %v8279_v55 }
0x162a   :  { %3482 = vmatprep.subr.mxu0 %v8280_v20 }
0x162b   :  { %3483 = vmatpush2.msra.mxu0 %v8281_v17 }
0x162c   :  { %3484 = vmatprep.subr.mxu0 %v8282_v10 }
0x162d   :  { %3485 = vmatpush2.msra.mxu0 %v8283_v2 }
0x162e   :  { %3486 = vmatprep.subr.mxu0 %v8284_v27 }
0x162f   :  { %3487 = vmatpush2.msra.mxu0 %v8285_v49  ;;  %v8304_v49 = vld [vmem:[#allocation48_spill] sm:$0xff] }
0x1630   :  { %3488 = vmatprep.subr.mxu0 %v8286_v36 }
0x1631   :  { %3489 = vmatpush2.msra.mxu0 %v8287_v16 }
0x1632   :  { %3490 = vmatprep.subr.mxu0 %v8288_v32 }
0x1633   :  { %3491 = vmatpush2.msra.mxu0 %v8289_v57 }
0x1634   :  { %3492 = vmatprep.subr.mxu0 %v8290_v12 }
0x1635   :  { %3493 = vmatpush2.msra.mxu0 %v8291_v42 }
0x1636   :  { %3494 = vmatprep.subr.mxu0 %v8292_v9 }
0x1637   :  { %3495 = vmatpush2.msra.mxu0 %v8293_v62 }
0x1638   :  { %3496 = vmatprep.subr.mxu0 %v8294_v1 }
0x1639   :  { %3497 = vmatpush2.msra.mxu0 %v8295_v45 }
0x163a   :  { %3498 = vmatprep.subr.mxu0 %v8296_v52 }
0x163b   :  { %3499 = vmatpush2.msra.mxu0 %v8297_v37 }
0x163c   :  { %3500 = vmatprep.subr.mxu0 %v8298_v61 }
0x163d   :  { %3501 = vmatpush2.msra.mxu0 %v8299_v11 }
0x163e   :  { %3502 = vmatprep.subr.mxu0 %v8300_v15 }
0x163f   :  { %3503 = vmatpush2.msra.mxu0 %v8301_v21 }
0x1640   :  { %3504 = vmatprep.subr.mxu0 %v8302_v26 }
0x1641   :  { %3505 = vmatpush2.msra.mxu0 %v8303_v31 }
0x16ae   :  { %v1855_v60 = vpop.xlane.xlu1 %1854 }
0x16af   :  { %vm1856_vm9 = vcmp.eq.f32.partialorder %v1853_v63, %v1855_v60  ;;  %v1861_v55 = vcvt.f32.s32 %v1855_v60 }
0x16b0   :  { %v1857_v34 = vsel %vm1856_vm9, %v1852_v4, inf }
0x16b1   :  { %1858 = vmin.xlane.f32.xlu0 %v1857_v34  ;;  %v1862_v25 = vshll.u32 %v1861_v55, 16 }
0x16c2   :  { %v3169_v6 = vpop.f32.mrf.mxu0 }
0x16c3   :  { %v7157_v29 = vadd.f32 %v7154_v40, %v3169_v6 }
0x16c4   :  { %v4081_v51 = vpop.f32.mrf.mxu0 }
0x16c5   :  { %3173 = vmax.xlane.f32.xlu0 %v7157_v29 }
0x173a   :  { %v1859_v20 = vpop.xlane.xlu0 %1858 }
0x173b   :  { %v1860_v17 = vcvt.f32.s32 %v1859_v20 }
0x173d   :  { %v1863_v10 = vadd.s32 %v1862_v25, %v1860_v17 }
0x173f   :  { %v1864_v63 = vcvt.s32.f32 %v1863_v10  ;;  %vm1891_vm10 = vcmp.eq.s32.totalorder %v8234_v7, %v1863_v10 }
0x1740   :  { %v7162_v2 = vsel %vm1891_vm10, -1e+30, %v7050_v22 }
0x1741   :  { %v1873_v27 = vmul.f32 %v8236_v56, %v1864_v63  ;;  %v7167_v36 = vadd.f32 %v8304_v49, %v7162_v2 }
0x1743   :  { %v1874_v16 = vsel %vm975_vm2, %v1873_v27, 0.0  ;;  %2295 = vmax.xlane.f32.xlu1 %v7167_v36 }
0x1744   :  { %v1875_v32 = vrot.slane %v1874_v16, 4 }
0x1746   :  { %v1876_v57 = vadd.f32 %v1875_v32, %v1874_v16 }
0x1748   :  { %v1877_v12 = vrot.slane %v1876_v57, 2 }
0x174a   :  { %v1878_v42 = vadd.f32 %v1877_v12, %v1876_v57 }
0x174c   :  { %v1879_v9 = vrot.slane %v1878_v42, 1 }
0x174e   :  { %v1880_v62 = vadd.f32 %v1879_v9, %v1878_v42  ;;  %v3174_v1 = vpop.xlane.xlu0 %3173 }
0x174f   :  { %vm3175_vm11 = vcmp.eq.f32.partialorder %v7157_v29, %v3174_v1 }
0x1750   :  { %1881 = vst.msk [vmem:[%s7329_s9 + $0x3] sm:$0x1] %vm521_vm13, %v1880_v62  ;;  %v3176_v22 = vsel %vm3175_vm11, %v8234_v7, 128 }
0x1751   :  { %v3178_v45 = vshra.s32 %v3176_v22, 16  ;;  %v3177_v21 = vand.u32 65535, %v3176_v22 }
0x1753   :  { %v3180_v52 = vcvt.s32.f32 %v3178_v45  ;;  %v3179_v31 = vcvt.s32.f32 %v3177_v21 }
0x1755   :  { %3181 = vmin.xlane.f32.xlu0 %v3180_v52 }
0x17cc   :  { %v7177_v37 = vpop.xlane.xlu1 %2295 }
0x17cd   :  { %vm2297_vm12 = vcmp.eq.f32.partialorder %v7167_v36, %v7177_v37 }
0x17ce   :  { %v2298_v61 = vsel %vm2297_vm12, %v8234_v7, 128 }
0x17cf   :  { %v2300_v11 = vshra.s32 %v2298_v61, 16  ;;  %v2299_v60 = vand.u32 65535, %v2298_v61 }
0x17d1   :  { %v2302_v15 = vcvt.s32.f32 %v2300_v11  ;;  %v2301_v34 = vcvt.s32.f32 %v2299_v60 }
0x17d3   :  { %2303 = vmin.xlane.f32.xlu1 %v2302_v15 }
0x17de   :  { %v3182_v26 = vpop.xlane.xlu0 %3181 }
0x17df   :  { %vm3183_vm14 = vcmp.eq.f32.partialorder %v3180_v52, %v3182_v26  ;;  %v3188_v51 = vcvt.f32.s32 %v3182_v26 }
0x17e0   :  { %v3184_v28 = vsel %vm3183_vm14, %v3179_v31, inf }
0x17e1   :  { %3185 = vmin.xlane.f32.xlu0 %v3184_v28  ;;  %v3189_v20 = vshll.u32 %v3188_v51, 16 }
0x185c   :  { %v2304_v4 = vpop.xlane.xlu1 %2303 }
0x185d   :  { %vm2305_vm15 = vcmp.eq.f32.partialorder %v2302_v15, %v2304_v4 }
0x185e   :  { %v2306_v6 = vsel %vm2305_vm15, %v2301_v34, inf }
0x185f   :  { %2307 = vmin.xlane.f32.xlu1 %v2306_v6 }
0x186a   :  { %v3186_v55 = vpop.xlane.xlu0 %3185 }
0x186b   :  { %v3187_v25 = vcvt.f32.s32 %v3186_v55 }
0x186d   :  { %v3190_v17 = vadd.s32 %v3189_v20, %v3187_v25 }
0x186f   :  { %v3191_v10 = vcvt.s32.f32 %v3190_v17 }
0x1871   :  { %v3240_v63 = vmul.f32 %v6911_v35, %v3191_v10  ;;  %v2310_v35 = vcvt.f32.s32 %v2304_v4 }
0x1873   :  { %v3241_v27 = vadd.f32 %v6914_v8, %v3240_v63 }
0x1875   :  { %v3242_v49 = vmax.f32 %v3241_v27, 0.0 }
0x1877   :  { %3436 = vmatmul.mubr.f32.vlgmr.msra.gmra.mxu1 %v3242_v49  ;;  %3507 = vmatmul.mubr.f32.vlgmr.msra.gmra.mxu0 %v3242_v49 }
0x1878   :  { %4083 = vmatpush3.msra.mxu1 %v6983_v33  ;;  %4114 = vmatprep.mubr.msk.f32.mxu1 %vm4345_vm0, %v7884_v58  ;;  %v2311_v33 = vshll.u32 %v2310_v35, 16 }
0x1879   :  { %4084 = vmatprep.subr.mxu1 %v7884_v58 }
0x187a   :  { %4085 = vmatpush3.msra.mxu1 %v6987_v39 }
0x187b   :  { %4086 = vmatprep.subr.mxu1 %v7884_v58 }
0x187c   :  { %4087 = vmatpush3.msra.mxu1 %v6991_v41 }
0x187d   :  { %4088 = vmatprep.subr.mxu1 %v7884_v58 }
0x187e   :  { %4089 = vmatpush3.msra.mxu1 %v6995_v23 }
0x187f   :  { %4090 = vmatprep.subr.mxu1 %v7884_v58 }
0x1880   :  { %4091 = vmatpush3.msra.mxu1 %v6999_v53 }
0x1881   :  { %4092 = vmatprep.subr.mxu1 %v7884_v58 }
0x1882   :  { %4093 = vmatpush3.msra.mxu1 %v7003_v44 }
0x1883   :  { %4094 = vmatprep.subr.mxu1 %v7884_v58 }
0x1884   :  { %4095 = vmatpush3.msra.mxu1 %v7007_v46  ;;  %v8305_v46 = vld [vmem:[#allocation78_spill] sm:$0xff] }
0x1885   :  { %4096 = vmatprep.subr.mxu1 %v7884_v58 }
0x1886   :  { %4097 = vmatpush3.msra.mxu1 %v7011_v47 }
0x1887   :  { %4098 = vmatprep.subr.mxu1 %v7884_v58 }
0x1888   :  { %4099 = vmatpush3.msra.mxu1 %v7013_v48 }
0x1889   :  { %4100 = vmatprep.subr.mxu1 %v7884_v58 }
0x188a   :  { %4101 = vmatpush3.msra.mxu1 %v7017_v43 }
0x188b   :  { %4102 = vmatprep.subr.mxu1 %v7884_v58 }
0x188c   :  { %4103 = vmatpush3.msra.mxu1 %v7021_v59 }
0x188d   :  { %4104 = vmatprep.subr.mxu1 %v7884_v58 }
0x188e   :  { %4105 = vmatpush3.msra.mxu1 %v7025_v19 }
0x188f   :  { %4106 = vmatprep.subr.mxu1 %v7884_v58 }
0x1890   :  { %4107 = vmatpush3.msra.mxu1 %v7029_v50 }
0x1891   :  { %4108 = vmatprep.subr.mxu1 %v7884_v58 }
0x1892   :  { %4109 = vmatpush3.msra.mxu1 %v7033_v24 }
0x1893   :  { %4110 = vmatprep.subr.mxu1 %v7884_v58 }
0x1894   :  { %4111 = vmatpush3.msra.mxu1 %v7037_v30 }
0x1895   :  { %4112 = vmatprep.subr.mxu1 %v7884_v58 }
0x1896   :  { %4113 = vmatpush3.msra.mxu1 %v7041_v38 }
0x18e8   :  { %v2308_v8 = vpop.xlane.xlu1 %2307 }
0x18e9   :  { %v2309_v39 = vcvt.f32.s32 %v2308_v8 }
0x18eb   :  { %v2312_v41 = vadd.s32 %v2311_v33, %v2309_v39 }
0x18ed   :  { %v2313_v23 = vcvt.s32.f32 %v2312_v41  ;;  %vm2340_vm0 = vcmp.eq.s32.totalorder %v8234_v7, %v2312_v41 }
0x18ee   :  { %v2341_v53 = vsel %vm2340_vm0, -1e+30, %v7162_v2 }
0x18ef   :  { %v2322_v44 = vmul.f32 %v8236_v56, %v2313_v23  ;;  %v7221_v47 = vadd.f32 %v8305_v46, %v2341_v53 }
0x18f1   :  { %v2323_v48 = vsel %vm975_vm2, %v2322_v44, 0.0  ;;  %2744 = vmax.xlane.f32.xlu1 %v7221_v47 }
0x18f2   :  { %v2324_v58 = vrot.slane %v2323_v48, 4 }
0x18f4   :  { %v2325_v43 = vadd.f32 %v2324_v58, %v2323_v48 }
0x18f6   :  { %v2326_v59 = vrot.slane %v2325_v43, 2 }
0x18f8   :  { %v2327_v19 = vadd.f32 %v2326_v59, %v2325_v43 }
0x18fa   :  { %v2328_v50 = vrot.slane %v2327_v19, 1 }
0x18fc   :  { %v2329_v24 = vadd.f32 %v2328_v50, %v2327_v19 }
0x18fe   :  { %2330 = vst.msk [vmem:[%s7329_s9 + $0x4] sm:$0x1] %vm521_vm13, %v2329_v24 }
0x1937   :  { %v3437_v30 = vpop.f32.mrf.mxu1  ;;  %v3508_v9 = vpop.f32.mrf.mxu0 }
0x1938   :  { %v3513_v38 = vadd.f32 %v3437_v30, %v8238_v54  ;;  %v3527_v61 = vadd.f32 %v7074_v13, %v3508_v9 }
0x1939   :  { %v3439_v16 = vpop.f32.mrf.mxu1  ;;  %v3510_v1 = vpop.f32.mrf.mxu0 }
0x193a   :  { %v3699_v2 = vmul.f32 -1.442695, %v3513_v38  ;;  %v3514_v32 = vadd.f32 %v3439_v16, %v8239_v18  ;;  %v3528_v45 = vadd.f32 %v7068_v5, %v3510_v1  ;;  %v8306_v38 = vld [vmem:[#allocation54_spill] sm:$0xff] }
0x193c   :  { %4197 = vpow2.f32 %v3699_v2  ;;  %v3700_v57 = vmul.f32 -1.442695, %v3514_v32  ;;  %v8307_v2 = vld [vmem:[#allocation50_spill] sm:$0xff] }
0x193d   :  { %v966_v16 = vsub.f32 %v8307_v2, %v8306_v38 }
0x193e   :  { %4199 = vpow2.f32 %v3700_v57  ;;  %v1865_v57 = vsub.f32 %v7055_v3, %v7110_v14 }
0x193f   :  { %v967_v32 = vmul.f32 1.442695, %v966_v16 }
0x1949   :  { %v4198_v12 = vpop.eup %4197 }
0x194a   :  { %v3521_v42 = vadd.f32 1.0, %v4198_v12 }
0x194b   :  { %v4200_v62 = vpop.eup %4199 }
0x194c   :  { %4201 = vrcp.f32 %v3521_v42  ;;  %v3522_v22 = vadd.f32 1.0, %v4200_v62  ;;  %v1866_v42 = vmul.f32 1.442695, %v1865_v57 }
0x194e   :  { %4203 = vrcp.f32 %v3522_v22 }
0x1959   :  { %v4202_v52 = vpop.eup %4201 }
0x195a   :  { %v3529_v54 = vmul.f32 %v4202_v52, %v3528_v45 }
0x195b   :  { %v4204_v15 = vpop.eup %4203 }
0x195c   :  { %v3530_v11 = vadd.f32 %v3529_v54, %v3527_v61  ;;  %v3532_v18 = vsub.f32 1.0, %v4204_v15  ;;  %v3534_v31 = vmul.f32 %v4204_v15, %v7078_v0 }
0x195e   :  { %4205 = vtanh.f32 %v3530_v11 }
0x195f   :  { %4207 = vpow2.f32 %v967_v32 }
0x1960   :  { %4209 = vpow2.f32 %v1866_v42 }
0x196b   :  { %v4206_v21 = vpop.eup %4205 }
0x196c   :  { %v3533_v26 = vmul.f32 %v4206_v21, %v3532_v18  ;;  %v4208_v18 = vpop.eup %4207 }
0x196e   :  { %v3535_v28 = vadd.f32 %v3534_v31, %v3533_v26  ;;  %v4210_v31 = vpop.eup %4209 }
0x1970   :  { %4115 = vmatmul.mubr.f32.vlgmr.msra.gmra.mxu1 %v3535_v28 }
0x197a   :  { %v2745_v60 = vpop.xlane.xlu1 %2744 }
0x197b   :  { %vm2746_vm1 = vcmp.eq.f32.partialorder %v7221_v47, %v2745_v60  ;;  %v2763_v9 = vsub.f32 %v7221_v47, %v2745_v60 }
0x197c   :  { %v2747_v5 = vsel %vm2746_vm1, %v8234_v7, 128 }
0x197d   :  { %v2749_v4 = vshra.s32 %v2747_v5, 16  ;;  %v2748_v13 = vand.u32 65535, %v2747_v5  ;;  %v2764_v45 = vmul.f32 1.442695, %v2763_v9 }
0x197f   :  { %v2751_v34 = vcvt.s32.f32 %v2749_v4  ;;  %v2750_v51 = vcvt.s32.f32 %v2748_v13  ;;  %4211 = vpow2.f32 %v2764_v45  ;;  %v8308_v4 = vld [vmem:[#allocation47_spill] sm:$0xff] }
0x1981   :  { %2752 = vmin.xlane.f32.xlu0 %v2751_v34 }
0x198c   :  { %v4212_v60 = vpop.eup %4211 }
0x1a0a   :  { %v2753_v6 = vpop.xlane.xlu0 %2752 }
0x1a0b   :  { %vm2754_vm3 = vcmp.eq.f32.partialorder %v2751_v34, %v2753_v6  ;;  %v2759_v17 = vcvt.f32.s32 %v2753_v6  ;;  %v8309_v34 = vld [vmem:[#allocation68_spill] sm:$0xff] }
0x1a0c   :  { %v2755_v55 = vsel %vm2754_vm3, %v2750_v51, inf  ;;  %v1416_v13 = vsub.f32 %v8309_v34, %v8308_v4  ;;  %v2314_v51 = vsub.f32 %v7167_v36, %v7177_v37 }
0x1a0d   :  { %2756 = vmin.xlane.f32.xlu1 %v2755_v55  ;;  %v2760_v10 = vshll.u32 %v2759_v17, 16 }
0x1a0e   :  { %v1417_v6 = vmul.f32 1.442695, %v1416_v13 }
0x1a10   :  { %4213 = vpow2.f32 %v1417_v6 }
0x1a1d   :  { %v4214_v37 = vpop.eup %4213 }
0x1a30   :  { %v3618_v20 = vpop.f32.mrf.mxu1 }
0x1a31   :  { %v3619_v61 = vadd.f32 %v7154_v40, %v3618_v20  ;;  %v2315_v20 = vmul.f32 1.442695, %v2314_v51 }
0x1a32   :  { %v4116_v25 = vpop.f32.mrf.mxu1 }
0x1a33   :  { %4215 = vpow2.f32 %v2315_v20 }
0x1a96   :  { %v2757_v0 = vpop.xlane.xlu1 %2756 }
0x1a97   :  { %v2758_v63 = vcvt.f32.s32 %v2757_v0 }
0x1a99   :  { %v2761_v27 = vadd.s32 %v2760_v10, %v2758_v63 }
0x1a9b   :  { %v2762_v49 = vcvt.s32.f32 %v2761_v27  ;;  %vm2789_vm4 = vcmp.eq.s32.totalorder %v8234_v7, %v2761_v27 }
0x1a9c   :  { %v2790_v35 = vsel %vm2789_vm4, -1e+30, %v2341_v53 }
0x1a9d   :  { %v2771_v8 = vmul.f32 %v8236_v56, %v2762_v49  ;;  %v7239_v33 = vadd.f32 %v7157_v29, %v2790_v35 }
0x1a9f   :  { %v2772_v39 = vsel %vm975_vm2, %v2771_v8, 0.0  ;;  %3193 = vmax.xlane.f32.xlu0 %v7239_v33 }
0x1aa0   :  { %v2773_v41 = vrot.slane %v2772_v39, 4 }
0x1aa2   :  { %v2774_v23 = vadd.f32 %v2773_v41, %v2772_v39 }
0x1aa4   :  { %v2775_v44 = vrot.slane %v2774_v23, 2 }
0x1aa6   :  { %v2776_v46 = vadd.f32 %v2775_v44, %v2774_v23 }
0x1aa8   :  { %v2777_v48 = vrot.slane %v2776_v46, 1 }
0x1aaa   :  { %v2778_v58 = vadd.f32 %v2777_v48, %v2776_v46 }
0x1aac   :  { %2779 = vst.msk [vmem:[%s7329_s9 + $0x5] sm:$0x1] %vm521_vm13, %v2778_v58 }
0x1b28   :  { %v3194_v53 = vpop.xlane.xlu0 %3193 }
0x1b29   :  { %vm3195_vm5 = vcmp.eq.f32.partialorder %v7239_v33, %v3194_v53  ;;  %v3212_v55 = vsub.f32 %v7239_v33, %v3194_v53  ;;  %v4216_v33 = vpop.eup %4215 }
0x1b2a   :  { %v3196_v29 = vsel %vm3195_vm5, %v8234_v7, 128 }
0x1b2b   :  { %v3198_v43 = vshra.s32 %v3196_v29, 16  ;;  %v3197_v19 = vand.u32 65535, %v3196_v29  ;;  %v3213_v25 = vmul.f32 1.442695, %v3212_v55 }
0x1b2d   :  { %v3200_v59 = vcvt.s32.f32 %v3198_v43  ;;  %v3199_v24 = vcvt.s32.f32 %v3197_v19  ;;  %4217 = vpow2.f32 %v3213_v25 }
0x1b2f   :  { %3201 = vmin.xlane.f32.xlu1 %v3200_v59 }
0x1b3a   :  { %v4218_v39 = vpop.eup %4217 }
0x1bb8   :  { %v3202_v50 = vpop.xlane.xlu1 %3201 }
0x1bb9   :  { %vm3203_vm6 = vcmp.eq.f32.partialorder %v3200_v59, %v3202_v50  ;;  %v3208_v12 = vcvt.f32.s32 %v3202_v50 }
0x1bba   :  { %v3204_v30 = vsel %vm3203_vm6, %v3199_v24, inf }
0x1bbb   :  { %3205 = vmin.xlane.f32.xlu0 %v3204_v30  ;;  %v3209_v1 = vshll.u32 %v3208_v12, 16 }
0x1c44   :  { %v3206_v62 = vpop.xlane.xlu0 %3205 }
0x1c45   :  { %v3207_v22 = vcvt.f32.s32 %v3206_v62 }
0x1c47   :  { %v3210_v52 = vadd.s32 %v3209_v1, %v3207_v22 }
0x1c49   :  { %v3211_v54 = vcvt.s32.f32 %v3210_v52  ;;  %vm3238_vm7 = vcmp.eq.s32.totalorder %v8234_v7, %v3210_v52 }
0x1c4a   :  { %v3239_v11 = vsel %vm3238_vm7, -1e+30, %v2790_v35 }
0x1c4b   :  { %v3220_v3 = vmul.f32 %v8236_v56, %v3211_v54  ;;  %v3622_v14 = vadd.f32 %v3619_v61, %v3239_v11 }
0x1c4d   :  { %v3221_v15 = vsel %vm975_vm2, %v3220_v3, 0.0  ;;  %3623 = vmax.xlane.f32.xlu1 %v3622_v14 }
0x1c4e   :  { %v3222_v47 = vrot.slane %v3221_v15, 4 }
0x1c50   :  { %v3223_v21 = vadd.f32 %v3222_v47, %v3221_v15 }
0x1c51   :  { %969 = vadd.xlane.f32.xlu1 %v4208_v18 }
0x1c52   :  { %v3224_v26 = vrot.slane %v3223_v21, 2 }
0x1c54   :  { %v3225_v28 = vadd.f32 %v3224_v26, %v3223_v21 }
0x1c55   :  { %1868 = vadd.xlane.f32.xlu1 %v4210_v31 }
0x1c56   :  { %v3226_v40 = vrot.slane %v3225_v28, 1 }
0x1c58   :  { %v3227_v5 = vadd.f32 %v3226_v40, %v3225_v28 }
0x1c59   :  { %2766 = vadd.xlane.f32.xlu1 %v4212_v60 }
0x1c5a   :  { %3228 = vst.msk [vmem:[%s7329_s9 + $0x6] sm:$0x1] %vm521_vm13, %v3227_v5 }
0x1cd6   :  { %v3624_v17 = vpop.xlane.xlu1 %3623 }
0x1cd7   :  { %vm3625_vm8 = vcmp.eq.f32.partialorder %v3622_v14, %v3624_v17  ;;  %v3642_v0 = vsub.f32 %v3622_v14, %v3624_v17 }
0x1cd8   :  { %v3626_v10 = vsel %vm3625_vm8, %v8234_v7, 128 }
0x1cd9   :  { %v3643_v63 = vmul.f32 1.442695, %v3642_v0  ;;  %v3628_v27 = vshra.s32 %v3626_v10, 16  ;;  %v3627_v47 = vand.u32 65535, %v3626_v10 }
0x1cda   :  { %v970_v49 = vpop.xlane.xlu1 %969 }
0x1cdb   :  { %4219 = vpow2.f32 %v3643_v63  ;;  %v3630_v35 = vcvt.s32.f32 %v3628_v27  ;;  %v3629_v21 = vcvt.s32.f32 %v3627_v47 }
0x1cdc   :  { %4221 = vlog2.f32 %v970_v49 }
0x1cdd   :  { %3631 = vmin.xlane.f32.xlu0 %v3630_v35 }
0x1cde   :  { %v1869_v36 = vpop.xlane.xlu1 %1868 }
0x1cdf   :  { %4223 = vlog2.f32 %v1869_v36 }
0x1ce1   :  { %1419 = vadd.xlane.f32.xlu0 %v4214_v37 }
0x1ce2   :  { %v2767_v8 = vpop.xlane.xlu1 %2766 }
0x1ce3   :  { %4225 = vlog2.f32 %v2767_v8 }
0x1ce5   :  { %2317 = vadd.xlane.f32.xlu0 %v4216_v33 }
0x1ce8   :  { %v4220_v41 = vpop.eup %4219 }
0x1ce9   :  { %v4222_v23 = vpop.eup %4221  ;;  %3645 = vadd.xlane.f32.xlu1 %v4220_v41  ;;  %3215 = vadd.xlane.f32.xlu0 %v4218_v39 }
0x1cea   :  { %v972_v7 = vmul.f32 0.6931472, %v4222_v23 }
0x1cec   :  { %v4224_v44 = vpop.eup %4223  ;;  %v973_v46 = vsub.f32 0.0, %v972_v7 }
0x1ced   :  { %v1871_v48 = vmul.f32 0.6931472, %v4224_v44 }
0x1cee   :  { %v984_v58 = vmul.f32 %v8236_v56, %v973_v46 }
0x1cef   :  { %v1872_v53 = vsub.f32 0.0, %v1871_v48 }
0x1cf0   :  { %v4226_v29 = vpop.eup %4225  ;;  %v985_v43 = vsel %vm975_vm2, %v984_v58, 0.0 }
0x1cf1   :  { %v986_v59 = vrot.slane %v985_v43, 4  ;;  %v1882_v19 = vmul.f32 %v8236_v56, %v1872_v53  ;;  %v2769_v50 = vmul.f32 0.6931472, %v4226_v29 }
0x1cf3   :  { %v987_v24 = vadd.f32 %v986_v59, %v985_v43  ;;  %v1883_v30 = vsel %vm975_vm2, %v1882_v19, 0.0  ;;  %v2770_v38 = vsub.f32 0.0, %v2769_v50 }
0x1cf4   :  { %v1884_v2 = vrot.slane %v1883_v30, 4 }
0x1cf5   :  { %v988_v16 = vrot.slane %v987_v24, 2  ;;  %v2780_v32 = vmul.f32 %v8236_v56, %v2770_v38 }
0x1cf6   :  { %v1885_v57 = vadd.f32 %v1884_v2, %v1883_v30 }
0x1cf7   :  { %v989_v12 = vadd.f32 %v988_v16, %v987_v24  ;;  %v2781_v42 = vsel %vm975_vm2, %v2780_v32, 0.0 }
0x1cf8   :  { %v1886_v9 = vrot.slane %v1885_v57, 2  ;;  %v2782_v62 = vrot.slane %v2781_v42, 4 }
0x1cf9   :  { %v990_v1 = vrot.slane %v989_v12, 1 }
0x1cfa   :  { %v1887_v22 = vadd.f32 %v1886_v9, %v1885_v57  ;;  %v2783_v45 = vadd.f32 %v2782_v62, %v2781_v42 }
0x1cfb   :  { %v991_v52 = vadd.f32 %v990_v1, %v989_v12 }
0x1cfc   :  { %v1888_v61 = vrot.slane %v1887_v22, 1  ;;  %v2784_v54 = vrot.slane %v2783_v45, 2 }
0x1cfd   :  { %992 = vst.msk [vmem:[%s7330_s10 + $0x1] sm:$0x1] %vm521_vm13, %v991_v52 }
0x1cfe   :  { %v1889_v11 = vadd.f32 %v1888_v61, %v1887_v22  ;;  %v2785_v3 = vadd.f32 %v2784_v54, %v2783_v45 }
0x1d00   :  { %1890 = vst.msk [vmem:[%s7330_s10 + $0x3] sm:$0x1] %vm521_vm13, %v1889_v11  ;;  %v2786_v14 = vrot.slane %v2785_v3, 1 }
0x1d02   :  { %v2787_v15 = vadd.f32 %v2786_v14, %v2785_v3 }
0x1d04   :  { %2788 = vst.msk [vmem:[%s7330_s10 + $0x5] sm:$0x1] %vm521_vm13, %v2787_v15 }
0x1d66   :  { %v7286_v18 = vpop.xlane.xlu0 %3631 }
0x1d67   :  { %vm3633_vm9 = vcmp.eq.f32.partialorder %v3630_v35, %v7286_v18  ;;  %v3638_v62 = vcvt.f32.s32 %v7286_v18 }
0x1d68   :  { %v3634_v26 = vsel %vm3633_vm9, %v3629_v21, inf }
0x1d69   :  { %3635 = vmin.xlane.f32.xlu0 %v3634_v26  ;;  %v3639_v22 = vshll.u32 %v3638_v62, 16 }
0x1d6a   :  { %v1420_v31 = vpop.xlane.xlu0 %1419 }
0x1d6b   :  { %4227 = vlog2.f32 %v1420_v31 }
0x1d6e   :  { %v2318_v28 = vpop.xlane.xlu0 %2317 }
0x1d6f   :  { %4229 = vlog2.f32 %v2318_v28 }
0x1d72   :  { %v3216_v40 = vpop.xlane.xlu0 %3215  ;;  %v3646_v60 = vpop.xlane.xlu1 %3645 }
0x1d73   :  { %4231 = vlog2.f32 %v3216_v40 }
0x1d74   :  { %4233 = vlog2.f32 %v3646_v60 }
0x1d78   :  { %v4228_v5 = vpop.eup %4227 }
0x1d79   :  { %v1422_v4 = vmul.f32 0.6931472, %v4228_v5 }
0x1d7b   :  { %v1423_v34 = vsub.f32 0.0, %v1422_v4 }
0x1d7c   :  { %v4230_v13 = vpop.eup %4229 }
0x1d7d   :  { %v1433_v6 = vmul.f32 %v8236_v56, %v1423_v34  ;;  %v2320_v51 = vmul.f32 0.6931472, %v4230_v13 }
0x1d7f   :  { %v1434_v55 = vsel %vm975_vm2, %v1433_v6, 0.0  ;;  %v2321_v20 = vsub.f32 0.0, %v2320_v51 }
0x1d80   :  { %v4232_v25 = vpop.eup %4231  ;;  %v1435_v17 = vrot.slane %v1434_v55, 4 }
0x1d81   :  { %v4234_v0 = vpop.eup %4233  ;;  %v2331_v10 = vmul.f32 %v8236_v56, %v2321_v20  ;;  %v3218_v63 = vmul.f32 0.6931472, %v4232_v25 }
0x1d82   :  { %v1436_v27 = vadd.f32 %v1435_v17, %v1434_v55  ;;  %v3648_v49 = vmul.f32 0.6931472, %v4234_v0 }
0x1d83   :  { %v2332_v35 = vsel %vm975_vm2, %v2331_v10, 0.0  ;;  %v3219_v36 = vsub.f32 0.0, %v3218_v63 }
0x1d84   :  { %v1437_v37 = vrot.slane %v1436_v27, 2  ;;  %v2333_v8 = vrot.slane %v2332_v35, 4  ;;  %v3649_v33 = vsub.f32 0.0, %v3648_v49 }
0x1d85   :  { %v3229_v39 = vmul.f32 %v8236_v56, %v3219_v36 }
0x1d86   :  { %v1438_v41 = vadd.f32 %v1437_v37, %v1436_v27  ;;  %v2334_v23 = vadd.f32 %v2333_v8, %v2332_v35  ;;  %v3659_v7 = vmul.f32 %v8236_v56, %v3649_v33 }
0x1d87   :  { %v3230_v44 = vsel %vm975_vm2, %v3229_v39, 0.0 }
0x1d88   :  { %v1439_v46 = vrot.slane %v1438_v41, 1  ;;  %v2335_v48 = vrot.slane %v2334_v23, 2  ;;  %v3231_v58 = vrot.slane %v3230_v44, 4  ;;  %v3660_v53 = vsel %vm975_vm2, %v3659_v7, 0.0 }
0x1d89   :  { %v3661_v29 = vrot.slane %v3660_v53, 4 }
0x1d8a   :  { %v1440_v43 = vadd.f32 %v1439_v46, %v1438_v41  ;;  %v2336_v59 = vadd.f32 %v2335_v48, %v2334_v23  ;;  %v3232_v19 = vadd.f32 %v3231_v58, %v3230_v44 }
0x1d8b   :  { %v3662_v50 = vadd.f32 %v3661_v29, %v3660_v53 }
0x1d8c   :  { %1441 = vst.msk [vmem:[%s7330_s10 + $0x2] sm:$0x1] %vm521_vm13, %v1440_v43  ;;  %v2337_v24 = vrot.slane %v2336_v59, 1  ;;  %v3233_v30 = vrot.slane %v3232_v19, 2 }
0x1d8d   :  { %v3663_v38 = vrot.slane %v3662_v50, 2 }
0x1d8e   :  { %v2338_v2 = vadd.f32 %v2337_v24, %v2336_v59  ;;  %v3234_v16 = vadd.f32 %v3233_v30, %v3232_v19 }
0x1d8f   :  { %v3664_v32 = vadd.f32 %v3663_v38, %v3662_v50 }
0x1d90   :  { %2339 = vst.msk [vmem:[%s7330_s10 + $0x4] sm:$0x1] %vm521_vm13, %v2338_v2  ;;  %v3235_v57 = vrot.slane %v3234_v16, 1 }
0x1d91   :  { %v3665_v12 = vrot.slane %v3664_v32, 1 }
0x1d92   :  { %v3236_v42 = vadd.f32 %v3235_v57, %v3234_v16 }
0x1d93   :  { %v3666_v9 = vadd.f32 %v3665_v12, %v3664_v32 }
0x1d94   :  { %3237 = vst.msk [vmem:[%s7330_s10 + $0x6] sm:$0x1] %vm521_vm13, %v3236_v42 }
0x1d95   :  { %3667 = vst.msk [vmem:[%s7330_s10 + $0x7] sm:$0x1] %vm521_vm13, %v3666_v9 }
0x1df2   :  { %v3636_v1 = vpop.xlane.xlu0 %3635 }
0x1df3   :  { %v3637_v45 = vcvt.f32.s32 %v3636_v1 }
0x1df5   :  { %v3640_v52 = vadd.s32 %v3639_v22, %v3637_v45 }
0x1df7   :  { %v3641_v61 = vcvt.s32.f32 %v3640_v52 }
0x1df9   :  { %v3650_v54 = vmul.f32 %v8236_v56, %v3641_v61 }
0x1dfb   :  { %v3651_v11 = vsel %vm975_vm2, %v3650_v54, 0.0 }
0x1dfc   :  { %v3652_v3 = vrot.slane %v3651_v11, 4 }
0x1dfe   :  { %v3653_v14 = vadd.f32 %v3652_v3, %v3651_v11 }
0x1e00   :  { %v3654_v15 = vrot.slane %v3653_v14, 2 }
0x1e02   :  { %v3655_v47 = vadd.f32 %v3654_v15, %v3653_v14 }
0x1e04   :  { %v3656_v21 = vrot.slane %v3655_v47, 1 }
0x1e06   :  { %v3657_v26 = vadd.f32 %v3656_v21, %v3655_v47 }
0x1e08   :  { %3658 = vst.msk [vmem:[%s7329_s9 + $0x7] sm:$0x1] %vm521_vm13, %v3657_v26 }
0x1e09   :  { %3676 = vsyncpa [#allocation3], 1 }
0x1e0a   :  { %3677 = vsyncpa [#allocation5], 1 }
0x1e0b   :  { %3678 = vsyncpa [#allocation8], 1 }

</bundles_post_ra>
